<compile_context>
chip_gen: v5e
topology: v5e:2x2
jax: 0.10.0
libtpu: 0.0.40
codegen_flags: <defaults>
</compile_context>

<pallas_src>
import jax
import jax.numpy as jnp
import numpy as np
from jax.experimental import pallas as pl
from jax.experimental.pallas import tpu as pltpu


def _round_up(x, m):
    return ((x + m - 1) // m) * m


# ----------------------------------------------------------------------------
# Fused kernel: conv1 (3x3, pad 1) + ReLU  ->  deconv-as-3x3-conv + ReLU.
# One batch element per grid step; everything stays resident in VMEM.
# ----------------------------------------------------------------------------
def _make_decoder_kernel(H, W, Cin, Cmid_p, Np):
    HW = H * W

    def kernel(xpad_ref, w1_ref, b1_ref, w2_ref, b2_ref, o_ref, ypad_ref):
        # ---- Conv2d 3x3 pad=1 + ReLU: 9 accumulating MXU matmuls (K = Cin),
        #      reading shifted windows of the padded-x block directly.      ----
        acc1 = jnp.broadcast_to(b1_ref[...], (HW, Cmid_p)).astype(jnp.float32)
        for t in range(9):
            u, v = divmod(t, 3)
            xt = xpad_ref[0, u:u + H, v:v + W, :].reshape(HW, Cin)
            acc1 = acc1 + jnp.dot(xt, w1_ref[t],
                                  preferred_element_type=jnp.float32)
        y = jnp.maximum(acc1, 0.0).astype(jnp.bfloat16)   # single downcast

        # ---- bf16 zero-padded y: zero only the 1-px border (4 thin stores);
        #      the interior is fully overwritten every grid step.           ----
        ypad_ref[0:1, :, :] = jnp.zeros((1, W + 2, Cmid_p), jnp.bfloat16)
        ypad_ref[H + 1:H + 2, :, :] = jnp.zeros((1, W + 2, Cmid_p), jnp.bfloat16)
        ypad_ref[:, 0:1, :] = jnp.zeros((H + 2, 1, Cmid_p), jnp.bfloat16)
        ypad_ref[:, W + 1:W + 2, :] = jnp.zeros((H + 2, 1, Cmid_p), jnp.bfloat16)
        ypad_ref[1:H + 1, 1:W + 1, :] = y.reshape(H, W, Cmid_p)

        # ---- ConvTranspose2d(4, s=2, p=1) + ReLU in pixel-shuffle form:
        #      a 3x3 conv producing 2*2*Cout channels, again as 9 accumulating
        #      per-tap MXU matmuls (K = Cmid_p) - no (HW, 9*Cmid) im2col.    ----
        acc2 = jnp.broadcast_to(b2_ref[...], (HW, Np)).astype(jnp.float32)
        for t in range(9):
            u, v = divmod(t, 3)
            yt = ypad_ref[u:u + H, v:v + W, :].reshape(HW, Cmid_p)
            acc2 = acc2 + jnp.dot(yt, w2_ref[t],
                                  preferred_element_type=jnp.float32)
        o_ref[0] = jnp.maximum(acc2, 0.0).astype(o_ref.dtype)  # bf16, lane-dense

    return kernel


# ----------------------------------------------------------------------------
# Wrapper: pads x once (no 9x slab), builds pixel-shuffle deconv weights with
# 128-aligned channel padding, runs the fused kernel, un-shuffles to NCHW.
# ----------------------------------------------------------------------------
def decoder_block_forward(x_nchw, params):
    """DecoderBlock(is_deconv=True).forward, NCHW in / NCHW out."""
    w1, b1 = params["w1"], params["b1"]        # (3,3,Cin,Cmid) HWIO, (Cmid,)
    w2, b2 = params["w2"], params["b2"]        # (Cmid,Cout,4,4) PyTorch, (Cout,)
    N, Cin, H, W = x_nchw.shape
    Cmid = w1.shape[-1]
    Cout = w2.shape[1]
    HW = H * W

    # Pad matmul N-dims / output lane dim to multiples of 128 (lane-dense).
    Cmid_p = _round_up(Cmid, 128)
    Np = _round_up(4 * Cout, 128)

    # Activation: one zero-padded NHWC bf16 slab (1x HBM bytes, not 9x).
    x = jnp.transpose(x_nchw, (0, 2, 3, 1))                    # NHWC
    xpad = jnp.pad(x, ((0, 0), (1, 1), (1, 1), (0, 0))).astype(jnp.bfloat16)

    # Conv1 weights: HWIO (3,3,Cin,Cmid) -> tap-major (9, Cin, Cmid_p) bf16.
    w1m = jnp.pad(w1.reshape(9, Cin, Cmid),
                  ((0, 0), (0, 0), (0, Cmid_p - Cmid))).astype(jnp.bfloat16)
    b1m = jnp.pad(b1, (0, Cmid_p - Cmid)).reshape(1, Cmid_p).astype(jnp.float32)

    # ConvTranspose2d(4, stride=2, pad=1) in pixel-shuffle form: a 3x3 / pad-1
    # conv on y producing 2*2*Cout channels; group g = 2*ph + pw holds output
    # sub-pixel (2r+ph, 2c+pw). Zero-padded channels of y hit zero weight rows.
    w_flip = jnp.transpose(w2[:, :, ::-1, ::-1], (2, 3, 0, 1))  # (4,4,Cmid,Cout)
    w2big = jnp.zeros((3, 3, Cmid, 2, 2, Cout), w2.dtype)
    for kh in range(4):
        for kw in range(4):
            a, ph = divmod(kh, 2)
            c, pw = divmod(kw, 2)
            w2big = w2big.at[a + ph, c + pw, :, ph, pw, :].set(w_flip[kh, kw])
    w2m = jnp.pad(w2big.reshape(9, Cmid, 4 * Cout),
                  ((0, 0), (0, Cmid_p - Cmid), (0, Np - 4 * Cout))
                  ).astype(jnp.bfloat16)
    b2m = jnp.pad(jnp.tile(b2, 4),
                  (0, Np - 4 * Cout)).reshape(1, Np).astype(jnp.float32)

    kernel = _make_decoder_kernel(H, W, Cin, Cmid_p, Np)
    z = pl.pallas_call(
        kernel,
        out_shape=jax.ShapeDtypeStruct((N, HW, Np), jnp.bfloat16),
        grid_spec=pltpu.PrefetchScalarGridSpec(
            num_scalar_prefetch=0,
            grid=(N,),
            in_specs=[
                pl.BlockSpec((1, H + 2, W + 2, Cin), lambda n: (n, 0, 0, 0)),  # xpad
                pl.BlockSpec((9, Cin, Cmid_p), lambda n: (0, 0, 0)),           # w1
                pl.BlockSpec((1, Cmid_p), lambda n: (0, 0)),                   # b1
                pl.BlockSpec((9, Cmid_p, Np), lambda n: (0, 0, 0)),            # w2
                pl.BlockSpec((1, Np), lambda n: (0, 0)),                       # b2
            ],
            out_specs=pl.BlockSpec((1, HW, Np), lambda n: (n, 0, 0)),
            scratch_shapes=[
                pltpu.VMEM((H + 2, W + 2, Cmid_p), jnp.bfloat16),  # padded y
            ],
        ),
        compiler_params=pltpu.CompilerParams(
            dimension_semantics=("parallel",)),
    )(xpad, w1m, b1m, w2m, b2m)

    # Drop channel padding, pixel-shuffle + NHWC->NCHW in a single transpose.
    z = z[..., :4 * Cout].reshape(N, H, W, 2, 2, Cout)
    return jnp.transpose(z, (0, 5, 1, 3, 2, 4)).reshape(N, Cout, 2 * H, 2 * W)


# ----------------------------------------------------------------------------
# Pure-JAX reference (lax convs) for a correctness check.
# ----------------------------------------------------------------------------
def decoder_block_reference(x_nchw, params):
    dn = ("NHWC", "HWIO", "NHWC")
    x = jnp.transpose(x_nchw, (0, 2, 3, 1))
    y = jax.lax.conv_general_dilated(
        x, params["w1"], (1, 1), ((1, 1), (1, 1)), dimension_numbers=dn,
        precision=jax.lax.Precision.HIGHEST)
    y = jnp.maximum(y + params["b1"], 0.0)
    w2_hwio = jnp.transpose(params["w2"][:, :, ::-1, ::-1], (2, 3, 0, 1))
    y = jax.lax.conv_general_dilated(
        y, w2_hwio, (1, 1), ((2, 2), (2, 2)), lhs_dilation=(2, 2),
        dimension_numbers=dn, precision=jax.lax.Precision.HIGHEST)
    y = jnp.maximum(y + params["b2"], 0.0)
    return jnp.transpose(y, (0, 3, 1, 2))


# ----------------------------------------------------------------------------
if __name__ == "__main__":
    N, Cin, H, W = 2, 4, 16, 16
    Cmid, Cout = 8, 4

    key = jax.random.PRNGKey(0)
    k_x, k_w1, k_b1, k_w2, k_b2 = jax.random.split(key, 5)

    x = jax.random.normal(k_x, (N, Cin, H, W), jnp.float32)  # NCHW like PyTorch

    params = {
        # Conv2d(Cin, Cmid, 3, padding=1): stored as HWIO (3,3,Cin,Cmid)
        "w1": 0.1 * jax.random.normal(k_w1, (3, 3, Cin, Cmid), jnp.float32),
        "b1": 0.1 * jax.random.normal(k_b1, (Cmid,), jnp.float32),
        # ConvTranspose2d(Cmid, Cout, 4, stride=2, padding=1): PyTorch (Cin,Cout,4,4)
        "w2": 0.1 * jax.random.normal(k_w2, (Cmid, Cout, 4, 4), jnp.float32),
        "b2": 0.1 * jax.random.normal(k_b2, (Cout,), jnp.float32),
    }

    out = jax.block_until_ready(jax.jit(decoder_block_forward)(x, params))
    assert out.shape == (N, Cout, 2 * H, 2 * W), out.shape

    ref = jax.block_until_ready(decoder_block_reference(x, params))
    out_f = np.asarray(jnp.asarray(out, jnp.float32))
    ref_f = np.asarray(ref)
    max_err = float(np.max(np.abs(out_f - ref_f)))
    # Kernel uses bf16 MXU inputs / bf16 output with f32 accumulation;
    # reference is f32 HIGHEST.
    assert np.allclose(out_f, ref_f, atol=3e-2, rtol=3e-2), max_err

    print("KERNEL_OK")
</pallas_src>

<mosaic_0001>
module attributes {stable_mosaic.version = 11 : i64} {
  func.func @kernel(%arg0: i32, %arg1: memref<1x18x18x4xbf16, #tpu.memory_space<vmem>>, %arg2: memref<9x4x128xbf16, #tpu.memory_space<vmem>>, %arg3: memref<1x128xf32, #tpu.memory_space<vmem>>, %arg4: memref<9x128x128xbf16, #tpu.memory_space<vmem>>, %arg5: memref<1x128xf32, #tpu.memory_space<vmem>>, %arg6: memref<1x256x128xbf16, #tpu.memory_space<vmem>>, %arg7: memref<18x18x128xbf16, #tpu.memory_space<vmem>>) attributes {dimension_semantics = [#tpu.dimension_semantics<parallel>], iteration_bounds = array<i64: 2>, scalar_prefetch = 0 : i64, scratch_operands = 1 : i64, tpu.core_type = #tpu.core_type<tc>, window_params = [{transform_indices = @transform_0, window_bounds = array<i64: 1, 18, 18, 4>}, {pipeline_mode = #tpu.pipeline_mode<synchronous>, transform_indices = @transform_1, window_bounds = array<i64: 9, 4, 128>}, {pipeline_mode = #tpu.pipeline_mode<synchronous>, transform_indices = @transform_2, window_bounds = array<i64: 1, 128>}, {pipeline_mode = #tpu.pipeline_mode<synchronous>, transform_indices = @transform_3, window_bounds = array<i64: 9, 128, 128>}, {pipeline_mode = #tpu.pipeline_mode<synchronous>, transform_indices = @transform_4, window_bounds = array<i64: 1, 128>}, {transform_indices = @transform_5, window_bounds = array<i64: 1, 256, 128>}]} {
    %c0 = arith.constant 0 : index
    %c0_0 = arith.constant 0 : index
    %0 = vector.load %arg3[%c0, %c0_0] : memref<1x128xf32, #tpu.memory_space<vmem>>, vector<1x128xf32>
    %1 = vector.shape_cast %0 : vector<1x128xf32> to vector<1x128xf32>
    %2 = vector.broadcast %1 : vector<1x128xf32> to vector<256x128xf32>
    %c0_1 = arith.constant 0 : index
    %c0_2 = arith.constant 0 : index
    %c0_3 = arith.constant 0 : index
    %c0_4 = arith.constant 0 : index
    %3 = vector.load %arg1[%c0_1, %c0_2, %c0_3, %c0_4] : memref<1x18x18x4xbf16, #tpu.memory_space<vmem>>, vector<1x16x16x4xbf16>
    %4 = vector.shape_cast %3 : vector<1x16x16x4xbf16> to vector<16x16x4xbf16>
    %5 = vector.shape_cast %4 : vector<16x16x4xbf16> to vector<256x4xbf16>
    %c0_5 = arith.constant 0 : index
    %c0_6 = arith.constant 0 : index
    %c0_7 = arith.constant 0 : index
    %6 = vector.load %arg2[%c0_5, %c0_6, %c0_7] : memref<9x4x128xbf16, #tpu.memory_space<vmem>>, vector<1x4x128xbf16>
    %7 = vector.shape_cast %6 : vector<1x4x128xbf16> to vector<4x128xbf16>
    %cst = arith.constant dense<0.000000e+00> : vector<256x128xf32>
    %8 = tpu.matmul %5, %7, %cst {dimension_numbers = #tpu.dot_dimension_numbers<[1], [0], [0], [1], [0, 0, 1, 1], [], []>} : vector<256x4xbf16>, vector<4x128xbf16>, vector<256x128xf32> -> vector<256x128xf32>
    %9 = arith.addf %2, %8 : vector<256x128xf32>
    %c0_8 = arith.constant 0 : index
    %c0_9 = arith.constant 0 : index
    %c1 = arith.constant 1 : index
    %c0_10 = arith.constant 0 : index
    %10 = vector.load %arg1[%c0_8, %c0_9, %c1, %c0_10] : memref<1x18x18x4xbf16, #tpu.memory_space<vmem>>, vector<1x16x16x4xbf16>
    %11 = vector.shape_cast %10 : vector<1x16x16x4xbf16> to vector<16x16x4xbf16>
    %12 = vector.shape_cast %11 : vector<16x16x4xbf16> to vector<256x4xbf16>
    %c1_11 = arith.constant 1 : index
    %c0_12 = arith.constant 0 : index
    %c0_13 = arith.constant 0 : index
    %13 = vector.load %arg2[%c1_11, %c0_12, %c0_13] : memref<9x4x128xbf16, #tpu.memory_space<vmem>>, vector<1x4x128xbf16>
    %14 = vector.shape_cast %13 : vector<1x4x128xbf16> to vector<4x128xbf16>
    %cst_14 = arith.constant dense<0.000000e+00> : vector<256x128xf32>
    %15 = tpu.matmul %12, %14, %cst_14 {dimension_numbers = #tpu.dot_dimension_numbers<[1], [0], [0], [1], [0, 0, 1, 1], [], []>} : vector<256x4xbf16>, vector<4x128xbf16>, vector<256x128xf32> -> vector<256x128xf32>
    %16 = arith.addf %9, %15 : vector<256x128xf32>
    %c0_15 = arith.constant 0 : index
    %c0_16 = arith.constant 0 : index
    %c2 = arith.constant 2 : index
    %c0_17 = arith.constant 0 : index
    %17 = vector.load %arg1[%c0_15, %c0_16, %c2, %c0_17] : memref<1x18x18x4xbf16, #tpu.memory_space<vmem>>, vector<1x16x16x4xbf16>
    %18 = vector.shape_cast %17 : vector<1x16x16x4xbf16> to vector<16x16x4xbf16>
    %19 = vector.shape_cast %18 : vector<16x16x4xbf16> to vector<256x4xbf16>
    %c2_18 = arith.constant 2 : index
    %c0_19 = arith.constant 0 : index
    %c0_20 = arith.constant 0 : index
    %20 = vector.load %arg2[%c2_18, %c0_19, %c0_20] : memref<9x4x128xbf16, #tpu.memory_space<vmem>>, vector<1x4x128xbf16>
    %21 = vector.shape_cast %20 : vector<1x4x128xbf16> to vector<4x128xbf16>
    %cst_21 = arith.constant dense<0.000000e+00> : vector<256x128xf32>
    %22 = tpu.matmul %19, %21, %cst_21 {dimension_numbers = #tpu.dot_dimension_numbers<[1], [0], [0], [1], [0, 0, 1, 1], [], []>} : vector<256x4xbf16>, vector<4x128xbf16>, vector<256x128xf32> -> vector<256x128xf32>
    %23 = arith.addf %16, %22 : vector<256x128xf32>
    %c0_22 = arith.constant 0 : index
    %c1_23 = arith.constant 1 : index
    %c0_24 = arith.constant 0 : index
    %c0_25 = arith.constant 0 : index
    %24 = vector.load %arg1[%c0_22, %c1_23, %c0_24, %c0_25] : memref<1x18x18x4xbf16, #tpu.memory_space<vmem>>, vector<1x16x16x4xbf16>
    %25 = vector.shape_cast %24 : vector<1x16x16x4xbf16> to vector<16x16x4xbf16>
    %26 = vector.shape_cast %25 : vector<16x16x4xbf16> to vector<256x4xbf16>
    %c3 = arith.constant 3 : index
    %c0_26 = arith.constant 0 : index
    %c0_27 = arith.constant 0 : index
    %27 = vector.load %arg2[%c3, %c0_26, %c0_27] : memref<9x4x128xbf16, #tpu.memory_space<vmem>>, vector<1x4x128xbf16>
    %28 = vector.shape_cast %27 : vector<1x4x128xbf16> to vector<4x128xbf16>
    %cst_28 = arith.constant dense<0.000000e+00> : vector<256x128xf32>
    %29 = tpu.matmul %26, %28, %cst_28 {dimension_numbers = #tpu.dot_dimension_numbers<[1], [0], [0], [1], [0, 0, 1, 1], [], []>} : vector<256x4xbf16>, vector<4x128xbf16>, vector<256x128xf32> -> vector<256x128xf32>
    %30 = arith.addf %23, %29 : vector<256x128xf32>
    %c0_29 = arith.constant 0 : index
    %c1_30 = arith.constant 1 : index
    %c1_31 = arith.constant 1 : index
    %c0_32 = arith.constant 0 : index
    %31 = vector.load %arg1[%c0_29, %c1_30, %c1_31, %c0_32] : memref<1x18x18x4xbf16, #tpu.memory_space<vmem>>, vector<1x16x16x4xbf16>
    %32 = vector.shape_cast %31 : vector<1x16x16x4xbf16> to vector<16x16x4xbf16>
    %33 = vector.shape_cast %32 : vector<16x16x4xbf16> to vector<256x4xbf16>
    %c4 = arith.constant 4 : index
    %c0_33 = arith.constant 0 : index
    %c0_34 = arith.constant 0 : index
    %34 = vector.load %arg2[%c4, %c0_33, %c0_34] : memref<9x4x128xbf16, #tpu.memory_space<vmem>>, vector<1x4x128xbf16>
    %35 = vector.shape_cast %34 : vector<1x4x128xbf16> to vector<4x128xbf16>
    %cst_35 = arith.constant dense<0.000000e+00> : vector<256x128xf32>
    %36 = tpu.matmul %33, %35, %cst_35 {dimension_numbers = #tpu.dot_dimension_numbers<[1], [0], [0], [1], [0, 0, 1, 1], [], []>} : vector<256x4xbf16>, vector<4x128xbf16>, vector<256x128xf32> -> vector<256x128xf32>
    %37 = arith.addf %30, %36 : vector<256x128xf32>
    %c0_36 = arith.constant 0 : index
    %c1_37 = arith.constant 1 : index
    %c2_38 = arith.constant 2 : index
    %c0_39 = arith.constant 0 : index
    %38 = vector.load %arg1[%c0_36, %c1_37, %c2_38, %c0_39] : memref<1x18x18x4xbf16, #tpu.memory_space<vmem>>, vector<1x16x16x4xbf16>
    %39 = vector.shape_cast %38 : vector<1x16x16x4xbf16> to vector<16x16x4xbf16>
    %40 = vector.shape_cast %39 : vector<16x16x4xbf16> to vector<256x4xbf16>
    %c5 = arith.constant 5 : index
    %c0_40 = arith.constant 0 : index
    %c0_41 = arith.constant 0 : index
    %41 = vector.load %arg2[%c5, %c0_40, %c0_41] : memref<9x4x128xbf16, #tpu.memory_space<vmem>>, vector<1x4x128xbf16>
    %42 = vector.shape_cast %41 : vector<1x4x128xbf16> to vector<4x128xbf16>
    %cst_42 = arith.constant dense<0.000000e+00> : vector<256x128xf32>
    %43 = tpu.matmul %40, %42, %cst_42 {dimension_numbers = #tpu.dot_dimension_numbers<[1], [0], [0], [1], [0, 0, 1, 1], [], []>} : vector<256x4xbf16>, vector<4x128xbf16>, vector<256x128xf32> -> vector<256x128xf32>
    %44 = arith.addf %37, %43 : vector<256x128xf32>
    %c0_43 = arith.constant 0 : index
    %c2_44 = arith.constant 2 : index
    %c0_45 = arith.constant 0 : index
    %c0_46 = arith.constant 0 : index
    %45 = vector.load %arg1[%c0_43, %c2_44, %c0_45, %c0_46] : memref<1x18x18x4xbf16, #tpu.memory_space<vmem>>, vector<1x16x16x4xbf16>
    %46 = vector.shape_cast %45 : vector<1x16x16x4xbf16> to vector<16x16x4xbf16>
    %47 = vector.shape_cast %46 : vector<16x16x4xbf16> to vector<256x4xbf16>
    %c6 = arith.constant 6 : index
    %c0_47 = arith.constant 0 : index
    %c0_48 = arith.constant 0 : index
    %48 = vector.load %arg2[%c6, %c0_47, %c0_48] : memref<9x4x128xbf16, #tpu.memory_space<vmem>>, vector<1x4x128xbf16>
    %49 = vector.shape_cast %48 : vector<1x4x128xbf16> to vector<4x128xbf16>
    %cst_49 = arith.constant dense<0.000000e+00> : vector<256x128xf32>
    %50 = tpu.matmul %47, %49, %cst_49 {dimension_numbers = #tpu.dot_dimension_numbers<[1], [0], [0], [1], [0, 0, 1, 1], [], []>} : vector<256x4xbf16>, vector<4x128xbf16>, vector<256x128xf32> -> vector<256x128xf32>
    %51 = arith.addf %44, %50 : vector<256x128xf32>
    %c0_50 = arith.constant 0 : index
    %c2_51 = arith.constant 2 : index
    %c1_52 = arith.constant 1 : index
    %c0_53 = arith.constant 0 : index
    %52 = vector.load %arg1[%c0_50, %c2_51, %c1_52, %c0_53] : memref<1x18x18x4xbf16, #tpu.memory_space<vmem>>, vector<1x16x16x4xbf16>
    %53 = vector.shape_cast %52 : vector<1x16x16x4xbf16> to vector<16x16x4xbf16>
    %54 = vector.shape_cast %53 : vector<16x16x4xbf16> to vector<256x4xbf16>
    %c7 = arith.constant 7 : index
    %c0_54 = arith.constant 0 : index
    %c0_55 = arith.constant 0 : index
    %55 = vector.load %arg2[%c7, %c0_54, %c0_55] : memref<9x4x128xbf16, #tpu.memory_space<vmem>>, vector<1x4x128xbf16>
    %56 = vector.shape_cast %55 : vector<1x4x128xbf16> to vector<4x128xbf16>
    %cst_56 = arith.constant dense<0.000000e+00> : vector<256x128xf32>
    %57 = tpu.matmul %54, %56, %cst_56 {dimension_numbers = #tpu.dot_dimension_numbers<[1], [0], [0], [1], [0, 0, 1, 1], [], []>} : vector<256x4xbf16>, vector<4x128xbf16>, vector<256x128xf32> -> vector<256x128xf32>
    %58 = arith.addf %51, %57 : vector<256x128xf32>
    %c0_57 = arith.constant 0 : index
    %c2_58 = arith.constant 2 : index
    %c2_59 = arith.constant 2 : index
    %c0_60 = arith.constant 0 : index
    %59 = vector.load %arg1[%c0_57, %c2_58, %c2_59, %c0_60] : memref<1x18x18x4xbf16, #tpu.memory_space<vmem>>, vector<1x16x16x4xbf16>
    %60 = vector.shape_cast %59 : vector<1x16x16x4xbf16> to vector<16x16x4xbf16>
    %61 = vector.shape_cast %60 : vector<16x16x4xbf16> to vector<256x4xbf16>
    %c8 = arith.constant 8 : index
    %c0_61 = arith.constant 0 : index
    %c0_62 = arith.constant 0 : index
    %62 = vector.load %arg2[%c8, %c0_61, %c0_62] : memref<9x4x128xbf16, #tpu.memory_space<vmem>>, vector<1x4x128xbf16>
    %63 = vector.shape_cast %62 : vector<1x4x128xbf16> to vector<4x128xbf16>
    %cst_63 = arith.constant dense<0.000000e+00> : vector<256x128xf32>
    %64 = tpu.matmul %61, %63, %cst_63 {dimension_numbers = #tpu.dot_dimension_numbers<[1], [0], [0], [1], [0, 0, 1, 1], [], []>} : vector<256x4xbf16>, vector<4x128xbf16>, vector<256x128xf32> -> vector<256x128xf32>
    %65 = arith.addf %58, %64 : vector<256x128xf32>
    %cst_64 = arith.constant 0.000000e+00 : f32
    %66 = vector.broadcast %cst_64 : f32 to vector<256x128xf32>
    %67 = arith.maximumf %65, %66 : vector<256x128xf32>
    %68 = arith.truncf %67 : vector<256x128xf32> to vector<256x128xbf16>
    %cst_65 = arith.constant 0.000000e+00 : bf16
    %69 = vector.broadcast %cst_65 : bf16 to vector<1x18x128xbf16>
    %c0_66 = arith.constant 0 : index
    %c0_67 = arith.constant 0 : index
    %c0_68 = arith.constant 0 : index
    %70 = vector.load %arg7[%c0_66, %c0_67, %c0_68] : memref<18x18x128xbf16, #tpu.memory_space<vmem>>, vector<1x18x128xbf16>
    tpu.vector_store %arg7[%c0_66, %c0_67, %c0_68], %69 {strides = array<i32>} : memref<18x18x128xbf16, #tpu.memory_space<vmem>>, vector<1x18x128xbf16>,
    %cst_69 = arith.constant 0.000000e+00 : bf16
    %71 = vector.broadcast %cst_69 : bf16 to vector<1x18x128xbf16>
    %c17 = arith.constant 17 : index
    %c0_70 = arith.constant 0 : index
    %c0_71 = arith.constant 0 : index
    %72 = vector.load %arg7[%c17, %c0_70, %c0_71] : memref<18x18x128xbf16, #tpu.memory_space<vmem>>, vector<1x18x128xbf16>
    tpu.vector_store %arg7[%c17, %c0_70, %c0_71], %71 {strides = array<i32>} : memref<18x18x128xbf16, #tpu.memory_space<vmem>>, vector<1x18x128xbf16>,
    %cst_72 = arith.constant 0.000000e+00 : bf16
    %73 = vector.broadcast %cst_72 : bf16 to vector<18x1x128xbf16>
    %c0_73 = arith.constant 0 : index
    %c0_74 = arith.constant 0 : index
    %c0_75 = arith.constant 0 : index
    %74 = vector.load %arg7[%c0_73, %c0_74, %c0_75] : memref<18x18x128xbf16, #tpu.memory_space<vmem>>, vector<18x1x128xbf16>
    tpu.vector_store %arg7[%c0_73, %c0_74, %c0_75], %73 {strides = array<i32>} : memref<18x18x128xbf16, #tpu.memory_space<vmem>>, vector<18x1x128xbf16>,
    %cst_76 = arith.constant 0.000000e+00 : bf16
    %75 = vector.broadcast %cst_76 : bf16 to vector<18x1x128xbf16>
    %c0_77 = arith.constant 0 : index
    %c17_78 = arith.constant 17 : index
    %c0_79 = arith.constant 0 : index
    %76 = vector.load %arg7[%c0_77, %c17_78, %c0_79] : memref<18x18x128xbf16, #tpu.memory_space<vmem>>, vector<18x1x128xbf16>
    tpu.vector_store %arg7[%c0_77, %c17_78, %c0_79], %75 {strides = array<i32>} : memref<18x18x128xbf16, #tpu.memory_space<vmem>>, vector<18x1x128xbf16>,
    %77 = vector.shape_cast %68 : vector<256x128xbf16> to vector<16x16x128xbf16>
    %c1_80 = arith.constant 1 : index
    %c1_81 = arith.constant 1 : index
    %c0_82 = arith.constant 0 : index
    %78 = vector.load %arg7[%c1_80, %c1_81, %c0_82] : memref<18x18x128xbf16, #tpu.memory_space<vmem>>, vector<16x16x128xbf16>
    tpu.vector_store %arg7[%c1_80, %c1_81, %c0_82], %77 {strides = array<i32>} : memref<18x18x128xbf16, #tpu.memory_space<vmem>>, vector<16x16x128xbf16>,
    %c0_83 = arith.constant 0 : index
    %c0_84 = arith.constant 0 : index
    %79 = vector.load %arg5[%c0_83, %c0_84] : memref<1x128xf32, #tpu.memory_space<vmem>>, vector<1x128xf32>
    %80 = vector.shape_cast %79 : vector<1x128xf32> to vector<1x128xf32>
    %81 = vector.broadcast %80 : vector<1x128xf32> to vector<256x128xf32>
    %c0_85 = arith.constant 0 : index
    %c0_86 = arith.constant 0 : index
    %c0_87 = arith.constant 0 : index
    %82 = vector.load %arg7[%c0_85, %c0_86, %c0_87] : memref<18x18x128xbf16, #tpu.memory_space<vmem>>, vector<16x16x128xbf16>
    %83 = vector.shape_cast %82 : vector<16x16x128xbf16> to vector<256x128xbf16>
    %c0_88 = arith.constant 0 : index
    %c0_89 = arith.constant 0 : index
    %c0_90 = arith.constant 0 : index
    %84 = vector.load %arg4[%c0_88, %c0_89, %c0_90] : memref<9x128x128xbf16, #tpu.memory_space<vmem>>, vector<1x128x128xbf16>
    %85 = vector.shape_cast %84 : vector<1x128x128xbf16> to vector<128x128xbf16>
    %cst_91 = arith.constant dense<0.000000e+00> : vector<256x128xf32>
    %86 = tpu.matmul %83, %85, %cst_91 {dimension_numbers = #tpu.dot_dimension_numbers<[1], [0], [0], [1], [0, 0, 1, 1], [], []>} : vector<256x128xbf16>, vector<128x128xbf16>, vector<256x128xf32> -> vector<256x128xf32>
    %87 = arith.addf %81, %86 : vector<256x128xf32>
    %c0_92 = arith.constant 0 : index
    %c1_93 = arith.constant 1 : index
    %c0_94 = arith.constant 0 : index
    %88 = vector.load %arg7[%c0_92, %c1_93, %c0_94] : memref<18x18x128xbf16, #tpu.memory_space<vmem>>, vector<16x16x128xbf16>
    %89 = vector.shape_cast %88 : vector<16x16x128xbf16> to vector<256x128xbf16>
    %c1_95 = arith.constant 1 : index
    %c0_96 = arith.constant 0 : index
    %c0_97 = arith.constant 0 : index
    %90 = vector.load %arg4[%c1_95, %c0_96, %c0_97] : memref<9x128x128xbf16, #tpu.memory_space<vmem>>, vector<1x128x128xbf16>
    %91 = vector.shape_cast %90 : vector<1x128x128xbf16> to vector<128x128xbf16>
    %cst_98 = arith.constant dense<0.000000e+00> : vector<256x128xf32>
    %92 = tpu.matmul %89, %91, %cst_98 {dimension_numbers = #tpu.dot_dimension_numbers<[1], [0], [0], [1], [0, 0, 1, 1], [], []>} : vector<256x128xbf16>, vector<128x128xbf16>, vector<256x128xf32> -> vector<256x128xf32>
    %93 = arith.addf %87, %92 : vector<256x128xf32>
    %c0_99 = arith.constant 0 : index
    %c2_100 = arith.constant 2 : index
    %c0_101 = arith.constant 0 : index
    %94 = vector.load %arg7[%c0_99, %c2_100, %c0_101] : memref<18x18x128xbf16, #tpu.memory_space<vmem>>, vector<16x16x128xbf16>
    %95 = vector.shape_cast %94 : vector<16x16x128xbf16> to vector<256x128xbf16>
    %c2_102 = arith.constant 2 : index
    %c0_103 = arith.constant 0 : index
    %c0_104 = arith.constant 0 : index
    %96 = vector.load %arg4[%c2_102, %c0_103, %c0_104] : memref<9x128x128xbf16, #tpu.memory_space<vmem>>, vector<1x128x128xbf16>
    %97 = vector.shape_cast %96 : vector<1x128x128xbf16> to vector<128x128xbf16>
    %cst_105 = arith.constant dense<0.000000e+00> : vector<256x128xf32>
    %98 = tpu.matmul %95, %97, %cst_105 {dimension_numbers = #tpu.dot_dimension_numbers<[1], [0], [0], [1], [0, 0, 1, 1], [], []>} : vector<256x128xbf16>, vector<128x128xbf16>, vector<256x128xf32> -> vector<256x128xf32>
    %99 = arith.addf %93, %98 : vector<256x128xf32>
    %c1_106 = arith.constant 1 : index
    %c0_107 = arith.constant 0 : index
    %c0_108 = arith.constant 0 : index
    %100 = vector.load %arg7[%c1_106, %c0_107, %c0_108] : memref<18x18x128xbf16, #tpu.memory_space<vmem>>, vector<16x16x128xbf16>
    %101 = vector.shape_cast %100 : vector<16x16x128xbf16> to vector<256x128xbf16>
    %c3_109 = arith.constant 3 : index
    %c0_110 = arith.constant 0 : index
    %c0_111 = arith.constant 0 : index
    %102 = vector.load %arg4[%c3_109, %c0_110, %c0_111] : memref<9x128x128xbf16, #tpu.memory_space<vmem>>, vector<1x128x128xbf16>
    %103 = vector.shape_cast %102 : vector<1x128x128xbf16> to vector<128x128xbf16>
    %cst_112 = arith.constant dense<0.000000e+00> : vector<256x128xf32>
    %104 = tpu.matmul %101, %103, %cst_112 {dimension_numbers = #tpu.dot_dimension_numbers<[1], [0], [0], [1], [0, 0, 1, 1], [], []>} : vector<256x128xbf16>, vector<128x128xbf16>, vector<256x128xf32> -> vector<256x128xf32>
    %105 = arith.addf %99, %104 : vector<256x128xf32>
    %c1_113 = arith.constant 1 : index
    %c1_114 = arith.constant 1 : index
    %c0_115 = arith.constant 0 : index
    %106 = vector.load %arg7[%c1_113, %c1_114, %c0_115] : memref<18x18x128xbf16, #tpu.memory_space<vmem>>, vector<16x16x128xbf16>
    %107 = vector.shape_cast %106 : vector<16x16x128xbf16> to vector<256x128xbf16>
    %c4_116 = arith.constant 4 : index
    %c0_117 = arith.constant 0 : index
    %c0_118 = arith.constant 0 : index
    %108 = vector.load %arg4[%c4_116, %c0_117, %c0_118] : memref<9x128x128xbf16, #tpu.memory_space<vmem>>, vector<1x128x128xbf16>
    %109 = vector.shape_cast %108 : vector<1x128x128xbf16> to vector<128x128xbf16>
    %cst_119 = arith.constant dense<0.000000e+00> : vector<256x128xf32>
    %110 = tpu.matmul %107, %109, %cst_119 {dimension_numbers = #tpu.dot_dimension_numbers<[1], [0], [0], [1], [0, 0, 1, 1], [], []>} : vector<256x128xbf16>, vector<128x128xbf16>, vector<256x128xf32> -> vector<256x128xf32>
    %111 = arith.addf %105, %110 : vector<256x128xf32>
    %c1_120 = arith.constant 1 : index
    %c2_121 = arith.constant 2 : index
    %c0_122 = arith.constant 0 : index
    %112 = vector.load %arg7[%c1_120, %c2_121, %c0_122] : memref<18x18x128xbf16, #tpu.memory_space<vmem>>, vector<16x16x128xbf16>
    %113 = vector.shape_cast %112 : vector<16x16x128xbf16> to vector<256x128xbf16>
    %c5_123 = arith.constant 5 : index
    %c0_124 = arith.constant 0 : index
    %c0_125 = arith.constant 0 : index
    %114 = vector.load %arg4[%c5_123, %c0_124, %c0_125] : memref<9x128x128xbf16, #tpu.memory_space<vmem>>, vector<1x128x128xbf16>
    %115 = vector.shape_cast %114 : vector<1x128x128xbf16> to vector<128x128xbf16>
    %cst_126 = arith.constant dense<0.000000e+00> : vector<256x128xf32>
    %116 = tpu.matmul %113, %115, %cst_126 {dimension_numbers = #tpu.dot_dimension_numbers<[1], [0], [0], [1], [0, 0, 1, 1], [], []>} : vector<256x128xbf16>, vector<128x128xbf16>, vector<256x128xf32> -> vector<256x128xf32>
    %117 = arith.addf %111, %116 : vector<256x128xf32>
    %c2_127 = arith.constant 2 : index
    %c0_128 = arith.constant 0 : index
    %c0_129 = arith.constant 0 : index
    %118 = vector.load %arg7[%c2_127, %c0_128, %c0_129] : memref<18x18x128xbf16, #tpu.memory_space<vmem>>, vector<16x16x128xbf16>
    %119 = vector.shape_cast %118 : vector<16x16x128xbf16> to vector<256x128xbf16>
    %c6_130 = arith.constant 6 : index
    %c0_131 = arith.constant 0 : index
    %c0_132 = arith.constant 0 : index
    %120 = vector.load %arg4[%c6_130, %c0_131, %c0_132] : memref<9x128x128xbf16, #tpu.memory_space<vmem>>, vector<1x128x128xbf16>
    %121 = vector.shape_cast %120 : vector<1x128x128xbf16> to vector<128x128xbf16>
    %cst_133 = arith.constant dense<0.000000e+00> : vector<256x128xf32>
    %122 = tpu.matmul %119, %121, %cst_133 {dimension_numbers = #tpu.dot_dimension_numbers<[1], [0], [0], [1], [0, 0, 1, 1], [], []>} : vector<256x128xbf16>, vector<128x128xbf16>, vector<256x128xf32> -> vector<256x128xf32>
    %123 = arith.addf %117, %122 : vector<256x128xf32>
    %c2_134 = arith.constant 2 : index
    %c1_135 = arith.constant 1 : index
    %c0_136 = arith.constant 0 : index
    %124 = vector.load %arg7[%c2_134, %c1_135, %c0_136] : memref<18x18x128xbf16, #tpu.memory_space<vmem>>, vector<16x16x128xbf16>
    %125 = vector.shape_cast %124 : vector<16x16x128xbf16> to vector<256x128xbf16>
    %c7_137 = arith.constant 7 : index
    %c0_138 = arith.constant 0 : index
    %c0_139 = arith.constant 0 : index
    %126 = vector.load %arg4[%c7_137, %c0_138, %c0_139] : memref<9x128x128xbf16, #tpu.memory_space<vmem>>, vector<1x128x128xbf16>
    %127 = vector.shape_cast %126 : vector<1x128x128xbf16> to vector<128x128xbf16>
    %cst_140 = arith.constant dense<0.000000e+00> : vector<256x128xf32>
    %128 = tpu.matmul %125, %127, %cst_140 {dimension_numbers = #tpu.dot_dimension_numbers<[1], [0], [0], [1], [0, 0, 1, 1], [], []>} : vector<256x128xbf16>, vector<128x128xbf16>, vector<256x128xf32> -> vector<256x128xf32>
    %129 = arith.addf %123, %128 : vector<256x128xf32>
    %c2_141 = arith.constant 2 : index
    %c2_142 = arith.constant 2 : index
    %c0_143 = arith.constant 0 : index
    %130 = vector.load %arg7[%c2_141, %c2_142, %c0_143] : memref<18x18x128xbf16, #tpu.memory_space<vmem>>, vector<16x16x128xbf16>
    %131 = vector.shape_cast %130 : vector<16x16x128xbf16> to vector<256x128xbf16>
    %c8_144 = arith.constant 8 : index
    %c0_145 = arith.constant 0 : index
    %c0_146 = arith.constant 0 : index
    %132 = vector.load %arg4[%c8_144, %c0_145, %c0_146] : memref<9x128x128xbf16, #tpu.memory_space<vmem>>, vector<1x128x128xbf16>
    %133 = vector.shape_cast %132 : vector<1x128x128xbf16> to vector<128x128xbf16>
    %cst_147 = arith.constant dense<0.000000e+00> : vector<256x128xf32>
    %134 = tpu.matmul %131, %133, %cst_147 {dimension_numbers = #tpu.dot_dimension_numbers<[1], [0], [0], [1], [0, 0, 1, 1], [], []>} : vector<256x128xbf16>, vector<128x128xbf16>, vector<256x128xf32> -> vector<256x128xf32>
    %135 = arith.addf %129, %134 : vector<256x128xf32>
    %cst_148 = arith.constant 0.000000e+00 : f32
    %136 = vector.broadcast %cst_148 : f32 to vector<256x128xf32>
    %137 = arith.maximumf %135, %136 : vector<256x128xf32>
    %138 = arith.truncf %137 : vector<256x128xf32> to vector<256x128xbf16>
    %c0_149 = arith.constant 0 : index
    %c0_150 = arith.constant 0 : index
    %c0_151 = arith.constant 0 : index
    %139 = vector.load %arg6[%c0_149, %c0_150, %c0_151] : memref<1x256x128xbf16, #tpu.memory_space<vmem>>, vector<1x256x128xbf16>
    %140 = vector.shape_cast %139 : vector<1x256x128xbf16> to vector<256x128xbf16>
    %141 = vector.shape_cast %138 : vector<256x128xbf16> to vector<1x256x128xbf16>
    tpu.vector_store %arg6[%c0_149, %c0_150, %c0_151], %141 {strides = array<i32>} : memref<1x256x128xbf16, #tpu.memory_space<vmem>>, vector<1x256x128xbf16>,
    return
  }
  func.func @transform_0(%arg0: i32) -> (i32, i32, i32, i32) {
    %c0_i32 = arith.constant 0 : i32
    %c0_i32_0 = arith.constant 0 : i32
    %c0_i32_1 = arith.constant 0 : i32
    %c0_i32_2 = arith.constant 0 : i32
    return %arg0, %c0_i32, %c0_i32_0, %c0_i32_1 : i32, i32, i32, i32
  }
  func.func @transform_1(%arg0: i32) -> (i32, i32, i32) {
    %c0_i32 = arith.constant 0 : i32
    %c0_i32_0 = arith.constant 0 : i32
    %c0_i32_1 = arith.constant 0 : i32
    %c0_i32_2 = arith.constant 0 : i32
    return %c0_i32, %c0_i32_0, %c0_i32_1 : i32, i32, i32
  }
  func.func @transform_2(%arg0: i32) -> (i32, i32) {
    %c0_i32 = arith.constant 0 : i32
    %c0_i32_0 = arith.constant 0 : i32
    %c0_i32_1 = arith.constant 0 : i32
    return %c0_i32, %c0_i32_0 : i32, i32
  }
  func.func @transform_3(%arg0: i32) -> (i32, i32, i32) {
    %c0_i32 = arith.constant 0 : i32
    %c0_i32_0 = arith.constant 0 : i32
    %c0_i32_1 = arith.constant 0 : i32
    %c0_i32_2 = arith.constant 0 : i32
    return %c0_i32, %c0_i32_0, %c0_i32_1 : i32, i32, i32
  }
  func.func @transform_4(%arg0: i32) -> (i32, i32) {
    %c0_i32 = arith.constant 0 : i32
    %c0_i32_0 = arith.constant 0 : i32
    %c0_i32_1 = arith.constant 0 : i32
    return %c0_i32, %c0_i32_0 : i32, i32
  }
  func.func @transform_5(%arg0: i32) -> (i32, i32, i32) {
    %c0_i32 = arith.constant 0 : i32
    %c0_i32_0 = arith.constant 0 : i32
    %c0_i32_1 = arith.constant 0 : i32
    return %arg0, %c0_i32, %c0_i32_0 : i32, i32, i32
  }
}

</mosaic_0001>

<bundles_post_ra>
// kernel: tile.9
= control target key start
LH: loop header
LB: loop body
LE: loop exit
PB: predicated region body
PF: predicated region fallthrough
CT: control target
= control target key end

     0   :  { %s37_s8 = smov 4   ;;  %s38_s9 = smov 8   ;;  %vm7_vm0 = vcmask 31744   ;;  %vm13_vm1 = vcmask 130144   ;;  %vm19_vm2 = vcmask 97344   ;;  %vm25_vm3 = vcmask 64544   ;;  %s55_s0 = inlined_call_operand.vmem [shape: f32[4,4], index: 0, kind: input, shape index: {}]   ;;  %s56_s1 = inlined_call_operand.vmem [shape: f32[16], index: 1, kind: output, shape index: {}]  }
   0x1   :  { %v4_v0 = vld [vmem:[%s55_s0] sm:$0xf]  ;;  %s36_s0 = smov 12  }
   0x2   :  { %5 = vst [vmem:[#allocation1] sm:$0xf] %v4_v0 }
   0x9   :  { %v10_v1 = vld [vmem:[#allocation1 + $0x3] sm:$0x1]   ;;  %v22_v2 = vld [vmem:[#allocation1 + $0x1] sm:$0x1]   ;;  %v16_v3 = vld [vmem:[#allocation1 + $0x2] sm:$0x1]  }
   0xa   :  { %11 = vrot.lane.b32.xlu0 %v10_v1, %s36_s0  ;;  %23 = vrot.lane.b32.xlu1 %v22_v2, %s37_s8  ;;  %v6_v4 = vld [vmem:[#allocation1] sm:$0x1]  }
   0xb   :  { %8 = vst.msk [vmem:[#allocation0] sm:$0x1] %vm7_vm0, %v6_v4  }
  0x12   :  { %17 = vrot.lane.b32.xlu0 %v16_v3, %s38_s9 }
  0x7c   :  { %v12_v5 = vpop.permute.xlu0 %11   ;;  %v24_v6 = vpop.permute.xlu1 %23  }
  0x7d   :  { %14 = vst.msk [vmem:[#allocation0] sm:$0x1] %vm13_vm1, %v12_v5  }
  0x84   :  { %v18_v7 = vpop.permute.xlu0 %17  }
  0x85   :  { %20 = vst.msk [vmem:[#allocation0] sm:$0x1] %vm19_vm2, %v18_v7  }
  0x86   :  { %26 = vst.msk [vmem:[#allocation0] sm:$0x1] %vm25_vm3, %v24_v6  }
  0x8d   :  { %v29_v8 = vld [vmem:[#allocation0] sm:$0x1] }
  0x8e   :  { %32 = vst [vmem:[%s56_s1] sm:$0x1] %v29_v8 }

// kernel: tile.8
= control target key start
LH: loop header
LB: loop body
LE: loop exit
PB: predicated region body
PF: predicated region fallthrough
CT: control target
= control target key end

     0   :  { %s22_s0 = inlined_call_operand.vmem [shape: f32[4], index: 0, kind: input, shape index: {}]   ;;  %s23_s1 = inlined_call_operand.vmem [shape: f32[4,4], index: 1, kind: output, shape index: {}]  }
   0x1   :  { %v4_v0 = vld [vmem:[%s22_s0] ss:$0 sm:$0xff] }
   0x2   :  { %5 = vst [vmem:[%s23_s1] sm:$0xf] %v4_v0 }

// kernel: decoder_block_forward.1
= control target key start
LH: loop header
LB: loop body
LE: loop exit
PB: predicated region body
PF: predicated region fallthrough
CT: control target
= control target key end

     0   :  { %s10905_s18 = smov 0   ;;  %s14504_s0 = inlined_call_operand.vmem [shape: bf16[2,18,18,4], index: 0, kind: input, shape index: {}]   ;;  %s14505_s1 = inlined_call_operand.vmem [shape: bf16[9,4,128], index: 1, kind: input, shape index: {}]   ;;  %s14506_s2 = inlined_call_operand.vmem [shape: f32[1,128], index: 2, kind: input, shape index: {}]   ;;  %s14507_s3 = inlined_call_operand.vmem [shape: bf16[9,128,128], index: 3, kind: input, shape index: {}]   ;;  %s14508_s4 = inlined_call_operand.vmem [shape: f32[1,128], index: 4, kind: input, shape index: {}]   ;;  %s14509_s5 = inlined_call_operand.vmem [shape: bf16[2,256,128], index: 5, kind: output, shape index: {}]  }
   0x1 LB: > { %s9295_s19 = sadd.s32 4294967295, %s10872_s18   ;;  %p9299_p0 = scmp.ge.s32.totalorder %s10872_s18, 1  ;;  %s10872_s18 = sphi %s10905_s18, %s15_s18  }
   0x2   : > { %p187_p1 = scmp.lt.s32.totalorder %s10872_s18, 3 }
   0x4   : > { %p188_p2 = pnand %p9299_p0, %p187_p1 }
   0x6   : > { %191 = sbr.rel (%p188_p2) target bundleno = 1457 (0x5b1), region = 40 }
   0xb   : > { %v262_v0 = vld [vmem:[%s14505_s1] sm:$0x3]  ;;  %vm392_vm0 = vcmask 1041408   ;;  %p215_p3 = scmp.lt.s32.totalorder %s9295_s19, 1  ;;  %v9383_v2 = vld [vmem:[%s14505_s1 + $0x2] sm:$0x3] }
   0xc   : > { %v394_v1 = vsel %vm392_vm0, %v262_v0, 0  ;;  %v9416_v3 = vld [vmem:[%s14505_s1 + $0x4] sm:$0x3]  ;;  %v1051_v4 = vsel %vm392_vm0, %v9383_v2, 0  ;;  %v9465_v6 = vld [vmem:[%s14505_s1 + $0x6] sm:$0x3] }
   0xd   : > { %403 = vmatpush.bf16.msra.mxu0 %v394_v1  ;;  %10809 = vmatpush.bf16.msra.mxu2 %v394_v1  ;;  %s14698_s19 = smov (!%p215_p3, %s9295_s19), 1  ;;  %v1452_v5 = vsel %vm392_vm0, %v9416_v3, 0  ;;  %v9594_v7 = vld [vmem:[%s14505_s1 + $0x8] sm:$0x3]  ;;  %v1739_v8 = vsel %vm392_vm0, %v9465_v6, 0  ;;  %vm343_vm1 = vcmask 31744  }
   0xe   : > { %10810 = vmatpush.bf16.msra.mxu3 %v1051_v4  ;;  %s10811_s30 = smul.u32 216, %s14698_s19  ;;  %1060 = vmatpush.bf16.msra.mxu1 %v1051_v4  ;;  %v2393_v9 = vsel %vm392_vm0, %v9594_v7, 0  ;;  %vm565_vm2 = vsmask.f32 3328  ;;  %vm566_vm3 = vsmask.f32 7440 }
   0xf   : > { %vm10960_vm4 = vmor %vm565_vm2, %vm566_vm3  ;;  %vm1238_vm5 = vcmask 1042432   ;;  %vm1239_vm6 = vcmask 1046532   ;;  %vm4324_vm8 = vcmask 1040384   ;;  %vm4325_vm9 = vsmask.f32 256  ;;  %s10545_s11 = sshll.u32 %s14698_s19, 7 }
  0x10   : > { %s10939_s8 = scalar_lea.vmem %s14504_s0, %s10811_s30  ;;  %vm11195_vm7 = vmor %vm1238_vm5, %vm1239_vm6  ;;  %vm4381_vm11 = vsmask.f32 7938  ;;  %vm4760_vm13 = vcmask 1043456   ;;  %vm4437_vm15 = vsmask.f32 4368  ;;  %s14421_s14 = scalar_lea.vmem %s14509_s5, %s10545_s11 }
  0x11   : > { %1461 = vmatpush.bf16.msrb.mxu2 %v1452_v5  ;;  %2402 = vmatpush.bf16.msrb.mxu0 %v2393_v9  ;;  %v10546_v10 = vld [vmem:[%s10939_s8] sm:$0xff]  ;;  %v543_v14 = vld [vmem:[%s10939_s8 + $0x68] sm:$0x1]  ;;  %v544_v32 = vld [vmem:[%s10939_s8 + $0x6c] sm:$0xf] }
  0x12   : > { %1748 = vmatpush.bf16.msrb.mxu3 %v1739_v8  ;;  %v10554_v11 = vld [vmem:[%s10939_s8 + $0x60] sm:$0xff]  ;;  %9367 = vmatmul.msk.bf16.vlgmr.msra.gmra.mxu0 %vm343_vm1, %v10546_v10  ;;  %v780_v19 = vshll.u32 %v543_v14, 16  ;;  %v10953_v24 = vld [vmem:[%s10939_s8 + $0x8] sm:$0x1]  ;;  %v545_v38 = vld [vmem:[%s10939_s8 + $0x70] sm:$0xf] }
  0x13   : > { %v541_v12 = vld [vmem:[%s10939_s8 + $0x60] sm:$0xf]  ;;  %v542_v13 = vld [vmem:[%s10939_s8 + $0x64] sm:$0xf]  ;;  %9375 = vmatmul.msk.bf16.vlgmr.msra.gmra.mxu2 %vm343_vm1, %v10554_v11  ;;  %v588_v37 = vshll.u32 %v10953_v24, 16  ;;  %v785_v45 = vshrl.u32 %v544_v32, 16  ;;  %vm12190_vm10 = vmand %vm4324_vm8, %vm4325_vm9 }
  0x14   : > { %v761_v15 = vshrl.u32 %v541_v12, 16  ;;  %v764_v16 = vshll.u32 %v541_v12, 16  ;;  %v770_v17 = vshll.u32 %v542_v13, 16  ;;  %v774_v18 = vshrl.u32 %v542_v13, 16  ;;  %v517_v20 = vld [vmem:[%s10939_s8] sm:$0xf]  ;;  %vm12225_vm12 = vmand %vm4324_vm8, %vm4381_vm11 }
  0x15   : > { %v10950_v23 = vld [vmem:[%s10939_s8 + $0x4] sm:$0xf]  ;;  %v569_v27 = vshrl.u32 %v517_v20, 16  ;;  %v572_v29 = vshll.u32 %v517_v20, 16  ;;  %v782_v35 = vrot.slane %v780_v19, 5  ;;  %v590_v44 = vrot.slane %v588_v37, 5  ;;  %vm12311_vm14 = vmand %vm4760_vm13, %vm4381_vm11 }
  0x16   : > { %v763_v21 = vrot.slane %v761_v15, 4  ;;  %v766_v22 = vrot.slane %v764_v16, 5  ;;  %v772_v25 = vrot.slane %v770_v17, 5  ;;  %v776_v26 = vrot.slane %v774_v18, 4  ;;  %v546_v50 = vld [vmem:[%s10939_s8 + $0x74] sm:$0x1] }
  0x17   : > { %v578_v30 = vshll.u32 %v10950_v23, 16  ;;  %v582_v31 = vshrl.u32 %v10950_v23, 16  ;;  %v571_v36 = vrot.slane %v569_v27, 4  ;;  %v574_v40 = vrot.slane %v572_v29, 5  ;;  %v520_v56 = vld [vmem:[%s10939_s8 + $0xc] sm:$0xf] }
  0x18   : > { %v767_v28 = vor.u32 %v766_v22, %v763_v21  ;;  %v777_v34 = vor.u32 %v776_v26, %v772_v25  ;;  %v788_v46 = vshll.u32 %v544_v32, 16  ;;  %v794_v51 = vshll.u32 %v545_v38, 16  ;;  %v10973_v0 = vld [vmem:[%s10939_s8 + $0x10] sm:$0xf]  ;;  %v10982_v10 = vld [vmem:[%s10939_s8 + $0x14] sm:$0x1] }
  0x19   : > { %v580_v41 = vrot.slane %v578_v30, 5  ;;  %v584_v42 = vrot.slane %v582_v31, 4  ;;  %v575_v48 = vor.u32 %v574_v40, %v571_v36  ;;  %v787_v54 = vrot.slane %v785_v45, 4  ;;  %v10547_v7 = vld [vmem:[%s10939_s8 + $0xc] sm:$0xff]  ;;  %v547_v15 = vld [vmem:[%s10939_s8 + $0x78] sm:$0xf] }
  0x1a   : > { %v768_v39 = vrot.slane %v767_v28, 4  ;;  %v778_v43 = vrot.slane %v777_v34, 4  ;;  %v790_v55 = vrot.slane %v788_v46, 5  ;;  %v796_v61 = vrot.slane %v794_v51, 5  ;;  %v10555_v8 = vld [vmem:[%s10939_s8 + $0x6c] sm:$0xff] }
  0x1b   : > { %v585_v49 = vor.u32 %v584_v42, %v580_v41  ;;  %v576_v58 = vrot.slane %v575_v48, 4  ;;  %v798_v62 = vshrl.u32 %v545_v38, 16  ;;  %v804_v63 = vshll.u32 %v546_v50, 16  ;;  %v548_v20 = vld [vmem:[%s10939_s8 + $0x7c] sm:$0xf] }
  0x1c   : > { %v773_v47 = vsel %vm10960_vm4, %v768_v39, %v772_v25  ;;  %v783_v52 = vsel %vm10960_vm4, %v778_v43, %v782_v35  ;;  %v791_v60 = vor.u32 %v790_v55, %v787_v54  ;;  %v593_v4 = vshrl.u32 %v520_v56, 16  ;;  %v523_v38 = vld [vmem:[%s10939_s8 + $0x18] sm:$0xf]  ;;  %v549_v45 = vld [vmem:[%s10939_s8 + $0x80] sm:$0x1] }
  0x1d   : > { %v970_v53 = vunpack.c.l.b16 %v773_v47  ;;  %v971_v57 = vunpack.c.l.b16 %v783_v52  ;;  %v586_v59 = vrot.slane %v585_v49, 4  ;;  %v581_v2 = vsel %vm10960_vm4, %v576_v58, %v580_v41  ;;  %v11002_v49 = vld [vmem:[%s10939_s8 + $0x1c] sm:$0xf] }
  0x1e   : > { %v954_v5 = vunpack.c.l.b16 %v581_v2  ;;  %v800_v9 = vrot.slane %v798_v62, 4  ;;  %v792_v11 = vrot.slane %v791_v60, 4  ;;  %v595_v12 = vrot.slane %v593_v4, 4  ;;  %v10548_v4 = vld [vmem:[%s10939_s8 + $0x18] sm:$0xff] }
  0x1f   : > { %v994_v1 = vpack.c.b16 %v971_v57, %v970_v53  ;;  %v591_v3 = vsel %vm10960_vm4, %v586_v59, %v590_v44  ;;  %v596_v13 = vshll.u32 %v520_v56, 16  ;;  %v602_v14 = vshll.u32 %v10973_v0, 16 }
  0x20   : > { %v955_v6 = vunpack.c.l.b16 %v591_v3  ;;  %v801_v17 = vor.u32 %v800_v9, %v796_v61  ;;  %v806_v18 = vrot.slane %v804_v63, 5  ;;  %v606_v19 = vshrl.u32 %v10973_v0, 16  ;;  %v11009_v63 = vld [vmem:[%s10939_s8 + $0x20] sm:$0x1] }
  0x21   : > { %9392 = vmatmul.msk.bf16.vlgmr.msra.gmra.mxu3 %vm343_vm1, %v994_v1  ;;  %v598_v21 = vrot.slane %v596_v13, 5  ;;  %v604_v22 = vrot.slane %v602_v14, 5  ;;  %v612_v25 = vshll.u32 %v10982_v10, 16  ;;  %v809_v28 = vshrl.u32 %v547_v15, 16  ;;  %v551_v14 = vld [vmem:[%s10939_s8 + $0x88] sm:$0xf] }
  0x22   : > { %v986_v16 = vpack.c.b16 %v955_v6, %v954_v5  ;;  %9368 = vmatmul.msk.bf16.gmra.mxu0 %vm343_vm1, %v10547_v7  ;;  %v802_v26 = vrot.slane %v801_v17, 4  ;;  %v608_v27 = vrot.slane %v606_v19, 4  ;;  %v812_v29 = vshll.u32 %v547_v15, 16  ;;  %v550_v7 = vld [vmem:[%s10939_s8 + $0x84] sm:$0xf] }
  0x23   : > { %9376 = vmatmul.msk.bf16.gmra.mxu2 %vm343_vm1, %v10555_v8  ;;  %v797_v30 = vsel %vm10960_vm4, %v792_v11, %v796_v61  ;;  %v599_v31 = vor.u32 %v598_v21, %v595_v12  ;;  %v818_v32 = vshll.u32 %v548_v20, 16  ;;  %v822_v34 = vshrl.u32 %v548_v20, 16  ;;  %v10556_v8 = vld [vmem:[%s10939_s8 + $0x78] sm:$0xff]  ;;  %v526_v20 = vld [vmem:[%s10939_s8 + $0x24] sm:$0xf] }
  0x24   : > { %9384 = vmatmul.msk.bf16.vlgmr.msra.gmra.mxu1 %vm343_vm1, %v986_v16  ;;  %v807_v35 = vsel %vm10960_vm4, %v802_v26, %v806_v18  ;;  %v609_v36 = vor.u32 %v608_v27, %v604_v22  ;;  %v614_v37 = vrot.slane %v612_v25, 5  ;;  %v811_v40 = vrot.slane %v809_v28, 4  ;;  %v11026_v27 = vld [vmem:[%s10939_s8 + $0x28] sm:$0xf] }
  0x25   : > { %v600_v39 = vrot.slane %v599_v31, 4  ;;  %v814_v41 = vrot.slane %v812_v29, 5  ;;  %v972_v42 = vunpack.c.l.b16 %v797_v30  ;;  %v973_v43 = vunpack.c.l.b16 %v807_v35 }
  0x26   : > { %v610_v44 = vrot.slane %v609_v36, 4  ;;  %v820_v47 = vrot.slane %v818_v32, 5  ;;  %v824_v48 = vrot.slane %v822_v34, 4  ;;  %v617_v50 = vshrl.u32 %v523_v38, 16 }
  0x27   : > { %v605_v46 = vsel %vm10960_vm4, %v600_v39, %v604_v22  ;;  %v815_v52 = vor.u32 %v814_v41, %v811_v40  ;;  %v828_v53 = vshll.u32 %v549_v45, 16  ;;  %v620_v54 = vshll.u32 %v523_v38, 16  ;;  %v552_v39 = vld [vmem:[%s10939_s8 + $0x8c] sm:$0x1] }
  0x28   : > { %v615_v51 = vsel %vm10960_vm4, %v610_v44, %v614_v37  ;;  %v956_v55 = vunpack.c.l.b16 %v605_v46  ;;  %v626_v57 = vshll.u32 %v11002_v49, 16  ;;  %v630_v58 = vshrl.u32 %v11002_v49, 16 }
  0x29   : > { %v957_v56 = vunpack.c.l.b16 %v615_v51  ;;  %v995_v59 = vpack.c.b16 %v973_v43, %v972_v42  ;;  %v825_v60 = vor.u32 %v824_v48, %v820_v47  ;;  %v619_v61 = vrot.slane %v617_v50, 4 }
  0x2a   : > { %v622_v62 = vrot.slane %v620_v54, 5  ;;  %v628_v1 = vrot.slane %v626_v57, 5  ;;  %v632_v2 = vrot.slane %v630_v58, 4  ;;  %v816_v5 = vrot.slane %v815_v52, 4  ;;  %v10549_v57 = vld [vmem:[%s10939_s8 + $0x24] sm:$0xff] }
  0x2b   : > { %v987_v3 = vpack.c.b16 %v957_v56, %v956_v55  ;;  %v830_v6 = vrot.slane %v828_v53, 5  ;;  %v826_v9 = vrot.slane %v825_v60, 4  ;;  %v636_v13 = vshll.u32 %v11009_v63, 16  ;;  %v11036_v53 = vld [vmem:[%s10939_s8 + $0x2c] sm:$0x1] }
  0x2c   : > { %v623_v11 = vor.u32 %v622_v62, %v619_v61  ;;  %v633_v12 = vor.u32 %v632_v2, %v628_v1  ;;  %v833_v15 = vshrl.u32 %v550_v7, 16  ;;  %v836_v16 = vshll.u32 %v550_v7, 16  ;;  %v553_v60 = vld [vmem:[%s10939_s8 + $0x90] sm:$0xf]  ;;  %v10557_v61 = vld [vmem:[%s10939_s8 + $0x84] sm:$0xff] }
  0x2d   : > { %v821_v17 = vsel %vm10960_vm4, %v816_v5, %v820_v47  ;;  %v842_v18 = vshll.u32 %v551_v14, 16  ;;  %v846_v19 = vshrl.u32 %v551_v14, 16  ;;  %v831_v21 = vsel %vm10960_vm4, %v826_v9, %v830_v6  ;;  %v554_v2 = vld [vmem:[%s10939_s8 + $0x94] sm:$0xf] }
  0x2e   : > { %v624_v22 = vrot.slane %v623_v11, 4  ;;  %v634_v25 = vrot.slane %v633_v12, 4  ;;  %v638_v26 = vrot.slane %v636_v13, 5  ;;  %v835_v28 = vrot.slane %v833_v15, 4  ;;  %v529_v13 = vld [vmem:[%s10939_s8 + $0x30] sm:$0xf] }
  0x2f   : > { %v838_v29 = vrot.slane %v836_v16, 5  ;;  %v641_v30 = vshrl.u32 %v526_v20, 16  ;;  %v644_v31 = vshll.u32 %v526_v20, 16  ;;  %v974_v32 = vunpack.c.l.b16 %v821_v17  ;;  %v11053_v14 = vld [vmem:[%s10939_s8 + $0x34] sm:$0xf] }
  0x30   : > { %v975_v34 = vunpack.c.l.b16 %v831_v21  ;;  %v844_v35 = vrot.slane %v842_v18, 5  ;;  %v848_v36 = vrot.slane %v846_v19, 4  ;;  %v629_v37 = vsel %vm10960_vm4, %v624_v22, %v628_v1  ;;  %v555_v19 = vld [vmem:[%s10939_s8 + $0x98] sm:$0x1] }
  0x31   : > { %9393 = vmatmul.msk.bf16.gmra.mxu3 %vm343_vm1, %v995_v59  ;;  %v639_v38 = vsel %vm10960_vm4, %v634_v25, %v638_v26  ;;  %v650_v40 = vshll.u32 %v11026_v27, 16  ;;  %v654_v41 = vshrl.u32 %v11026_v27, 16  ;;  %v839_v42 = vor.u32 %v838_v29, %v835_v28 }
  0x32   : > { %9369 = vmatmul.msk.bf16.gmra.mxu0 %vm343_vm1, %v10548_v4  ;;  %v643_v43 = vrot.slane %v641_v30, 4  ;;  %v646_v44 = vrot.slane %v644_v31, 5  ;;  %v958_v45 = vunpack.c.l.b16 %v629_v37  ;;  %v959_v46 = vunpack.c.l.b16 %v639_v38 }
  0x33   : > { %9377 = vmatmul.msk.bf16.gmra.mxu2 %vm343_vm1, %v10556_v8  ;;  %v849_v47 = vor.u32 %v848_v36, %v844_v35  ;;  %v852_v48 = vshll.u32 %v552_v39, 16  ;;  %v996_v50 = vpack.c.b16 %v975_v34, %v974_v32  ;;  %v652_v51 = vrot.slane %v650_v40, 5 }
  0x34   : > { %9385 = vmatmul.msk.bf16.gmra.mxu1 %vm343_vm1, %v987_v3  ;;  %v656_v52 = vrot.slane %v654_v41, 4  ;;  %v840_v54 = vrot.slane %v839_v42, 4  ;;  %v647_v55 = vor.u32 %v646_v44, %v643_v43  ;;  %v988_v56 = vpack.c.b16 %v959_v46, %v958_v45  ;;  %v11063_v42 = vld [vmem:[%s10939_s8 + $0x38] sm:$0x1]  ;;  %v10550_v44 = vld [vmem:[%s10939_s8 + $0x30] sm:$0xff] }
  0x35   : > { %v850_v58 = vrot.slane %v849_v47, 4  ;;  %v854_v59 = vrot.slane %v852_v48, 5  ;;  %v660_v1 = vshll.u32 %v11036_v53, 16  ;;  %v857_v5 = vshrl.u32 %v553_v60, 16  ;;  %v10558_v47 = vld [vmem:[%s10939_s8 + $0x90] sm:$0xff] }
  0x36   : > { %v657_v62 = vor.u32 %v656_v52, %v652_v51  ;;  %v845_v3 = vsel %vm10960_vm4, %v840_v54, %v844_v35  ;;  %v648_v4 = vrot.slane %v647_v55, 4  ;;  %v860_v7 = vshll.u32 %v553_v60, 16  ;;  %v556_v54 = vld [vmem:[%s10939_s8 + $0x9c] sm:$0xf]  ;;  %v557_v55 = vld [vmem:[%s10939_s8 + $0xa0] sm:$0xf] }
  0x37   : > { %v855_v6 = vsel %vm10960_vm4, %v850_v58, %v854_v59  ;;  %v866_v8 = vshll.u32 %v554_v2, 16  ;;  %v870_v9 = vshrl.u32 %v554_v2, 16  ;;  %v662_v12 = vrot.slane %v660_v1, 5  ;;  %v11077_v58 = vld [vmem:[%s10939_s8 + $0x40] sm:$0xf] }
  0x38   : > { %v658_v11 = vrot.slane %v657_v62, 4  ;;  %v976_v15 = vunpack.c.l.b16 %v845_v3  ;;  %v977_v16 = vunpack.c.l.b16 %v855_v6  ;;  %v653_v17 = vsel %vm10960_vm4, %v648_v4, %v652_v51 }
  0x39   : > { %v859_v18 = vrot.slane %v857_v5, 4  ;;  %v862_v20 = vrot.slane %v860_v7, 5  ;;  %v868_v21 = vrot.slane %v866_v8, 5  ;;  %v872_v22 = vrot.slane %v870_v9, 4 }
  0x3a   : > { %v665_v25 = vshrl.u32 %v529_v13, 16  ;;  %v663_v26 = vsel %vm10960_vm4, %v658_v11, %v662_v12  ;;  %v668_v28 = vshll.u32 %v529_v13, 16  ;;  %v674_v29 = vshll.u32 %v11053_v14, 16 }
  0x3b   : > { %v678_v30 = vshrl.u32 %v11053_v14, 16  ;;  %v997_v31 = vpack.c.b16 %v977_v16, %v976_v15  ;;  %v876_v32 = vshll.u32 %v555_v19, 16  ;;  %v960_v34 = vunpack.c.l.b16 %v653_v17  ;;  %v558_v15 = vld [vmem:[%s10939_s8 + $0xa4] sm:$0x1] }
  0x3c   : > { %v961_v35 = vunpack.c.l.b16 %v663_v26  ;;  %v863_v36 = vor.u32 %v862_v20, %v859_v18  ;;  %v667_v37 = vrot.slane %v665_v25, 4  ;;  %v873_v38 = vor.u32 %v872_v22, %v868_v21  ;;  %v11090_v20 = vld [vmem:[%s10939_s8 + $0x44] sm:$0x1] }
  0x3d   : > { %v670_v39 = vrot.slane %v668_v28, 5  ;;  %v676_v40 = vrot.slane %v674_v29, 5  ;;  %v680_v41 = vrot.slane %v678_v30, 4  ;;  %v878_v46 = vrot.slane %v876_v32, 5 }
  0x3e   : > { %v989_v43 = vpack.c.b16 %v961_v35, %v960_v34  ;;  %v864_v45 = vrot.slane %v863_v36, 4  ;;  %v874_v48 = vrot.slane %v873_v38, 4  ;;  %v684_v52 = vshll.u32 %v11063_v42, 16 }
  0x3f   : > { %v681_v51 = vor.u32 %v680_v41, %v676_v40  ;;  %v881_v1 = vshrl.u32 %v556_v54, 16  ;;  %v884_v2 = vshll.u32 %v556_v54, 16  ;;  %v890_v3 = vshll.u32 %v557_v55, 16  ;;  %v10559_v41 = vld [vmem:[%s10939_s8 + $0x9c] sm:$0xff] }
  0x40   : > { %v879_v59 = vsel %vm10960_vm4, %v874_v48, %v878_v46  ;;  %v686_v62 = vrot.slane %v684_v52, 5  ;;  %v894_v4 = vshrl.u32 %v557_v55, 16  ;;  %v698_v7 = vshll.u32 %v11077_v58, 16 }
  0x41   : > { %9394 = vmatmul.msk.bf16.gmra.mxu3 %vm343_vm1, %v996_v50  ;;  %v671_v50 = vor.u32 %v670_v39, %v667_v37  ;;  %v702_v8 = vshrl.u32 %v11077_v58, 16  ;;  %v979_v11 = vunpack.c.l.b16 %v879_v59  ;;  %v883_v16 = vrot.slane %v881_v1, 4  ;;  %v10551_v39 = vld [vmem:[%s10939_s8 + $0x3c] sm:$0xff] }
  0x42   : > { %9370 = vmatmul.msk.bf16.gmra.mxu0 %vm343_vm1, %v10549_v57  ;;  %v532_v57 = vld [vmem:[%s10939_s8 + $0x3c] sm:$0xf]  ;;  %v886_v17 = vrot.slane %v884_v2, 5  ;;  %v892_v18 = vrot.slane %v890_v3, 5  ;;  %v896_v19 = vrot.slane %v894_v4, 4  ;;  %v700_v25 = vrot.slane %v698_v7, 5 }
  0x43   : > { %9378 = vmatmul.msk.bf16.gmra.mxu2 %vm343_vm1, %v10557_v61  ;;  %v672_v60 = vrot.slane %v671_v50, 4  ;;  %v682_v61 = vrot.slane %v681_v51, 4  ;;  %v689_v5 = vshrl.u32 %v532_v57, 16  ;;  %v692_v6 = vshll.u32 %v532_v57, 16  ;;  %v11103_v57 = vld [vmem:[%s10939_s8 + $0x4c] sm:$0xf] }
  0x44   : > { %9386 = vmatmul.msk.bf16.gmra.mxu1 %vm343_vm1, %v988_v56  ;;  %v869_v56 = vsel %vm10960_vm4, %v864_v45, %v868_v21  ;;  %v704_v26 = vrot.slane %v702_v8, 4  ;;  %v897_v32 = vor.u32 %v896_v19, %v892_v18  ;;  %v900_v34 = vshll.u32 %v558_v15, 16 }
  0x45   : > { %v978_v9 = vunpack.c.l.b16 %v869_v56  ;;  %v677_v12 = vsel %vm10960_vm4, %v672_v60, %v676_v40  ;;  %v687_v13 = vsel %vm10960_vm4, %v682_v61, %v686_v62  ;;  %v691_v21 = vrot.slane %v689_v5, 4  ;;  %v559_v40 = vld [vmem:[%s10939_s8 + $0xa8] sm:$0xf] }
  0x46   : > { %v694_v22 = vrot.slane %v692_v6, 5  ;;  %v962_v28 = vunpack.c.l.b16 %v677_v12  ;;  %v963_v29 = vunpack.c.l.b16 %v687_v13  ;;  %v708_v35 = vshll.u32 %v11090_v20, 16  ;;  %v535_v56 = vld [vmem:[%s10939_s8 + $0x48] sm:$0xf]  ;;  %v561_v12 = vld [vmem:[%s10939_s8 + $0xb0] sm:$0x1] }
  0x47   : > { %v998_v30 = vpack.c.b16 %v979_v11, %v978_v9  ;;  %v705_v37 = vor.u32 %v704_v26, %v700_v25  ;;  %v902_v45 = vrot.slane %v900_v34, 5  ;;  %v905_v51 = vshrl.u32 %v559_v40, 16 }
  0x48   : > { %v695_v36 = vor.u32 %v694_v22, %v691_v21  ;;  %v990_v38 = vpack.c.b16 %v963_v29, %v962_v28  ;;  %v710_v46 = vrot.slane %v708_v35, 5  ;;  %v908_v52 = vshll.u32 %v559_v40, 16  ;;  %v11117_v28 = vld [vmem:[%s10939_s8 + $0x50] sm:$0x1]  ;;  %v563_v40 = vld [vmem:[%s10939_s8 + $0xb8] sm:$0xf] }
  0x49   : > { %v706_v50 = vrot.slane %v705_v37, 4  ;;  %v907_v1 = vrot.slane %v905_v51, 4  ;;  %v713_v3 = vshrl.u32 %v535_v56, 16  ;;  %v716_v4 = vshll.u32 %v535_v56, 16 }
  0x4a   : > { %v696_v48 = vrot.slane %v695_v36, 4  ;;  %v910_v2 = vrot.slane %v908_v52, 5  ;;  %v722_v5 = vshll.u32 %v11103_v57, 16  ;;  %v726_v6 = vshrl.u32 %v11103_v57, 16  ;;  %v10560_v36 = vld [vmem:[%s10939_s8 + $0xa8] sm:$0xff] }
  0x4b   : > { %v711_v62 = vsel %vm10960_vm4, %v706_v50, %v710_v46  ;;  %v924_v26 = vshll.u32 %v561_v12, 16  ;;  %v732_v35 = vshll.u32 %v11117_v28, 16  ;;  %v9546_v50 = vld [vmem:[%s10939_s8 + $0xc] sm:$0xf] }
  0x4c   : > { %v701_v61 = vsel %vm10960_vm4, %v696_v48, %v700_v25  ;;  %v965_v15 = vunpack.c.l.b16 %v711_v62  ;;  %v724_v19 = vrot.slane %v722_v5, 5  ;;  %v728_v21 = vrot.slane %v726_v6, 4 }
  0x4d   : > { %v964_v13 = vunpack.c.l.b16 %v701_v61  ;;  %v11139_v61 = vld [vmem:[%s10939_s8 + $0x10] sm:$0xf] }
  0x4e   : > { %v729_v34 = vor.u32 %v728_v21, %v724_v19  ;;  %v1920_v12 = vshll.u32 %v11139_v61, 16 }
  0x50   : > { %v730_v46 = vrot.slane %v729_v34, 4 }
  0x51   : > { %9395 = vmatmul.msk.bf16.gmra.mxu3 %vm343_vm1, %v997_v31  ;;  %v887_v31 = vor.u32 %v886_v17, %v883_v16  ;;  %v911_v16 = vor.u32 %v910_v2, %v907_v1  ;;  %v715_v17 = vrot.slane %v713_v3, 4  ;;  %v1911_v2 = vshrl.u32 %v9546_v50, 16 }
  0x52   : > { %9371 = vmatmul.msk.bf16.gmra.mxu0 %vm343_vm1, %v10550_v44  ;;  %v898_v44 = vrot.slane %v897_v32, 4  ;;  %v1914_v3 = vshll.u32 %v9546_v50, 16 }
  0x53   : > { %9379 = vmatmul.msk.bf16.gmra.mxu2 %vm343_vm1, %v10558_v47  ;;  %v560_v47 = vld [vmem:[%s10939_s8 + $0xac] sm:$0xf]  ;;  %v912_v29 = vrot.slane %v911_v16, 4 }
  0x54   : > { %9387 = vmatmul.msk.bf16.gmra.mxu1 %vm343_vm1, %v989_v43  ;;  %v888_v43 = vrot.slane %v887_v31, 4  ;;  %v914_v54 = vshll.u32 %v560_v47, 16  ;;  %v918_v55 = vshrl.u32 %v560_v47, 16  ;;  %v903_v60 = vsel %vm10960_vm4, %v898_v44, %v902_v45  ;;  %v10552_v31 = vld [vmem:[%s10939_s8 + $0x48] sm:$0xff]  ;;  %v11129_v44 = vld [vmem:[%s10939_s8 + $0x58] sm:$0xf] }
  0x55   : > { %v981_v8 = vunpack.c.l.b16 %v903_v60  ;;  %v734_v47 = vrot.slane %v732_v35, 5  ;;  %v746_v60 = vshll.u32 %v11129_v44, 16  ;;  %v750_v1 = vshrl.u32 %v11129_v44, 16 }
  0x56   : > { %v893_v59 = vsel %vm10960_vm4, %v888_v43, %v892_v18  ;;  %v916_v9 = vrot.slane %v914_v54, 5  ;;  %v920_v11 = vrot.slane %v918_v55, 4  ;;  %v718_v18 = vrot.slane %v716_v4, 5  ;;  %v538_v43 = vld [vmem:[%s10939_s8 + $0x54] sm:$0xf] }
  0x57   : > { %v980_v7 = vunpack.c.l.b16 %v893_v59  ;;  %v938_v54 = vshll.u32 %v563_v40, 16  ;;  %v942_v55 = vshrl.u32 %v563_v40, 16  ;;  %v737_v56 = vshrl.u32 %v538_v43, 16  ;;  %v11162_v40 = vld [vmem:[%s10939_s8 + $0x14] sm:$0x1] }
  0x58   : > { %v921_v25 = vor.u32 %v920_v11, %v916_v9  ;;  %v719_v32 = vor.u32 %v718_v18, %v715_v17  ;;  %v740_v59 = vshll.u32 %v538_v43, 16  ;;  %v735_v6 = vsel %vm10960_vm4, %v730_v46, %v734_v47  ;;  %v10553_v47 = vld [vmem:[%s10939_s8 + $0x54] sm:$0xff] }
  0x59   : > { %v999_v22 = vpack.c.b16 %v981_v8, %v980_v7  ;;  %v564_v8 = vld [vmem:[%s10939_s8 + $0xbc] sm:$0x1]  ;;  %v11147_v11 = vrot.slane %v938_v54, 5  ;;  %v739_v16 = vrot.slane %v737_v56, 4  ;;  %v11151_v18 = vrot.slane %v746_v60, 5 }
  0x5a   : > { %v922_v37 = vrot.slane %v921_v25, 4  ;;  %v720_v45 = vrot.slane %v719_v32, 4  ;;  %v742_v17 = vrot.slane %v740_v59, 5  ;;  %v752_v21 = vrot.slane %v750_v1, 4  ;;  %v9821_v60 = vld [vmem:[%s14505_s1 + $0xe] sm:$0x3] }
  0x5b   : > { %v1916_v25 = vrot.slane %v1914_v3, 5  ;;  %v948_v34 = vshll.u32 %v564_v8, 16  ;;  %v1922_v35 = vrot.slane %v1920_v12, 5  ;;  %v1243_v59 = vrot.slane %v10950_v23, 5  ;;  %v11182_v8 = vld [vmem:[%s10939_s8 + $0x1c] sm:$0xf] }
  0x5c   : > { %v725_v5 = vsel %vm10960_vm4, %v720_v45, %v724_v19  ;;  %v9692_v19 = vld [vmem:[%s14505_s1 + $0xc] sm:$0x3]  ;;  %v1246_v23 = vrot.slane %v10953_v24, 5 }
  0x5d   : > { %v950_v50 = vrot.slane %v948_v34, 5 }
  0x61   : > { %9396 = vmatmul.msk.bf16.gmra.mxu3 %vm343_vm1, %v998_v30  ;;  %v991_v30 = vpack.c.b16 %v965_v15, %v964_v13  ;;  %v1924_v13 = vshrl.u32 %v11139_v61, 16  ;;  %v944_v15 = vrot.slane %v942_v55, 4 }
  0x62   : > { %9372 = vmatmul.msk.bf16.gmra.mxu0 %vm343_vm1, %v10551_v39  ;;  %v562_v39 = vld [vmem:[%s10939_s8 + $0xb4] sm:$0xf] }
  0x63   : > { %9380 = vmatmul.msk.bf16.gmra.mxu2 %vm343_vm1, %v10559_v41  ;;  %v917_v41 = vsel %vm10960_vm4, %v912_v29, %v916_v9  ;;  %v929_v48 = vshrl.u32 %v562_v39, 16  ;;  %v932_v52 = vshll.u32 %v562_v39, 16  ;;  %v966_v29 = vunpack.c.l.b16 %v725_v5  ;;  %v9549_v5 = vld [vmem:[%s10939_s8 + $0x18] sm:$0xf] }
  0x64   : > { %9388 = vmatmul.msk.bf16.gmra.mxu1 %vm343_vm1, %v990_v38  ;;  %v926_v38 = vrot.slane %v924_v26, 5  ;;  %v982_v62 = vunpack.c.l.b16 %v917_v41  ;;  %v3078_v26 = vsel %vm392_vm0, %v9692_v19, 0  ;;  %v743_v39 = vor.u32 %v742_v17, %v739_v16 }
  0x65   : > { %v931_v7 = vrot.slane %v929_v48, 4  ;;  %v934_v9 = vrot.slane %v932_v52, 5  ;;  %3087 = vmatpush.bf16.msra.mxu2 %v3078_v26  ;;  %v753_v41 = vor.u32 %v752_v21, %v11151_v18  ;;  %v10561_v48 = vld [vmem:[%s10939_s8 + $0xb4] sm:$0xff]  ;;  %v1930_v52 = vshll.u32 %v11162_v40, 16  ;;  %v9643_v21 = vld [vmem:[%s14505_s1 + $0xa] sm:$0x3] }
  0x66   : > { %v927_v51 = vsel %vm10960_vm4, %v922_v37, %v926_v38  ;;  %v945_v38 = vor.u32 %v944_v15, %v11147_v11  ;;  %v744_v56 = vrot.slane %v743_v39, 4  ;;  %v1245_v15 = vrot.slane %v1243_v59, 4 }
  0x67   : > { %v983_v4 = vunpack.c.l.b16 %v927_v51  ;;  %v935_v37 = vor.u32 %v934_v9, %v931_v7  ;;  %v1932_v7 = vrot.slane %v1930_v52, 5  ;;  %v1935_v19 = vshrl.u32 %v9549_v5, 16 }
  0x68   : > { %v946_v55 = vrot.slane %v945_v38, 4  ;;  %v749_v24 = vsel %vm10960_vm4, %v744_v56, %v11151_v18  ;;  %v1948_v18 = vshrl.u32 %v11182_v8, 16  ;;  %v2791_v26 = vsel %vm392_vm0, %v9643_v21, 0 }
  0x69   : > { %v1000_v32 = vpack.c.b16 %v983_v4, %v982_v62  ;;  %v936_v54 = vrot.slane %v935_v37, 4  ;;  %v754_v62 = vrot.slane %v753_v41, 4  ;;  %v3732_v4 = vsel %vm392_vm0, %v9821_v60, 0  ;;  %2800 = vmatpush.bf16.msrb.mxu1 %v2791_v26  ;;  %v9870_v37 = vld [vmem:[%s14505_s1 + $0x10] sm:$0x3] }
  0x6a   : > { %3741 = vmatpush.bf16.msra.mxu3 %v3732_v4  ;;  %v951_v12 = vsel %vm10960_vm4, %v946_v55, %v950_v50  ;;  %v968_v34 = vunpack.c.l.b16 %v749_v24  ;;  %v1937_v41 = vrot.slane %v1935_v19, 4  ;;  %v1250_v60 = vrot.slane %v10973_v0, 5 }
  0x6b   : > { %v941_v9 = vsel %vm10960_vm4, %v936_v54, %v11147_v11  ;;  %v11218_v54 = vld [vmem:[%s10939_s8 + $0x20] sm:$0x1] }
  0x6c   : > { %v1954_v4 = vshll.u32 %v11218_v54, 16  ;;  %v1252_v0 = vrot.slane %v1250_v60, 4 }
  0x6e   : > { %v1956_v24 = vrot.slane %v1954_v4, 5  ;;  %v9612_v4 = vld [vmem:[%s10939_s8 + $0x18] sm:$0xe] }
  0x71   : > { %9397 = vmatmul.msk.bf16.gmra.mxu3 %vm343_vm1, %v999_v22  ;;  %v1913_v22 = vrot.slane %v1911_v2, 4  ;;  %v1174_v2 = vld [vmem:[%s10939_s8] sm:$0xe] }
  0x72   : > { %9373 = vmatmul.msk.bf16.gmra.mxu0 %vm343_vm1, %v10552_v31  ;;  %v11158_v31 = vld [vmem:[%s10939_s8 + $0x5c] sm:$0x1] }
  0x73   : > { %9381 = vmatmul.msk.bf16.gmra.mxu2 %vm343_vm1, %v10560_v36  ;;  %v1926_v36 = vrot.slane %v1924_v13, 4  ;;  %v756_v43 = vshll.u32 %v11158_v31, 16  ;;  %v1917_v45 = vor.u32 %v1916_v25, %v1913_v22  ;;  %v9400_v13 = vrot.slane %v1174_v2, 9 }
  0x74   : > { %9389 = vmatmul.msk.bf16.gmra.mxu1 %vm343_vm1, %v991_v30  ;;  %v967_v30 = vunpack.c.l.b16 %v735_v6  ;;  %v1938_v22 = vshll.u32 %v9549_v5, 16  ;;  %v1944_v25 = vshll.u32 %v11182_v8, 16  ;;  %v2582_v5 = vrot.slane %v11139_v61, 5 }
  0x75   : > { %v1927_v51 = vor.u32 %v1926_v36, %v1922_v35  ;;  %v758_v1 = vrot.slane %v756_v43, 5  ;;  %v1918_v3 = vrot.slane %v1917_v45, 4  ;;  %v1247_v36 = vsel %vm11195_vm7, %v1245_v15, %v1246_v23  ;;  %v9611_v23 = vld [vmem:[%s10939_s8 + $0xc] sm:$0xe] }
  0x76   : > { %v992_v46 = vpack.c.b16 %v967_v30, %v966_v29  ;;  %v984_v29 = vunpack.c.l.b16 %v941_v9  ;;  %v985_v30 = vunpack.c.l.b16 %v951_v12  ;;  %v4130_v43 = vsel %vm392_vm0, %v9870_v37, 0  ;;  %v11228_v9 = vld [vmem:[%s10939_s8 + $0x28] sm:$0xf]  ;;  %vm12342_vm0 = vmor %vm4325_vm9, %vm4437_vm15 }
  0x77   : > { %v1928_v6 = vrot.slane %v1927_v51, 4  ;;  %v759_v16 = vsel %vm10960_vm4, %v754_v62, %v758_v1  ;;  %v1923_v11 = vsel %vm10960_vm4, %v1918_v3, %v1922_v35  ;;  %v1244_v35 = vsel %vm11195_vm7, %v9400_v13, %v1243_v59  ;;  %4139 = vmatpush.bf16.msra.mxu0 %v4130_v43  ;;  %v1175_v59 = vld [vmem:[%s10939_s8 + $0xc] sm:$0xe] }
  0x78   : > { %v969_v38 = vunpack.c.l.b16 %v759_v16  ;;  %v2296_v39 = vunpack.c.l.b16 %v1923_v11  ;;  %v1001_v50 = vpack.c.b16 %v985_v30, %v984_v29  ;;  %v1355_v51 = vunpack.c.l.b16 %v1244_v35 }
  0x79   : > { %v1356_v52 = vunpack.c.l.b16 %v1247_v36  ;;  %v1253_v12 = vrot.slane %v10982_v10, 5  ;;  %v9627_v16 = vrot.slane %v9611_v23, 9  ;;  %v2584_v11 = vrot.slane %v2582_v5, 4 }
  0x7a   : > { %v993_v55 = vpack.c.b16 %v969_v38, %v968_v34  ;;  %v2585_v61 = vrot.slane %v11162_v40, 5 }
  0x7b   : > { %v1387_v3 = vpack.c.b16 %v1356_v52, %v1355_v51  ;;  %v1254_v10 = vsel %vm11195_vm7, %v1252_v0, %v1253_v12  ;;  %v1257_v0 = vrot.slane %v11002_v49, 5 }
  0x7c   : > { %v2586_v34 = vsel %vm11195_vm7, %v2584_v11, %v2585_v61  ;;  %v1358_v51 = vunpack.c.l.b16 %v1254_v10  ;;  %v2592_v11 = vrot.slane %v11218_v54, 5 }
  0x81   : > { %9398 = vmatmul.msk.bf16.gmra.mxu3 %vm343_vm1, %v1000_v32  ;;  %v1933_v32 = vsel %vm10960_vm4, %v1928_v6, %v1932_v7  ;;  %v9401_v6 = vrot.slane %v1175_v59, 9  ;;  %v9552_v7 = vld [vmem:[%s10939_s8 + $0x24] sm:$0xf] }
  0x82   : > { %9374 = vmatmul.msk.bf16.gmra.mxu0 %vm343_vm1, %v10553_v47  ;;  %v2297_v45 = vunpack.c.l.b16 %v1933_v32  ;;  %v1946_v47 = vrot.slane %v1944_v25, 5  ;;  %v1959_v19 = vshrl.u32 %v9552_v7, 16  ;;  %v1962_v21 = vshll.u32 %v9552_v7, 16 }
  0x83   : > { %9382 = vmatmul.msk.bf16.gmra.mxu2 %vm343_vm1, %v10561_v48  ;;  %v1950_v48 = vrot.slane %v1948_v18, 4  ;;  %v1972_v25 = vshrl.u32 %v11228_v9, 16  ;;  %v1251_v26 = vsel %vm11195_vm7, %v9401_v6, %v1250_v60  ;;  %v2583_v32 = vsel %vm11195_vm7, %v9627_v16, %v2582_v5 }
  0x84   : > { %9390 = vmatmul.msk.bf16.gmra.mxu1 %vm343_vm1, %v992_v46  ;;  %v1940_v46 = vrot.slane %v1938_v22, 5  ;;  %v2328_v56 = vpack.c.b16 %v2297_v45, %v2296_v39  ;;  %v1968_v22 = vshll.u32 %v11228_v9, 16  ;;  %v1961_v35 = vrot.slane %v1959_v19, 4  ;;  %v11252_v39 = vld [vmem:[%s14506_s2] ss:$0 sm:$0xff] }
  0x85   : > { %v1951_v1 = vor.u32 %v1950_v48, %v1946_v47  ;;  %v1964_v36 = vrot.slane %v1962_v21, 5  ;;  %v1974_v38 = vrot.slane %v1972_v25, 4  ;;  %v2694_v45 = vunpack.c.l.b16 %v2583_v32  ;;  %v10562_v48 = vld [vmem:[%s10939_s8 + $0xc] sm:$0xff] }
  0x86   : > { %v1941_v62 = vor.u32 %v1940_v46, %v1937_v41  ;;  %v1970_v37 = vrot.slane %v1968_v22, 5  ;;  %v2695_v46 = vunpack.c.l.b16 %v2586_v34  ;;  %v9555_v21 = vld [vmem:[%s10939_s8 + $0x30] sm:$0xf]  ;;  %v11276_v22 = vld [vmem:[%s10939_s8 + $0x34] sm:$0xf] }
  0x87   : > { %v1952_v15 = vrot.slane %v1951_v1, 4  ;;  %v1983_v34 = vshrl.u32 %v9555_v21, 16 }
  0x88   : > { %v1942_v13 = vrot.slane %v1941_v62, 4  ;;  %v2589_v62 = vrot.slane %v11182_v8, 5 }
  0x89   : > { %v1957_v40 = vsel %vm10960_vm4, %v1952_v15, %v1956_v24  ;;  %v1176_v15 = vld [vmem:[%s10939_s8 + $0x18] sm:$0xe]  ;;  %v9628_v24 = vrot.slane %v9612_v4, 9 }
  0x8a   : > { %v1947_v30 = vsel %vm10960_vm4, %v1942_v13, %v1946_v47  ;;  %v2299_v43 = vunpack.c.l.b16 %v1957_v40  ;;  %v11255_v47 = vld [vmem:[%s10939_s8 + $0x2c] sm:$0x1]  ;;  %v2591_v16 = vrot.slane %v2589_v62, 4  ;;  %v9402_v25 = vrot.slane %v1176_v15, 9 }
  0x8b   : > { %v2298_v41 = vunpack.c.l.b16 %v1947_v30  ;;  %v1978_v60 = vshll.u32 %v11255_v47, 16  ;;  %v2590_v30 = vsel %vm11195_vm7, %v9628_v24, %v2589_v62  ;;  %v1264_v15 = vrot.slane %v11026_v27, 5 }
  0x8c   : > { %v2593_v40 = vsel %vm11195_vm7, %v2591_v16, %v2592_v11 }
  0x8d   : > { %v2329_v1 = vpack.c.b16 %v2299_v43, %v2298_v41  ;;  %v1980_v8 = vrot.slane %v1978_v60, 5  ;;  %v1258_v41 = vsel %vm11195_vm7, %v9402_v25, %v1257_v0 }
  0x8e   : > { %v1359_v4 = vunpack.c.l.b16 %v1258_v41  ;;  %v1267_v41 = vrot.slane %v11036_v53, 5 }
  0x8f   : > { %v405_v2 = vpop.f32.mrf.mxu0 }
  0x90   : > { %v485_v52 = vadd.f32 %v11252_v39, %v405_v2 }
  0x91   : > { %9399 = vmatmul.msk.bf16.gmra.mxu3 %vm343_vm1, %v1001_v50  ;;  %v1357_v50 = vunpack.c.l.b16 %v1251_v26  ;;  %v1260_v26 = vrot.slane %v11009_v63, 5 }
  0x92   : > { %9595 = vmatmul.msk.bf16.vlgmr.msrb.gmra.mxu0 %vm343_vm1, %v2328_v56  ;;  %v1975_v56 = vor.u32 %v1974_v38, %v1970_v37 }
  0x93   : > { %9417 = vmatmul.msk.bf16.vlgmr.msrb.gmra.mxu2 %vm343_vm1, %v1387_v3  ;;  %v2726_v3 = vpack.c.b16 %v2695_v46, %v2694_v45  ;;  %v1388_v7 = vpack.c.b16 %v1358_v51, %v1357_v50  ;;  %v2696_v50 = vunpack.c.l.b16 %v2590_v30  ;;  %v2697_v51 = vunpack.c.l.b16 %v2593_v40 }
  0x94   : > { %9391 = vmatmul.msk.bf16.gmra.mxu1 %vm343_vm1, %v993_v55  ;;  %v1965_v55 = vor.u32 %v1964_v36, %v1961_v35  ;;  %v1976_v13 = vrot.slane %v1975_v56, 4  ;;  %v1986_v35 = vshll.u32 %v9555_v21, 16  ;;  %v1996_v36 = vshrl.u32 %v11276_v22, 16 }
  0x96   : > { %v445_v18 = vpop.f32.mrf.mxu2  ;;  %v1966_v12 = vrot.slane %v1965_v55, 4  ;;  %v1981_v10 = vsel %vm10960_vm4, %v1976_v13, %v1980_v8  ;;  %v1985_v55 = vrot.slane %v1983_v34, 4  ;;  %v1988_v56 = vrot.slane %v1986_v35, 5  ;;  %v1177_v13 = vld [vmem:[%s10939_s8 + $0x24] sm:$0xe] }
  0x97   : > { %v407_v29 = vpop.f32.mrf.mxu0  ;;  %v501_v5 = vadd.f32 %v11252_v39, %v445_v18  ;;  %v1259_v18 = vrot.slane %v1257_v0, 4  ;;  %v1998_v62 = vrot.slane %v1996_v36, 4  ;;  %v2727_v0 = vpack.c.b16 %v2697_v51, %v2696_v50  ;;  %v11317_v34 = vld [vmem:[%s10939_s8 + $0x40] sm:$0xf] }
  0x98   : > { %v486_v49 = vadd.f32 %v11252_v39, %v407_v29  ;;  %v1971_v54 = vsel %vm10960_vm4, %v1966_v12, %v1970_v37  ;;  %v1992_v29 = vshll.u32 %v11276_v22, 16  ;;  %v1989_v8 = vor.u32 %v1988_v56, %v1985_v55 }
  0x99   : > { %v1261_v43 = vsel %vm11195_vm7, %v1259_v18, %v1260_v26  ;;  %v2300_v45 = vunpack.c.l.b16 %v1971_v54  ;;  %v9613_v18 = vld [vmem:[%s10939_s8 + $0x24] sm:$0xe]  ;;  %v9403_v26 = vrot.slane %v1177_v13, 9  ;;  %v9558_v54 = vld [vmem:[%s10939_s8 + $0x3c] sm:$0xf]  ;;  %v2599_v36 = vrot.slane %v11255_v47, 5 }
  0x9a   : > { %v1994_v60 = vrot.slane %v1992_v29, 5  ;;  %v1990_v30 = vrot.slane %v1989_v8, 4 }
  0x9b   : > { %v1265_v51 = vsel %vm11195_vm7, %v9403_v26, %v1264_v15 }
  0x9c   : > { %v1999_v24 = vor.u32 %v1998_v62, %v1994_v60  ;;  %v1995_v47 = vsel %vm10960_vm4, %v1990_v30, %v1994_v60  ;;  %v11343_v60 = vld [vmem:[%s10939_s8 + $0x44] sm:$0x1] }
  0x9e   : > { %v447_v59 = vpop.f32.mrf.mxu2  ;;  %v2000_v40 = vrot.slane %v1999_v24, 4 }
  0x9f   : > { %v410_v6 = vpop.f32.mrf.mxu0  ;;  %v502_v46 = vadd.f32 %v11252_v39, %v447_v59 }
  0xa1   : > { %v1062_v23 = vpop.f32.mrf.mxu1  ;;  %9530 = vmatmul.msk.bf16.vlgmr.msrb.gmra.mxu3 %vm343_vm1, %v10562_v48  ;;  %v2301_v48 = vunpack.c.l.b16 %v1981_v10  ;;  %v1266_v10 = vrot.slane %v1264_v15, 4  ;;  %v2302_v15 = vunpack.c.l.b16 %v1995_v47 }
  0xa2   : > { %v11264_v2 = vadd.f32 %v1062_v23, %v485_v52  ;;  %9596 = vmatmul.msk.bf16.gmra.mxu0 %vm343_vm1, %v2329_v1  ;;  %v11301_v23 = vld [vmem:[%s10939_s8 + $0x38] sm:$0x1] }
  0xa3   : > { %9418 = vmatmul.msk.bf16.gmra.mxu2 %vm343_vm1, %v1388_v7  ;;  %v487_v7 = vadd.f32 %v11252_v39, %v410_v6  ;;  %v2330_v59 = vpack.c.b16 %v2301_v48, %v2300_v45  ;;  %v2002_v16 = vshll.u32 %v11301_v23, 16  ;;  %v2010_v45 = vshll.u32 %v9558_v54, 16 }
  0xa4   : > { %v1102_v61 = vpop.f32.mrf.mxu3  ;;  %9644 = vmatmul.msk.bf16.vlgmr.msrb.gmra.mxu1 %vm343_vm1, %v2726_v3  ;;  %v10563_v3 = vld [vmem:[%s10939_s8 + $0x18] sm:$0xff]  ;;  %v2020_v48 = vshrl.u32 %v11317_v34, 16 }
  0xa5   : > { %v11271_v19 = vadd.f32 %v1102_v61, %v501_v5  ;;  %v1360_v5 = vunpack.c.l.b16 %v1261_v43  ;;  %v2007_v43 = vshrl.u32 %v9558_v54, 16 }
  0xa6   : > { %v450_v32 = vpop.f32.mrf.mxu2 }
  0xa7   : > { %v412_v38 = vpop.f32.mrf.mxu0  ;;  %v503_v11 = vadd.f32 %v11252_v39, %v450_v32  ;;  %v1389_v6 = vpack.c.b16 %v1360_v5, %v1359_v4  ;;  %v2004_v32 = vrot.slane %v2002_v16, 5  ;;  %v2009_v4 = vrot.slane %v2007_v43, 4 }
  0xa8   : > { %v2012_v5 = vrot.slane %v2010_v45, 5 }
  0xa9   : > { %v1064_v63 = vpop.f32.mrf.mxu1 }
  0xaa   : > { %v11290_v37 = vadd.f32 %v1064_v63, %v486_v49  ;;  %v2596_v49 = vrot.slane %v11228_v9, 5  ;;  %v9629_v9 = vrot.slane %v9613_v18, 9  ;;  %v488_v63 = vadd.f32 %v11252_v39, %v412_v38 }
  0xab   : > { %v2005_v38 = vsel %vm10960_vm4, %v2000_v40, %v2004_v32  ;;  %v2013_v26 = vor.u32 %v2012_v5, %v2009_v4  ;;  %v9614_v32 = vld [vmem:[%s10939_s8 + $0x30] sm:$0xe] }
  0xac   : > { %v1104_v52 = vpop.f32.mrf.mxu3  ;;  %v2598_v29 = vrot.slane %v2596_v49, 4  ;;  %v2597_v53 = vsel %vm11195_vm7, %v9629_v9, %v2596_v49  ;;  %v2303_v8 = vunpack.c.l.b16 %v2005_v38  ;;  %v9561_v38 = vld [vmem:[%s10939_s8 + $0x48] sm:$0xf] }
  0xad   : > { %v11297_v1 = vadd.f32 %v1104_v52, %v502_v46  ;;  %v2016_v46 = vshll.u32 %v11317_v34, 16  ;;  %v2698_v24 = vunpack.c.l.b16 %v2597_v53  ;;  %v2014_v43 = vrot.slane %v2013_v26, 4  ;;  %v11366_v53 = vld [vmem:[%s10939_s8 + $0x4c] sm:$0xf] }
  0xae   : > { %v452_v12 = vpop.f32.mrf.mxu2  ;;  %v2600_v56 = vsel %vm11195_vm7, %v2598_v29, %v2599_v36  ;;  %v2331_v30 = vpack.c.b16 %v2303_v8, %v2302_v15  ;;  %v2031_v15 = vshrl.u32 %v9561_v38, 16  ;;  %v2034_v8 = vshll.u32 %v9561_v38, 16 }
  0xaf   : > { %v415_v21 = vpop.f32.mrf.mxu0  ;;  %v2699_v16 = vunpack.c.l.b16 %v2600_v56 }
  0xb0   : > { %v489_v18 = vadd.f32 %v11252_v39, %v415_v21 }
  0xb1   : > { %v1067_v61 = vpop.f32.mrf.mxu1  ;;  %9531 = vmatmul.msk.bf16.gmra.mxu3 %vm343_vm1, %v10563_v3  ;;  %v1268_v3 = vsel %vm11195_vm7, %v1266_v10, %v1267_v41  ;;  %v2728_v40 = vpack.c.b16 %v2699_v16, %v2698_v24  ;;  %v1271_v41 = vrot.slane %v11053_v14, 5  ;;  %v1274_v14 = vrot.slane %v11063_v42, 5 }
  0xb2   : > { %v11310_v25 = vadd.f32 %v1067_v61, %v487_v7  ;;  %9597 = vmatmul.msk.bf16.gmra.mxu0 %vm343_vm1, %v2330_v59  ;;  %v504_v7 = vadd.f32 %v11252_v39, %v452_v12  ;;  %v2018_v59 = vrot.slane %v2016_v46, 5  ;;  %v10564_v61 = vld [vmem:[%s10939_s8 + $0x24] sm:$0xff]  ;;  %v1362_v49 = vunpack.c.l.b16 %v1268_v3 }
  0xb3   : > { %9419 = vmatmul.msk.bf16.gmra.mxu2 %vm343_vm1, %v1389_v6  ;;  %v1361_v6 = vunpack.c.l.b16 %v1265_v51  ;;  %v2026_v12 = vshll.u32 %v11343_v60, 16  ;;  %v1273_v4 = vrot.slane %v1271_v41, 4  ;;  %v2040_v42 = vshll.u32 %v11366_v53, 16 }
  0xb4   : > { %v1107_v27 = vpop.f32.mrf.mxu3  ;;  %9645 = vmatmul.msk.bf16.gmra.mxu1 %vm343_vm1, %v2727_v0  ;;  %v2022_v0 = vrot.slane %v2020_v48, 4  ;;  %v9630_v48 = vrot.slane %v9614_v32, 9 }
  0xb5   : > { %v11319_v35 = vadd.f32 %v1107_v27, %v503_v11  ;;  %v2603_v27 = vrot.slane %v11276_v22, 5  ;;  %v2028_v45 = vrot.slane %v2026_v12, 5  ;;  %v1178_v22 = vld [vmem:[%s10939_s8 + $0x30] sm:$0xe]  ;;  %v2042_v32 = vrot.slane %v2040_v42, 5 }
  0xb6   : > { %v455_v50 = vpop.f32.mrf.mxu2  ;;  %v2023_v54 = vor.u32 %v2022_v0, %v2018_v59  ;;  %v9404_v3 = vrot.slane %v1178_v22, 9 }
  0xb7   : > { %v417_v55 = vpop.f32.mrf.mxu0  ;;  %v505_v9 = vadd.f32 %v11252_v39, %v455_v50  ;;  %v2605_v51 = vrot.slane %v2603_v27, 4 }
  0xb8   : > { %v2024_v46 = vrot.slane %v2023_v54, 4  ;;  %v490_v56 = vadd.f32 %v11252_v39, %v417_v55  ;;  %v2044_v55 = vshrl.u32 %v11366_v53, 16 }
  0xb9   : > { %v1069_v52 = vpop.f32.mrf.mxu1 }
  0xba   : > { %v11337_v62 = vadd.f32 %v1069_v52, %v488_v63  ;;  %v1390_v63 = vpack.c.b16 %v1362_v49, %v1361_v6  ;;  %v2606_v52 = vrot.slane %v11301_v23, 5  ;;  %v2019_v23 = vsel %vm10960_vm4, %v2014_v43, %v2018_v59 }
  0xbb   : > { %v2029_v5 = vsel %vm10960_vm4, %v2024_v46, %v2028_v45  ;;  %v1275_v6 = vsel %vm11195_vm7, %v1273_v4, %v1274_v14  ;;  %v2304_v49 = vunpack.c.l.b16 %v2019_v23  ;;  %v11391_v45 = vld [vmem:[%s10939_s8 + $0x50] sm:$0x1]  ;;  %v1179_v4 = vld [vmem:[%s10939_s8 + $0x3c] sm:$0xe] }
  0xbc   : > { %v1109_v13 = vpop.f32.mrf.mxu3  ;;  %v2607_v0 = vsel %vm11195_vm7, %v2605_v51, %v2606_v52  ;;  %v2305_v26 = vunpack.c.l.b16 %v2029_v5  ;;  %v1364_v43 = vunpack.c.l.b16 %v1275_v6  ;;  %v1278_v5 = vrot.slane %v11077_v58, 5 }
  0xbd   : > { %v11345_v11 = vadd.f32 %v1109_v13, %v504_v7  ;;  %v2604_v7 = vsel %vm11195_vm7, %v9630_v48, %v2603_v27  ;;  %v2701_v54 = vunpack.c.l.b16 %v2607_v0  ;;  %v1281_v0 = vrot.slane %v11090_v20, 5 }
  0xbe   : > { %v457_v10 = vpop.f32.mrf.mxu2  ;;  %v2700_v12 = vunpack.c.l.b16 %v2604_v7  ;;  %v9615_v7 = vld [vmem:[%s10939_s8 + $0x3c] sm:$0xe]  ;;  %v2613_v20 = vrot.slane %v11343_v60, 5 }
  0xbf   : > { %v420_v36 = vpop.f32.mrf.mxu0  ;;  %v9631_v58 = vrot.slane %v9615_v7, 9 }
  0xc0   : > { %v491_v22 = vadd.f32 %v11252_v39, %v420_v36  ;;  %v2729_v48 = vpack.c.b16 %v2701_v54, %v2700_v12  ;;  %v2610_v36 = vrot.slane %v11317_v34, 5 }
  0xc1   : > { %v1072_v29 = vpop.f32.mrf.mxu1  ;;  %9532 = vmatmul.msk.bf16.gmra.mxu3 %vm343_vm1, %v10564_v61  ;;  %v1272_v61 = vsel %vm11195_vm7, %v9404_v3, %v1271_v41 }
  0xc2   : > { %v11354_v21 = vadd.f32 %v1072_v29, %v489_v18  ;;  %9598 = vmatmul.msk.bf16.gmra.mxu0 %vm343_vm1, %v2331_v30  ;;  %v506_v18 = vadd.f32 %v11252_v39, %v457_v10  ;;  %v2033_v30 = vrot.slane %v2031_v15, 4  ;;  %v1363_v41 = vunpack.c.l.b16 %v1272_v61  ;;  %v9564_v15 = vld [vmem:[%s10939_s8 + $0x54] sm:$0xf]  ;;  %v11408_v61 = vld [vmem:[%s10939_s8 + $0x58] sm:$0xf] }
  0xc3   : > { %9420 = vmatmul.msk.bf16.gmra.mxu2 %vm343_vm1, %v1390_v63  ;;  %v10565_v63 = vld [vmem:[%s10939_s8 + $0x30] sm:$0xff]  ;;  %v2332_v10 = vpack.c.b16 %v2305_v26, %v2304_v49  ;;  %v2612_v6 = vrot.slane %v2610_v36, 4  ;;  %v2055_v26 = vshrl.u32 %v9564_v15, 16  ;;  %v2058_v12 = vshll.u32 %v9564_v15, 16  ;;  %v10566_v15 = vld [vmem:[%s10939_s8 + $0x3c] sm:$0xff] }
  0xc4   : > { %v1112_v50 = vpop.f32.mrf.mxu3  ;;  %9646 = vmatmul.msk.bf16.gmra.mxu1 %vm343_vm1, %v2728_v40  ;;  %v2036_v40 = vrot.slane %v2034_v8, 5  ;;  %v1391_v3 = vpack.c.b16 %v1364_v43, %v1363_v41  ;;  %v2064_v54 = vshll.u32 %v11408_v61, 16 }
  0xc5   : > { %v11361_v47 = vadd.f32 %v1112_v50, %v505_v9  ;;  %v2046_v9 = vrot.slane %v2044_v55, 4  ;;  %v2050_v50 = vshll.u32 %v11391_v45, 16  ;;  %v2614_v43 = vsel %vm11195_vm7, %v2612_v6, %v2613_v20 }
  0xc6   : > { %v460_v13 = vpop.f32.mrf.mxu2  ;;  %v2037_v51 = vor.u32 %v2036_v40, %v2033_v30 }
  0xc7   : > { %v422_v16 = vpop.f32.mrf.mxu0  ;;  %v2047_v52 = vor.u32 %v2046_v9, %v2042_v32  ;;  %v507_v38 = vadd.f32 %v11252_v39, %v460_v13  ;;  %v9405_v13 = vrot.slane %v1179_v4, 9 }
  0xc8   : > { %v2038_v42 = vrot.slane %v2037_v51, 4  ;;  %v492_v49 = vadd.f32 %v11252_v39, %v422_v16  ;;  %v2611_v16 = vsel %vm11195_vm7, %v9631_v58, %v2610_v36  ;;  %v2060_v51 = vrot.slane %v2058_v12, 5 }
  0xc9   : > { %v1074_v24 = vpop.f32.mrf.mxu1  ;;  %v2048_v55 = vrot.slane %v2047_v52, 4  ;;  %v1279_v40 = vsel %vm11195_vm7, %v9405_v13, %v1278_v5  ;;  %v2702_v36 = vunpack.c.l.b16 %v2611_v16 }
  0xca   : > { %v11380_v59 = vadd.f32 %v1074_v24, %v490_v56  ;;  %v2052_v24 = vrot.slane %v2050_v50, 5  ;;  %v2043_v41 = vsel %vm10960_vm4, %v2038_v42, %v2042_v32  ;;  %v11433_v32 = vld [vmem:[%s10939_s8 + $0x5c] sm:$0x1]  ;;  %v2066_v50 = vrot.slane %v2064_v54, 5 }
  0xcc   : > { %v1114_v27 = vpop.f32.mrf.mxu3  ;;  %v2053_v60 = vsel %vm10960_vm4, %v2048_v55, %v2052_v24  ;;  %v2617_v24 = vrot.slane %v11366_v53, 5  ;;  %v1180_v53 = vld [vmem:[%s10939_s8 + $0x48] sm:$0xe] }
  0xcd   : > { %v11387_v29 = vadd.f32 %v1114_v27, %v506_v18  ;;  %v1280_v18 = vrot.slane %v1278_v5, 4  ;;  %v2068_v27 = vshrl.u32 %v11408_v61, 16  ;;  %v2307_v4 = vunpack.c.l.b16 %v2053_v60 }
  0xce   : > { %v462_v46 = vpop.f32.mrf.mxu2  ;;  %v2703_v5 = vunpack.c.l.b16 %v2614_v43  ;;  %v2619_v16 = vrot.slane %v2617_v24, 4  ;;  %v2620_v43 = vrot.slane %v11391_v45, 5 }
  0xcf   : > { %v425_v56 = vpop.f32.mrf.mxu0  ;;  %v508_v52 = vadd.f32 %v11252_v39, %v462_v46  ;;  %v2074_v46 = vshll.u32 %v11433_v32, 16 }
  0xd0   : > { %v2730_v20 = vpack.c.b16 %v2703_v5, %v2702_v36  ;;  %v2621_v36 = vsel %vm11195_vm7, %v2619_v16, %v2620_v43  ;;  %v11481_v16 = vld [vmem:[%s10939_s8 + $0x68] sm:$0x1] }
  0xd1   : > { %v1077_v14 = vpop.f32.mrf.mxu1  ;;  %9533 = vmatmul.msk.bf16.gmra.mxu3 %vm343_vm1, %v10565_v63 }
  0xd2   : > { %v11399_v23 = vadd.f32 %v1077_v14, %v491_v22  ;;  %9599 = vmatmul.msk.bf16.gmra.mxu0 %vm343_vm1, %v2332_v10  ;;  %v1282_v10 = vsel %vm11195_vm7, %v1280_v18, %v1281_v0  ;;  %v493_v0 = vadd.f32 %v11252_v39, %v425_v56 }
  0xd3   : > { %9421 = vmatmul.msk.bf16.gmra.mxu2 %vm343_vm1, %v1391_v3  ;;  %v2306_v3 = vunpack.c.l.b16 %v2043_v41  ;;  %v1366_v13 = vunpack.c.l.b16 %v1282_v10 }
  0xd4   : > { %v1117_v8 = vpop.f32.mrf.mxu3  ;;  %9647 = vmatmul.msk.bf16.gmra.mxu1 %vm343_vm1, %v2729_v48  ;;  %v2057_v48 = vrot.slane %v2055_v26, 4 }
  0xd5   : > { %v11410_v34 = vadd.f32 %v1117_v8, %v507_v38  ;;  %v2070_v38 = vrot.slane %v2068_v27, 4  ;;  %v1365_v8 = vunpack.c.l.b16 %v1279_v40  ;;  %v2333_v6 = vpack.c.b16 %v2307_v4, %v2306_v3 }
  0xd6   : > { %v465_v30 = vpop.f32.mrf.mxu2  ;;  %v2061_v42 = vor.u32 %v2060_v51, %v2057_v48  ;;  %v1285_v27 = vrot.slane %v11103_v57, 5  ;;  %v9567_v48 = vld [vmem:[%s10939_s8 + $0x60] sm:$0xf]  ;;  %v11456_v51 = vld [vmem:[%s10939_s8 + $0x64] sm:$0xf]  ;;  %v1288_v57 = vrot.slane %v11117_v28, 5 }
  0xd7   : > { %v427_v63 = vpop.f32.mrf.mxu0  ;;  %v2071_v55 = vor.u32 %v2070_v38, %v2066_v50  ;;  %v509_v18 = vadd.f32 %v11252_v39, %v465_v30  ;;  %v1392_v54 = vpack.c.b16 %v1366_v13, %v1365_v8  ;;  %v9406_v38 = vrot.slane %v1180_v53, 9 }
  0xd8   : > { %v2062_v40 = vrot.slane %v2061_v42, 4  ;;  %v2082_v8 = vshll.u32 %v9567_v48, 16  ;;  %v2088_v28 = vshll.u32 %v11456_v51, 16 }
  0xd9   : > { %v1079_v9 = vpop.f32.mrf.mxu1  ;;  %v2072_v41 = vrot.slane %v2071_v55, 4  ;;  %v1286_v42 = vsel %vm11195_vm7, %v9406_v38, %v1285_v27  ;;  %v2098_v38 = vshll.u32 %v11481_v16, 16 }
  0xda   : > { %v11427_v22 = vadd.f32 %v1079_v9, %v492_v49  ;;  %v9616_v49 = vld [vmem:[%s10939_s8 + $0x48] sm:$0xe]  ;;  %v2076_v9 = vrot.slane %v2074_v46, 5  ;;  %v2067_v45 = vsel %vm10960_vm4, %v2062_v40, %v2066_v50  ;;  %v2090_v40 = vrot.slane %v2088_v28, 5  ;;  %v9617_v28 = vld [vmem:[%s10939_s8 + $0x54] sm:$0xe] }
  0xdb   : > { %v9632_v60 = vrot.slane %v9616_v49, 9  ;;  %v2308_v55 = vunpack.c.l.b16 %v2067_v45  ;;  %v2705_v49 = vunpack.c.l.b16 %v2621_v36  ;;  %v1181_v36 = vld [vmem:[%s10939_s8 + $0x54] sm:$0xe] }
  0xdc   : > { %v1119_v14 = vpop.f32.mrf.mxu3  ;;  %v2077_v3 = vsel %vm10960_vm4, %v2072_v41, %v2076_v9  ;;  %v10567_v41 = vld [vmem:[%s10939_s8 + $0x48] sm:$0xff] }
  0xdd   : > { %v11435_v7 = vadd.f32 %v1119_v14, %v508_v52  ;;  %v494_v52 = vadd.f32 %v11252_v39, %v427_v63  ;;  %v1287_v14 = vrot.slane %v1285_v27, 4  ;;  %v2618_v4 = vsel %vm11195_vm7, %v9632_v60, %v2617_v24 }
  0xde   : > { %v467_v58 = vpop.f32.mrf.mxu2  ;;  %v2092_v63 = vshrl.u32 %v11456_v51, 16  ;;  %v1367_v27 = vunpack.c.l.b16 %v1286_v42 }
  0xdf   : > { %v430_v12 = vpop.f32.mrf.mxu0  ;;  %v1289_v46 = vsel %vm11195_vm7, %v1287_v14, %v1288_v57  ;;  %v510_v24 = vadd.f32 %v11252_v39, %v467_v58 }
  0xe0   : > { %v2094_v9 = vrot.slane %v2092_v63, 4  ;;  %v1368_v60 = vunpack.c.l.b16 %v1289_v46  ;;  %v495_v43 = vadd.f32 %v11252_v39, %v430_v12  ;;  %v2624_v12 = vrot.slane %v11408_v61, 5 }
  0xe1   : > { %v1082_v26 = vpop.f32.mrf.mxu1  ;;  %9534 = vmatmul.msk.bf16.gmra.mxu3 %vm343_vm1, %v10566_v15  ;;  %v2079_v15 = vshrl.u32 %v9567_v48, 16  ;;  %v1295_v63 = vrot.slane %v11158_v31, 5  ;;  %v2627_v31 = vrot.slane %v11433_v32, 5 }
  0xe2   : > { %v11444_v56 = vadd.f32 %v1082_v26, %v493_v0  ;;  %9600 = vmatmul.msk.bf16.gmra.mxu0 %vm343_vm1, %v2333_v6  ;;  %v2309_v6 = vunpack.c.l.b16 %v2077_v3 }
  0xe3   : > { %9422 = vmatmul.msk.bf16.gmra.mxu2 %vm343_vm1, %v1392_v54  ;;  %v2081_v26 = vrot.slane %v2079_v15, 4  ;;  %v2084_v54 = vrot.slane %v2082_v8, 5  ;;  %v1292_v8 = vrot.slane %v11129_v44, 5  ;;  %v9633_v44 = vrot.slane %v9617_v28, 9 }
  0xe4   : > { %v1122_v30 = vpop.f32.mrf.mxu3  ;;  %9648 = vmatmul.msk.bf16.gmra.mxu1 %vm343_vm1, %v2730_v20  ;;  %v2704_v20 = vunpack.c.l.b16 %v2618_v4  ;;  %v2334_v58 = vpack.c.b16 %v2309_v6, %v2308_v55  ;;  %v1393_v4 = vpack.c.b16 %v1368_v60, %v1367_v27  ;;  %v11498_v6 = vld [vmem:[%s10939_s8 + $0x70] sm:$0xf] }
  0xe5   : > { %v11451_v10 = vadd.f32 %v1122_v30, %v509_v18  ;;  %v2085_v57 = vor.u32 %v2084_v54, %v2081_v26 }
  0xe6   : > { %v470_v5 = vpop.f32.mrf.mxu2  ;;  %v2731_v48 = vpack.c.b16 %v2705_v49, %v2704_v20  ;;  %v2626_v20 = vrot.slane %v2624_v12, 4 }
  0xe7   : > { %v432_v0 = vpop.f32.mrf.mxu0  ;;  %v511_v14 = vadd.f32 %v11252_v39, %v470_v5  ;;  %v9407_v5 = vrot.slane %v1181_v36, 9  ;;  %v2086_v46 = vrot.slane %v2085_v57, 4 }
  0xe8   : > { %v496_v49 = vadd.f32 %v11252_v39, %v432_v0  ;;  %v2625_v0 = vsel %vm11195_vm7, %v9633_v44, %v2624_v12  ;;  %v2628_v57 = vsel %vm11195_vm7, %v2626_v20, %v2627_v31 }
  0xe9   : > { %v1084_v13 = vpop.f32.mrf.mxu1  ;;  %v1293_v60 = vsel %vm11195_vm7, %v9407_v5, %v1292_v8  ;;  %v2707_v5 = vunpack.c.l.b16 %v2628_v57 }
  0xea   : > { %v11470_v50 = vadd.f32 %v1084_v13, %v494_v52  ;;  %v2095_v52 = vor.u32 %v2094_v9, %v2090_v40  ;;  %v9570_v13 = vld [vmem:[%s10939_s8 + $0x6c] sm:$0xf]  ;;  %v2112_v9 = vshll.u32 %v11498_v6, 16 }
  0xeb   : > { %v2103_v26 = vshrl.u32 %v9570_v13, 16  ;;  %v2106_v54 = vshll.u32 %v9570_v13, 16 }
  0xec   : > { %v1124_v18 = vpop.f32.mrf.mxu3  ;;  %v2096_v55 = vrot.slane %v2095_v52, 4  ;;  %v2114_v36 = vrot.slane %v2112_v9, 5  ;;  %v9618_v9 = vld [vmem:[%s10939_s8 + $0x60] sm:$0xe] }
  0xed   : > { %v11477_v53 = vadd.f32 %v1124_v18, %v510_v24  ;;  %v2100_v24 = vrot.slane %v2098_v38, 5  ;;  %v1294_v18 = vrot.slane %v1292_v8, 4 }
  0xee   : > { %v472_v30 = vpop.f32.mrf.mxu2 }
  0xef   : > { %v435_v3 = vpop.f32.mrf.mxu0  ;;  %v2101_v32 = vsel %vm10960_vm4, %v2096_v55, %v2100_v24  ;;  %v1296_v38 = vsel %vm11195_vm7, %v1294_v18, %v1295_v63  ;;  %v10568_v55 = vld [vmem:[%s10939_s8 + $0x54] sm:$0xff]  ;;  %v1369_v24 = vunpack.c.l.b16 %v1293_v60 }
  0xf0   : > { %v2311_v12 = vunpack.c.l.b16 %v2101_v32  ;;  %v1370_v44 = vunpack.c.l.b16 %v1296_v38  ;;  %v497_v63 = vadd.f32 %v11252_v39, %v435_v3  ;;  %v10823_v32 = vld [vmem:[%s10939_s8 + $0x64] sm:$0xf]  ;;  %v1182_v38 = vld [vmem:[%s10939_s8 + $0x60] sm:$0xe] }
  0xf1   : > { %v1087_v45 = vpop.f32.mrf.mxu1  ;;  %9535 = vmatmul.msk.bf16.gmra.mxu3 %vm343_vm1, %v10567_v41  ;;  %v2116_v41 = vshrl.u32 %v11498_v6, 16 }
  0xf2   : > { %v11489_v15 = vadd.f32 %v1087_v45, %v495_v43  ;;  %9601 = vmatmul.msk.bf16.gmra.mxu0 %vm343_vm1, %v2334_v58  ;;  %v2108_v45 = vrot.slane %v2106_v54, 5 }
  0xf3   : > { %9423 = vmatmul.msk.bf16.gmra.mxu2 %vm343_vm1, %v1393_v4  ;;  %v512_v4 = vadd.f32 %v11252_v39, %v472_v30  ;;  %v2118_v8 = vrot.slane %v2116_v41, 4 }
  0xf4   : > { %v1127_v42 = vpop.f32.mrf.mxu3  ;;  %9649 = vmatmul.msk.bf16.gmra.mxu1 %vm343_vm1, %v2731_v48  ;;  %v2091_v48 = vsel %vm10960_vm4, %v2086_v46, %v2090_v40  ;;  %v11523_v40 = vld [vmem:[%s10939_s8 + $0x74] sm:$0x1] }
  0xf5   : > { %v11500_v61 = vadd.f32 %v1127_v42, %v511_v14  ;;  %v2105_v14 = vrot.slane %v2103_v26, 4  ;;  %v2310_v13 = vunpack.c.l.b16 %v2091_v48  ;;  %v2706_v42 = vunpack.c.l.b16 %v2625_v0 }
  0xf6   : > { %v475_v27 = vpop.f32.mrf.mxu2  ;;  %v2122_v30 = vshll.u32 %v11523_v40, 16  ;;  %v2119_v31 = vor.u32 %v2118_v8, %v2114_v36  ;;  %v1394_v48 = vpack.c.b16 %v1370_v44, %v1369_v24  ;;  %v1299_v0 = vrot.slane %v10823_v32, 5 }
  0xf7   : > { %v437_v58 = vpop.f32.mrf.mxu0  ;;  %v2109_v20 = vor.u32 %v2108_v45, %v2105_v14  ;;  %v2335_v26 = vpack.c.b16 %v2311_v12, %v2310_v13  ;;  %v2732_v54 = vpack.c.b16 %v2707_v5, %v2706_v42  ;;  %v513_v41 = vadd.f32 %v11252_v39, %v475_v27  ;;  %v9573_v13 = vld [vmem:[%s10939_s8 + $0x78] sm:$0xf]  ;;  %v11546_v12 = vld [vmem:[%s10939_s8 + $0x7c] sm:$0xf]  ;;  %v10824_v42 = vld [vmem:[%s10939_s8 + $0x68] sm:$0x1] }
  0xf8   : > { %v2120_v14 = vrot.slane %v2119_v31, 4  ;;  %v9634_v45 = vrot.slane %v9618_v9, 9  ;;  %v2634_v27 = vrot.slane %v11481_v16, 5  ;;  %v1302_v5 = vrot.slane %v10824_v42, 5 }
  0xf9   : > { %v1089_v43 = vpop.f32.mrf.mxu1  ;;  %v2110_v57 = vrot.slane %v2109_v20, 4  ;;  %v9408_v24 = vrot.slane %v1182_v38, 9  ;;  %v1301_v44 = vrot.slane %v1299_v0, 4  ;;  %v2136_v9 = vshll.u32 %v11546_v12, 16 }
  0xfa   : > { %v11517_v52 = vadd.f32 %v1089_v43, %v496_v49  ;;  %v2631_v49 = vrot.slane %v11456_v51, 5  ;;  %v2124_v51 = vrot.slane %v2122_v30, 5 }
  0xfb   : > { %v2115_v16 = vsel %vm10960_vm4, %v2110_v57, %v2114_v36 }
  0xfc   : > { %v1129_v28 = vpop.f32.mrf.mxu3  ;;  %v2632_v20 = vsel %vm11195_vm7, %v9634_v45, %v2631_v49  ;;  %v2312_v32 = vunpack.c.l.b16 %v2115_v16 }
  0xfd   : > { %v11525_v46 = vadd.f32 %v1129_v28, %v512_v4  ;;  %v2633_v4 = vrot.slane %v2631_v49, 4  ;;  %v1303_v49 = vsel %vm11195_vm7, %v1301_v44, %v1302_v5  ;;  %v2708_v38 = vunpack.c.l.b16 %v2632_v20 }
  0xfe   : > { %v477_v18 = vpop.f32.mrf.mxu2 }
  0xff   : > { %v440_v60 = vpop.f32.mrf.mxu0  ;;  %v2635_v30 = vsel %vm11195_vm7, %v2633_v4, %v2634_v27  ;;  %v514_v57 = vadd.f32 %v11252_v39, %v477_v18 }
 0x100   : > { %v499_v18 = vadd.f32 %v11252_v39, %v440_v60  ;;  %v1183_v60 = vld [vmem:[%s10939_s8 + $0x6c] sm:$0xe] }
 0x101   : > { %v1092_v43 = vpop.f32.mrf.mxu1  ;;  %9536 = vmatmul.msk.bf16.gmra.mxu3 %vm343_vm1, %v10568_v55  ;;  %v498_v55 = vadd.f32 %v11252_v39, %v437_v58  ;;  %v2140_v58 = vshrl.u32 %v11546_v12, 16 }
 0x102   : > { %v11534_v3 = vadd.f32 %v1092_v43, %v497_v63  ;;  %9602 = vmatmul.msk.bf16.gmra.mxu0 %vm343_vm1, %v2335_v26  ;;  %v2125_v63 = vsel %vm10960_vm4, %v2120_v14, %v2124_v51  ;;  %v2127_v26 = vshrl.u32 %v9573_v13, 16  ;;  %v2709_v14 = vunpack.c.l.b16 %v2635_v30 }
 0x103   : > { %9424 = vmatmul.msk.bf16.gmra.mxu2 %vm343_vm1, %v1394_v48  ;;  %v1300_v48 = vsel %vm11195_vm7, %v9408_v24, %v1299_v0  ;;  %v2313_v51 = vunpack.c.l.b16 %v2125_v63  ;;  %v1372_v24 = vunpack.c.l.b16 %v1303_v49 }
 0x104   : > { %v1132_v8 = vpop.f32.mrf.mxu3  ;;  %9650 = vmatmul.msk.bf16.gmra.mxu1 %vm343_vm1, %v2732_v54  ;;  %v2130_v54 = vshll.u32 %v9573_v13, 16  ;;  %v2129_v4 = vrot.slane %v2127_v26, 4  ;;  %v2142_v13 = vrot.slane %v2140_v58, 4  ;;  %v1371_v0 = vunpack.c.l.b16 %v1300_v48 }
 0x105   : > { %v11541_v28 = vadd.f32 %v1132_v8, %v513_v41  ;;  %v11567_v8 = vrot.slane %v2136_v9, 5  ;;  %v2336_v5 = vpack.c.b16 %v2313_v51, %v2312_v32  ;;  %v2733_v16 = vpack.c.b16 %v2709_v14, %v2708_v38  ;;  %v10825_v32 = vld [vmem:[%s10939_s8 + $0x70] sm:$0xf]  ;;  %v9619_v51 = vld [vmem:[%s10939_s8 + $0x6c] sm:$0xe] }
 0x106   : > { %v480_v31 = vpop.f32.mrf.mxu2  ;;  %v2132_v27 = vrot.slane %v2130_v54, 5  ;;  %v1395_v58 = vpack.c.b16 %v1372_v24, %v1371_v0  ;;  %v2638_v48 = vrot.slane %v11498_v6, 5  ;;  %v10826_v38 = vld [vmem:[%s10939_s8 + $0x74] sm:$0x1]  ;;  %v11593_v0 = vld [vmem:[%s10939_s8 + $0x88] sm:$0xf] }
 0x107   : > { %14518 = vst [vmem:[#allocation3_spill] sm:$0xff] %v11541_v28  ;;  %v442_v43 = vpop.f32.mrf.mxu0  ;;  %v2143_v20 = vor.u32 %v2142_v13, %v11567_v8  ;;  %v515_v26 = vadd.f32 %v11252_v39, %v480_v31  ;;  %v1309_v14 = vrot.slane %v10826_v38, 5  ;;  %v9409_v31 = vrot.slane %v1183_v60, 9 }
 0x108   : > { %v2133_v63 = vor.u32 %v2132_v27, %v2129_v4  ;;  %v9635_v24 = vrot.slane %v9619_v51, 9 }
 0x109   : > { %v1094_v41 = vpop.f32.mrf.mxu1  ;;  %v2144_v13 = vrot.slane %v2143_v20, 4 }
 0x10a   : > { %v11560_v36 = vadd.f32 %v1094_v41, %v498_v55  ;;  %v10569_v55 = vld [vmem:[%s10939_s8 + $0x60] sm:$0xff]  ;;  %v2134_v27 = vrot.slane %v2133_v63, 4 }
 0x10b   : > { %v11573_v41 = vld [vmem:[%s10939_s8 + $0x80] sm:$0x1] }
 0x10c   : > { %v1134_v45 = vpop.f32.mrf.mxu3  ;;  %v2146_v30 = vshll.u32 %v11573_v41, 16 }
 0x10d   : > { %v11569_v42 = vadd.f32 %v1134_v45, %v514_v57  ;;  %v1306_v57 = vrot.slane %v10825_v32, 5  ;;  %v9576_v45 = vld [vmem:[%s10939_s8 + $0x84] sm:$0xf] }
 0x10e   : > { %v482_v44 = vpop.f32.mrf.mxu2  ;;  %v2151_v63 = vshrl.u32 %v9576_v45, 16  ;;  %v2154_v20 = vshll.u32 %v9576_v45, 16 }
 0x10f   : > { %14519 = vst [vmem:[#allocation4_spill] sm:$0xff] %v11569_v42  ;;  %v11580_v9 = vpop.f32.mrf.mxu0  ;;  %v1308_v60 = vrot.slane %v1306_v57, 4  ;;  %v1307_v32 = vsel %vm11195_vm7, %v9409_v31, %v1306_v57 }
 0x110   : > { %v2153_v31 = vrot.slane %v2151_v63, 4 }
 0x111   : > { %v1097_v54 = vpop.f32.mrf.mxu1  ;;  %9537 = vmatmul.msk.bf16.gmra.mxu3 %vm343_vm1, %v10569_v55  ;;  %v2148_v55 = vrot.slane %v2146_v30, 5  ;;  %v2160_v30 = vshll.u32 %v11593_v0, 16 }
 0x112   : > { %v11584_v49 = vadd.f32 %v1097_v54, %v499_v18  ;;  %9603 = vmatmul.msk.bf16.gmra.mxu0 %vm343_vm1, %v2336_v5  ;;  %v2640_v18 = vrot.slane %v2638_v48, 4  ;;  %v2641_v54 = vrot.slane %v11523_v40, 5  ;;  %v10617_v5 = vld [vmem:[%s14507_s3 + $0x38] sm:$0xff]  ;;  %v2139_v40 = vsel %vm10960_vm4, %v2134_v27, %v11567_v8 }
 0x113   : > { %9425 = vmatmul.msk.bf16.gmra.mxu2 %vm343_vm1, %v1395_v58  ;;  %5070 = vmatpush.bf16.msra.mxu1 %v10617_v5  ;;  %v2149_v45 = vsel %vm10960_vm4, %v2144_v13, %v2148_v55  ;;  %v1310_v8 = vsel %vm11195_vm7, %v1308_v60, %v1309_v14  ;;  %v2156_v27 = vrot.slane %v2154_v20, 5 }
 0x114   : > { %v1137_v4 = vpop.f32.mrf.mxu3  ;;  %9651 = vmatmul.msk.bf16.gmra.mxu1 %vm343_vm1, %v2733_v16  ;;  %v500_v16 = vadd.f32 %v11252_v39, %v442_v43  ;;  %v2642_v5 = vsel %vm11195_vm7, %v2640_v18, %v2641_v54  ;;  %v10570_v54 = vld [vmem:[%s10939_s8 + $0x6c] sm:$0xff]  ;;  %v1374_v14 = vunpack.c.l.b16 %v1310_v8 }
 0x115   : > { %v11595_v6 = vadd.f32 %v1137_v4, %v515_v26  ;;  %v2164_v26 = vshrl.u32 %v11593_v0, 16  ;;  %v2639_v4 = vsel %vm11195_vm7, %v9635_v24, %v2638_v48  ;;  %v2314_v48 = vunpack.c.l.b16 %v2139_v40  ;;  %v9620_v40 = vld [vmem:[%s10939_s8 + $0x78] sm:$0xe] }
 0x116   : > { %v1463_v58 = vpop.f32.mrf.mxu2  ;;  %v2315_v24 = vunpack.c.l.b16 %v2149_v45  ;;  %v2710_v42 = vunpack.c.l.b16 %v2639_v4  ;;  %v2711_v28 = vunpack.c.l.b16 %v2642_v5  ;;  %v2157_v60 = vor.u32 %v2156_v27, %v2153_v31  ;;  %v10827_v5 = vld [vmem:[%s10939_s8 + $0x7c] sm:$0xf] }
 0x117   : > { %14520 = vst [vmem:[#allocation5_spill] sm:$0xff] %v11595_v6  ;;  %v1543_v43 = vadd.f32 %v1463_v58, %v11264_v2  ;;  %v11611_v38 = vpop.f32.mrf.mxu0  ;;  %v516_v2 = vadd.f32 %v11252_v39, %v482_v44  ;;  %v11625_v58 = vld [vmem:[%s10939_s8 + $0x8c] sm:$0x1]  ;;  %v2162_v6 = vrot.slane %v2160_v30, 5  ;;  %v2166_v13 = vrot.slane %v2164_v26, 4 }
 0x118   : > { %v2170_v63 = vshll.u32 %v11625_v58, 16  ;;  %v2645_v44 = vrot.slane %v11546_v12, 5  ;;  %v2337_v30 = vpack.c.b16 %v2315_v24, %v2314_v48  ;;  %v2734_v26 = vpack.c.b16 %v2711_v28, %v2710_v42  ;;  %v1184_v12 = vld [vmem:[%s10939_s8 + $0x78] sm:$0xe]  ;;  %v9579_v48 = vld [vmem:[%s10939_s8 + $0x90] sm:$0xf] }
 0x119   : > { %v1099_v51 = vpop.f32.mrf.mxu1  ;;  %v2167_v39 = vor.u32 %v2166_v13, %v2162_v6  ;;  %v1313_v8 = vrot.slane %v10827_v5, 5  ;;  %v2158_v31 = vrot.slane %v2157_v60, 4  ;;  %v9636_v13 = vrot.slane %v9620_v40, 9  ;;  %v11645_v24 = vld [vmem:[%s10939_s8 + $0x94] sm:$0xf] }
 0x11a   : > { %v11619_v57 = vadd.f32 %v1099_v51, %v500_v16  ;;  %v1373_v16 = vunpack.c.l.b16 %v1307_v32  ;;  %v2172_v27 = vrot.slane %v2170_v63, 5  ;;  %v2647_v28 = vrot.slane %v2645_v44, 4 }
 0x11b   : > { %v2648_v42 = vrot.slane %v11573_v41, 5  ;;  %v1315_v60 = vrot.slane %v1313_v8, 4  ;;  %v2163_v63 = vsel %vm10960_vm4, %v2158_v31, %v2162_v6  ;;  %v2178_v40 = vshll.u32 %v9579_v48, 16 }
 0x11c   : > { %v1139_v55 = vpop.f32.mrf.mxu3  ;;  %v1396_v4 = vpack.c.b16 %v1374_v14, %v1373_v16  ;;  %v9410_v14 = vrot.slane %v1184_v12, 9  ;;  %v2188_v5 = vshrl.u32 %v11645_v24, 16 }
 0x11d   : > { %v11627_v18 = vadd.f32 %v1139_v55, %v516_v2  ;;  %v2168_v2 = vrot.slane %v2167_v39, 4 }
 0x11e   : > { %v1465_v20 = vpop.f32.mrf.mxu2 }
 0x11f   : > { %14521 = vst [vmem:[#allocation6_spill] sm:$0xff] %v11627_v18  ;;  %v1544_v51 = vadd.f32 %v1465_v20, %v11290_v37  ;;  %v11635_v45 = vpop.f32.mrf.mxu0  ;;  %v2173_v39 = vsel %vm10960_vm4, %v2168_v2, %v2172_v27  ;;  %v2649_v20 = vsel %vm11195_vm7, %v2647_v28, %v2648_v42  ;;  %v2316_v2 = vunpack.c.l.b16 %v2163_v63  ;;  %v11672_v18 = vld [vmem:[%s10939_s8 + $0x98] sm:$0x1] }
 0x120   : > { %v2713_v42 = vunpack.c.l.b16 %v2649_v20 }
 0x121   : > { %9538 = vmatmul.msk.bf16.gmra.mxu3 %vm343_vm1, %v10570_v54  ;;  %v2802_v32 = vpop.f32.mrf.mxu1  ;;  %v10828_v54 = vld [vmem:[%s10939_s8 + $0x80] sm:$0x1] }
 0x122   : > { %9604 = vmatmul.msk.bf16.gmra.mxu0 %vm343_vm1, %v2337_v30  ;;  %v1316_v16 = vrot.slane %v10828_v54, 5 }
 0x123   : > { %9426 = vmatmul.msk.bf16.gmra.mxu2 %vm343_vm1, %v1396_v4  ;;  %v2184_v4 = vshll.u32 %v11645_v24, 16 }
 0x124   : > { %v1750_v37 = vpop.f32.mrf.mxu3  ;;  %9652 = vmatmul.msk.bf16.gmra.mxu1 %vm343_vm1, %v2734_v26  ;;  %v2175_v26 = vshrl.u32 %v9579_v48, 16  ;;  %v1317_v27 = vsel %vm11195_vm7, %v1315_v60, %v1316_v16 }
 0x125   : > { %v1830_v55 = vadd.f32 %v1750_v37, %v1543_v43  ;;  %v2646_v43 = vsel %vm11195_vm7, %v9636_v13, %v2645_v44  ;;  %v1314_v44 = vsel %vm11195_vm7, %v9410_v14, %v1313_v8  ;;  %v2317_v13 = vunpack.c.l.b16 %v2173_v39 }
 0x126   : > { %v1468_v30 = vpop.f32.mrf.mxu2  ;;  %v2712_v28 = vunpack.c.l.b16 %v2646_v43  ;;  %v11668_v48 = vrot.slane %v2184_v4, 5  ;;  %v2652_v4 = vrot.slane %v11593_v0, 5 }
 0x127   : > { %v2484_v41 = vadd.f32 %v11580_v9, %v1830_v55  ;;  %v1545_v9 = vadd.f32 %v1468_v30, %v11310_v25  ;;  %v11662_v6 = vpop.f32.mrf.mxu0  ;;  %v2180_v55 = vrot.slane %v2178_v40, 5  ;;  %v2190_v25 = vrot.slane %v2188_v5, 4  ;;  %v10829_v5 = vld [vmem:[%s10939_s8 + $0x88] sm:$0xf] }
 0x128   : > { %v1375_v30 = vunpack.c.l.b16 %v1314_v44  ;;  %v2338_v16 = vpack.c.b16 %v2317_v13, %v2316_v2  ;;  %v2735_v60 = vpack.c.b16 %v2713_v42, %v2712_v28  ;;  %v1320_v44 = vrot.slane %v10829_v5, 5  ;;  %v1185_v2 = vld [vmem:[%s10939_s8 + $0x84] sm:$0xe]  ;;  %v9582_v13 = vld [vmem:[%s10939_s8 + $0x9c] sm:$0xf] }
 0x129   : > { %v11659_v12 = vadd.f32 %v2802_v32, %v2484_v41  ;;  %v2804_v31 = vpop.f32.mrf.mxu1  ;;  %v2177_v32 = vrot.slane %v2175_v26, 4  ;;  %v10571_v41 = vld [vmem:[%s10939_s8 + $0x78] sm:$0xff]  ;;  %v2191_v39 = vor.u32 %v2190_v25, %v11668_v48  ;;  %v10830_v28 = vld [vmem:[%s10939_s8 + $0x8c] sm:$0x1]  ;;  %v2654_v25 = vrot.slane %v2652_v4, 4 }
 0x12a   : > { %v1323_v42 = vrot.slane %v10830_v28, 5 }
 0x12b   : > { %14522 = vst [vmem:[#allocation7_spill] sm:$0xff] %v11659_v12  ;;  %v1376_v12 = vunpack.c.l.b16 %v1317_v27  ;;  %v2181_v63 = vor.u32 %v2180_v55, %v2177_v32  ;;  %v9621_v27 = vld [vmem:[%s10939_s8 + $0x84] sm:$0xe] }
 0x12c   : > { %v1752_v37 = vpop.f32.mrf.mxu3  ;;  %v9637_v0 = vrot.slane %v9621_v27, 9 }
 0x12d   : > { %v1831_v54 = vadd.f32 %v1752_v37, %v1544_v51  ;;  %v2194_v51 = vshll.u32 %v11672_v18, 16  ;;  %v2192_v37 = vrot.slane %v2191_v39, 4 }
 0x12e   : > { %v1470_v14 = vpop.f32.mrf.mxu2 }
 0x12f   : > { %v2485_v8 = vadd.f32 %v11611_v38, %v1831_v54  ;;  %v1546_v20 = vadd.f32 %v1470_v14, %v11337_v62  ;;  %v11681_v26 = vpop.f32.mrf.mxu0  ;;  %v1397_v38 = vpack.c.b16 %v1376_v12, %v1375_v30  ;;  %v2182_v62 = vrot.slane %v2181_v63, 4  ;;  %v11692_v12 = vld [vmem:[%s10939_s8 + $0xa0] sm:$0xf] }
 0x130   : > { %v2196_v32 = vrot.slane %v2194_v51, 5  ;;  %v2655_v54 = vrot.slane %v11625_v58, 5  ;;  %v9411_v30 = vrot.slane %v1185_v2, 9  ;;  %v2202_v14 = vshll.u32 %v9582_v13, 16 }
 0x131   : > { %v11677_v43 = vadd.f32 %v2804_v31, %v2485_v8  ;;  %9539 = vmatmul.msk.bf16.gmra.mxu3 %vm343_vm1, %v10571_v41  ;;  %v2807_v40 = vpop.f32.mrf.mxu1  ;;  %v10616_v41 = vld [vmem:[%s14507_s3 + $0x30] sm:$0xff]  ;;  %v1322_v8 = vrot.slane %v1320_v44, 4  ;;  %v2208_v63 = vshll.u32 %v11692_v12, 16  ;;  %v2187_v58 = vsel %vm10960_vm4, %v2182_v62, %v11668_v48  ;;  %v11721_v62 = vld [vmem:[%s10939_s8 + $0xa4] sm:$0x1] }
 0x132   : > { %9605 = vmatmul.msk.bf16.gmra.mxu0 %vm343_vm1, %v2338_v16  ;;  %v2199_v16 = vshrl.u32 %v9582_v13, 16  ;;  %5071 = vmatpush.bf16.msra.mxu1 %v10616_v41  ;;  %v2197_v51 = vsel %vm10960_vm4, %v2192_v37, %v2196_v32  ;;  %v2653_v2 = vsel %vm11195_vm7, %v9637_v0, %v2652_v4  ;;  %v2656_v13 = vsel %vm11195_vm7, %v2654_v25, %v2655_v54  ;;  %v10572_v54 = vld [vmem:[%s10939_s8 + $0x84] sm:$0xff] }
 0x133   : > { %9427 = vmatmul.msk.bf16.gmra.mxu2 %vm343_vm1, %v1397_v38  ;;  %v1321_v48 = vsel %vm11195_vm7, %v9411_v30, %v1320_v44  ;;  %v1324_v28 = vsel %vm11195_vm7, %v1322_v8, %v1323_v42  ;;  %v2319_v4 = vunpack.c.l.b16 %v2197_v51  ;;  %v2714_v0 = vunpack.c.l.b16 %v2653_v2 }
 0x134   : > { %v1755_v31 = vpop.f32.mrf.mxu3  ;;  %9653 = vmatmul.msk.bf16.gmra.mxu1 %vm343_vm1, %v2735_v60  ;;  %v2715_v41 = vunpack.c.l.b16 %v2656_v13  ;;  %v1378_v44 = vunpack.c.l.b16 %v1324_v28  ;;  %v2218_v42 = vshll.u32 %v11721_v62, 16 }
 0x135   : > { %v1832_v55 = vadd.f32 %v1755_v31, %v1545_v9  ;;  %v2212_v9 = vshrl.u32 %v11692_v12, 16  ;;  %v2204_v31 = vrot.slane %v2202_v14, 5  ;;  %v2659_v14 = vrot.slane %v11645_v24, 5 }
 0x136   : > { %v1473_v39 = vpop.f32.mrf.mxu2 }
 0x137   : > { %v2486_v60 = vadd.f32 %v11635_v45, %v1832_v55  ;;  %v1547_v5 = vadd.f32 %v1473_v39, %v11354_v21  ;;  %v11710_v27 = vpop.f32.mrf.mxu0  ;;  %v11723_v21 = vrot.slane %v2208_v63, 5  ;;  %v2214_v37 = vrot.slane %v2212_v9, 4 }
 0x138   : > { %v2318_v55 = vunpack.c.l.b16 %v2187_v58  ;;  %v2736_v39 = vpack.c.b16 %v2715_v41, %v2714_v0  ;;  %v9622_v58 = vld [vmem:[%s10939_s8 + $0x90] sm:$0xe]  ;;  %v9585_v0 = vld [vmem:[%s10939_s8 + $0xa8] sm:$0xf]  ;;  %v11745_v41 = vld [vmem:[%s10939_s8 + $0xac] sm:$0xf] }
 0x139   : > { %v11707_v38 = vadd.f32 %v2807_v40, %v2486_v60  ;;  %v2809_v45 = vpop.f32.mrf.mxu1  ;;  %v2201_v40 = vrot.slane %v2199_v16, 4  ;;  %v1377_v60 = vunpack.c.l.b16 %v1321_v48  ;;  %v2215_v16 = vor.u32 %v2214_v37, %v11723_v21  ;;  %v10831_v48 = vld [vmem:[%s10939_s8 + $0x94] sm:$0xf] }
 0x13a   : > { %v2339_v9 = vpack.c.b16 %v2319_v4, %v2318_v55  ;;  %v1327_v28 = vrot.slane %v10831_v48, 5  ;;  %v2662_v55 = vrot.slane %v11672_v18, 5 }
 0x13b   : > { %v2205_v30 = vor.u32 %v2204_v31, %v2201_v40  ;;  %v1398_v13 = vpack.c.b16 %v1378_v44, %v1377_v60  ;;  %v2220_v40 = vrot.slane %v2218_v42, 5  ;;  %v1186_v31 = vld [vmem:[%s10939_s8 + $0x90] sm:$0xe]  ;;  %v2216_v37 = vrot.slane %v2215_v16, 4 }
 0x13c   : > { %v1757_v32 = vpop.f32.mrf.mxu3  ;;  %v9412_v60 = vrot.slane %v1186_v31, 9  ;;  %v1329_v44 = vrot.slane %v1327_v28, 4 }
 0x13d   : > { %v1833_v25 = vadd.f32 %v1757_v32, %v1546_v20  ;;  %v2206_v24 = vrot.slane %v2205_v30, 4  ;;  %v9638_v32 = vrot.slane %v9622_v58, 9  ;;  %v2221_v42 = vsel %vm10960_vm4, %v2216_v37, %v2220_v40 }
 0x13e   : > { %v1475_v63 = vpop.f32.mrf.mxu2  ;;  %v2236_v58 = vshrl.u32 %v11745_v41, 16  ;;  %v2321_v31 = vunpack.c.l.b16 %v2221_v42 }
 0x13f   : > { %v2487_v8 = vadd.f32 %v11662_v6, %v1833_v25  ;;  %v1548_v20 = vadd.f32 %v1475_v63, %v11380_v59  ;;  %v11735_v2 = vpop.f32.mrf.mxu0  ;;  %v10832_v25 = vld [vmem:[%s10939_s8 + $0x98] sm:$0x1]  ;;  %v2211_v30 = vsel %vm10960_vm4, %v2206_v24, %v11723_v21  ;;  %v2223_v63 = vshrl.u32 %v9585_v0, 16 }
 0x140   : > { %v2320_v40 = vunpack.c.l.b16 %v2211_v30 }
 0x141   : > { %v11731_v51 = vadd.f32 %v2809_v45, %v2487_v8  ;;  %9540 = vmatmul.msk.bf16.gmra.mxu3 %vm343_vm1, %v10572_v54  ;;  %v2812_v6 = vpop.f32.mrf.mxu1  ;;  %v2661_v45 = vrot.slane %v2659_v14, 4  ;;  %v1330_v54 = vrot.slane %v10832_v25, 5 }
 0x142   : > { %9606 = vmatmul.msk.bf16.gmra.mxu0 %vm343_vm1, %v2339_v9  ;;  %v2226_v9 = vshll.u32 %v9585_v0, 16  ;;  %v10573_v0 = vld [vmem:[%s10939_s8 + $0x90] sm:$0xff] }
 0x143   : > { %9428 = vmatmul.msk.bf16.gmra.mxu2 %vm343_vm1, %v1398_v13  ;;  %v2663_v8 = vsel %vm11195_vm7, %v2661_v45, %v2662_v55  ;;  %v1331_v24 = vsel %vm11195_vm7, %v1329_v44, %v1330_v54  ;;  %v2340_v54 = vpack.c.b16 %v2321_v31, %v2320_v40  ;;  %v1187_v40 = vld [vmem:[%s10939_s8 + $0x9c] sm:$0xe]  ;;  %v9588_v31 = vld [vmem:[%s10939_s8 + $0xb4] sm:$0xf] }
 0x144   : > { %v1760_v59 = vpop.f32.mrf.mxu3  ;;  %9654 = vmatmul.msk.bf16.gmra.mxu1 %vm343_vm1, %v2736_v39  ;;  %v2232_v39 = vshll.u32 %v11745_v41, 16  ;;  %v2228_v55 = vrot.slane %v2226_v9, 5 }
 0x145   : > { %v1834_v4 = vadd.f32 %v1760_v59, %v1547_v5  ;;  %v2660_v5 = vsel %vm11195_vm7, %v9638_v32, %v2659_v14  ;;  %v1328_v14 = vsel %vm11195_vm7, %v9412_v60, %v1327_v28  ;;  %v2717_v32 = vunpack.c.l.b16 %v2663_v8 }
 0x146   : > { %v1478_v16 = vpop.f32.mrf.mxu2  ;;  %v2716_v37 = vunpack.c.l.b16 %v2660_v5  ;;  %v11769_v59 = vrot.slane %v2232_v39, 5  ;;  %v1379_v25 = vunpack.c.l.b16 %v1328_v14  ;;  %v2666_v39 = vrot.slane %v11692_v12, 5 }
 0x147   : > { %v2488_v18 = vadd.f32 %v11681_v26, %v1834_v4  ;;  %v1549_v26 = vadd.f32 %v1478_v16, %v11399_v23  ;;  %v11763_v21 = vpop.f32.mrf.mxu0  ;;  %v2238_v23 = vrot.slane %v2236_v58, 4  ;;  %v11773_v16 = vld [vmem:[%s10939_s8 + $0xb0] sm:$0x1]  ;;  %v10833_v58 = vld [vmem:[%s10939_s8 + $0xa0] sm:$0xf] }
 0x148   : > { %v2737_v44 = vpack.c.b16 %v2717_v32, %v2716_v37  ;;  %v1334_v14 = vrot.slane %v10833_v58, 5  ;;  %v10834_v37 = vld [vmem:[%s10939_s8 + $0xa4] sm:$0x1] }
 0x149   : > { %v11760_v13 = vadd.f32 %v2812_v6, %v2488_v18  ;;  %v2814_v48 = vpop.f32.mrf.mxu1  ;;  %v2225_v6 = vrot.slane %v2223_v63, 4  ;;  %v1380_v18 = vunpack.c.l.b16 %v1331_v24  ;;  %v2239_v42 = vor.u32 %v2238_v23, %v11769_v59  ;;  %v9623_v24 = vld [vmem:[%s10939_s8 + $0x9c] sm:$0xe] }
 0x14a   : > { %v1337_v32 = vrot.slane %v10834_v37, 5  ;;  %v9639_v12 = vrot.slane %v9623_v24, 9 }
 0x14b   : > { %v2229_v30 = vor.u32 %v2228_v55, %v2225_v6  ;;  %v11793_v55 = vld [vmem:[%s10939_s8 + $0xb8] sm:$0xf] }
 0x14c   : > { %v1762_v45 = vpop.f32.mrf.mxu3 }
 0x14d   : > { %v1835_v4 = vadd.f32 %v1762_v45, %v1548_v20  ;;  %v2242_v20 = vshll.u32 %v11773_v16, 16  ;;  %v2240_v45 = vrot.slane %v2239_v42, 4 }
 0x14e   : > { %v1480_v60 = vpop.f32.mrf.mxu2 }
 0x14f   : > { %v2489_v28 = vadd.f32 %v11710_v27, %v1835_v4  ;;  %v1550_v8 = vadd.f32 %v1480_v60, %v11427_v22  ;;  %v11782_v63 = vpop.f32.mrf.mxu0  ;;  %v1399_v27 = vpack.c.b16 %v1380_v18, %v1379_v25  ;;  %v2230_v22 = vrot.slane %v2229_v30, 4  ;;  %v10615_v25 = vld [vmem:[%s14507_s3 + $0x28] sm:$0xff] }
 0x150   : > { %v2244_v6 = vrot.slane %v2242_v20, 5  ;;  %v2668_v4 = vrot.slane %v2666_v39, 4  ;;  %v9413_v18 = vrot.slane %v1187_v40, 9  ;;  %v2250_v60 = vshll.u32 %v9588_v31, 16  ;;  %5072 = vmatpush.bf16.msra.mxu1 %v10615_v25 }
 0x151   : > { %v11778_v5 = vadd.f32 %v2814_v48, %v2489_v28  ;;  %9541 = vmatmul.msk.bf16.gmra.mxu3 %vm343_vm1, %v10573_v0  ;;  %v2817_v9 = vpop.f32.mrf.mxu1  ;;  %v2669_v0 = vrot.slane %v11721_v62, 5  ;;  %v1336_v28 = vrot.slane %v1334_v14, 4  ;;  %v2256_v30 = vshll.u32 %v11793_v55, 16 }
 0x152   : > { %9607 = vmatmul.msk.bf16.gmra.mxu0 %vm343_vm1, %v2340_v54  ;;  %v2247_v54 = vshrl.u32 %v9588_v31, 16  ;;  %v2235_v62 = vsel %vm10960_vm4, %v2230_v22, %v11769_v59  ;;  %v2245_v20 = vsel %vm10960_vm4, %v2240_v45, %v2244_v6  ;;  %v2667_v40 = vsel %vm11195_vm7, %v9639_v12, %v2666_v39  ;;  %v11822_v22 = vld [vmem:[%s10939_s8 + $0xbc] sm:$0x1] }
 0x153   : > { %9429 = vmatmul.msk.bf16.gmra.mxu2 %vm343_vm1, %v1399_v27  ;;  %v2670_v31 = vsel %vm11195_vm7, %v2668_v4, %v2669_v0  ;;  %v1335_v59 = vsel %vm11195_vm7, %v9413_v18, %v1334_v14  ;;  %v1338_v37 = vsel %vm11195_vm7, %v1336_v28, %v1337_v32  ;;  %v2323_v39 = vunpack.c.l.b16 %v2245_v20  ;;  %v10574_v0 = vld [vmem:[%s10939_s8 + $0x9c] sm:$0xff] }
 0x154   : > { %v1765_v48 = vpop.f32.mrf.mxu3  ;;  %9655 = vmatmul.msk.bf16.gmra.mxu1 %vm343_vm1, %v2737_v44  ;;  %v2718_v12 = vunpack.c.l.b16 %v2667_v40  ;;  %v2719_v25 = vunpack.c.l.b16 %v2670_v31  ;;  %v1382_v14 = vunpack.c.l.b16 %v1338_v37  ;;  %v2266_v32 = vshll.u32 %v11822_v22, 16 }
 0x155   : > { %v1836_v23 = vadd.f32 %v1765_v48, %v1549_v26  ;;  %v2260_v26 = vshrl.u32 %v11793_v55, 16  ;;  %v2252_v48 = vrot.slane %v2250_v60, 5  ;;  %v2673_v60 = vrot.slane %v11745_v41, 5 }
 0x156   : > { %v1483_v42 = vpop.f32.mrf.mxu2 }
 0x157   : > { %v2490_v44 = vadd.f32 %v11735_v2, %v1836_v23  ;;  %v1551_v58 = vadd.f32 %v1483_v42, %v11444_v56  ;;  %v11811_v24 = vpop.f32.mrf.mxu0  ;;  %v11824_v56 = vrot.slane %v2256_v30, 5  ;;  %v2262_v45 = vrot.slane %v2260_v26, 4 }
 0x158   : > { %v2322_v23 = vunpack.c.l.b16 %v2235_v62  ;;  %v2738_v42 = vpack.c.b16 %v2719_v25, %v2718_v12  ;;  %v9624_v62 = vld [vmem:[%s10939_s8 + $0xa8] sm:$0xe]  ;;  %v9591_v12 = vld [vmem:[%s10939_s8 + $0xc0] sm:$0xf]  ;;  %v11846_v25 = vld [vmem:[%s10939_s8 + $0xc4] sm:$0xf] }
 0x159   : > { %v11808_v27 = vadd.f32 %v2817_v9, %v2490_v44  ;;  %v2819_v2 = vpop.f32.mrf.mxu1  ;;  %v2249_v9 = vrot.slane %v2247_v54, 4  ;;  %v1381_v44 = vunpack.c.l.b16 %v1335_v59  ;;  %v2263_v54 = vor.u32 %v2262_v45, %v11824_v56  ;;  %v10835_v59 = vld [vmem:[%s10939_s8 + $0xac] sm:$0xf] }
 0x15a   : > { %v2341_v26 = vpack.c.b16 %v2323_v39, %v2322_v23  ;;  %v1341_v37 = vrot.slane %v10835_v59, 5  ;;  %v2676_v23 = vrot.slane %v11773_v16, 5 }
 0x15b   : > { %v2253_v18 = vor.u32 %v2252_v48, %v2249_v9  ;;  %v1400_v31 = vpack.c.b16 %v1382_v14, %v1381_v44  ;;  %v2268_v9 = vrot.slane %v2266_v32, 5  ;;  %v1188_v48 = vld [vmem:[%s10939_s8 + $0xa8] sm:$0xe]  ;;  %v2264_v45 = vrot.slane %v2263_v54, 4 }
 0x15c   : > { %v1767_v6 = vpop.f32.mrf.mxu3  ;;  %v9414_v44 = vrot.slane %v1188_v48, 9  ;;  %v1343_v14 = vrot.slane %v1341_v37, 4 }
 0x15d   : > { %v1837_v4 = vadd.f32 %v1767_v6, %v1550_v8  ;;  %v2254_v41 = vrot.slane %v2253_v18, 4  ;;  %v9640_v6 = vrot.slane %v9624_v62, 9  ;;  %v2269_v32 = vsel %vm10960_vm4, %v2264_v45, %v2268_v9 }
 0x15e   : > { %v1485_v30 = vpop.f32.mrf.mxu2  ;;  %v2284_v62 = vshrl.u32 %v11846_v25, 16  ;;  %v2325_v48 = vunpack.c.l.b16 %v2269_v32 }
 0x15f   : > { %v2491_v28 = vadd.f32 %v11763_v21, %v1837_v4  ;;  %v1552_v8 = vadd.f32 %v1485_v30, %v11470_v50  ;;  %v11836_v40 = vpop.f32.mrf.mxu0  ;;  %v10836_v4 = vld [vmem:[%s10939_s8 + $0xb0] sm:$0x1]  ;;  %v2259_v18 = vsel %vm10960_vm4, %v2254_v41, %v11824_v56  ;;  %v2271_v30 = vshrl.u32 %v9591_v12, 16 }
 0x160   : > { %v2324_v9 = vunpack.c.l.b16 %v2259_v18 }
 0x161   : > { %v11832_v20 = vadd.f32 %v2819_v2, %v2491_v28  ;;  %9542 = vmatmul.msk.bf16.gmra.mxu3 %vm343_vm1, %v10574_v0  ;;  %v2822_v21 = vpop.f32.mrf.mxu1  ;;  %v2675_v2 = vrot.slane %v2673_v60, 4  ;;  %v1344_v0 = vrot.slane %v10836_v4, 5 }
 0x162   : > { %9608 = vmatmul.msk.bf16.gmra.mxu0 %vm343_vm1, %v2341_v26  ;;  %v2274_v26 = vshll.u32 %v9591_v12, 16  ;;  %v10575_v12 = vld [vmem:[%s10939_s8 + $0xa8] sm:$0xff] }
 0x163   : > { %9430 = vmatmul.msk.bf16.gmra.mxu2 %vm343_vm1, %v1400_v31  ;;  %v2677_v28 = vsel %vm11195_vm7, %v2675_v2, %v2676_v23  ;;  %v1345_v41 = vsel %vm11195_vm7, %v1343_v14, %v1344_v0  ;;  %v2273_v2 = vrot.slane %v2271_v30, 4  ;;  %v2342_v0 = vpack.c.b16 %v2325_v48, %v2324_v9 }
 0x164   : > { %v1770_v50 = vpop.f32.mrf.mxu3  ;;  %9656 = vmatmul.msk.bf16.gmra.mxu1 %vm343_vm1, %v2738_v42  ;;  %v2280_v42 = vshll.u32 %v11846_v25, 16  ;;  %v2276_v23 = vrot.slane %v2274_v26, 5 }
 0x165   : > { %v1838_v39 = vadd.f32 %v1770_v50, %v1551_v58  ;;  %v2674_v58 = vsel %vm11195_vm7, %v9640_v6, %v2673_v60  ;;  %v1342_v60 = vsel %vm11195_vm7, %v9414_v44, %v1341_v37  ;;  %v2721_v6 = vunpack.c.l.b16 %v2677_v28 }
 0x166   : > { %v1488_v54 = vpop.f32.mrf.mxu2  ;;  %v2720_v45 = vunpack.c.l.b16 %v2674_v58  ;;  %v2282_v50 = vrot.slane %v2280_v42, 5  ;;  %v1383_v4 = vunpack.c.l.b16 %v1342_v60  ;;  %v2277_v18 = vor.u32 %v2276_v23, %v2273_v2  ;;  %v9625_v60 = vld [vmem:[%s10939_s8 + $0xb4] sm:$0xe]  ;;  %v10614_v23 = vld [vmem:[%s14507_s3 + $0x20] sm:$0xff] }
 0x167   : > { %v2492_v16 = vadd.f32 %v11782_v63, %v1838_v39  ;;  %v1553_v63 = vadd.f32 %v1488_v54, %v11489_v15  ;;  %v11864_v56 = vpop.f32.mrf.mxu0  ;;  %v2286_v15 = vrot.slane %v2284_v62, 4  ;;  %v11874_v54 = vld [vmem:[%s10939_s8 + $0xc8] sm:$0x1]  ;;  %v2680_v42 = vrot.slane %v11793_v55, 5  ;;  %5073 = vmatpush.bf16.msra.mxu1 %v10614_v23  ;;  %v9773_v23 = vld [vmem:[%s10939_s8 + $0x18] sm:$0xf] }
 0x168   : > { %v2739_v14 = vpack.c.b16 %v2721_v6, %v2720_v45  ;;  %v2290_v58 = vshll.u32 %v11874_v54, 16  ;;  %v2278_v48 = vrot.slane %v2277_v18, 4  ;;  %v2683_v55 = vrot.slane %v11822_v22, 5 }
 0x169   : > { %v11861_v31 = vadd.f32 %v2822_v21, %v2492_v16  ;;  %v11866_v59 = vpop.f32.mrf.mxu1  ;;  %v1384_v16 = vunpack.c.l.b16 %v1345_v41  ;;  %v2287_v32 = vor.u32 %v2286_v15, %v2282_v50  ;;  %v1189_v41 = vld [vmem:[%s10939_s8 + $0xb4] sm:$0xe]  ;;  %v2682_v2 = vrot.slane %v2680_v42, 4  ;;  %v10838_v15 = vld [vmem:[%s10939_s8 + $0xbc] sm:$0x1] }
 0x16a   : > { %v2292_v45 = vrot.slane %v2290_v58, 5 }
 0x16b   : > { %v1401_v30 = vpack.c.b16 %v1384_v16, %v1383_v4  ;;  %v2684_v58 = vsel %vm11195_vm7, %v2682_v2, %v2683_v55 }
 0x16c   : > { %v1772_v21 = vpop.f32.mrf.mxu3 }
 0x16d   : > { %v1839_v39 = vadd.f32 %v1772_v21, %v1552_v8  ;;  %v9641_v21 = vrot.slane %v9625_v60, 9 }
 0x16e   : > { %v1490_v44 = vpop.f32.mrf.mxu2 }
 0x16f   : > { %v11877_v37 = vadd.f32 %v11811_v24, %v1839_v39  ;;  %v1554_v8 = vadd.f32 %v1490_v44, %v11517_v52  ;;  %v11882_v28 = vpop.f32.mrf.mxu0  ;;  %v10837_v24 = vld [vmem:[%s10939_s8 + $0xb8] sm:$0xf]  ;;  %v2288_v52 = vrot.slane %v2287_v32, 4  ;;  %v1351_v39 = vrot.slane %v10838_v15, 5 }
 0x170   : > { %v1348_v62 = vrot.slane %v10837_v24, 5 }
 0x171   : > { %9543 = vmatmul.msk.bf16.gmra.mxu3 %vm343_vm1, %v10575_v12  ;;  %v2827_v26 = vpop.f32.mrf.mxu1  ;;  %v9415_v12 = vrot.slane %v1189_v41, 9  ;;  %v2293_v44 = vsel %vm10960_vm4, %v2288_v52, %v2292_v45  ;;  %v2723_v41 = vunpack.c.l.b16 %v2684_v58  ;;  %v9774_v45 = vld [vmem:[%s10939_s8 + $0x1c] sm:$0xf] }
 0x172   : > { %9609 = vmatmul.msk.bf16.gmra.mxu0 %vm343_vm1, %v2342_v0  ;;  %v1350_v4 = vrot.slane %v1348_v62, 4  ;;  %v2327_v24 = vunpack.c.l.b16 %v2293_v44  ;;  %v3921_v55 = vrot.slane %v9774_v45, 5  ;;  %v3253_v44 = vshll.u32 %v9773_v23, 16 }
 0x173   : > { %9431 = vmatmul.msk.bf16.gmra.mxu2 %vm343_vm1, %v1401_v30 }
 0x174   : > { %v1775_v9 = vpop.f32.mrf.mxu3  ;;  %9657 = vmatmul.msk.bf16.gmra.mxu1 %vm343_vm1, %v2739_v14  ;;  %v1352_v30 = vsel %vm11195_vm7, %v1350_v4, %v1351_v39  ;;  %v9775_v4 = vld [vmem:[%s10939_s8 + $0x20] sm:$0x1] }
 0x175   : > { %v1840_v6 = vadd.f32 %v1775_v9, %v1553_v63  ;;  %v2283_v63 = vsel %vm10960_vm4, %v2278_v48, %v2282_v50  ;;  %v1349_v50 = vsel %vm11195_vm7, %v9415_v12, %v1348_v62  ;;  %v10576_v48 = vld [vmem:[%s10939_s8 + $0xb4] sm:$0xff]  ;;  %v1386_v52 = vunpack.c.l.b16 %v1352_v30 }
 0x176   : > { %v1493_v0 = vpop.f32.mrf.mxu2 }
 0x177   : > { %v2494_v16 = vadd.f32 %v11836_v40, %v1840_v6  ;;  %v1555_v14 = vadd.f32 %v1493_v0, %v11534_v3  ;;  %v11904_v18 = vpop.f32.mrf.mxu0  ;;  %v2681_v40 = vsel %vm11195_vm7, %v9641_v21, %v2680_v42  ;;  %v2326_v3 = vunpack.c.l.b16 %v2283_v63  ;;  %v9626_v63 = vld [vmem:[%s10939_s8 + $0xc0] sm:$0xe] }
 0x178   : > { %v2722_v60 = vunpack.c.l.b16 %v2681_v40  ;;  %v1385_v42 = vunpack.c.l.b16 %v1349_v50  ;;  %v2687_v0 = vrot.slane %v11846_v25, 5  ;;  %v3924_v50 = vrot.slane %v9775_v4, 5 }
 0x179   : > { %v11901_v22 = vadd.f32 %v2827_v26, %v2494_v16  ;;  %v11906_v32 = vpop.f32.mrf.mxu1  ;;  %v2343_v21 = vpack.c.b16 %v2327_v24, %v2326_v3  ;;  %v9838_v16 = vld [vmem:[%s10939_s8 + $0x18] sm:$0xe]  ;;  %v2690_v24 = vrot.slane %v11874_v54, 5  ;;  %v3263_v25 = vshrl.u32 %v9774_v45, 16 }
 0x17a   : > { %v2740_v2 = vpack.c.b16 %v2723_v41, %v2722_v60  ;;  %v1402_v39 = vpack.c.b16 %v1386_v52, %v1385_v42  ;;  %v9854_v58 = vrot.slane %v9838_v16, 9  ;;  %v2689_v3 = vrot.slane %v2687_v0, 4 }
 0x17b   : > { %v3259_v60 = vshll.u32 %v9774_v45, 16 }
 0x17c   : > { %v1777_v26 = vpop.f32.mrf.mxu3  ;;  %v3922_v52 = vsel %vm11195_vm7, %v9854_v58, %v3921_v55  ;;  %v2691_v45 = vsel %vm11195_vm7, %v2689_v3, %v2690_v24 }
 0x17d   : > { %v1841_v9 = vadd.f32 %v1777_v26, %v1554_v8  ;;  %v9642_v26 = vrot.slane %v9626_v63, 9 }
 0x17e   : > { %v1495_v62 = vpop.f32.mrf.mxu2 }
 0x17f   : > { %v11919_v6 = vadd.f32 %v11864_v56, %v1841_v9  ;;  %v1556_v15 = vadd.f32 %v1495_v62, %v11560_v36  ;;  %v11924_v8 = vpop.f32.mrf.mxu0  ;;  %v3250_v56 = vshrl.u32 %v9773_v23, 16  ;;  %v3923_v36 = vrot.slane %v3921_v55, 4 }
 0x180   : > { %v3261_v55 = vrot.slane %v3259_v60, 5  ;;  %v3265_v23 = vrot.slane %v3263_v25, 4  ;;  %v9839_v60 = vld [vmem:[%s10939_s8 + $0x24] sm:$0xe] }
 0x181   : > { %9544 = vmatmul.msk.bf16.gmra.mxu3 %vm343_vm1, %v10576_v48  ;;  %v2832_v12 = vpop.f32.mrf.mxu1  ;;  %v3252_v9 = vrot.slane %v3250_v56, 4  ;;  %v3255_v48 = vrot.slane %v3253_v44, 5  ;;  %v3925_v62 = vsel %vm11195_vm7, %v3923_v36, %v3924_v50  ;;  %v3269_v36 = vshll.u32 %v9775_v4, 16  ;;  %v9777_v50 = vld [vmem:[%s10939_s8 + $0x28] sm:$0xf] }
 0x182   : > { %9610 = vmatmul.msk.bf16.gmra.mxu0 %vm343_vm1, %v2343_v21  ;;  %v4034_v63 = vunpack.c.l.b16 %v3925_v62  ;;  %v3266_v58 = vor.u32 %v3265_v23, %v3261_v55  ;;  %v9776_v4 = vld [vmem:[%s10939_s8 + $0x24] sm:$0xf]  ;;  %v9778_v62 = vld [vmem:[%s10939_s8 + $0x2c] sm:$0x1] }
 0x183   : > { %9432 = vmatmul.msk.bf16.gmra.mxu2 %vm343_vm1, %v1402_v39  ;;  %v3256_v39 = vor.u32 %v3255_v48, %v3252_v9  ;;  %v3928_v48 = vrot.slane %v9777_v50, 5  ;;  %v3277_v23 = vshll.u32 %v9776_v4, 16 }
 0x184   : > { %v1780_v40 = vpop.f32.mrf.mxu3  ;;  %9658 = vmatmul.msk.bf16.gmra.mxu1 %vm343_vm1, %v2740_v2 }
 0x185   : > { %v1842_v30 = vadd.f32 %v1780_v40, %v1555_v14  ;;  %v10577_v40 = vld [vmem:[%s10939_s8 + $0xc0] sm:$0xff] }
 0x186   : > { %v1498_v42 = vpop.f32.mrf.mxu2 }
 0x187   : > { %v2496_v41 = vadd.f32 %v11882_v28, %v1842_v30  ;;  %v1557_v21 = vadd.f32 %v1498_v42, %v11584_v49  ;;  %v11942_v2 = vpop.f32.mrf.mxu0  ;;  %v2688_v28 = vsel %vm11195_vm7, %v9642_v26, %v2687_v0  ;;  %v2725_v49 = vunpack.c.l.b16 %v2691_v45 }
 0x188   : > { %v2724_v56 = vunpack.c.l.b16 %v2688_v28  ;;  %v3257_v30 = vrot.slane %v3256_v39, 4  ;;  %v3267_v42 = vrot.slane %v3266_v58, 4  ;;  %v9855_v28 = vrot.slane %v9839_v60, 9 }
 0x189   : > { %v11939_v14 = vadd.f32 %v2832_v12, %v2496_v41  ;;  %v11944_v54 = vpop.f32.mrf.mxu1  ;;  %v4033_v12 = vunpack.c.l.b16 %v3922_v52  ;;  %v3271_v52 = vrot.slane %v3269_v36, 5  ;;  %v3283_v39 = vshll.u32 %v9777_v50, 16 }
 0x18a   : > { %v2741_v24 = vpack.c.b16 %v2725_v49, %v2724_v56  ;;  %v3931_v56 = vrot.slane %v9778_v62, 5  ;;  %v10613_v49 = vld [vmem:[%s14507_s3 + $0x18] sm:$0xff]  ;;  %v3929_v58 = vsel %vm11195_vm7, %v9855_v28, %v3928_v48 }
 0x18b   : > { %v4065_v3 = vpack.c.b16 %v4034_v63, %v4033_v12  ;;  %v3930_v63 = vrot.slane %v3928_v48, 4  ;;  %5074 = vmatpush.bf16.msra.mxu1 %v10613_v49  ;;  %v4035_v48 = vunpack.c.l.b16 %v3929_v58  ;;  %v9779_v49 = vld [vmem:[%s10939_s8 + $0x30] sm:$0xf]  ;;  %v9781_v58 = vld [vmem:[%s10939_s8 + $0x38] sm:$0x1] }
 0x18c   : > { %v1782_v16 = vpop.f32.mrf.mxu3 }
 0x18d   : > { %v1843_v44 = vadd.f32 %v1782_v16, %v1556_v15  ;;  %v10578_v15 = vld [vmem:[%s10939_s8 + $0x18] sm:$0xff]  ;;  %v3287_v16 = vshrl.u32 %v9777_v50, 16  ;;  %v3279_v50 = vrot.slane %v3277_v23, 5 }
 0x18e   : > { %v1500_v26 = vpop.f32.mrf.mxu2 }
 0x18f   : > { %v11953_v0 = vadd.f32 %v11904_v18, %v1843_v44  ;;  %v1558_v25 = vadd.f32 %v1500_v26, %v11619_v57  ;;  %v11958_v41 = vpop.f32.mrf.mxu0  ;;  %v3262_v18 = vsel %vm10960_vm4, %v3257_v30, %v3261_v55  ;;  %v3274_v57 = vshrl.u32 %v9776_v4, 16 }
 0x190   : > { %v3272_v55 = vsel %vm10960_vm4, %v3267_v42, %v3271_v52  ;;  %v3285_v30 = vrot.slane %v3283_v39, 5  ;;  %v3289_v26 = vrot.slane %v3287_v16, 4  ;;  %v3932_v4 = vsel %vm11195_vm7, %v3930_v63, %v3931_v56 }
 0x191   : > { %9545 = vmatmul.msk.bf16.gmra.mxu3 %vm343_vm1, %v10577_v40  ;;  %v2837_v9 = vpop.f32.mrf.mxu1  ;;  %v3635_v40 = vunpack.c.l.b16 %v3262_v18  ;;  %v4036_v52 = vunpack.c.l.b16 %v3932_v4 }
 0x192   : > { %9871 = vmatmul.msk.bf16.vlgmr.msra.gmra.mxu0 %vm343_vm1, %v4065_v3  ;;  %v3290_v28 = vor.u32 %v3289_v26, %v3285_v30 }
 0x193   : > { %9757 = vmatmul.msk.bf16.vlgmr.msra.gmra.mxu2 %vm343_vm1, %v10578_v15  ;;  %v4066_v16 = vpack.c.b16 %v4036_v52, %v4035_v48 }
 0x194   : > { %v1785_v45 = vpop.f32.mrf.mxu3  ;;  %9659 = vmatmul.msk.bf16.gmra.mxu1 %vm343_vm1, %v2741_v24  ;;  %v3291_v63 = vrot.slane %v3290_v28, 4 }
 0x195   : > { %v1844_v12 = vadd.f32 %v1785_v45, %v1557_v21  ;;  %v3276_v21 = vrot.slane %v3274_v57, 4  ;;  %v3293_v45 = vshll.u32 %v9778_v62, 16 }
 0x196   : > { %v1503_v36 = vpop.f32.mrf.mxu2 }
 0x197   : > { %v2498_v44 = vadd.f32 %v11924_v8, %v1844_v12  ;;  %v1559_v24 = vadd.f32 %v1503_v36, %v11271_v19  ;;  %v11979_v60 = vpop.f32.mrf.mxu0  ;;  %v3636_v8 = vunpack.c.l.b16 %v3272_v55  ;;  %v3280_v18 = vor.u32 %v3279_v50, %v3276_v21  ;;  %v9780_v19 = vld [vmem:[%s10939_s8 + $0x34] sm:$0xf]  ;;  %v9840_v36 = vld [vmem:[%s10939_s8 + $0x30] sm:$0xe] }
 0x198   : > { %v3295_v56 = vrot.slane %v3293_v45, 5  ;;  %v3298_v21 = vshrl.u32 %v9779_v49, 16  ;;  %v9856_v4 = vrot.slane %v9840_v36, 9  ;;  %v3307_v52 = vshll.u32 %v9780_v19, 16 }
 0x199   : > { %v11976_v3 = vadd.f32 %v2837_v9, %v2498_v44  ;;  %v11981_v15 = vpop.f32.mrf.mxu1  ;;  %v3667_v57 = vpack.c.b16 %v3636_v8, %v3635_v40  ;;  %v3281_v12 = vrot.slane %v3280_v18, 4  ;;  %v3935_v40 = vrot.slane %v9780_v19, 5 }
 0x19a   : > { %v3311_v18 = vshrl.u32 %v9780_v19, 16  ;;  %v3300_v45 = vrot.slane %v3298_v21, 4  ;;  %v3309_v19 = vrot.slane %v3307_v52, 5 }
 0x19b   : > { %v3286_v26 = vsel %vm10960_vm4, %v3281_v12, %v3285_v30  ;;  %v3937_v48 = vrot.slane %v3935_v40, 4 }
 0x19c   : > { %v1787_v42 = vpop.f32.mrf.mxu3 }
 0x19d   : > { %v1845_v9 = vadd.f32 %v1787_v42, %v1558_v25  ;;  %v10579_v25 = vld [vmem:[%s10939_s8 + $0x24] sm:$0xff]  ;;  %v3938_v42 = vrot.slane %v9781_v58, 5 }
 0x19e   : > { %v1505_v39 = vpop.f32.mrf.mxu2 }
 0x19f   : > { %v11987_v23 = vadd.f32 %v11942_v2, %v1845_v9  ;;  %v1560_v55 = vadd.f32 %v1505_v39, %v11297_v1  ;;  %v11992_v44 = vpop.f32.mrf.mxu0  ;;  %v3301_v2 = vshll.u32 %v9779_v49, 16  ;;  %v3296_v1 = vsel %vm10960_vm4, %v3291_v63, %v3295_v56 }
 0x1a0   : > { %v3637_v39 = vunpack.c.l.b16 %v3286_v26  ;;  %v3936_v63 = vsel %vm11195_vm7, %v9856_v4, %v3935_v40  ;;  %v3313_v56 = vrot.slane %v3311_v18, 4  ;;  %v3317_v26 = vshll.u32 %v9781_v58, 16 }
 0x1a1   : > { %9822 = vmatmul.msk.bf16.vlgmr.msra.gmra.mxu3 %vm343_vm1, %v3667_v57  ;;  %v2842_v62 = vpop.f32.mrf.mxu1  ;;  %v3303_v9 = vrot.slane %v3301_v2, 5 }
 0x1a2   : > { %9872 = vmatmul.msk.bf16.gmra.mxu0 %vm343_vm1, %v4066_v16  ;;  %v3638_v16 = vunpack.c.l.b16 %v3296_v1  ;;  %v9783_v1 = vld [vmem:[%s10939_s8 + $0x40] sm:$0xf] }
 0x1a3   : > { %9758 = vmatmul.msk.bf16.gmra.mxu2 %vm343_vm1, %v10579_v25  ;;  %v3304_v25 = vor.u32 %v3303_v9, %v3300_v45  ;;  %v3942_v45 = vrot.slane %v9783_v1, 5  ;;  %v9782_v9 = vld [vmem:[%s10939_s8 + $0x3c] sm:$0xf] }
 0x1a4   : > { %v1790_v50 = vpop.f32.mrf.mxu3 }
 0x1a5   : > { %v1846_v8 = vadd.f32 %v1790_v50, %v1559_v24  ;;  %v3314_v50 = vor.u32 %v3313_v56, %v3309_v19  ;;  %v3331_v56 = vshll.u32 %v9783_v1, 16 }
 0x1a6   : > { %v1508_v57 = vpop.f32.mrf.mxu2 }
 0x1a7   : > { %v2500_v28 = vadd.f32 %v11958_v41, %v1846_v8  ;;  %v1561_v30 = vadd.f32 %v1508_v57, %v11319_v35  ;;  %v12007_v24 = vpop.f32.mrf.mxu0  ;;  %v3939_v41 = vsel %vm11195_vm7, %v3937_v48, %v3938_v42  ;;  %v3668_v35 = vpack.c.b16 %v3638_v16, %v3637_v39  ;;  %v9841_v42 = vld [vmem:[%s10939_s8 + $0x3c] sm:$0xe]  ;;  %v9784_v39 = vld [vmem:[%s10939_s8 + $0x44] sm:$0x1] }
 0x1a8   : > { %v4038_v21 = vunpack.c.l.b16 %v3939_v41  ;;  %v3305_v8 = vrot.slane %v3304_v25, 4  ;;  %v3315_v58 = vrot.slane %v3314_v50, 4  ;;  %v3319_v57 = vrot.slane %v3317_v26, 5 }
 0x1a9   : > { %v12004_v49 = vadd.f32 %v2842_v62, %v2500_v28  ;;  %v12009_v12 = vpop.f32.mrf.mxu1  ;;  %v4037_v62 = vunpack.c.l.b16 %v3936_v63  ;;  %v9857_v16 = vrot.slane %v9841_v42, 9  ;;  %v3322_v41 = vshrl.u32 %v9782_v9, 16 }
 0x1aa   : > { %v3335_v25 = vshrl.u32 %v9783_v1, 16 }
 0x1ab   : > { %v4067_v48 = vpack.c.b16 %v4038_v21, %v4037_v62  ;;  %v3944_v62 = vrot.slane %v3942_v45, 4  ;;  %v3945_v21 = vrot.slane %v9784_v39, 5  ;;  %v3943_v26 = vsel %vm11195_vm7, %v9857_v16, %v3942_v45 }
 0x1ac   : > { %v1792_v36 = vpop.f32.mrf.mxu3  ;;  %v4039_v45 = vunpack.c.l.b16 %v3943_v26 }
 0x1ad   : > { %v1847_v2 = vadd.f32 %v1792_v36, %v1560_v55  ;;  %v10580_v55 = vld [vmem:[%s10939_s8 + $0x30] sm:$0xff] }
 0x1ae   : > { %v1510_v4 = vpop.f32.mrf.mxu2 }
 0x1af   : > { %v12017_v40 = vadd.f32 %v11979_v60, %v1847_v2  ;;  %v1562_v52 = vadd.f32 %v1510_v4, %v11345_v11  ;;  %v12022_v18 = vpop.f32.mrf.mxu0  ;;  %v3310_v60 = vsel %vm10960_vm4, %v3305_v8, %v3309_v19  ;;  %v3325_v11 = vshll.u32 %v9782_v9, 16  ;;  %v10612_v2 = vld [vmem:[%s14507_s3 + $0x10] sm:$0xff] }
 0x1b0   : > { %v3320_v19 = vsel %vm10960_vm4, %v3315_v58, %v3319_v57  ;;  %v3639_v50 = vunpack.c.l.b16 %v3310_v60  ;;  %5075 = vmatpush.bf16.msra.mxu1 %v10612_v2  ;;  %v3333_v4 = vrot.slane %v3331_v56, 5  ;;  %v3946_v57 = vsel %vm11195_vm7, %v3944_v62, %v3945_v21 }
 0x1b1   : > { %9823 = vmatmul.msk.bf16.gmra.mxu3 %vm343_vm1, %v3668_v35  ;;  %v2847_v28 = vpop.f32.mrf.mxu1  ;;  %v3327_v8 = vrot.slane %v3325_v11, 5  ;;  %v4040_v16 = vunpack.c.l.b16 %v3946_v57  ;;  %v3341_v11 = vshll.u32 %v9784_v39, 16 }
 0x1b2   : > { %9873 = vmatmul.msk.bf16.gmra.mxu0 %vm343_vm1, %v4067_v48  ;;  %v3337_v48 = vrot.slane %v3335_v25, 4 }
 0x1b3   : > { %9759 = vmatmul.msk.bf16.gmra.mxu2 %vm343_vm1, %v10580_v55  ;;  %v4068_v2 = vpack.c.b16 %v4040_v16, %v4039_v45  ;;  %v3343_v21 = vrot.slane %v3341_v11, 5 }
 0x1b4   : > { %v1795_v63 = vpop.f32.mrf.mxu3 }
 0x1b5   : > { %v1848_v36 = vadd.f32 %v1795_v63, %v1561_v30  ;;  %v3324_v30 = vrot.slane %v3322_v41, 4  ;;  %v3338_v41 = vor.u32 %v3337_v48, %v3333_v4 }
 0x1b6   : > { %v1513_v1 = vpop.f32.mrf.mxu2 }
 0x1b7   : > { %v2502_v35 = vadd.f32 %v11992_v44, %v1848_v36  ;;  %v1563_v55 = vadd.f32 %v1513_v1, %v11361_v47  ;;  %v12042_v9 = vpop.f32.mrf.mxu0  ;;  %v3640_v44 = vunpack.c.l.b16 %v3320_v19  ;;  %v3328_v63 = vor.u32 %v3327_v8, %v3324_v30  ;;  %v9786_v47 = vld [vmem:[%s10939_s8 + $0x4c] sm:$0xf]  ;;  %v9787_v30 = vld [vmem:[%s10939_s8 + $0x50] sm:$0x1]  ;;  %v9842_v8 = vld [vmem:[%s10939_s8 + $0x48] sm:$0xe] }
 0x1b8   : > { %v3339_v62 = vrot.slane %v3338_v41, 4  ;;  %v3355_v41 = vshll.u32 %v9786_v47, 16  ;;  %v3359_v11 = vshrl.u32 %v9786_v47, 16 }
 0x1b9   : > { %v12039_v42 = vadd.f32 %v2847_v28, %v2502_v35  ;;  %v12044_v58 = vpop.f32.mrf.mxu1  ;;  %v3669_v56 = vpack.c.b16 %v3640_v44, %v3639_v50  ;;  %v3329_v19 = vrot.slane %v3328_v63, 4  ;;  %v9785_v35 = vld [vmem:[%s10939_s8 + $0x48] sm:$0xf]  ;;  %v3949_v50 = vrot.slane %v9786_v47, 5 }
 0x1ba   : > { %14523 = vst [vmem:[#allocation8_spill] sm:$0xff] %v12044_v58  ;;  %v3346_v48 = vshrl.u32 %v9785_v35, 16  ;;  %v3952_v63 = vrot.slane %v9787_v30, 5  ;;  %v3357_v47 = vrot.slane %v3355_v41, 5 }
 0x1bb   : > { %v3334_v57 = vsel %vm10960_vm4, %v3329_v19, %v3333_v4  ;;  %v3951_v16 = vrot.slane %v3949_v50, 4 }
 0x1bc   : > { %v1797_v60 = vpop.f32.mrf.mxu3 }
 0x1bd   : > { %v1849_v28 = vadd.f32 %v1797_v60, %v1562_v52  ;;  %v10581_v52 = vld [vmem:[%s10939_s8 + $0x3c] sm:$0xff]  ;;  %v9858_v60 = vrot.slane %v9842_v8, 9 }
 0x1be   : > { %v1515_v36 = vpop.f32.mrf.mxu2 }
 0x1bf   : > { %v12050_v25 = vadd.f32 %v12007_v24, %v1849_v28  ;;  %v1564_v26 = vadd.f32 %v1515_v36, %v11387_v29  ;;  %v12055_v1 = vpop.f32.mrf.mxu0  ;;  %v3349_v24 = vshll.u32 %v9785_v35, 16  ;;  %v3344_v29 = vsel %vm10960_vm4, %v3339_v62, %v3343_v21 }
 0x1c0   : > { %v3642_v58 = vunpack.c.l.b16 %v3344_v29  ;;  %v3950_v62 = vsel %vm11195_vm7, %v9858_v60, %v3949_v50  ;;  %v3361_v21 = vrot.slane %v3359_v11, 4  ;;  %v9789_v29 = vld [vmem:[%s10939_s8 + $0x58] sm:$0xf] }
 0x1c1   : > { %14524 = vst [vmem:[#allocation9_spill] sm:$0xff] %v12050_v25  ;;  %9824 = vmatmul.msk.bf16.gmra.mxu3 %vm343_vm1, %v3669_v56  ;;  %v2852_v39 = vpop.f32.mrf.mxu1  ;;  %v3348_v56 = vrot.slane %v3346_v48, 4  ;;  %v3351_v36 = vrot.slane %v3349_v24, 5 }
 0x1c2   : > { %9874 = vmatmul.msk.bf16.gmra.mxu0 %vm343_vm1, %v4068_v2  ;;  %v3641_v2 = vunpack.c.l.b16 %v3334_v57  ;;  %v3365_v57 = vshll.u32 %v9787_v30, 16 }
 0x1c3   : > { %9760 = vmatmul.msk.bf16.gmra.mxu2 %vm343_vm1, %v10581_v52  ;;  %v3352_v52 = vor.u32 %v3351_v36, %v3348_v56  ;;  %v9788_v56 = vld [vmem:[%s10939_s8 + $0x54] sm:$0xf] }
 0x1c4   : > { %v1800_v44 = vpop.f32.mrf.mxu3  ;;  %v3367_v36 = vrot.slane %v3365_v57, 5 }
 0x1c5   : > { %v1850_v45 = vadd.f32 %v1800_v44, %v1563_v55  ;;  %v3362_v44 = vor.u32 %v3361_v21, %v3357_v47  ;;  %v3379_v21 = vshll.u32 %v9789_v29, 16 }
 0x1c6   : > { %v1518_v35 = vpop.f32.mrf.mxu2 }
 0x1c7   : > { %v2504_v28 = vadd.f32 %v12022_v18, %v1850_v45  ;;  %v1565_v4 = vadd.f32 %v1518_v35, %v11410_v34  ;;  %v12070_v55 = vpop.f32.mrf.mxu0  ;;  %v3953_v18 = vsel %vm11195_vm7, %v3951_v16, %v3952_v63  ;;  %v3670_v34 = vpack.c.b16 %v3642_v58, %v3641_v2  ;;  %v9843_v63 = vld [vmem:[%s10939_s8 + $0x54] sm:$0xe]  ;;  %v9790_v35 = vld [vmem:[%s10939_s8 + $0x5c] sm:$0x1] }
 0x1c8   : > { %v4042_v48 = vunpack.c.l.b16 %v3953_v18  ;;  %v3353_v45 = vrot.slane %v3352_v52, 4  ;;  %v3956_v58 = vrot.slane %v9789_v29, 5  ;;  %v3363_v30 = vrot.slane %v3362_v44, 4 }
 0x1c9   : > { %v12067_v25 = vadd.f32 %v2852_v39, %v2504_v28  ;;  %v12072_v19 = vpop.f32.mrf.mxu1  ;;  %v4041_v39 = vunpack.c.l.b16 %v3950_v62  ;;  %v9859_v2 = vrot.slane %v9843_v63, 9  ;;  %v3370_v18 = vshrl.u32 %v9788_v56, 16 }
 0x1ca   : > { %v3383_v52 = vshrl.u32 %v9789_v29, 16 }
 0x1cb   : > { %v4069_v16 = vpack.c.b16 %v4042_v48, %v4041_v39  ;;  %v3958_v39 = vrot.slane %v3956_v58, 4  ;;  %v3959_v48 = vrot.slane %v9790_v35, 5  ;;  %v3957_v57 = vsel %vm11195_vm7, %v9859_v2, %v3956_v58 }
 0x1cc   : > { %v1802_v8 = vpop.f32.mrf.mxu3  ;;  %v4043_v58 = vunpack.c.l.b16 %v3957_v57 }
 0x1cd   : > { %v1851_v24 = vadd.f32 %v1802_v8, %v1564_v26  ;;  %v10582_v26 = vld [vmem:[%s10939_s8 + $0x48] sm:$0xff] }
 0x1ce   : > { %v1520_v60 = vpop.f32.mrf.mxu2 }
 0x1cf   : > { %v12080_v50 = vadd.f32 %v12042_v9, %v1851_v24  ;;  %v1566_v41 = vadd.f32 %v1520_v60, %v11435_v7  ;;  %v12085_v11 = vpop.f32.mrf.mxu0  ;;  %v3358_v9 = vsel %vm10960_vm4, %v3353_v45, %v3357_v47  ;;  %v3373_v7 = vshll.u32 %v9788_v56, 16  ;;  %v10611_v24 = vld [vmem:[%s14507_s3 + $0x8] sm:$0xff] }
 0x1d0   : > { %v3368_v47 = vsel %vm10960_vm4, %v3363_v30, %v3367_v36  ;;  %v3643_v44 = vunpack.c.l.b16 %v3358_v9  ;;  %5076 = vmatpush.bf16.msra.mxu1 %v10611_v24  ;;  %v3381_v60 = vrot.slane %v3379_v21, 5  ;;  %v3960_v36 = vsel %vm11195_vm7, %v3958_v39, %v3959_v48 }
 0x1d1   : > { %9825 = vmatmul.msk.bf16.gmra.mxu3 %vm343_vm1, %v3670_v34  ;;  %v2857_v28 = vpop.f32.mrf.mxu1  ;;  %v3375_v45 = vrot.slane %v3373_v7, 5  ;;  %v4044_v2 = vunpack.c.l.b16 %v3960_v36  ;;  %v3389_v7 = vshll.u32 %v9790_v35, 16 }
 0x1d2   : > { %9875 = vmatmul.msk.bf16.gmra.mxu0 %vm343_vm1, %v4069_v16  ;;  %v3385_v16 = vrot.slane %v3383_v52, 4 }
 0x1d3   : > { %9761 = vmatmul.msk.bf16.gmra.mxu2 %vm343_vm1, %v10582_v26  ;;  %v4070_v24 = vpack.c.b16 %v4044_v2, %v4043_v58  ;;  %v3391_v48 = vrot.slane %v3389_v7, 5 }
 0x1d4   : > { %v1805_v62 = vpop.f32.mrf.mxu3 }
 0x1d5   : > { %v1852_v8 = vadd.f32 %v1805_v62, %v1565_v4  ;;  %v3372_v4 = vrot.slane %v3370_v18, 4  ;;  %v3386_v18 = vor.u32 %v3385_v16, %v3381_v60 }
 0x1d6   : > { %v1523_v29 = vpop.f32.mrf.mxu2 }
 0x1d7   : > { %v2506_v34 = vadd.f32 %v12055_v1, %v1852_v8  ;;  %v1567_v26 = vadd.f32 %v1523_v29, %v11451_v10  ;;  %v12105_v56 = vpop.f32.mrf.mxu0  ;;  %v3644_v1 = vunpack.c.l.b16 %v3368_v47  ;;  %v3376_v62 = vor.u32 %v3375_v45, %v3372_v4  ;;  %v9792_v10 = vld [vmem:[%s10939_s8 + $0x64] sm:$0xf]  ;;  %v9793_v4 = vld [vmem:[%s10939_s8 + $0x68] sm:$0x1]  ;;  %v9844_v45 = vld [vmem:[%s10939_s8 + $0x60] sm:$0xe] }
 0x1d8   : > { %v3387_v39 = vrot.slane %v3386_v18, 4  ;;  %v3403_v18 = vshll.u32 %v9792_v10, 16  ;;  %v3407_v7 = vshrl.u32 %v9792_v10, 16 }
 0x1d9   : > { %v12102_v63 = vadd.f32 %v2857_v28, %v2506_v34  ;;  %v12107_v30 = vpop.f32.mrf.mxu1  ;;  %v3671_v21 = vpack.c.b16 %v3644_v1, %v3643_v44  ;;  %v3377_v47 = vrot.slane %v3376_v62, 4  ;;  %v9791_v34 = vld [vmem:[%s10939_s8 + $0x60] sm:$0xf]  ;;  %v3963_v44 = vrot.slane %v9792_v10, 5 }
 0x1da   : > { %14525 = vst [vmem:[#allocation10_spill] sm:$0xff] %v12107_v30  ;;  %v3394_v16 = vshrl.u32 %v9791_v34, 16  ;;  %v3966_v62 = vrot.slane %v9793_v4, 5  ;;  %v3405_v10 = vrot.slane %v3403_v18, 5 }
 0x1db   : > { %v3382_v36 = vsel %vm10960_vm4, %v3377_v47, %v3381_v60  ;;  %v3965_v2 = vrot.slane %v3963_v44, 4 }
 0x1dc   : > { %v1807_v9 = vpop.f32.mrf.mxu3 }
 0x1dd   : > { %v1853_v28 = vadd.f32 %v1807_v9, %v1566_v41  ;;  %v10583_v41 = vld [vmem:[%s10939_s8 + $0x54] sm:$0xff]  ;;  %v9860_v9 = vrot.slane %v9844_v45, 9 }
 0x1de   : > { %v1525_v8 = vpop.f32.mrf.mxu2 }
 0x1df   : > { %v12113_v52 = vadd.f32 %v12070_v55, %v1853_v28  ;;  %v1568_v57 = vadd.f32 %v1525_v8, %v11477_v53  ;;  %v12118_v29 = vpop.f32.mrf.mxu0  ;;  %v3397_v55 = vshll.u32 %v9791_v34, 16  ;;  %v3392_v53 = vsel %vm10960_vm4, %v3387_v39, %v3391_v48 }
 0x1e0   : > { %v3646_v30 = vunpack.c.l.b16 %v3392_v53  ;;  %v3964_v39 = vsel %vm11195_vm7, %v9860_v9, %v3963_v44  ;;  %v3409_v48 = vrot.slane %v3407_v7, 4  ;;  %v9795_v53 = vld [vmem:[%s10939_s8 + $0x70] sm:$0xf] }
 0x1e1   : > { %14526 = vst [vmem:[#allocation11_spill] sm:$0xff] %v12113_v52  ;;  %9826 = vmatmul.msk.bf16.gmra.mxu3 %vm343_vm1, %v3671_v21  ;;  %v2862_v35 = vpop.f32.mrf.mxu1  ;;  %v3396_v21 = vrot.slane %v3394_v16, 4  ;;  %v3399_v8 = vrot.slane %v3397_v55, 5 }
 0x1e2   : > { %9876 = vmatmul.msk.bf16.gmra.mxu0 %vm343_vm1, %v4070_v24  ;;  %v3645_v24 = vunpack.c.l.b16 %v3382_v36  ;;  %v3413_v36 = vshll.u32 %v9793_v4, 16 }
 0x1e3   : > { %9762 = vmatmul.msk.bf16.gmra.mxu2 %vm343_vm1, %v10583_v41  ;;  %v3400_v41 = vor.u32 %v3399_v8, %v3396_v21  ;;  %v9794_v21 = vld [vmem:[%s10939_s8 + $0x6c] sm:$0xf] }
 0x1e4   : > { %v1810_v1 = vpop.f32.mrf.mxu3  ;;  %v3415_v8 = vrot.slane %v3413_v36, 5 }
 0x1e5   : > { %v1854_v58 = vadd.f32 %v1810_v1, %v1567_v26  ;;  %v3410_v1 = vor.u32 %v3409_v48, %v3405_v10  ;;  %v3427_v48 = vshll.u32 %v9795_v53, 16 }
 0x1e6   : > { %v1528_v34 = vpop.f32.mrf.mxu2 }
 0x1e7   : > { %v2508_v28 = vadd.f32 %v12085_v11, %v1854_v58  ;;  %v1569_v60 = vadd.f32 %v1528_v34, %v11500_v61  ;;  %v12133_v26 = vpop.f32.mrf.mxu0  ;;  %v3967_v11 = vsel %vm11195_vm7, %v3965_v2, %v3966_v62  ;;  %v3672_v61 = vpack.c.b16 %v3646_v30, %v3645_v24  ;;  %v9845_v62 = vld [vmem:[%s10939_s8 + $0x6c] sm:$0xe]  ;;  %v9796_v34 = vld [vmem:[%s10939_s8 + $0x74] sm:$0x1] }
 0x1e8   : > { %v4046_v16 = vunpack.c.l.b16 %v3967_v11  ;;  %v3401_v58 = vrot.slane %v3400_v41, 4  ;;  %v3970_v30 = vrot.slane %v9795_v53, 5  ;;  %v3411_v4 = vrot.slane %v3410_v1, 4 }
 0x1e9   : > { %v12130_v52 = vadd.f32 %v2862_v35, %v2508_v28  ;;  %v12135_v47 = vpop.f32.mrf.mxu1  ;;  %v4045_v35 = vunpack.c.l.b16 %v3964_v39  ;;  %v9861_v24 = vrot.slane %v9845_v62, 9  ;;  %v3418_v11 = vshrl.u32 %v9794_v21, 16 }
 0x1ea   : > { %14528 = vst [vmem:[#allocation13_spill] sm:$0xff] %v12135_v47  ;;  %v3431_v41 = vshrl.u32 %v9795_v53, 16 }
 0x1eb   : > { %14527 = vst [vmem:[#allocation12_spill] sm:$0xff] %v12130_v52  ;;  %v4071_v2 = vpack.c.b16 %v4046_v16, %v4045_v35  ;;  %v3972_v35 = vrot.slane %v3970_v30, 4  ;;  %v3973_v16 = vrot.slane %v9796_v34, 5  ;;  %v3971_v36 = vsel %vm11195_vm7, %v9861_v24, %v3970_v30 }
 0x1ec   : > { %v1812_v45 = vpop.f32.mrf.mxu3  ;;  %v4047_v30 = vunpack.c.l.b16 %v3971_v36 }
 0x1ed   : > { %v1855_v55 = vadd.f32 %v1812_v45, %v1568_v57  ;;  %v10584_v57 = vld [vmem:[%s10939_s8 + $0x60] sm:$0xff] }
 0x1ee   : > { %v1530_v9 = vpop.f32.mrf.mxu2 }
 0x1ef   : > { %v12143_v44 = vadd.f32 %v12105_v56, %v1855_v55  ;;  %v1570_v18 = vadd.f32 %v1530_v9, %v11525_v46  ;;  %v12148_v7 = vpop.f32.mrf.mxu0  ;;  %v3406_v56 = vsel %vm10960_vm4, %v3401_v58, %v3405_v10  ;;  %v3421_v46 = vshll.u32 %v9794_v21, 16  ;;  %v10610_v55 = vld [vmem:[%s14507_s3] sm:$0xff] }
 0x1f0   : > { %v3416_v10 = vsel %vm10960_vm4, %v3411_v4, %v3415_v8  ;;  %v3647_v1 = vunpack.c.l.b16 %v3406_v56  ;;  %5077 = vmatpush.bf16.msra.mxu1 %v10610_v55  ;;  %v3429_v9 = vrot.slane %v3427_v48, 5  ;;  %v3974_v8 = vsel %vm11195_vm7, %v3972_v35, %v3973_v16  ;;  %v9798_v55 = vld [vmem:[%s10939_s8 + $0x7c] sm:$0xf] }
 0x1f1   : > { %14529 = vst [vmem:[#allocation14_spill] sm:$0xff] %v12143_v44  ;;  %9827 = vmatmul.msk.bf16.gmra.mxu3 %vm343_vm1, %v3672_v61  ;;  %v2867_v28 = vpop.f32.mrf.mxu1  ;;  %v3423_v58 = vrot.slane %v3421_v46, 5  ;;  %v4048_v24 = vunpack.c.l.b16 %v3974_v8  ;;  %v3437_v48 = vshll.u32 %v9796_v34, 16  ;;  %v14535_v8 = vmov 0 }
 0x1f2   : > { %9877 = vmatmul.msk.bf16.gmra.mxu0 %vm343_vm1, %v4071_v2  ;;  %v3433_v2 = vrot.slane %v3431_v41, 4  ;;  %v10874_v41 = vmov 0   ;;  %v14536_v8 = vsel %vm12190_vm10, 4294967295, %v14535_v8 }
 0x1f3   : > { %9763 = vmatmul.msk.bf16.gmra.mxu2 %vm343_vm1, %v10584_v57  ;;  %v14531_v57 = vld [vmem:[#allocation3_spill] sm:$0xff]  ;;  %4317 = vst [vmem:[#allocation2] sm:$0xf] %v10874_v41  ;;  %v4072_v16 = vpack.c.b16 %v4048_v24, %v4047_v30  ;;  %v3439_v34 = vrot.slane %v3437_v48, 5 }
 0x1f4   : > { %v1815_v39 = vpop.f32.mrf.mxu3  ;;  %v3434_v46 = vor.u32 %v3433_v2, %v3429_v9  ;;  %4318 = vst [vmem:[#allocation2 + $0x4] sm:$0xf] %v10874_v41  ;;  %v9846_v2 = vld [vmem:[%s10939_s8 + $0x78] sm:$0xe] }
 0x1f5   : > { %v1856_v45 = vadd.f32 %v1815_v39, %v1569_v60  ;;  %v3420_v60 = vrot.slane %v3418_v11, 4  ;;  %4319 = vst [vmem:[#allocation2 + $0x8] sm:$0x1] %v10874_v41 }
 0x1f6   : > { %v1533_v53 = vpop.f32.mrf.mxu2  ;;  %4321 = vst [vmem:[#allocation2 + $0xcc] sm:$0xf] %v10874_v41  ;;  %v3435_v36 = vrot.slane %v3434_v46, 4 }
 0x1f7   : > { %v2510_v61 = vadd.f32 %v12118_v29, %v1856_v45  ;;  %v1571_v21 = vadd.f32 %v1533_v53, %v14531_v57  ;;  %v12168_v39 = vpop.f32.mrf.mxu0  ;;  %v3648_v29 = vunpack.c.l.b16 %v3416_v10  ;;  %v3424_v11 = vor.u32 %v3423_v58, %v3420_v60  ;;  %4322 = vst [vmem:[#allocation2 + $0xd0] sm:$0xf] %v10874_v41  ;;  %v14534_v53 = vld [vmem:[#allocation4_spill] sm:$0xff]  ;;  %v10585_v60 = vld [vmem:[%s10939_s8 + $0x6c] sm:$0xff] }
 0x1f8   : > { %v12184_v58 = vld [vmem:[%s10939_s8 + $0x80] sm:$0x1]  ;;  %4323 = vst [vmem:[#allocation2 + $0xd4] sm:$0x1] %v10874_v41  ;;  %v9862_v41 = vrot.slane %v9846_v2, 9 }
 0x1f9   : > { %v12165_v62 = vadd.f32 %v2867_v28, %v2510_v61  ;;  %v12170_v4 = vpop.f32.mrf.mxu1  ;;  %v3673_v45 = vpack.c.b16 %v3648_v29, %v3647_v1  ;;  %v3425_v61 = vrot.slane %v3424_v11, 4  ;;  %v9797_v29 = vld [vmem:[%s10939_s8 + $0x78] sm:$0xf]  ;;  %14537 = vst [vmem:[#allocation4_spill] sm:$0xff] %v14536_v8  ;;  %v3440_v11 = vsel %vm10960_vm4, %v3435_v36, %v3439_v34 }
 0x1fa   : > { %14532 = vst [vmem:[#allocation3_spill] sm:$0xff] %v12170_v4  ;;  %v4327_v30 = vld [vmem:[#allocation2] sm:$0x1]  ;;  %v3455_v4 = vshrl.u32 %v9798_v55, 16  ;;  %v3650_v36 = vunpack.c.l.b16 %v3440_v11 }
 0x1fb   : > { %14530 = vst [vmem:[#allocation15_spill] sm:$0xff] %v12165_v62  ;;  %v3430_v24 = vsel %vm10960_vm4, %v3425_v61, %v3429_v9  ;;  %v4328_v46 = vsel %vm12190_vm10, 0, %v4327_v30  ;;  %v14539_v30 = vld [vmem:[#allocation5_spill] sm:$0xff] }
 0x1fc   : > { %v1817_v56 = vpop.f32.mrf.mxu3  ;;  %4329 = vst [vmem:[#allocation2] sm:$0x1] %v4328_v46 }
 0x1fd   : > { %v1857_v28 = vadd.f32 %v1817_v56, %v1570_v18 }
 0x1fe   : > { %v1535_v35 = vpop.f32.mrf.mxu2 }
 0x1ff   : > { %v12176_v10 = vadd.f32 %v12133_v26, %v1857_v28  ;;  %v1572_v18 = vadd.f32 %v1535_v35, %v14534_v53  ;;  %v12180_v1 = vpop.f32.mrf.mxu0  ;;  %v3977_v26 = vrot.slane %v9798_v55, 5  ;;  %v3442_v35 = vshrl.u32 %v9797_v29, 16 }
 0x200   : > { %v3445_v53 = vshll.u32 %v9797_v29, 16 }
 0x201   : > { %14533 = vst [vmem:[#allocation16_spill] sm:$0xff] %v12176_v10  ;;  %9828 = vmatmul.msk.bf16.gmra.mxu3 %vm343_vm1, %v3673_v45  ;;  %v2872_v57 = vpop.f32.mrf.mxu1  ;;  %v3979_v28 = vrot.slane %v3977_v26, 4  ;;  %v3980_v45 = vrot.slane %v12184_v58, 5  ;;  %v3649_v10 = vunpack.c.l.b16 %v3430_v24  ;;  %v3978_v2 = vsel %vm11195_vm7, %v9862_v41, %v3977_v26  ;;  %v9801_v26 = vld [vmem:[%s10939_s8 + $0x88] sm:$0xf] }
 0x202   : > { %9878 = vmatmul.msk.bf16.gmra.mxu0 %vm343_vm1, %v4072_v16  ;;  %v3451_v16 = vshll.u32 %v9798_v55, 16  ;;  %v3447_v55 = vrot.slane %v3445_v53, 5 }
 0x203   : > { %9764 = vmatmul.msk.bf16.gmra.mxu2 %vm343_vm1, %v10585_v60  ;;  %v3981_v29 = vsel %vm11195_vm7, %v3979_v28, %v3980_v45  ;;  %v10594_v41 = vld [vmem:[#allocation2] sm:$0xff]  ;;  %v3674_v28 = vpack.c.b16 %v3650_v36, %v3649_v10  ;;  %v14545_v36 = vld [vmem:[#allocation6_spill] sm:$0xff] }
 0x204   : > { %v1820_v56 = vpop.f32.mrf.mxu3  ;;  %v3453_v46 = vrot.slane %v3451_v16, 5  ;;  %5078 = vmatmul.bf16.vlgmr.msra.gmra.mxu1 %v10594_v41  ;;  %v9847_v16 = vld [vmem:[%s10939_s8 + $0x84] sm:$0xe] }
 0x205   : > { %v1858_v48 = vadd.f32 %v1820_v56, %v1571_v21  ;;  %v3444_v56 = vrot.slane %v3442_v35, 4  ;;  %v3461_v35 = vshll.u32 %v12184_v58, 16  ;;  %v9800_v10 = vld [vmem:[%s10939_s8 + $0x84] sm:$0xf]  ;;  %v9863_v41 = vrot.slane %v9847_v16, 9 }
 0x206   : > { %v1538_v61 = vpop.f32.mrf.mxu2 }
 0x207   : > { %v2512_v9 = vadd.f32 %v12148_v7, %v1858_v48  ;;  %v1573_v21 = vadd.f32 %v1538_v61, %v14539_v30  ;;  %v12207_v60 = vpop.f32.mrf.mxu0  ;;  %v3457_v7 = vrot.slane %v3455_v4, 4  ;;  %v4330_v48 = vld [vmem:[#allocation2 + $0xc] sm:$0x1]  ;;  %v4050_v61 = vunpack.c.l.b16 %v3981_v29 }
 0x208   : > { %v3448_v4 = vor.u32 %v3447_v55, %v3444_v56  ;;  %v10586_v55 = vld [vmem:[%s10939_s8 + $0x78] sm:$0xff] }
 0x209   : > { %v12204_v34 = vadd.f32 %v2872_v57, %v2512_v9  ;;  %v4331_v57 = vsel %vm12190_vm10, 0, %v4330_v48  ;;  %v12215_v11 = vpop.f32.mrf.mxu1  ;;  %v4049_v9 = vunpack.c.l.b16 %v3978_v2  ;;  %v3458_v45 = vor.u32 %v3457_v7, %v3453_v46 }
 0x20a   : > { %14540 = vst [vmem:[#allocation5_spill] sm:$0xff] %v12215_v11  ;;  %v3984_v2 = vrot.slane %v9801_v26, 5  ;;  %v3449_v7 = vrot.slane %v3448_v4, 4  ;;  %v3466_v11 = vshrl.u32 %v9800_v10, 16  ;;  %v3475_v4 = vshll.u32 %v9801_v26, 16 }
 0x20b   : > { %14538 = vst [vmem:[#allocation17_spill] sm:$0xff] %v12204_v34  ;;  %v4073_v48 = vpack.c.b16 %v4050_v61, %v4049_v9  ;;  %v4386_v9 = vld [vmem:[#allocation2 + $0x14] sm:$0x1] }
 0x20c   : > { %v1822_v24 = vpop.f32.mrf.mxu3  ;;  %4332 = vst [vmem:[#allocation2 + $0xc] sm:$0x1] %v4331_v57  ;;  %v3459_v57 = vrot.slane %v3458_v45, 4  ;;  %v3986_v61 = vrot.slane %v3984_v2, 4  ;;  %v3479_v45 = vshrl.u32 %v9801_v26, 16 }
 0x20d   : > { %v1859_v30 = vadd.f32 %v1822_v24, %v1572_v18  ;;  %v14542_v18 = vmov 0  ;;  %v3463_v24 = vrot.slane %v3461_v35, 5 }
 0x20e   : > { %v1540_v29 = vpop.f32.mrf.mxu2  ;;  %v14543_v18 = vsel %vm12225_vm12, 4294967295, %v14542_v18  ;;  %v3481_v26 = vrot.slane %v3479_v45, 4 }
 0x20f   : > { %v12220_v53 = vadd.f32 %v12168_v39, %v1859_v30  ;;  %14544 = vst [vmem:[#allocation19_spill] sm:$0xff] %v14543_v18  ;;  %v1574_v56 = vadd.f32 %v1540_v29, %v14545_v36  ;;  %v12232_v58 = vpop.f32.mrf.mxu0  ;;  %v9802_v39 = vld [vmem:[%s10939_s8 + $0x8c] sm:$0x1]  ;;  %v4387_v30 = vsel %vm12225_vm12, 0, %v4386_v9  ;;  %v3454_v36 = vsel %vm10960_vm4, %v3449_v7, %v3453_v46 }
 0x210   : > { %v3987_v29 = vrot.slane %v9802_v39, 5  ;;  %4388 = vst [vmem:[#allocation2 + $0x14] sm:$0x1] %v4387_v30  ;;  %v3468_v9 = vrot.slane %v3466_v11, 4  ;;  %v3985_v30 = vsel %vm11195_vm7, %v9863_v41, %v3984_v2  ;;  %v3651_v7 = vunpack.c.l.b16 %v3454_v36 }
 0x211   : > { %14541 = vst [vmem:[#allocation18_spill] sm:$0xff] %v12220_v53  ;;  %9829 = vmatmul.msk.bf16.gmra.mxu3 %vm343_vm1, %v3674_v28  ;;  %v3469_v53 = vshll.u32 %v9800_v10, 16  ;;  %v10625_v28 = vld [vmem:[%s14507_s3 + $0x78] sm:$0xff]  ;;  %v2877_v16 = vpop.f32.mrf.mxu1  ;;  %v3464_v10 = vsel %vm10960_vm4, %v3459_v57, %v3463_v24  ;;  %v4051_v11 = vunpack.c.l.b16 %v3985_v30 }
 0x212   : > { %9879 = vmatmul.msk.bf16.gmra.mxu0 %vm343_vm1, %v4073_v48  ;;  %5752 = vmatpush.bf16.msrb.mxu2 %v10625_v28  ;;  %v3652_v57 = vunpack.c.l.b16 %v3464_v10 }
 0x213   : > { %9765 = vmatmul.msk.bf16.gmra.mxu2 %vm343_vm1, %v10586_v55  ;;  %v3471_v62 = vrot.slane %v3469_v53, 5 }
 0x214   : > { %v1825_v34 = vpop.f32.mrf.mxu3  ;;  %v3675_v45 = vpack.c.b16 %v3652_v57, %v3651_v7  ;;  %v10587_v57 = vld [vmem:[%s10939_s8 + $0x84] sm:$0xff] }
 0x215   : > { %v1860_v35 = vadd.f32 %v1825_v34, %v1573_v21  ;;  %v3988_v34 = vsel %vm11195_vm7, %v3986_v61, %v3987_v29  ;;  %v3477_v21 = vrot.slane %v3475_v4, 5  ;;  %v3472_v24 = vor.u32 %v3471_v62, %v3468_v9  ;;  %v9804_v29 = vld [vmem:[%s10939_s8 + $0x94] sm:$0xf] }
 0x216   : > { %v3089_v47 = vpop.f32.mrf.mxu2  ;;  %v4052_v53 = vunpack.c.l.b16 %v3988_v34  ;;  %v3485_v61 = vshll.u32 %v9802_v39, 16  ;;  %v9848_v34 = vld [vmem:[%s10939_s8 + $0x90] sm:$0xe] }
 0x217   : > { %v2514_v48 = vadd.f32 %v12180_v1, %v1860_v35  ;;  %v12254_v46 = vpop.f32.mrf.mxu0  ;;  %v4333_v1 = vld [vmem:[#allocation2 + $0x18] sm:$0x1]  ;;  %v3482_v28 = vor.u32 %v3481_v26, %v3477_v21  ;;  %v3473_v10 = vrot.slane %v3472_v24, 4  ;;  %v3503_v26 = vshrl.u32 %v9804_v29, 16 }
 0x218   : > { %v4334_v2 = vsel %vm12190_vm10, 0, %v4333_v1  ;;  %v10633_v35 = vld [vmem:[%s14507_s3 + $0xb8] sm:$0xff]  ;;  %v4074_v62 = vpack.c.b16 %v4052_v53, %v4051_v11  ;;  %v3487_v30 = vrot.slane %v3485_v61, 5  ;;  %v9864_v53 = vrot.slane %v9848_v34, 9 }
 0x219   : > { %v12252_v55 = vadd.f32 %v2877_v16, %v2514_v48  ;;  %4335 = vst [vmem:[#allocation2 + $0x18] sm:$0x1] %v4334_v2  ;;  %v9803_v16 = vld [vmem:[%s10939_s8 + $0x90] sm:$0xf]  ;;  %6178 = vmatpush.bf16.msrb.mxu3 %v10633_v35  ;;  %v3991_v48 = vrot.slane %v9804_v29, 5  ;;  %v3483_v39 = vrot.slane %v3482_v28, 4 }
 0x21a   : > { %v3490_v1 = vshrl.u32 %v9803_v16, 16  ;;  %v3493_v2 = vshll.u32 %v9803_v16, 16  ;;  %v10657_v35 = vld [vmem:[%s14507_s3 + $0xf8] sm:$0xff]  ;;  %v3505_v34 = vrot.slane %v3503_v26, 4 }
 0x21b   : > { %14546 = vst [vmem:[#allocation6_spill] sm:$0xff] %v12252_v55  ;;  %v3993_v24 = vrot.slane %v3991_v48, 4  ;;  %6492 = vmatpush.bf16.msrb.mxu0 %v10657_v35  ;;  %v12306_v55 = vld [vmem:[%s10939_s8 + $0xa4] sm:$0x1] }
 0x21c   : > { %v1827_v41 = vpop.f32.mrf.mxu3 }
 0x21d   : > { %v1861_v4 = vadd.f32 %v1827_v41, %v1574_v56  ;;  %v3499_v56 = vshll.u32 %v9804_v29, 16  ;;  %v4389_v41 = vld [vmem:[#allocation2 + $0x20] sm:$0x1]  ;;  %v3478_v29 = vsel %vm10960_vm4, %v3473_v10, %v3477_v21  ;;  %v3492_v21 = vrot.slane %v3490_v1, 4 }
 0x21e   : > { %v3091_v9 = vpop.f32.mrf.mxu2  ;;  %v4390_v28 = vsel %vm12225_vm12, 0, %v4389_v41  ;;  %v3495_v10 = vrot.slane %v3493_v2, 5 }
 0x21f   : > { %v12264_v36 = vadd.f32 %v12207_v60, %v1861_v4  ;;  %v12268_v7 = vpop.f32.mrf.mxu0  ;;  %v9805_v60 = vld [vmem:[%s10939_s8 + $0x98] sm:$0x1]  ;;  %4391 = vst [vmem:[#allocation2 + $0x20] sm:$0x1] %v4390_v28  ;;  %v12286_v16 = vrot.slane %v3499_v56, 5  ;;  %v3992_v28 = vsel %vm11195_vm7, %v9864_v53, %v3991_v48 }
 0x220   : > { %v14548_v4 = vld [vmem:[#allocation7_spill] sm:$0xff]  ;;  %v3496_v1 = vor.u32 %v3495_v10, %v3492_v21  ;;  %v3509_v2 = vshll.u32 %v9805_v60, 16  ;;  %v9807_v48 = vld [vmem:[%s10939_s8 + $0xa0] sm:$0xf] }
 0x221   : > { %14547 = vst [vmem:[#allocation20_spill] sm:$0xff] %v12264_v36  ;;  %9830 = vmatmul.msk.bf16.gmra.mxu3 %vm343_vm1, %v3675_v45  ;;  %v3169_v11 = vadd.f32 %v3089_v47, %v14548_v4  ;;  %v3488_v45 = vsel %vm10960_vm4, %v3483_v39, %v3487_v30  ;;  %v10665_v47 = vld [vmem:[%s14507_s3 + $0x138] sm:$0xff]  ;;  %v3653_v4 = vunpack.c.l.b16 %v3478_v29  ;;  %v3506_v56 = vor.u32 %v3505_v34, %v12286_v16 }
 0x222   : > { %9880 = vmatmul.msk.bf16.gmra.mxu0 %vm343_vm1, %v4074_v62  ;;  %v3994_v62 = vrot.slane %v9805_v60, 5  ;;  %7174 = vmatpush.bf16.msrb.mxu1 %v10665_v47  ;;  %v3654_v36 = vunpack.c.l.b16 %v3488_v45  ;;  %v4053_v47 = vunpack.c.l.b16 %v3992_v28  ;;  %v3511_v21 = vrot.slane %v3509_v2, 5  ;;  %v9806_v10 = vld [vmem:[%s10939_s8 + $0x9c] sm:$0xf]  ;;  %v4762_v28 = vld [vmem:[#allocation2 + $0xc] sm:$0xf] }
 0x223   : > { %9766 = vmatmul.msk.bf16.gmra.mxu2 %vm343_vm1, %v10587_v57  ;;  %v3517_v2 = vshll.u32 %v9806_v10, 16 }
 0x224   : > { %v3743_v61 = vpop.f32.mrf.mxu3  ;;  %v3995_v57 = vsel %vm11195_vm7, %v3993_v24, %v3994_v62  ;;  %v3676_v45 = vpack.c.b16 %v3654_v36, %v3653_v4  ;;  %v3497_v62 = vrot.slane %v3496_v1, 4  ;;  %v9849_v36 = vld [vmem:[%s10939_s8 + $0x9c] sm:$0xe]  ;;  %v3514_v1 = vshrl.u32 %v9806_v10, 16 }
 0x225   : > { %v3823_v41 = vadd.f32 %v3743_v61, %v3169_v11  ;;  %v4336_v61 = vld [vmem:[#allocation2 + $0x24] sm:$0x1]  ;;  %v4054_v34 = vunpack.c.l.b16 %v3995_v57  ;;  %v9865_v44 = vrot.slane %v9849_v36, 9 }
 0x226   : > { %v3094_v30 = vpop.f32.mrf.mxu2  ;;  %v4337_v29 = vsel %vm12190_vm10, 0, %v4336_v61 }
 0x227   : > { %v4221_v39 = vadd.f32 %v12232_v58, %v3823_v41  ;;  %v12293_v11 = vpop.f32.mrf.mxu0  ;;  %v3170_v58 = vadd.f32 %v3091_v9, %v11677_v43  ;;  %v3507_v41 = vrot.slane %v3506_v56, 4  ;;  %4338 = vst [vmem:[#allocation2 + $0x24] sm:$0x1] %v4337_v29  ;;  %v3998_v43 = vrot.slane %v9807_v48, 5 }
 0x228   : > { %v3523_v9 = vshll.u32 %v9807_v48, 16  ;;  %v4075_v57 = vpack.c.b16 %v4054_v34, %v4053_v47  ;;  %v4001_v34 = vrot.slane %v12306_v55, 5 }
 0x229   : > { %v4253_v26 = vmax.f32 %v4221_v39, 0.0  ;;  %v4000_v47 = vrot.slane %v3998_v43, 4 }
 0x22a   : > { %v12326_v10 = vrot.slane %v3523_v9, 5 }
 0x22b   : > { %v4285_v35 = vpack.c.bf16 %v4253_v26, %v4253_v26 }
 0x22c   : > { %v3745_v53 = vpop.f32.mrf.mxu3 }
 0x22d   : > { %v4440_v24 = vshrl.u32 %v4285_v35, 16  ;;  %v3824_v60 = vadd.f32 %v3745_v53, %v3170_v58  ;;  %v4443_v26 = vshll.u32 %v4285_v35, 16  ;;  %v3527_v58 = vshrl.u32 %v9807_v48, 16  ;;  %v10588_v53 = vld [vmem:[%s10939_s8 + $0x90] sm:$0xff]  ;;  %v4392_v48 = vld [vmem:[#allocation2 + $0x2c] sm:$0x1] }
 0x22e   : > { %v3096_v56 = vpop.f32.mrf.mxu2  ;;  %v4393_v52 = vsel %vm12225_vm12, 0, %v4392_v48  ;;  %v3999_v48 = vsel %vm11195_vm7, %v9865_v44, %v3998_v43 }
 0x22f   : > { %v12302_v39 = vrot.slane %v4440_v24, 7  ;;  %v4222_v61 = vadd.f32 %v12254_v46, %v3824_v60  ;;  %v12317_v46 = vpop.f32.mrf.mxu0  ;;  %v3502_v24 = vsel %vm10960_vm4, %v3497_v62, %v12286_v16  ;;  %v3512_v60 = vsel %vm10960_vm4, %v3507_v41, %v3511_v21  ;;  %v10624_v41 = vld [vmem:[%s14507_s3 + $0x70] sm:$0xff]  ;;  %4394 = vst [vmem:[#allocation2 + $0x2c] sm:$0x1] %v4393_v52 }
 0x230   : > { %v3516_v62 = vrot.slane %v3514_v1, 4  ;;  %v3519_v21 = vrot.slane %v3517_v2, 5  ;;  %v3529_v9 = vrot.slane %v3527_v58, 4  ;;  %5753 = vmatpush.bf16.msrb.mxu2 %v10624_v41  ;;  %v4766_v2 = vld [vmem:[#allocation2 + $0x14] sm:$0x1]  ;;  %v4002_v52 = vsel %vm11195_vm7, %v4000_v47, %v4001_v34 }
 0x231   : > { %v4445_v29 = vor.u32 %v4443_v26, %v12302_v39  ;;  %v4254_v35 = vmax.f32 %v4222_v61, 0.0  ;;  %9831 = vmatmul.msk.bf16.gmra.mxu3 %vm343_vm1, %v3676_v45  ;;  %v3171_v26 = vadd.f32 %v3094_v30, %v11707_v38  ;;  %v3655_v38 = vunpack.c.l.b16 %v3502_v24  ;;  %v4339_v41 = vld [vmem:[#allocation2 + $0x30] sm:$0x1] }
 0x232   : > { %9881 = vmatmul.msk.bf16.gmra.mxu0 %vm343_vm1, %v4075_v57  ;;  %v3656_v30 = vunpack.c.l.b16 %v3512_v60  ;;  %v3530_v24 = vor.u32 %v3529_v9, %v12326_v10  ;;  %v3533_v60 = vshll.u32 %v12306_v55, 16  ;;  %v4340_v55 = vsel %vm12190_vm10, 0, %v4339_v41 }
 0x233   : > { %v4763_v45 = vsel %vm12311_vm14, %v4445_v29, %v4762_v28  ;;  %v4286_v61 = vpack.c.bf16 %v4254_v35, %v4254_v35  ;;  %9767 = vmatmul.msk.bf16.gmra.mxu2 %vm343_vm1, %v10588_v53  ;;  %v3520_v53 = vor.u32 %v3519_v21, %v3516_v62  ;;  %v4056_v9 = vunpack.c.l.b16 %v4002_v52  ;;  %4341 = vst [vmem:[#allocation2 + $0x30] sm:$0x1] %v4340_v55 }
 0x234   : > { %4764 = vst [vmem:[#allocation2 + $0xc] sm:$0xf] %v4763_v45  ;;  %v3748_v16 = vpop.f32.mrf.mxu3 }
 0x235   : > { %v4448_v36 = vshrl.u32 %v4286_v61, 16  ;;  %v3825_v28 = vadd.f32 %v3748_v16, %v3171_v26  ;;  %v4451_v35 = vshll.u32 %v4286_v61, 16  ;;  %v3172_v61 = vadd.f32 %v3096_v56, %v11731_v51 }
 0x236   : > { %v3099_v58 = vpop.f32.mrf.mxu2  ;;  %v4055_v16 = vunpack.c.l.b16 %v3999_v48  ;;  %v3521_v51 = vrot.slane %v3520_v53, 4  ;;  %v3531_v56 = vrot.slane %v3530_v24, 4  ;;  %v9809_v48 = vld [vmem:[%s10939_s8 + $0xa8] sm:$0xf]  ;;  %v12373_v24 = vld [vmem:[%s10939_s8 + $0xb0] sm:$0x1] }
 0x237   : > { %v4450_v29 = vrot.slane %v4448_v36, 7  ;;  %v4223_v57 = vadd.f32 %v12268_v7, %v3825_v28  ;;  %v4446_v7 = vrot.slane %v12302_v39, 4  ;;  %v12351_v26 = vpop.f32.mrf.mxu0  ;;  %v12361_v39 = vld [vmem:[%s10939_s8 + $0xac] sm:$0xf]  ;;  %v3535_v36 = vrot.slane %v3533_v60, 5 }
 0x238   : > { %v4769_v60 = vld [vmem:[#allocation2 + $0x18] sm:$0xf] }
 0x239   : > { %v4453_v45 = vor.u32 %v4451_v35, %v4450_v29  ;;  %v4455_v44 = vrot.slane %v4450_v29, 4  ;;  %v4255_v43 = vmax.f32 %v4223_v57, 0.0  ;;  %v3677_v35 = vpack.c.b16 %v3656_v30, %v3655_v38  ;;  %v10632_v57 = vld [vmem:[%s14507_s3 + $0xb0] sm:$0xff] }
 0x23a   : > { %6179 = vmatpush.bf16.msrb.mxu3 %v10632_v57  ;;  %v4076_v30 = vpack.c.b16 %v4056_v9, %v4055_v16  ;;  %v4008_v16 = vrot.slane %v12373_v24, 5  ;;  %v4395_v9 = vld [vmem:[#allocation2 + $0x38] sm:$0x1] }
 0x23b   : > { %v4454_v47 = vsel %vm12342_vm0, %v4446_v7, %v4453_v45  ;;  %v4767_v34 = vsel %vm12190_vm10, %v4455_v44, %v4766_v2  ;;  %v4287_v62 = vpack.c.bf16 %v4255_v43, %v4255_v43  ;;  %v9850_v2 = vld [vmem:[%s10939_s8 + $0xa8] sm:$0xe]  ;;  %v4005_v7 = vrot.slane %v12361_v39, 5 }
 0x23c   : > { %4765 = vst [vmem:[#allocation2 + $0x10] sm:$0xf] %v4454_v47  ;;  %v3750_v21 = vpop.f32.mrf.mxu3  ;;  %v3536_v44 = vsel %vm10960_vm4, %v3531_v56, %v3535_v36  ;;  %v3538_v43 = vshrl.u32 %v9809_v48, 16  ;;  %v9866_v55 = vrot.slane %v9850_v2, 9  ;;  %v3547_v56 = vshll.u32 %v12361_v39, 16 }
 0x23d   : > { %4768 = vst [vmem:[#allocation2 + $0x14] sm:$0x1] %v4767_v34  ;;  %v4457_v28 = vshrl.u32 %v4287_v62, 16  ;;  %v3826_v29 = vadd.f32 %v3750_v21, %v3172_v61  ;;  %v4460_v52 = vshll.u32 %v4287_v62, 16  ;;  %v3541_v61 = vshll.u32 %v9809_v48, 16  ;;  %v10589_v62 = vld [vmem:[%s10939_s8 + $0x9c] sm:$0xff] }
 0x23e   : > { %v3101_v38 = vpop.f32.mrf.mxu2  ;;  %v4007_v21 = vrot.slane %v4005_v7, 4  ;;  %v3551_v36 = vshrl.u32 %v12361_v39, 16  ;;  %v4396_v48 = vsel %vm12225_vm12, 0, %v4395_v9  ;;  %v10664_v39 = vld [vmem:[%s14507_s3 + $0x130] sm:$0xff]  ;;  %v3540_v2 = vrot.slane %v3538_v43, 4 }
 0x23f   : > { %v12369_v45 = vrot.slane %v4457_v28, 7  ;;  %v4224_v53 = vadd.f32 %v12293_v11, %v3826_v29  ;;  %v12379_v34 = vpop.f32.mrf.mxu0  ;;  %v3526_v11 = vsel %vm10960_vm4, %v3521_v51, %v12326_v10  ;;  %v3173_v29 = vadd.f32 %v3099_v58, %v11760_v13  ;;  %v10656_v51 = vld [vmem:[%s14507_s3 + $0xf0] sm:$0xff]  ;;  %4397 = vst [vmem:[#allocation2 + $0x38] sm:$0x1] %v4396_v48  ;;  %7175 = vmatpush.bf16.msrb.mxu1 %v10664_v39 }
 0x240   : > { %6493 = vmatpush.bf16.msrb.mxu0 %v10656_v51  ;;  %v4006_v9 = vsel %vm11195_vm7, %v9866_v55, %v4005_v7  ;;  %v4342_v51 = vld [vmem:[#allocation2 + $0x3c] sm:$0x1] }
 0x241   : > { %v4462_v41 = vor.u32 %v4460_v52, %v12369_v45  ;;  %v4256_v47 = vmax.f32 %v4224_v53, 0.0  ;;  %9832 = vmatmul.msk.bf16.gmra.mxu3 %vm343_vm1, %v3677_v35  ;;  %v3543_v52 = vrot.slane %v3541_v61, 5  ;;  %v3657_v53 = vunpack.c.l.b16 %v3526_v11 }
 0x242   : > { %9882 = vmatmul.msk.bf16.gmra.mxu0 %vm343_vm1, %v4076_v30  ;;  %v4009_v61 = vsel %vm11195_vm7, %v4007_v21, %v4008_v16  ;;  %v4343_v16 = vsel %vm12190_vm10, 0, %v4342_v51  ;;  %v10590_v51 = vld [vmem:[%s10939_s8 + $0xa8] sm:$0xff] }
 0x243   : > { %v4770_v28 = vsel %vm12311_vm14, %v4462_v41, %v4769_v60  ;;  %v4288_v35 = vpack.c.bf16 %v4256_v47, %v4256_v47  ;;  %v10595_v57 = vld [vmem:[#allocation2 + $0xc] sm:$0xff]  ;;  %9768 = vmatmul.msk.bf16.gmra.mxu2 %vm343_vm1, %v10589_v62  ;;  %v3658_v60 = vunpack.c.l.b16 %v3536_v44  ;;  %v12406_v62 = vrot.slane %v3547_v56, 5  ;;  %4344 = vst [vmem:[#allocation2 + $0x3c] sm:$0x1] %v4343_v16  ;;  %v4398_v16 = vld [vmem:[#allocation2 + $0x44] sm:$0x1] }
 0x244   : > { %4771 = vst [vmem:[#allocation2 + $0x18] sm:$0xf] %v4770_v28  ;;  %v3753_v10 = vpop.f32.mrf.mxu3  ;;  %5083 = vmatmul.bf16.gmra.mxu1 %v10595_v57  ;;  %v4773_v28 = vld [vmem:[#allocation2 + $0x20] sm:$0x1]  ;;  %v3553_v57 = vrot.slane %v3551_v36, 4  ;;  %v4463_v44 = vrot.slane %v12369_v45, 4  ;;  %v4057_v56 = vunpack.c.l.b16 %v4006_v9  ;;  %v4058_v36 = vunpack.c.l.b16 %v4009_v61 }
 0x245   : > { %v4465_v13 = vshrl.u32 %v4288_v35, 16  ;;  %v3827_v58 = vadd.f32 %v3753_v10, %v3173_v29  ;;  %v4468_v41 = vshll.u32 %v4288_v35, 16  ;;  %v3544_v29 = vor.u32 %v3543_v52, %v3540_v2  ;;  %v9814_v61 = vld [vmem:[%s10939_s8 + $0xbc] sm:$0x1] }
 0x246   : > { %v3104_v43 = vpop.f32.mrf.mxu2  ;;  %v3678_v52 = vpack.c.b16 %v3658_v60, %v3657_v53 }
 0x247   : > { %v4467_v30 = vrot.slane %v4465_v13, 7  ;;  %v4225_v47 = vadd.f32 %v12317_v46, %v3827_v58  ;;  %v12409_v35 = vpop.f32.mrf.mxu0  ;;  %v3174_v46 = vadd.f32 %v3101_v38, %v11778_v5  ;;  %v3554_v5 = vor.u32 %v3553_v57, %v12406_v62  ;;  %v9813_v58 = vld [vmem:[%s10939_s8 + $0xb8] sm:$0xf]  ;;  %v9851_v57 = vld [vmem:[%s10939_s8 + $0xb4] sm:$0xe] }
 0x248   : > { %v3557_v38 = vshll.u32 %v12373_v24, 16  ;;  %v3545_v13 = vrot.slane %v3544_v29, 4  ;;  %v4012_v53 = vrot.slane %v9813_v58, 5 }
 0x249   : > { %v4470_v11 = vor.u32 %v4468_v41, %v4467_v30  ;;  %v4472_v48 = vrot.slane %v4467_v30, 4  ;;  %v4257_v10 = vmax.f32 %v4225_v47, 0.0  ;;  %v3571_v30 = vshll.u32 %v9813_v58, 16 }
 0x24a   : > { %v3575_v41 = vshrl.u32 %v9813_v58, 16  ;;  %v10623_v58 = vld [vmem:[%s14507_s3 + $0x68] sm:$0xff] }
 0x24b   : > { %v4471_v7 = vsel %vm12342_vm0, %v4463_v44, %v4470_v11  ;;  %v4774_v55 = vsel %vm12190_vm10, %v4472_v48, %v4773_v28  ;;  %v4289_v21 = vpack.c.bf16 %v4257_v10, %v4257_v10  ;;  %v4776_v44 = vld [vmem:[#allocation2 + $0x24] sm:$0xf]  ;;  %v4077_v11 = vpack.c.b16 %v4058_v36, %v4057_v56  ;;  %5754 = vmatpush.bf16.msrb.mxu2 %v10623_v58 }
 0x24c   : > { %4772 = vst [vmem:[#allocation2 + $0x1c] sm:$0xf] %v4471_v7  ;;  %v3755_v45 = vpop.f32.mrf.mxu3  ;;  %v3555_v48 = vrot.slane %v3554_v5, 4  ;;  %v3559_v10 = vrot.slane %v3557_v38, 5  ;;  %v9812_v7 = vld [vmem:[%s10939_s8 + $0xb4] sm:$0xf]  ;;  %v3175_v5 = vadd.f32 %v3104_v43, %v11808_v27 }
 0x24d   : > { %4775 = vst [vmem:[#allocation2 + $0x20] sm:$0x1] %v4774_v55  ;;  %v4474_v39 = vshrl.u32 %v4289_v21, 16  ;;  %v3828_v2 = vadd.f32 %v3755_v45, %v3174_v46  ;;  %v4477_v9 = vshll.u32 %v4289_v21, 16  ;;  %v9867_v55 = vrot.slane %v9851_v57, 9 }
 0x24e   : > { %v3106_v24 = vpop.f32.mrf.mxu2  ;;  %v4015_v21 = vrot.slane %v9814_v61, 5  ;;  %v12435_v45 = vrot.slane %v3571_v30, 5  ;;  %v3577_v56 = vrot.slane %v3575_v41, 4  ;;  %v3562_v30 = vshrl.u32 %v9812_v7, 16 }
 0x24f   : > { %v12421_v47 = vrot.slane %v4474_v39, 7  ;;  %v4226_v28 = vadd.f32 %v12351_v26, %v3828_v2  ;;  %v12428_v46 = vpop.f32.mrf.mxu0  ;;  %v3550_v26 = vsel %vm10960_vm4, %v3545_v13, %v12406_v62  ;;  %v4399_v2 = vsel %vm12225_vm12, 0, %v4398_v16 }
 0x250   : > { %v3560_v62 = vsel %vm10960_vm4, %v3555_v48, %v3559_v10  ;;  %v4014_v13 = vrot.slane %v4012_v53, 4  ;;  %v3565_v41 = vshll.u32 %v9812_v7, 16  ;;  %4400 = vst [vmem:[#allocation2 + $0x44] sm:$0x1] %v4399_v2  ;;  %v3581_v57 = vshll.u32 %v9814_v61, 16 }
 0x251   : > { %v4479_v60 = vor.u32 %v4477_v9, %v12421_v47  ;;  %v4258_v29 = vmax.f32 %v4226_v28, 0.0  ;;  %9833 = vmatmul.msk.bf16.gmra.mxu3 %vm343_vm1, %v3678_v52  ;;  %v3659_v9 = vunpack.c.l.b16 %v3550_v26  ;;  %v3578_v28 = vor.u32 %v3577_v56, %v12435_v45 }
 0x252   : > { %9883 = vmatmul.msk.bf16.gmra.mxu0 %vm343_vm1, %v4077_v11  ;;  %v3660_v10 = vunpack.c.l.b16 %v3560_v62  ;;  %v4013_v7 = vsel %vm11195_vm7, %v9867_v55, %v4012_v53  ;;  %v3564_v26 = vrot.slane %v3562_v30, 4  ;;  %v3567_v16 = vrot.slane %v3565_v41, 5  ;;  %v4345_v55 = vld [vmem:[#allocation2 + $0x48] sm:$0x1]  ;;  %v12472_v62 = vld [vmem:[%s10939_s8 + $0xc4] sm:$0xf] }
 0x253   : > { %v4777_v36 = vsel %vm12311_vm14, %v4479_v60, %v4776_v44  ;;  %v4290_v38 = vpack.c.bf16 %v4258_v29, %v4258_v29  ;;  %v10596_v39 = vld [vmem:[#allocation2 + $0x18] sm:$0xff]  ;;  %9769 = vmatmul.msk.bf16.gmra.mxu2 %vm343_vm1, %v10590_v51  ;;  %v4780_v60 = vld [vmem:[#allocation2 + $0x2c] sm:$0x1]  ;;  %v4016_v51 = vsel %vm11195_vm7, %v4014_v13, %v4015_v21  ;;  %v4480_v61 = vrot.slane %v12421_v47, 4  ;;  %v9815_v13 = vld [vmem:[%s10939_s8 + $0xc0] sm:$0xf] }
 0x254   : > { %4778 = vst [vmem:[#allocation2 + $0x24] sm:$0xf] %v4777_v36  ;;  %v3758_v52 = vpop.f32.mrf.mxu3  ;;  %5088 = vmatmul.bf16.gmra.mxu1 %v10596_v39  ;;  %v12461_v39 = vrot.slane %v3578_v28, 4  ;;  %v12463_v53 = vrot.slane %v3581_v57, 5  ;;  %v4060_v58 = vunpack.c.l.b16 %v4016_v51  ;;  %v3568_v30 = vor.u32 %v3567_v16, %v3564_v26  ;;  %v12476_v41 = vld [vmem:[%s10939_s8 + $0xc8] sm:$0x1] }
 0x255   : > { %v4482_v27 = vshrl.u32 %v4290_v38, 16  ;;  %v3829_v43 = vadd.f32 %v3758_v52, %v3175_v5  ;;  %v4485_v11 = vshll.u32 %v4290_v38, 16  ;;  %v3176_v38 = vadd.f32 %v3106_v24, %v11832_v20 }
 0x256   : > { %v12451_v29 = vpop.f32.mrf.mxu2  ;;  %v4346_v52 = vsel %vm12190_vm10, 0, %v4345_v55  ;;  %v4059_v24 = vunpack.c.l.b16 %v4013_v7  ;;  %v3679_v57 = vpack.c.b16 %v3660_v10, %v3659_v9  ;;  %v3589_v7 = vshll.u32 %v9815_v13, 16  ;;  %v4783_v10 = vld [vmem:[#allocation2 + $0x30] sm:$0xf] }
 0x257   : > { %v4484_v44 = vrot.slane %v4482_v27, 7  ;;  %v4227_v48 = vadd.f32 %v12379_v34, %v3829_v43  ;;  %v12458_v34 = vpop.f32.mrf.mxu0  ;;  %v9852_v27 = vld [vmem:[%s10939_s8 + $0xc0] sm:$0xe]  ;;  %4347 = vst [vmem:[#allocation2 + $0x48] sm:$0x1] %v4346_v52  ;;  %v3595_v51 = vshll.u32 %v12472_v62, 16 }
 0x258   : > { %v4022_v52 = vrot.slane %v12476_v41, 5 }
 0x259   : > { %v4487_v56 = vor.u32 %v4485_v11, %v4484_v44  ;;  %v4489_v36 = vrot.slane %v4484_v44, 4  ;;  %v4259_v5 = vmax.f32 %v4227_v48, 0.0  ;;  %v10631_v44 = vld [vmem:[%s14507_s3 + $0xa8] sm:$0xff]  ;;  %v4019_v48 = vrot.slane %v12472_v62, 5 }
 0x25a   : > { %v10655_v11 = vld [vmem:[%s14507_s3 + $0xe8] sm:$0xff]  ;;  %6180 = vmatpush.bf16.msrb.mxu3 %v10631_v44 }
 0x25b   : > { %v4488_v21 = vsel %vm12342_vm0, %v4480_v61, %v4487_v56  ;;  %v4781_v47 = vsel %vm12190_vm10, %v4489_v36, %v4780_v60  ;;  %v4291_v2 = vpack.c.bf16 %v4259_v5, %v4259_v5  ;;  %v3586_v60 = vshrl.u32 %v9815_v13, 16  ;;  %6494 = vmatpush.bf16.msrb.mxu0 %v10655_v11  ;;  %v10622_v13 = vld [vmem:[%s14507_s3 + $0x60] sm:$0xff]  ;;  %v10663_v11 = vld [vmem:[%s14507_s3 + $0x128] sm:$0xff] }
 0x25c   : > { %4779 = vst [vmem:[#allocation2 + $0x28] sm:$0xf] %v4488_v21  ;;  %v3760_v20 = vpop.f32.mrf.mxu3  ;;  %v4078_v56 = vpack.c.b16 %v4060_v58, %v4059_v24  ;;  %v3569_v36 = vrot.slane %v3568_v30, 4  ;;  %v3584_v5 = vsel %vm10960_vm4, %v12461_v39, %v12463_v53  ;;  %v10654_v39 = vld [vmem:[%s14507_s3 + $0xe0] sm:$0xff]  ;;  %v4021_v53 = vrot.slane %v4019_v48, 4  ;;  %5755 = vmatpush.bf16.msrb.mxu2 %v10622_v13  ;;  %7176 = vmatpush.bf16.msrb.mxu1 %v10663_v11 }
 0x25d   : > { %4782 = vst [vmem:[#allocation2 + $0x2c] sm:$0x1] %v4781_v47  ;;  %v4491_v43 = vshrl.u32 %v4291_v2, 16  ;;  %v3830_v28 = vadd.f32 %v3760_v20, %v3176_v38  ;;  %v4494_v16 = vshll.u32 %v4291_v2, 16  ;;  %v3599_v38 = vshrl.u32 %v12472_v62, 16  ;;  %v10591_v47 = vld [vmem:[%s10939_s8 + $0xb4] sm:$0xff] }
 0x25e   : > { %v12490_v61 = vpop.f32.mrf.mxu2  ;;  %v9868_v2 = vrot.slane %v9852_v27, 9  ;;  %v4401_v62 = vld [vmem:[#allocation2 + $0x50] sm:$0x1]  ;;  %v3588_v20 = vrot.slane %v3586_v60, 4  ;;  %v3591_v24 = vrot.slane %v3589_v7, 5  ;;  %v12509_v58 = vrot.slane %v3595_v51, 5 }
 0x25f   : > { %v12487_v26 = vrot.slane %v4491_v43, 7  ;;  %v4228_v9 = vadd.f32 %v12409_v35, %v3830_v28  ;;  %v12499_v35 = vpop.f32.mrf.mxu0  ;;  %v3177_v27 = vadd.f32 %v12451_v29, %v11861_v31  ;;  %6495 = vmatpush.bf16.msrb.mxu0 %v10654_v39  ;;  %v3601_v60 = vrot.slane %v3599_v38, 4  ;;  %v4383_v7 = vld [vmem:[#allocation2 + $0x8] sm:$0x1]  ;;  %v10621_v38 = vld [vmem:[%s14507_s3 + $0x58] sm:$0xff] }
 0x260   : > { %v3574_v31 = vsel %vm10960_vm4, %v3569_v36, %v12435_v45  ;;  %v2891_v29 = vadd.f32 %v11866_v59, %v11877_v37  ;;  %v4384_v59 = vsel %vm12225_vm12, 0, %v4383_v7  ;;  %v4787_v37 = vld [vmem:[#allocation2 + $0x38] sm:$0x1]  ;;  %v3605_v13 = vshll.u32 %v12476_v41, 16  ;;  %5756 = vmatpush.bf16.msrb.mxu2 %v10621_v38  ;;  %v9853_v11 = vld [vmem:[%s10939_s8 + $0xcc] sm:$0xe] }
 0x261   : > { %v4496_v55 = vor.u32 %v4494_v16, %v12487_v26  ;;  %v4260_v21 = vmax.f32 %v4228_v9, 0.0  ;;  %9834 = vmatmul.msk.bf16.gmra.mxu3 %vm343_vm1, %v3679_v57  ;;  %v4402_v57 = vsel %vm12225_vm12, 0, %v4401_v62  ;;  %v12527_v9 = vunpack.c.l.b16 %v3584_v5  ;;  %4385 = vst [vmem:[#allocation2 + $0x8] sm:$0x1] %v4384_v59  ;;  %v9818_v59 = vld [vmem:[%s10939_s8 + $0xcc] sm:$0xf] }
 0x262   : > { %9884 = vmatmul.msk.bf16.gmra.mxu0 %vm343_vm1, %v4078_v56  ;;  %4403 = vst [vmem:[#allocation2 + $0x50] sm:$0x1] %v4402_v57  ;;  %v3592_v56 = vor.u32 %v3591_v24, %v3588_v20  ;;  %v3178_v41 = vadd.f32 %v12490_v61, %v2891_v29 }
 0x263   : > { %v4784_v30 = vsel %vm12311_vm14, %v4496_v55, %v4783_v10  ;;  %v4292_v43 = vpack.c.bf16 %v4260_v21, %v4260_v21  ;;  %v10597_v28 = vld [vmem:[#allocation2 + $0x24] sm:$0xff]  ;;  %9770 = vmatmul.msk.bf16.gmra.mxu2 %vm343_vm1, %v10591_v47  ;;  %v4020_v10 = vsel %vm11195_vm7, %v9868_v2, %v4019_v48  ;;  %v10653_v55 = vld [vmem:[%s14507_s3 + $0xd8] sm:$0xff]  ;;  %v3661_v48 = vunpack.c.l.b16 %v3574_v31  ;;  %v12569_v31 = vld [vmem:[%s10939_s8 + $0xd4] sm:$0x1] }
 0x264   : > { %4785 = vst [vmem:[#allocation2 + $0x30] sm:$0xf] %v4784_v30  ;;  %v3763_v44 = vpop.f32.mrf.mxu3  ;;  %5093 = vmatmul.bf16.gmra.mxu1 %v10597_v28  ;;  %v4023_v47 = vsel %vm11195_vm7, %v4021_v53, %v4022_v52  ;;  %v3602_v2 = vor.u32 %v3601_v60, %v12509_v58  ;;  %6496 = vmatpush.bf16.msrb.mxu0 %v10653_v55  ;;  %v10620_v52 = vld [vmem:[%s14507_s3 + $0x50] sm:$0xff]  ;;  %v12556_v30 = vrot.slane %v3592_v56, 4  ;;  %v4061_v7 = vunpack.c.l.b16 %v4020_v10  ;;  %v10619_v10 = vld [vmem:[%s14507_s3 + $0x48] sm:$0xff] }
 0x265   : > { %v4499_v51 = vshrl.u32 %v4292_v43, 16  ;;  %v3831_v16 = vadd.f32 %v3763_v44, %v3177_v27  ;;  %v4502_v36 = vshll.u32 %v4292_v43, 16  ;;  %v10652_v53 = vld [vmem:[%s14507_s3 + $0xd0] sm:$0xff]  ;;  %v4062_v61 = vunpack.c.l.b16 %v4023_v47  ;;  %5757 = vmatpush.bf16.msrb.mxu2 %v10620_v52  ;;  %v4790_v47 = vld [vmem:[#allocation2 + $0x3c] sm:$0xf] }
 0x266   : > { %v12540_v5 = vpop.f32.mrf.mxu2  ;;  %v4348_v27 = vld [vmem:[#allocation2 + $0x54] sm:$0x1]  ;;  %v3680_v38 = vpack.c.b16 %v12527_v9, %v3661_v48 }
 0x267   : > { %v4501_v45 = vrot.slane %v4499_v51, 7  ;;  %v4229_v21 = vadd.f32 %v12428_v46, %v3831_v16  ;;  %v4497_v46 = vrot.slane %v12487_v26, 4  ;;  %v12547_v24 = vpop.f32.mrf.mxu0  ;;  %v12559_v26 = vld [vmem:[%s10939_s8 + $0xd0] sm:$0xf]  ;;  %v4349_v44 = vsel %vm12190_vm10, 0, %v4348_v27 }
 0x268   : > { %v3603_v51 = vrot.slane %v3602_v2, 4  ;;  %v3607_v16 = vrot.slane %v3605_v13, 5  ;;  %6497 = vmatpush.bf16.msrb.mxu0 %v10652_v53  ;;  %v4026_v55 = vrot.slane %v12559_v26, 5  ;;  %4350 = vst [vmem:[#allocation2 + $0x54] sm:$0x1] %v4349_v44  ;;  %v4079_v13 = vpack.c.b16 %v4062_v61, %v4061_v7  ;;  %v10592_v53 = vld [vmem:[%s10939_s8 + $0xc0] sm:$0xff] }
 0x269   : > { %v4504_v39 = vor.u32 %v4502_v36, %v4501_v45  ;;  %v4506_v62 = vrot.slane %v4501_v45, 4  ;;  %v4261_v20 = vmax.f32 %v4229_v21, 0.0  ;;  %v10630_v45 = vld [vmem:[%s14507_s3 + $0xa0] sm:$0xff]  ;;  %v9869_v36 = vrot.slane %v9853_v11, 9  ;;  %v10651_v21 = vld [vmem:[%s14507_s3 + $0xc8] sm:$0xff]  ;;  %5758 = vmatpush.bf16.msrb.mxu2 %v10619_v10 }
 0x26a   : > { %6181 = vmatpush.bf16.msrb.mxu3 %v10630_v45  ;;  %v3610_v27 = vshrl.u32 %v9818_v59, 16  ;;  %v3619_v44 = vshll.u32 %v12559_v26, 16  ;;  %v3623_v11 = vshrl.u32 %v12559_v26, 16  ;;  %v3179_v61 = vadd.f32 %v12540_v5, %v11901_v22 }
 0x26b   : > { %v4505_v43 = vsel %vm12342_vm0, %v4497_v46, %v4504_v39  ;;  %v4788_v28 = vsel %vm12190_vm10, %v4506_v62, %v4787_v37  ;;  %v4293_v57 = vpack.c.bf16 %v4261_v20, %v4261_v20  ;;  %v3598_v46 = vsel %vm10960_vm4, %v12556_v30, %v12509_v58  ;;  %v10629_v58 = vld [vmem:[%s14507_s3 + $0x98] sm:$0xff]  ;;  %v10618_v30 = vld [vmem:[%s14507_s3 + $0x40] sm:$0xff] }
 0x26c   : > { %4786 = vst [vmem:[#allocation2 + $0x34] sm:$0xf] %v4505_v43  ;;  %v3765_v60 = vpop.f32.mrf.mxu3  ;;  %v3608_v39 = vsel %vm10960_vm4, %v3603_v51, %v3607_v16  ;;  %v4029_v62 = vrot.slane %v12569_v31, 5  ;;  %6498 = vmatpush.bf16.msrb.mxu0 %v10651_v21  ;;  %v12608_v43 = vsel %vm11195_vm7, %v9869_v36, %v4026_v55  ;;  %v12630_v36 = vld [vmem:[#allocation2 + $0x4] sm:$0xf] }
 0x26d   : > { %4789 = vst [vmem:[#allocation2 + $0x38] sm:$0x1] %v4788_v28  ;;  %v4508_v29 = vshrl.u32 %v4293_v57, 16  ;;  %v3832_v56 = vadd.f32 %v3765_v60, %v3178_v41  ;;  %v4511_v9 = vshll.u32 %v4293_v57, 16  ;;  %v4028_v41 = vrot.slane %v4026_v55, 4  ;;  %v10650_v60 = vld [vmem:[%s14507_s3 + $0xc0] sm:$0xff]  ;;  %5759 = vmatpush.bf16.msrb.mxu2 %v10618_v30 }
 0x26e   : > { %v12586_v2 = vpop.f32.mrf.mxu2  ;;  %v4404_v28 = vld [vmem:[#allocation2 + $0x5c] sm:$0x1]  ;;  %v3613_v57 = vshll.u32 %v9818_v59, 16  ;;  %6182 = vmatpush.bf16.msrb.mxu3 %v10629_v58  ;;  %v5191_v55 = vld [vmem:[#allocation2] sm:$0xf]  ;;  %v12627_v22 = vunpack.c.l.b16 %v3608_v39  ;;  %v4063_v5 = vunpack.c.l.b16 %v12608_v43  ;;  %v12634_v59 = vrot.slane %v3619_v44, 5 }
 0x26f   : > { %v12583_v37 = vrot.slane %v4508_v29, 7  ;;  %v4230_v48 = vadd.f32 %v12458_v34, %v3832_v56  ;;  %v12597_v52 = vpop.f32.mrf.mxu0  ;;  %v4405_v29 = vsel %vm12225_vm12, 0, %v4404_v28  ;;  %v2893_v56 = vadd.f32 %v11906_v32, %v11919_v6  ;;  %v4794_v39 = vld [vmem:[#allocation2 + $0x44] sm:$0x1] }
 0x270   : > { %4406 = vst [vmem:[#allocation2 + $0x5c] sm:$0x1] %v4405_v29  ;;  %v4030_v32 = vsel %vm11195_vm7, %v4028_v41, %v4029_v62  ;;  %v3612_v6 = vrot.slane %v3610_v27, 4  ;;  %v3615_v21 = vrot.slane %v3613_v57, 5  ;;  %6499 = vmatpush.bf16.msrb.mxu0 %v10650_v60  ;;  %v5249_v62 = vshll.u32 %v12630_v36, 16 }
 0x271   : > { %v4513_v20 = vor.u32 %v4511_v9, %v12583_v37  ;;  %v4262_v34 = vmax.f32 %v4230_v48, 0.0  ;;  %9835 = vmatmul.msk.bf16.gmra.mxu3 %vm343_vm1, %v3680_v38  ;;  %v12624_v38 = vunpack.c.l.b16 %v3598_v46  ;;  %v10628_v9 = vld [vmem:[%s14507_s3 + $0x90] sm:$0xff]  ;;  %v3625_v46 = vrot.slane %v3623_v11, 4 }
 0x272   : > { %9885 = vmatmul.msk.bf16.gmra.mxu0 %vm343_vm1, %v4079_v13  ;;  %v5253_v41 = vshrl.u32 %v12630_v36, 16  ;;  %6183 = vmatpush.bf16.msrb.mxu3 %v10628_v9  ;;  %v4514_v27 = vrot.slane %v12583_v37, 4  ;;  %v3180_v57 = vadd.f32 %v12586_v2, %v2893_v56  ;;  %v4064_v44 = vunpack.c.l.b16 %v4030_v32 }
 0x273   : > { %v4791_v7 = vsel %vm12311_vm14, %v4513_v20, %v4790_v47  ;;  %v4294_v51 = vpack.c.bf16 %v4262_v34, %v4262_v34  ;;  %v10598_v16 = vld [vmem:[#allocation2 + $0x30] sm:$0xff]  ;;  %9771 = vmatmul.msk.bf16.gmra.mxu2 %vm343_vm1, %v10592_v53  ;;  %v5240_v34 = vshrl.u32 %v5191_v55, 16  ;;  %v5243_v53 = vshll.u32 %v5191_v55, 16 }
 0x274   : > { %4792 = vst [vmem:[#allocation2 + $0x3c] sm:$0xf] %v4791_v7  ;;  %v3768_v26 = vpop.f32.mrf.mxu3  ;;  %5098 = vmatmul.bf16.gmra.mxu1 %v10598_v16  ;;  %v3616_v11 = vor.u32 %v3615_v21, %v3612_v6  ;;  %v3629_v60 = vshll.u32 %v12569_v31, 16  ;;  %v4351_v7 = vld [vmem:[#allocation2 + $0x60] sm:$0x1]  ;;  %v12656_v2 = vrot.slane %v5249_v62, 5  ;;  %v3626_v32 = vor.u32 %v3625_v46, %v12634_v59 }
 0x275   : > { %v4516_v45 = vshrl.u32 %v4294_v51, 16  ;;  %v3833_v10 = vadd.f32 %v3768_v26, %v3179_v61  ;;  %v4519_v47 = vshll.u32 %v4294_v51, 16  ;;  %v4352_v16 = vsel %vm12190_vm10, 0, %v4351_v7  ;;  %v12661_v6 = vld [vmem:[#allocation2 + $0x8] sm:$0x1]  ;;  %v10626_v21 = vld [vmem:[%s14507_s3 + $0x80] sm:$0xff] }
 0x276   : > { %v3119_v20 = vpop.f32.mrf.mxu2  ;;  %v5242_v26 = vrot.slane %v5240_v34, 4  ;;  %v5245_v55 = vrot.slane %v5243_v53, 5  ;;  %v5255_v56 = vrot.slane %v5253_v41, 4  ;;  %4353 = vst [vmem:[#allocation2 + $0x60] sm:$0x1] %v4352_v16  ;;  %v3617_v53 = vrot.slane %v3616_v11, 4 }
 0x277   : > { %v4518_v48 = vrot.slane %v4516_v45, 7  ;;  %v4231_v13 = vadd.f32 %v12499_v35, %v3833_v10  ;;  %v12643_v28 = vpop.f32.mrf.mxu0  ;;  %v10627_v35 = vld [vmem:[%s14507_s3 + $0x88] sm:$0xff]  ;;  %v3681_v10 = vpack.c.b16 %v12627_v22, %v12624_v38  ;;  %v5259_v22 = vshll.u32 %v12661_v6, 16 }
 0x278   : > { %6184 = vmatpush.bf16.msrb.mxu3 %v10627_v35  ;;  %v5246_v62 = vor.u32 %v5245_v55, %v5242_v26  ;;  %v5256_v38 = vor.u32 %v5255_v56, %v12656_v2  ;;  %v3181_v35 = vadd.f32 %v3119_v20, %v11939_v14  ;;  %v10662_v14 = vld [vmem:[%s14507_s3 + $0x120] sm:$0xff] }
 0x279   : > { %v4521_v58 = vor.u32 %v4519_v47, %v4518_v48  ;;  %v4523_v30 = vrot.slane %v4518_v48, 4  ;;  %v4263_v43 = vmax.f32 %v4231_v13, 0.0  ;;  %v4080_v13 = vpack.c.b16 %v4064_v44, %v4063_v5  ;;  %7177 = vmatpush.bf16.msrb.mxu1 %v10662_v14 }
 0x27b   : > { %v4522_v61 = vsel %vm12342_vm0, %v4514_v27, %v4521_v58  ;;  %v4795_v37 = vsel %vm12190_vm10, %v4523_v30, %v4794_v39  ;;  %v4295_v51 = vpack.c.bf16 %v4263_v43, %v4263_v43  ;;  %v4797_v39 = vld [vmem:[#allocation2 + $0x48] sm:$0xf]  ;;  %v10593_v58 = vld [vmem:[%s10939_s8 + $0xcc] sm:$0xff]  ;;  %v3627_v30 = vrot.slane %v3626_v32, 4 }
 0x27c   : > { %4793 = vst [vmem:[#allocation2 + $0x40] sm:$0xf] %v4522_v61  ;;  %v3770_v29 = vpop.f32.mrf.mxu3  ;;  %6185 = vmatpush.bf16.msrb.mxu3 %v10626_v21  ;;  %v3631_v43 = vrot.slane %v3629_v60, 5  ;;  %v3622_v61 = vsel %vm10960_vm4, %v3617_v53, %v12634_v59  ;;  %v5247_v60 = vrot.slane %v5246_v62, 4  ;;  %v2895_v59 = vadd.f32 %v11944_v54, %v11953_v0  ;;  %v4354_v62 = vld [vmem:[#allocation2 + $0x6c] sm:$0x1] }
 0x27d   : > { %4796 = vst [vmem:[#allocation2 + $0x44] sm:$0x1] %v4795_v37  ;;  %v4525_v31 = vshrl.u32 %v4295_v51, 16  ;;  %v3834_v45 = vadd.f32 %v3770_v29, %v3180_v57  ;;  %v4528_v48 = vshll.u32 %v4295_v51, 16  ;;  %v5257_v37 = vrot.slane %v5256_v38, 4 }
 0x27e   : > { %v3121_v34 = vpop.f32.mrf.mxu2  ;;  %v5261_v51 = vrot.slane %v5259_v22, 5  ;;  %v3632_v29 = vsel %vm10960_vm4, %v3627_v30, %v3631_v43  ;;  %v3665_v32 = vunpack.c.l.b16 %v3622_v61 }
 0x27f   : > { %v4527_v9 = vrot.slane %v4525_v31, 7  ;;  %v4232_v47 = vadd.f32 %v12547_v24, %v3834_v45  ;;  %v12670_v27 = vpop.f32.mrf.mxu0  ;;  %v4407_v24 = vld [vmem:[#allocation2 + $0x68] sm:$0x1]  ;;  %v12691_v31 = vld [vmem:[#allocation2 + $0x10] sm:$0xf]  ;;  %v3666_v21 = vunpack.c.l.b16 %v3632_v29 }
 0x280   : > { %v4408_v11 = vsel %vm12225_vm12, 0, %v4407_v24  ;;  %v4801_v45 = vld [vmem:[#allocation2 + $0x50] sm:$0x1]  ;;  %v5273_v38 = vshll.u32 %v12691_v31, 16  ;;  %v5277_v22 = vshrl.u32 %v12691_v31, 16 }
 0x281   : > { %v4530_v46 = vor.u32 %v4528_v48, %v4527_v9  ;;  %v4264_v41 = vmax.f32 %v4232_v47, 0.0  ;;  %9836 = vmatmul.msk.bf16.gmra.mxu3 %vm343_vm1, %v3681_v10  ;;  %4409 = vst [vmem:[#allocation2 + $0x68] sm:$0x1] %v4408_v11  ;;  %v5252_v48 = vsel %vm10960_vm4, %v5247_v60, %v12656_v2  ;;  %v5262_v47 = vsel %vm10960_vm4, %v5257_v37, %v5261_v51 }
 0x282   : > { %9886 = vmatmul.msk.bf16.gmra.mxu0 %vm343_vm1, %v4080_v13  ;;  %v4531_v13 = vrot.slane %v4527_v9, 4  ;;  %v4355_v9 = vsel %vm12190_vm10, 0, %v4354_v62  ;;  %v5640_v43 = vunpack.c.l.b16 %v5252_v48  ;;  %v12709_v61 = vrot.slane %v5273_v38, 5  ;;  %v4410_v38 = vld [vmem:[#allocation2 + $0x74] sm:$0x1] }
 0x283   : > { %v4798_v5 = vsel %vm12311_vm14, %v4530_v46, %v4797_v39  ;;  %v4296_v57 = vpack.c.bf16 %v4264_v41, %v4264_v41  ;;  %v10599_v44 = vld [vmem:[#allocation2 + $0x3c] sm:$0xff]  ;;  %9772 = vmatmul.msk.bf16.gmra.mxu2 %vm343_vm1, %v10593_v58  ;;  %v5194_v58 = vld [vmem:[#allocation2 + $0xc] sm:$0xf]  ;;  %4356 = vst [vmem:[#allocation2 + $0x6c] sm:$0x1] %v4355_v9  ;;  %v5279_v60 = vrot.slane %v5277_v22, 4 }
 0x284   : > { %4799 = vst [vmem:[#allocation2 + $0x48] sm:$0xf] %v4798_v5  ;;  %v3773_v7 = vpop.f32.mrf.mxu3  ;;  %5103 = vmatmul.bf16.gmra.mxu1 %v10599_v44  ;;  %v5939_v44 = vrot.slane %v12630_v36, 5  ;;  %v5264_v11 = vshrl.u32 %v5194_v58, 16 }
 0x285   : > { %v4533_v20 = vshrl.u32 %v4296_v57, 16  ;;  %v3835_v16 = vadd.f32 %v3773_v7, %v3181_v35  ;;  %v4536_v55 = vshll.u32 %v4296_v57, 16  ;;  %v3682_v35 = vpack.c.b16 %v3666_v21, %v3665_v32  ;;  %v5873_v57 = vld [vmem:[#allocation2] sm:$0xe]  ;;  %v12716_v32 = vld [vmem:[#allocation2 + $0x14] sm:$0x1] }
 0x286   : > { %v3124_v10 = vpop.f32.mrf.mxu2  ;;  %v5267_v7 = vshll.u32 %v5194_v58, 16  ;;  %v5941_v36 = vrot.slane %v5939_v44, 4  ;;  %v10634_v21 = vld [vmem:[#allocation2 + $0xc] sm:$0xff]  ;;  %v5266_v48 = vrot.slane %v5264_v11, 4  ;;  %v5283_v62 = vshll.u32 %v12716_v32, 16 }
 0x287   : > { %v4535_v26 = vrot.slane %v4533_v20, 7  ;;  %v4233_v56 = vadd.f32 %v12597_v52, %v3835_v16  ;;  %v12698_v53 = vpop.f32.mrf.mxu0  ;;  %v3182_v52 = vadd.f32 %v3121_v34, %v2895_v59  ;;  %v5641_v34 = vunpack.c.l.b16 %v5262_v47  ;;  %v4804_v20 = vld [vmem:[#allocation2 + $0x54] sm:$0xf] }
 0x288   : > { %v10031_v59 = vrot.slane %v5873_v57, 9  ;;  %v5269_v47 = vrot.slane %v5267_v7, 5 }
 0x289   : > { %v4538_v39 = vor.u32 %v4536_v55, %v4535_v26  ;;  %v4540_v54 = vrot.slane %v4535_v26, 4  ;;  %v4265_v0 = vmax.f32 %v4233_v56, 0.0  ;;  %v5672_v29 = vpack.c.b16 %v5641_v34, %v5640_v43  ;;  %v12730_v43 = vld [vmem:[#allocation2 + $0x1c] sm:$0xf] }
 0x28a   : > { %v2897_v34 = vadd.f32 %v11981_v15, %v11987_v23  ;;  %v5301_v15 = vshrl.u32 %v12730_v43, 16 }
 0x28b   : > { %v4539_v46 = vsel %vm12342_vm0, %v4531_v13, %v4538_v39  ;;  %v4802_v2 = vsel %vm12190_vm10, %v4540_v54, %v4801_v45  ;;  %v4297_v41 = vpack.c.bf16 %v4265_v0, %v4265_v0  ;;  %v5942_v45 = vrot.slane %v12661_v6, 5 }
 0x28c   : > { %4800 = vst [vmem:[#allocation2 + $0x4c] sm:$0xf] %v4539_v46  ;;  %v3775_v30 = vpop.f32.mrf.mxu3  ;;  %v3183_v39 = vadd.f32 %v3124_v10, %v11976_v3  ;;  %v5940_v6 = vsel %vm11195_vm7, %v10031_v59, %v5939_v44  ;;  %v4411_v3 = vsel %vm12225_vm12, 0, %v4410_v38  ;;  %v5270_v10 = vor.u32 %v5269_v47, %v5266_v48 }
 0x28d   : > { %4803 = vst [vmem:[#allocation2 + $0x50] sm:$0x1] %v4802_v2  ;;  %v4542_v24 = vshrl.u32 %v4297_v41, 16  ;;  %v3836_v5 = vadd.f32 %v3775_v30, %v3182_v52  ;;  %v4545_v51 = vshll.u32 %v4297_v41, 16  ;;  %v5943_v2 = vsel %vm11195_vm7, %v5941_v36, %v5942_v45 }
 0x28e   : > { %v3126_v16 = vpop.f32.mrf.mxu2  ;;  %4412 = vst [vmem:[#allocation2 + $0x74] sm:$0x1] %v4411_v3  ;;  %v6067_v57 = vunpack.c.l.b16 %v5943_v2  ;;  %v5285_v44 = vrot.slane %v5283_v62, 5  ;;  %v5297_v59 = vshll.u32 %v12730_v43, 16 }
 0x28f   : > { %v4544_v37 = vrot.slane %v4542_v24, 7  ;;  %v4234_v14 = vadd.f32 %v12643_v28, %v3836_v5  ;;  %v12713_v56 = vpop.f32.mrf.mxu0  ;;  %v5280_v28 = vor.u32 %v5279_v60, %v12709_v61  ;;  %v4808_v24 = vld [vmem:[#allocation2 + $0x5c] sm:$0x1] }
 0x291   : > { %v4547_v26 = vor.u32 %v4545_v51, %v4544_v37  ;;  %v4266_v55 = vmax.f32 %v4234_v14, 0.0  ;;  %9837 = vmatmul.msk.bf16.gmra.mxu3 %vm343_vm1, %v3682_v35  ;;  %v5281_v41 = vrot.slane %v5280_v28, 4  ;;  %v6066_v35 = vunpack.c.l.b16 %v5940_v6 }
 0x292   : > { %6500 = vmatmul.bf16.vlgmr.msrb.gmra.mxu0 %v10634_v21  ;;  %v4548_v11 = vrot.slane %v4544_v37, 4  ;;  %v5946_v21 = vrot.slane %v12691_v31, 5  ;;  %v12748_v6 = vrot.slane %v5297_v59, 5  ;;  %v4413_v59 = vld [vmem:[#allocation2 + $0x80] sm:$0x1] }
 0x293   : > { %v4805_v13 = vsel %vm12311_vm14, %v4547_v26, %v4804_v20  ;;  %v4298_v54 = vpack.c.bf16 %v4266_v55, %v4266_v55  ;;  %v10600_v0 = vld [vmem:[#allocation2 + $0x48] sm:$0xff]  ;;  %5760 = vmatmul.bf16.vlgmr.msrb.gmra.mxu2 %v5672_v29  ;;  %v5271_v20 = vrot.slane %v5270_v10, 4  ;;  %v5197_v29 = vld [vmem:[#allocation2 + $0x18] sm:$0xf]  ;;  %v3184_v26 = vadd.f32 %v3126_v16, %v2897_v34 }
 0x294   : > { %4806 = vst [vmem:[#allocation2 + $0x54] sm:$0xf] %v4805_v13  ;;  %v3778_v52 = vpop.f32.mrf.mxu3  ;;  %5108 = vmatmul.bf16.gmra.mxu1 %v10600_v0  ;;  %v6098_v28 = vpack.c.b16 %v6067_v57, %v6066_v35  ;;  %v5874_v13 = vld [vmem:[#allocation2 + $0xc] sm:$0xe]  ;;  %v4357_v0 = vld [vmem:[#allocation2 + $0x78] sm:$0x1] }
 0x295   : > { %v4550_v22 = vshrl.u32 %v4298_v54, 16  ;;  %v3837_v46 = vadd.f32 %v3778_v52, %v3183_v39  ;;  %v4553_v58 = vshll.u32 %v4298_v54, 16  ;;  %v5276_v45 = vsel %vm10960_vm4, %v5271_v20, %v12709_v61  ;;  %v4811_v61 = vld [vmem:[#allocation2 + $0x60] sm:$0xf]  ;;  %v10635_v34 = vld [vmem:[#allocation2 + $0x18] sm:$0xff] }
 0x296   : > { %v3129_v5 = vpop.f32.mrf.mxu2  ;;  %v5288_v39 = vshrl.u32 %v5197_v29, 16  ;;  %v5291_v52 = vshll.u32 %v5197_v29, 16  ;;  %v5303_v16 = vrot.slane %v5301_v15, 4  ;;  %v4358_v31 = vsel %vm12190_vm10, 0, %v4357_v0  ;;  %v10661_v29 = vld [vmem:[%s14507_s3 + $0x118] sm:$0xff] }
 0x297   : > { %v4552_v9 = vrot.slane %v4550_v22, 7  ;;  %v4235_v30 = vadd.f32 %v12670_v27, %v3837_v46  ;;  %v12734_v14 = vpop.f32.mrf.mxu0  ;;  %v5286_v27 = vsel %vm10960_vm4, %v5281_v41, %v5285_v44  ;;  %v5642_v2 = vunpack.c.l.b16 %v5276_v45  ;;  %4359 = vst [vmem:[#allocation2 + $0x78] sm:$0x1] %v4358_v31  ;;  %7178 = vmatpush.bf16.msrb.mxu1 %v10661_v29 }
 0x298   : > { %v5643_v54 = vunpack.c.l.b16 %v5286_v27  ;;  %v5293_v35 = vrot.slane %v5291_v52, 5  ;;  %v5304_v57 = vor.u32 %v5303_v16, %v12748_v6 }
 0x299   : > { %v4555_v7 = vor.u32 %v4553_v58, %v4552_v9  ;;  %v4557_v60 = vrot.slane %v4552_v9, 4  ;;  %v4267_v51 = vmax.f32 %v4235_v30, 0.0  ;;  %v10032_v9 = vrot.slane %v5874_v13, 9  ;;  %v12758_v30 = vld [vmem:[#allocation2 + $0x20] sm:$0x1] }
 0x29a   : > { %v5948_v58 = vrot.slane %v5946_v21, 4 }
 0x29b   : > { %v4556_v23 = vsel %vm12342_vm0, %v4548_v11, %v4555_v7  ;;  %v4809_v37 = vsel %vm12190_vm10, %v4557_v60, %v4808_v24  ;;  %v4299_v55 = vpack.c.bf16 %v4267_v51, %v4267_v51  ;;  %v5290_v24 = vrot.slane %v5288_v39, 4 }
 0x29c   : > { %4807 = vst [vmem:[#allocation2 + $0x58] sm:$0xf] %v4556_v23  ;;  %v3780_v36 = vpop.f32.mrf.mxu3  ;;  %v3185_v11 = vadd.f32 %v3129_v5, %v12004_v49  ;;  %v5673_v51 = vpack.c.b16 %v5643_v54, %v5642_v2  ;;  %v5947_v27 = vsel %vm11195_vm7, %v10032_v9, %v5946_v21  ;;  %v4414_v5 = vsel %vm12225_vm12, 0, %v4413_v59  ;;  %v12776_v21 = vld [vmem:[#allocation2 + $0x28] sm:$0xf] }
 0x29d   : > { %4810 = vst [vmem:[#allocation2 + $0x5c] sm:$0x1] %v4809_v37  ;;  %v4559_v48 = vshrl.u32 %v4299_v55, 16  ;;  %v3838_v47 = vadd.f32 %v3780_v36, %v3184_v26  ;;  %v4562_v38 = vshll.u32 %v4299_v55, 16  ;;  %v5294_v37 = vor.u32 %v5293_v35, %v5290_v24  ;;  %v5200_v2 = vld [vmem:[#allocation2 + $0x24] sm:$0xf] }
 0x29e   : > { %v3131_v46 = vpop.f32.mrf.mxu2  ;;  %v5305_v26 = vrot.slane %v5304_v57, 4  ;;  %4415 = vst [vmem:[#allocation2 + $0x80] sm:$0x1] %v4414_v5  ;;  %v6068_v39 = vunpack.c.l.b16 %v5947_v27  ;;  %v4818_v59 = vld [vmem:[#allocation2 + $0x6c] sm:$0xf] }
 0x29f   : > { %v12750_v62 = vrot.slane %v4559_v48, 7  ;;  %v4236_v22 = vadd.f32 %v12698_v53, %v3838_v47  ;;  %v12756_v41 = vpop.f32.mrf.mxu0  ;;  %v5949_v53 = vrot.slane %v12716_v32, 5  ;;  %v5307_v32 = vshll.u32 %v12758_v30, 16  ;;  %v12780_v47 = vpop.f32.mrf.mxu1 }
 0x2a0   : > { %v2899_v48 = vadd.f32 %v12009_v12, %v12017_v40  ;;  %v5321_v12 = vshll.u32 %v12776_v21, 16  ;;  %v5325_v40 = vshrl.u32 %v12776_v21, 16 }
 0x2a1   : > { %v4564_v3 = vor.u32 %v4562_v38, %v12750_v62  ;;  %v4268_v10 = vmax.f32 %v4236_v22, 0.0  ;;  %6186 = vmatmul.bf16.vlgmr.msrb.gmra.mxu3 %v6098_v28  ;;  %v5950_v49 = vsel %vm11195_vm7, %v5948_v58, %v5949_v53  ;;  %v4815_v28 = vld [vmem:[#allocation2 + $0x68] sm:$0x1]  ;;  %v5309_v0 = vrot.slane %v5307_v32, 5 }
 0x2a2   : > { %6505 = vmatmul.bf16.gmra.mxu0 %v10635_v34  ;;  %v6069_v54 = vunpack.c.l.b16 %v5950_v49  ;;  %v4565_v52 = vrot.slane %v12750_v62, 4  ;;  %v5953_v53 = vrot.slane %v12730_v43, 5 }
 0x2a3   : > { %v4812_v44 = vsel %vm12311_vm14, %v4564_v3, %v4811_v61  ;;  %v4300_v7 = vpack.c.bf16 %v4268_v10, %v4268_v10  ;;  %v10601_v60 = vld [vmem:[#allocation2 + $0x54] sm:$0xff]  ;;  %5765 = vmatmul.bf16.gmra.mxu2 %v5673_v51  ;;  %v5310_v61 = vsel %vm10960_vm4, %v5305_v26, %v5309_v0  ;;  %v3186_v10 = vadd.f32 %v3131_v46, %v2899_v48 }
 0x2a4   : > { %4813 = vst [vmem:[#allocation2 + $0x60] sm:$0xf] %v4812_v44  ;;  %v3783_v20 = vpop.f32.mrf.mxu3  ;;  %5113 = vmatmul.bf16.gmra.mxu1 %v10601_v60  ;;  %v6099_v34 = vpack.c.b16 %v6069_v54, %v6068_v39  ;;  %v5875_v44 = vld [vmem:[#allocation2 + $0x18] sm:$0xe]  ;;  %v4360_v60 = vld [vmem:[#allocation2 + $0x84] sm:$0x1] }
 0x2a5   : > { %v4567_v15 = vshrl.u32 %v4300_v7, 16  ;;  %v3839_v23 = vadd.f32 %v3783_v20, %v3185_v11  ;;  %v4570_v36 = vshll.u32 %v4300_v7, 16  ;;  %v5312_v11 = vshrl.u32 %v5200_v2, 16 }
 0x2a6   : > { %v3134_v13 = vpop.f32.mrf.mxu2  ;;  %v5645_v7 = vunpack.c.l.b16 %v5310_v61  ;;  %v5315_v51 = vshll.u32 %v5200_v2, 16  ;;  %v12797_v20 = vrot.slane %v5321_v12, 5  ;;  %v5327_v46 = vrot.slane %v5325_v40, 4  ;;  %v4416_v61 = vld [vmem:[#allocation2 + $0x8c] sm:$0x1] }
 0x2a7   : > { %v4569_v55 = vrot.slane %v4567_v15, 7  ;;  %v4237_v45 = vadd.f32 %v12713_v56, %v3839_v23  ;;  %v12783_v31 = vpop.f32.mrf.mxu0  ;;  %v5295_v56 = vrot.slane %v5294_v37, 4  ;;  %v4361_v29 = vsel %vm12190_vm10, 0, %v4360_v60  ;;  %v12804_v15 = vpop.f32.mrf.mxu1 }
 0x2a8   : > { %v10033_v23 = vrot.slane %v5875_v44, 9  ;;  %4362 = vst [vmem:[#allocation2 + $0x84] sm:$0x1] %v4361_v29  ;;  %v5314_v48 = vrot.slane %v5312_v11, 4  ;;  %v5328_v39 = vor.u32 %v5327_v46, %v12797_v20  ;;  %v3187_v0 = vadd.f32 %v3134_v13, %v12039_v42 }
 0x2a9   : > { %v4572_v16 = vor.u32 %v4570_v36, %v4569_v55  ;;  %v4574_v38 = vrot.slane %v4569_v55, 4  ;;  %v4269_v22 = vmax.f32 %v4237_v45, 0.0  ;;  %v5300_v57 = vsel %vm10960_vm4, %v5295_v56, %v12748_v6  ;;  %v12809_v36 = vld [vmem:[#allocation2 + $0x2c] sm:$0x1] }
 0x2aa   : > { %v5644_v26 = vunpack.c.l.b16 %v5300_v57  ;;  %v5955_v55 = vrot.slane %v5953_v53, 4  ;;  %v5956_v45 = vrot.slane %v12758_v30, 5  ;;  %v5954_v56 = vsel %vm11195_vm7, %v10033_v23, %v5953_v53  ;;  %v14554_v53 = vld [vmem:[#allocation8_spill] sm:$0xff]  ;;  %v5203_v23 = vld [vmem:[#allocation2 + $0x30] sm:$0xf] }
 0x2ab   : > { %v4573_v3 = vsel %vm12342_vm0, %v4565_v52, %v4572_v16  ;;  %v4816_v62 = vsel %vm12190_vm10, %v4574_v38, %v4815_v28  ;;  %v4301_v9 = vpack.c.bf16 %v4269_v22, %v4269_v22  ;;  %v5317_v28 = vrot.slane %v5315_v51, 5 }
 0x2ac   : > { %4814 = vst [vmem:[#allocation2 + $0x64] sm:$0xf] %v4573_v3  ;;  %v3785_v58 = vpop.f32.mrf.mxu3  ;;  %v5674_v38 = vpack.c.b16 %v5645_v7, %v5644_v26  ;;  %v5331_v30 = vshll.u32 %v12809_v36, 16  ;;  %v5957_v40 = vsel %vm11195_vm7, %v5955_v55, %v5956_v45  ;;  %v4417_v42 = vsel %vm12225_vm12, 0, %v4416_v61 }
 0x2ad   : > { %4817 = vst [vmem:[#allocation2 + $0x68] sm:$0x1] %v4816_v62  ;;  %v4576_v24 = vshrl.u32 %v4301_v9, 16  ;;  %v3840_v35 = vadd.f32 %v3785_v58, %v3186_v10  ;;  %v4579_v32 = vshll.u32 %v4301_v9, 16  ;;  %v5318_v13 = vor.u32 %v5317_v28, %v5314_v48  ;;  %v12824_v58 = vld [vmem:[#allocation2 + $0x34] sm:$0xf] }
 0x2ae   : > { %v3136_v6 = vpop.f32.mrf.mxu2  ;;  %v5329_v3 = vrot.slane %v5328_v39, 4  ;;  %4418 = vst [vmem:[#allocation2 + $0x8c] sm:$0x1] %v4417_v42  ;;  %v6070_v44 = vunpack.c.l.b16 %v5954_v56  ;;  %v6071_v11 = vunpack.c.l.b16 %v5957_v40  ;;  %v5333_v7 = vrot.slane %v5331_v30, 5  ;;  %v4825_v40 = vld [vmem:[#allocation2 + $0x78] sm:$0xf] }
 0x2af   : > { %v12799_v27 = vrot.slane %v4576_v24, 7  ;;  %v4238_v43 = vadd.f32 %v12734_v14, %v3840_v35  ;;  %v12807_v37 = vpop.f32.mrf.mxu0  ;;  %v10636_v14 = vld [vmem:[#allocation2 + $0x24] sm:$0xff]  ;;  %v4822_v35 = vld [vmem:[#allocation2 + $0x74] sm:$0x1]  ;;  %v12831_v29 = vpop.f32.mrf.mxu1  ;;  %v5960_v28 = vrot.slane %v12776_v21, 5  ;;  %v5339_v56 = vshll.u32 %v5203_v23, 16 }
 0x2b0   : > { %v6100_v48 = vpack.c.b16 %v6071_v11, %v6070_v44 }
 0x2b1   : > { %v4581_v49 = vor.u32 %v4579_v32, %v12799_v27  ;;  %v4270_v5 = vmax.f32 %v4238_v43, 0.0  ;;  %6191 = vmatmul.bf16.gmra.mxu3 %v6099_v34  ;;  %v14553_v34 = vld [vmem:[#allocation9_spill] sm:$0xff]  ;;  %v4582_v60 = vrot.slane %v12799_v27, 4  ;;  %v5341_v44 = vrot.slane %v5339_v56, 5 }
 0x2b2   : > { %6510 = vmatmul.bf16.gmra.mxu0 %v10636_v14  ;;  %v2901_v24 = vadd.f32 %v14554_v53, %v14553_v34  ;;  %v12855_v34 = vld [vmem:[#allocation2 + $0x38] sm:$0x1] }
 0x2b3   : > { %v4819_v54 = vsel %vm12311_vm14, %v4581_v49, %v4818_v59  ;;  %v4302_v52 = vpack.c.bf16 %v4270_v5, %v4270_v5  ;;  %v10602_v16 = vld [vmem:[#allocation2 + $0x60] sm:$0xff]  ;;  %5770 = vmatmul.bf16.gmra.mxu2 %v5674_v38  ;;  %v5334_v59 = vsel %vm10960_vm4, %v5329_v3, %v5333_v7  ;;  %v5345_v49 = vshll.u32 %v12824_v58, 16 }
 0x2b4   : > { %4820 = vst [vmem:[#allocation2 + $0x6c] sm:$0xf] %v4819_v54  ;;  %v3788_v22 = vpop.f32.mrf.mxu3  ;;  %5118 = vmatmul.bf16.gmra.mxu1 %v10602_v16  ;;  %v5349_v5 = vshrl.u32 %v12824_v58, 16  ;;  %v3188_v55 = vadd.f32 %v3136_v6, %v2901_v24  ;;  %v5336_v16 = vshrl.u32 %v5203_v23, 16  ;;  %v5647_v38 = vunpack.c.l.b16 %v5334_v59  ;;  %v10660_v23 = vld [vmem:[%s14507_s3 + $0x110] sm:$0xff] }
 0x2b5   : > { %v4584_v2 = vshrl.u32 %v4302_v52, 16  ;;  %v3841_v12 = vadd.f32 %v3788_v22, %v3187_v0  ;;  %v4587_v10 = vshll.u32 %v4302_v52, 16  ;;  %v5876_v52 = vld [vmem:[#allocation2 + $0x24] sm:$0xe]  ;;  %v4363_v22 = vld [vmem:[#allocation2 + $0x90] sm:$0x1]  ;;  %7179 = vmatpush.bf16.msrb.mxu1 %v10660_v23 }
 0x2b6   : > { %v3139_v57 = vpop.f32.mrf.mxu2  ;;  %v12845_v30 = vrot.slane %v5345_v49, 5  ;;  %v5351_v6 = vrot.slane %v5349_v5, 4  ;;  %v5963_v24 = vrot.slane %v12809_v36, 5  ;;  %v5355_v36 = vshll.u32 %v12855_v34, 16  ;;  %v4419_v49 = vld [vmem:[#allocation2 + $0x98] sm:$0x1] }
 0x2b7   : > { %v4586_v62 = vrot.slane %v4584_v2, 7  ;;  %v4239_v9 = vadd.f32 %v12756_v41, %v3841_v12  ;;  %v12829_v43 = vpop.f32.mrf.mxu0  ;;  %v5319_v41 = vrot.slane %v5318_v13, 4  ;;  %v4364_v12 = vsel %vm12190_vm10, 0, %v4363_v22 }
 0x2b8   : > { %v10034_v13 = vrot.slane %v5876_v52, 9  ;;  %4365 = vst [vmem:[#allocation2 + $0x90] sm:$0x1] %v4364_v12  ;;  %v5352_v11 = vor.u32 %v5351_v6, %v12845_v30 }
 0x2b9   : > { %v4589_v51 = vor.u32 %v4587_v10, %v4586_v62  ;;  %v4591_v46 = vrot.slane %v4586_v62, 4  ;;  %v4271_v32 = vmax.f32 %v4239_v9, 0.0  ;;  %v5324_v0 = vsel %vm10960_vm4, %v5319_v41, %v12797_v20 }
 0x2ba   : > { %v5646_v10 = vunpack.c.l.b16 %v5324_v0  ;;  %v5962_v9 = vrot.slane %v5960_v28, 4  ;;  %v5961_v59 = vsel %vm11195_vm7, %v10034_v13, %v5960_v28  ;;  %v12875_v28 = vld [vmem:[#allocation2 + $0x40] sm:$0xf]  ;;  %v5206_v13 = vld [vmem:[#allocation2 + $0x3c] sm:$0xf] }
 0x2bb   : > { %v4590_v26 = vsel %vm12342_vm0, %v4582_v60, %v4589_v51  ;;  %v4823_v27 = vsel %vm12190_vm10, %v4591_v46, %v4822_v35  ;;  %v4303_v14 = vpack.c.bf16 %v4271_v32, %v4271_v32  ;;  %v5338_v35 = vrot.slane %v5336_v16, 4 }
 0x2bc   : > { %4821 = vst [vmem:[#allocation2 + $0x70] sm:$0xf] %v4590_v26  ;;  %v3790_v45 = vpop.f32.mrf.mxu3  ;;  %v3189_v60 = vadd.f32 %v3139_v57, %v12067_v25  ;;  %v5675_v32 = vpack.c.b16 %v5647_v38, %v5646_v10  ;;  %v5964_v25 = vsel %vm11195_vm7, %v5962_v9, %v5963_v24  ;;  %v4420_v57 = vsel %vm12225_vm12, 0, %v4419_v49  ;;  %v4832_v49 = vld [vmem:[#allocation2 + $0x84] sm:$0xf] }
 0x2bd   : > { %4824 = vst [vmem:[#allocation2 + $0x74] sm:$0x1] %v4823_v27  ;;  %v4593_v39 = vshrl.u32 %v4303_v14, 16  ;;  %v3842_v54 = vadd.f32 %v3790_v45, %v3188_v55  ;;  %v4596_v2 = vshll.u32 %v4303_v14, 16  ;;  %v5342_v27 = vor.u32 %v5341_v44, %v5338_v35  ;;  %v5877_v35 = vld [vmem:[#allocation2 + $0x30] sm:$0xe] }
 0x2be   : > { %v3141_v42 = vpop.f32.mrf.mxu2  ;;  %v5353_v55 = vrot.slane %v5352_v11, 4  ;;  %4421 = vst [vmem:[#allocation2 + $0x98] sm:$0x1] %v4420_v57  ;;  %v6072_v52 = vunpack.c.l.b16 %v5961_v59  ;;  %v6073_v16 = vunpack.c.l.b16 %v5964_v25  ;;  %v5357_v38 = vrot.slane %v5355_v36, 5 }
 0x2bf   : > { %v12847_v61 = vrot.slane %v4593_v39, 7  ;;  %v4240_v21 = vadd.f32 %v12783_v31, %v3842_v54  ;;  %v12853_v62 = vpop.f32.mrf.mxu0  ;;  %v10637_v31 = vld [vmem:[#allocation2 + $0x30] sm:$0xff]  ;;  %v2903_v39 = vadd.f32 %v12072_v19, %v12080_v50  ;;  %v4829_v54 = vld [vmem:[#allocation2 + $0x80] sm:$0x1]  ;;  %v5369_v19 = vshll.u32 %v12875_v28, 16 }
 0x2c0   : > { %v5373_v50 = vshrl.u32 %v12875_v28, 16 }
 0x2c1   : > { %v4598_v20 = vor.u32 %v4596_v2, %v12847_v61  ;;  %v4272_v3 = vmax.f32 %v4240_v21, 0.0  ;;  %6196 = vmatmul.bf16.gmra.mxu3 %v6100_v48  ;;  %v12857_v53 = vpop.f32.mrf.mxu1  ;;  %v4599_v22 = vrot.slane %v12847_v61, 4 }
 0x2c2   : > { %6515 = vmatmul.bf16.gmra.mxu0 %v10637_v31  ;;  %v6101_v31 = vpack.c.b16 %v6073_v16, %v6072_v52 }
 0x2c3   : > { %v4826_v7 = vsel %vm12311_vm14, %v4598_v20, %v4825_v40  ;;  %v4304_v51 = vpack.c.bf16 %v4272_v3, %v4272_v3  ;;  %v10603_v46 = vld [vmem:[#allocation2 + $0x6c] sm:$0xff]  ;;  %5775 = vmatmul.bf16.gmra.mxu2 %v5675_v32  ;;  %v5358_v40 = vsel %vm10960_vm4, %v5353_v55, %v5357_v38  ;;  %v3190_v3 = vadd.f32 %v3141_v42, %v2903_v39 }
 0x2c4   : > { %4827 = vst [vmem:[#allocation2 + $0x78] sm:$0xf] %v4826_v7  ;;  %v3793_v41 = vpop.f32.mrf.mxu3  ;;  %5123 = vmatmul.bf16.gmra.mxu1 %v10603_v46  ;;  %v5967_v7 = vrot.slane %v12824_v58, 5  ;;  %v4366_v46 = vld [vmem:[#allocation2 + $0x9c] sm:$0x1]  ;;  %v5363_v32 = vshll.u32 %v5206_v13, 16 }
 0x2c5   : > { %v4601_v5 = vshrl.u32 %v4304_v51, 16  ;;  %v3843_v26 = vadd.f32 %v3793_v41, %v3189_v60  ;;  %v4604_v45 = vshll.u32 %v4304_v51, 16  ;;  %v5360_v60 = vshrl.u32 %v5206_v13, 16 }
 0x2c6   : > { %v3144_v0 = vpop.f32.mrf.mxu2  ;;  %v5649_v51 = vunpack.c.l.b16 %v5358_v40  ;;  %v12896_v41 = vrot.slane %v5369_v19, 5  ;;  %v5375_v42 = vrot.slane %v5373_v50, 4  ;;  %v5969_v55 = vrot.slane %v5967_v7, 4  ;;  %v4422_v40 = vld [vmem:[#allocation2 + $0xa4] sm:$0x1] }
 0x2c7   : > { %v4603_v14 = vrot.slane %v4601_v5, 7  ;;  %v4241_v48 = vadd.f32 %v12807_v37, %v3843_v26  ;;  %v12880_v21 = vpop.f32.mrf.mxu0  ;;  %v5343_v37 = vrot.slane %v5342_v27, 4  ;;  %v10035_v26 = vrot.slane %v5877_v35, 9 }
 0x2c8   : > { %v5362_v39 = vrot.slane %v5360_v60, 4  ;;  %v5376_v52 = vor.u32 %v5375_v42, %v12896_v41  ;;  %v3191_v38 = vadd.f32 %v3144_v0, %v12102_v63  ;;  %v4423_v63 = vsel %vm12225_vm12, 0, %v4422_v40 }
 0x2c9   : > { %v4606_v56 = vor.u32 %v4604_v45, %v4603_v14  ;;  %v4608_v6 = vrot.slane %v4603_v14, 4  ;;  %v4273_v2 = vmax.f32 %v4241_v48, 0.0  ;;  %v12882_v12 = vpop.f32.mrf.mxu1  ;;  %v5348_v24 = vsel %vm10960_vm4, %v5343_v37, %v12845_v30  ;;  %v12906_v14 = vld [vmem:[#allocation2 + $0x44] sm:$0x1]  ;;  %4424 = vst [vmem:[#allocation2 + $0xa4] sm:$0x1] %v4423_v63 }
 0x2ca   : > { %v4367_v30 = vsel %vm12190_vm10, 0, %v4366_v46  ;;  %v5648_v27 = vunpack.c.l.b16 %v5348_v24  ;;  %v5970_v48 = vrot.slane %v12855_v34, 5  ;;  %v5968_v37 = vsel %vm11195_vm7, %v10035_v26, %v5967_v7  ;;  %v14556_v24 = vld [vmem:[#allocation10_spill] sm:$0xff]  ;;  %v5209_v26 = vld [vmem:[#allocation2 + $0x48] sm:$0xf] }
 0x2cb   : > { %v4607_v20 = vsel %vm12342_vm0, %v4599_v22, %v4606_v56  ;;  %v4830_v61 = vsel %vm12190_vm10, %v4608_v6, %v4829_v54  ;;  %v4305_v10 = vpack.c.bf16 %v4273_v2, %v4273_v2  ;;  %4368 = vst [vmem:[#allocation2 + $0x9c] sm:$0x1] %v4367_v30  ;;  %v5365_v54 = vrot.slane %v5363_v32, 5 }
 0x2cc   : > { %4828 = vst [vmem:[#allocation2 + $0x7c] sm:$0xf] %v4607_v20  ;;  %v3795_v9 = vpop.f32.mrf.mxu3  ;;  %v5676_v6 = vpack.c.b16 %v5649_v51, %v5648_v27  ;;  %v5379_v34 = vshll.u32 %v12906_v14, 16  ;;  %v5971_v50 = vsel %vm11195_vm7, %v5969_v55, %v5970_v48  ;;  %v5377_v20 = vrot.slane %v5376_v52, 4 }
 0x2cd   : > { %4831 = vst [vmem:[#allocation2 + $0x80] sm:$0x1] %v4830_v61  ;;  %v4610_v44 = vshrl.u32 %v4305_v10, 16  ;;  %v3844_v11 = vadd.f32 %v3795_v9, %v3190_v3  ;;  %v4613_v36 = vshll.u32 %v4305_v10, 16  ;;  %v5366_v0 = vor.u32 %v5365_v54, %v5362_v39  ;;  %v12923_v9 = vld [vmem:[#allocation2 + $0x4c] sm:$0xf] }
 0x2ce   : > { %v3146_v5 = vpop.f32.mrf.mxu2  ;;  %v6074_v7 = vunpack.c.l.b16 %v5968_v37  ;;  %v6075_v60 = vunpack.c.l.b16 %v5971_v50  ;;  %v5381_v51 = vrot.slane %v5379_v34, 5  ;;  %v5974_v54 = vrot.slane %v12875_v28, 5  ;;  %v4839_v50 = vld [vmem:[#allocation2 + $0x90] sm:$0xf] }
 0x2cf   : > { %v12898_v59 = vrot.slane %v4610_v44, 7  ;;  %v4242_v23 = vadd.f32 %v12829_v43, %v3844_v11  ;;  %v12904_v57 = vpop.f32.mrf.mxu0  ;;  %v10638_v43 = vld [vmem:[#allocation2 + $0x3c] sm:$0xff]  ;;  %v4836_v44 = vld [vmem:[#allocation2 + $0x8c] sm:$0x1]  ;;  %v5387_v37 = vshll.u32 %v5209_v26, 16 }
 0x2d0   : > { %v6102_v39 = vpack.c.b16 %v6075_v60, %v6074_v7 }
 0x2d1   : > { %v4615_v58 = vor.u32 %v4613_v36, %v12898_v59  ;;  %v4274_v25 = vmax.f32 %v4242_v23, 0.0  ;;  %6201 = vmatmul.bf16.gmra.mxu3 %v6101_v31  ;;  %v12908_v45 = vpop.f32.mrf.mxu1  ;;  %v14555_v31 = vld [vmem:[#allocation11_spill] sm:$0xff]  ;;  %v4616_v46 = vrot.slane %v12898_v59, 4  ;;  %v5389_v7 = vrot.slane %v5387_v37, 5 }
 0x2d2   : > { %6520 = vmatmul.bf16.gmra.mxu0 %v10638_v43  ;;  %v2905_v35 = vadd.f32 %v14556_v24, %v14555_v31  ;;  %v12954_v31 = vld [vmem:[#allocation2 + $0x50] sm:$0x1] }
 0x2d3   : > { %v4833_v16 = vsel %vm12311_vm14, %v4615_v58, %v4832_v49  ;;  %v4306_v22 = vpack.c.bf16 %v4274_v25, %v4274_v25  ;;  %v10604_v56 = vld [vmem:[#allocation2 + $0x78] sm:$0xff]  ;;  %5780 = vmatmul.bf16.gmra.mxu2 %v5676_v6  ;;  %v5382_v49 = vsel %vm10960_vm4, %v5377_v20, %v5381_v51  ;;  %v5393_v58 = vshll.u32 %v12923_v9, 16 }
 0x2d4   : > { %4834 = vst [vmem:[#allocation2 + $0x84] sm:$0xf] %v4833_v16  ;;  %v3798_v2 = vpop.f32.mrf.mxu3  ;;  %5128 = vmatmul.bf16.gmra.mxu1 %v10604_v56  ;;  %v5397_v25 = vshrl.u32 %v12923_v9, 16  ;;  %v3192_v55 = vadd.f32 %v3146_v5, %v2905_v35  ;;  %v5384_v56 = vshrl.u32 %v5209_v26, 16  ;;  %v5651_v6 = vunpack.c.l.b16 %v5382_v49 }
 0x2d5   : > { %v4618_v13 = vshrl.u32 %v4306_v22, 16  ;;  %v3845_v19 = vadd.f32 %v3798_v2, %v3191_v38  ;;  %v4621_v3 = vshll.u32 %v4306_v22, 16  ;;  %v5878_v22 = vld [vmem:[#allocation2 + $0x3c] sm:$0xe]  ;;  %v4369_v2 = vld [vmem:[#allocation2 + $0xa8] sm:$0x1] }
 0x2d6   : > { %v3149_v11 = vpop.f32.mrf.mxu2  ;;  %v12944_v34 = vrot.slane %v5393_v58, 5  ;;  %v5399_v5 = vrot.slane %v5397_v25, 4  ;;  %v5977_v35 = vrot.slane %v12906_v14, 5  ;;  %v5403_v14 = vshll.u32 %v12954_v31, 16  ;;  %v10659_v58 = vld [vmem:[%s14507_s3 + $0x108] sm:$0xff] }
 0x2d7   : > { %v4620_v61 = vrot.slane %v4618_v13, 7  ;;  %v4243_v10 = vadd.f32 %v12853_v62, %v3845_v19  ;;  %v12928_v23 = vpop.f32.mrf.mxu0  ;;  %v5367_v62 = vrot.slane %v5366_v0, 4  ;;  %v4370_v19 = vsel %vm12190_vm10, 0, %v4369_v2  ;;  %v4425_v25 = vld [vmem:[#allocation2 + $0xb0] sm:$0x1]  ;;  %7180 = vmatpush.bf16.msrb.mxu1 %v10659_v58 }
 0x2d8   : > { %v10036_v0 = vrot.slane %v5878_v22, 9  ;;  %4371 = vst [vmem:[#allocation2 + $0xa8] sm:$0x1] %v4370_v19  ;;  %v5400_v60 = vor.u32 %v5399_v5, %v12944_v34  ;;  %v14559_v22 = vld [vmem:[#allocation13_spill] sm:$0xff] }
 0x2d9   : > { %v4623_v32 = vor.u32 %v4621_v3, %v4620_v61  ;;  %v4625_v42 = vrot.slane %v4620_v61, 4  ;;  %v4275_v36 = vmax.f32 %v4243_v10, 0.0  ;;  %v12930_v30 = vpop.f32.mrf.mxu1  ;;  %v5372_v38 = vsel %vm10960_vm4, %v5367_v62, %v12896_v41 }
 0x2da   : > { %v5650_v3 = vunpack.c.l.b16 %v5372_v38  ;;  %v5976_v10 = vrot.slane %v5974_v54, 4  ;;  %v5975_v26 = vsel %vm11195_vm7, %v10036_v0, %v5974_v54  ;;  %v14558_v38 = vld [vmem:[#allocation14_spill] sm:$0xff] }
 0x2db   : > { %v4624_v27 = vsel %vm12342_vm0, %v4616_v46, %v4623_v32  ;;  %v4837_v59 = vsel %vm12190_vm10, %v4625_v42, %v4836_v44  ;;  %v4307_v43 = vpack.c.bf16 %v4275_v36, %v4275_v36  ;;  %v5386_v44 = vrot.slane %v5384_v56, 4  ;;  %v14557_v46 = vld [vmem:[#allocation12_spill] sm:$0xff] }
 0x2dc   : > { %4835 = vst [vmem:[#allocation2 + $0x88] sm:$0xf] %v4624_v27  ;;  %v3800_v48 = vpop.f32.mrf.mxu3  ;;  %v3193_v32 = vadd.f32 %v3149_v11, %v14557_v46  ;;  %v5677_v62 = vpack.c.b16 %v5651_v6, %v5650_v3  ;;  %v5978_v11 = vsel %vm11195_vm7, %v5976_v10, %v5977_v35  ;;  %v2907_v56 = vadd.f32 %v14559_v22, %v14558_v38  ;;  %v4843_v6 = vld [vmem:[#allocation2 + $0x98] sm:$0x1]  ;;  %v13005_v22 = vld [vmem:[#allocation2 + $0x5c] sm:$0x1] }
 0x2dd   : > { %4838 = vst [vmem:[#allocation2 + $0x8c] sm:$0x1] %v4837_v59  ;;  %v4627_v52 = vshrl.u32 %v4307_v43, 16  ;;  %v3846_v16 = vadd.f32 %v3800_v48, %v3192_v55  ;;  %v4630_v13 = vshll.u32 %v4307_v43, 16  ;;  %v4426_v55 = vsel %vm12225_vm12, 0, %v4425_v25 }
 0x2de   : > { %v3151_v63 = vpop.f32.mrf.mxu2  ;;  %v5390_v43 = vor.u32 %v5389_v7, %v5386_v44  ;;  %v5401_v48 = vrot.slane %v5400_v60, 4  ;;  %4427 = vst [vmem:[#allocation2 + $0xb0] sm:$0x1] %v4426_v55  ;;  %v6076_v37 = vunpack.c.l.b16 %v5975_v26  ;;  %v6077_v5 = vunpack.c.l.b16 %v5978_v11  ;;  %v5212_v60 = vld [vmem:[#allocation2 + $0x54] sm:$0xf] }
 0x2df   : > { %v12946_v40 = vrot.slane %v4627_v52, 7  ;;  %v4244_v28 = vadd.f32 %v12880_v21, %v3846_v16  ;;  %v12952_v61 = vpop.f32.mrf.mxu0  ;;  %v10639_v21 = vld [vmem:[#allocation2 + $0x48] sm:$0xff]  ;;  %v12974_v16 = vld [vmem:[#allocation2 + $0x58] sm:$0xf]  ;;  %v3194_v44 = vadd.f32 %v3151_v63, %v2907_v56  ;;  %v4372_v26 = vld [vmem:[#allocation2 + $0xb4] sm:$0x1] }
 0x2e0   : > { %v5417_v10 = vshll.u32 %v12974_v16, 16  ;;  %v6103_v46 = vpack.c.b16 %v6077_v5, %v6076_v37  ;;  %v5879_v11 = vld [vmem:[#allocation2 + $0x48] sm:$0xe]  ;;  %v4373_v55 = vsel %vm12190_vm10, 0, %v4372_v26  ;;  %v5984_v37 = vrot.slane %v12954_v31, 5  ;;  %v14562_v26 = vld [vmem:[#allocation3_spill] sm:$0xff] }
 0x2e1   : > { %v4632_v41 = vor.u32 %v4630_v13, %v12946_v40  ;;  %v4276_v20 = vmax.f32 %v4244_v28, 0.0  ;;  %6206 = vmatmul.bf16.gmra.mxu3 %v6102_v39  ;;  %v12956_v24 = vpop.f32.mrf.mxu1  ;;  %v5405_v13 = vrot.slane %v5403_v14, 5  ;;  %v4633_v28 = vrot.slane %v12946_v40, 4  ;;  %4374 = vst [vmem:[#allocation2 + $0xb4] sm:$0x1] %v4373_v55 }
 0x2e2   : > { %6525 = vmatmul.bf16.gmra.mxu0 %v10639_v21  ;;  %v5421_v21 = vshrl.u32 %v12974_v16, 16  ;;  %v5408_v14 = vshrl.u32 %v5212_v60, 16  ;;  %v12995_v58 = vrot.slane %v5417_v10, 5 }
 0x2e3   : > { %v4840_v51 = vsel %vm12311_vm14, %v4632_v41, %v4839_v50  ;;  %v4308_v42 = vpack.c.bf16 %v4276_v20, %v4276_v20  ;;  %v10605_v36 = vld [vmem:[#allocation2 + $0x84] sm:$0xff]  ;;  %5785 = vmatmul.bf16.gmra.mxu2 %v5677_v62  ;;  %v5406_v3 = vsel %vm10960_vm4, %v5401_v48, %v5405_v13  ;;  %v5981_v62 = vrot.slane %v12923_v9, 5 }
 0x2e4   : > { %4841 = vst [vmem:[#allocation2 + $0x90] sm:$0xf] %v4840_v51  ;;  %v3803_v49 = vpop.f32.mrf.mxu3  ;;  %5133 = vmatmul.bf16.gmra.mxu1 %v10605_v36  ;;  %v5423_v63 = vrot.slane %v5421_v21, 4  ;;  %v5410_v5 = vrot.slane %v5408_v14, 4 }
 0x2e5   : > { %v4635_v27 = vshrl.u32 %v4308_v42, 16  ;;  %v3847_v59 = vadd.f32 %v3803_v49, %v3193_v32  ;;  %v4638_v54 = vshll.u32 %v4308_v42, 16  ;;  %v5653_v49 = vunpack.c.l.b16 %v5406_v3 }
 0x2e6   : > { %v3154_v2 = vpop.f32.mrf.mxu2  ;;  %v5983_v38 = vrot.slane %v5981_v62, 4  ;;  %v5424_v13 = vor.u32 %v5423_v63, %v12995_v58  ;;  %v4850_v63 = vld [vmem:[#allocation2 + $0xa4] sm:$0x1] }
 0x2e7   : > { %v4637_v39 = vrot.slane %v4635_v27, 7  ;;  %v4245_v52 = vadd.f32 %v12904_v57, %v3847_v59  ;;  %v12979_v41 = vpop.f32.mrf.mxu0  ;;  %v5391_v57 = vrot.slane %v5390_v43, 4  ;;  %v4846_v43 = vld [vmem:[#allocation2 + $0x9c] sm:$0xf] }
 0x2e9   : > { %v4640_v19 = vor.u32 %v4638_v54, %v4637_v39  ;;  %v4642_v50 = vrot.slane %v4637_v39, 4  ;;  %v4277_v0 = vmax.f32 %v4245_v52, 0.0  ;;  %v12981_v20 = vpop.f32.mrf.mxu1  ;;  %v5396_v36 = vsel %vm10960_vm4, %v5391_v57, %v12944_v34 }
 0x2ea   : > { %v5411_v34 = vshll.u32 %v5212_v60, 16  ;;  %v5652_v52 = vunpack.c.l.b16 %v5396_v36  ;;  %v5425_v60 = vrot.slane %v5424_v13, 4  ;;  %v5215_v36 = vld [vmem:[#allocation2 + $0x60] sm:$0xf] }
 0x2eb   : > { %v4641_v35 = vsel %vm12342_vm0, %v4633_v28, %v4640_v19  ;;  %v4844_v40 = vsel %vm12190_vm10, %v4642_v50, %v4843_v6  ;;  %v4309_v7 = vpack.c.bf16 %v4277_v0, %v4277_v0  ;;  %v10037_v6 = vrot.slane %v5879_v11, 9  ;;  %v14560_v19 = vld [vmem:[#allocation15_spill] sm:$0xff] }
 0x2ec   : > { %4842 = vst [vmem:[#allocation2 + $0x94] sm:$0xf] %v4641_v35  ;;  %v3805_v51 = vpop.f32.mrf.mxu3  ;;  %v3195_v50 = vadd.f32 %v3154_v2, %v14560_v19  ;;  %v5678_v3 = vpack.c.b16 %v5653_v49, %v5652_v52  ;;  %v5413_v21 = vrot.slane %v5411_v34, 5  ;;  %v5427_v35 = vshll.u32 %v13005_v22, 16  ;;  %v14561_v49 = vld [vmem:[#allocation16_spill] sm:$0xff] }
 0x2ed   : > { %4845 = vst [vmem:[#allocation2 + $0x98] sm:$0x1] %v4844_v40  ;;  %v4644_v32 = vshrl.u32 %v4309_v7, 16  ;;  %v3848_v42 = vadd.f32 %v3805_v51, %v3194_v44  ;;  %v4647_v27 = vshll.u32 %v4309_v7, 16  ;;  %v4428_v40 = vld [vmem:[#allocation2 + $0xbc] sm:$0x1]  ;;  %v5985_v7 = vsel %vm11195_vm7, %v5983_v38, %v5984_v37 }
 0x2ee   : > { %v3156_v48 = vpop.f32.mrf.mxu2  ;;  %v4429_v2 = vsel %vm12225_vm12, 0, %v4428_v40  ;;  %v2909_v14 = vadd.f32 %v14562_v26, %v14561_v49  ;;  %v5414_v11 = vor.u32 %v5413_v21, %v5410_v5  ;;  %v5429_v55 = vrot.slane %v5427_v35, 5 }
 0x2ef   : > { %v12997_v25 = vrot.slane %v4644_v32, 7  ;;  %v4246_v59 = vadd.f32 %v12928_v23, %v3848_v42  ;;  %v13003_v54 = vpop.f32.mrf.mxu0  ;;  %v10640_v23 = vld [vmem:[#allocation2 + $0x54] sm:$0xff]  ;;  %4430 = vst [vmem:[#allocation2 + $0xbc] sm:$0x1] %v4429_v2  ;;  %v5982_v42 = vsel %vm11195_vm7, %v10037_v6, %v5981_v62  ;;  %v5432_v6 = vshrl.u32 %v5215_v36, 16 }
 0x2f0   : > { %v6078_v62 = vunpack.c.l.b16 %v5982_v42  ;;  %v5435_v37 = vshll.u32 %v5215_v36, 16  ;;  %v3196_v13 = vadd.f32 %v3156_v48, %v2909_v14  ;;  %v5988_v35 = vrot.slane %v12974_v16, 5  ;;  %v4375_v48 = vld [vmem:[#allocation2 + $0xc0] sm:$0x1]  ;;  %v4853_v42 = vld [vmem:[#allocation2 + $0xa8] sm:$0xf] }
 0x2f1   : > { %v4649_v9 = vor.u32 %v4647_v27, %v12997_v25  ;;  %v4278_v39 = vmax.f32 %v4246_v59, 0.0  ;;  %6211 = vmatmul.bf16.gmra.mxu3 %v6103_v46  ;;  %v13007_v56 = vpop.f32.mrf.mxu1  ;;  %v6079_v59 = vunpack.c.l.b16 %v5985_v7 }
 0x2f2   : > { %6530 = vmatmul.bf16.gmra.mxu0 %v10640_v23  ;;  %v5430_v23 = vsel %vm10960_vm4, %v5425_v60, %v5429_v55  ;;  %v5437_v7 = vrot.slane %v5435_v37, 5  ;;  %v5217_v37 = vld [vmem:[#allocation2 + $0x68] sm:$0x1] }
 0x2f3   : > { %v4847_v28 = vsel %vm12311_vm14, %v4649_v9, %v4846_v43  ;;  %v4310_v0 = vpack.c.bf16 %v4278_v39, %v4278_v39  ;;  %v10606_v57 = vld [vmem:[#allocation2 + $0x90] sm:$0xff]  ;;  %5790 = vmatmul.bf16.gmra.mxu2 %v5678_v3  ;;  %v4650_v43 = vrot.slane %v12997_v25, 4  ;;  %v6104_v21 = vpack.c.b16 %v6079_v59, %v6078_v62 }
 0x2f4   : > { %4848 = vst [vmem:[#allocation2 + $0x9c] sm:$0xf] %v4847_v28  ;;  %v3808_v10 = vpop.f32.mrf.mxu3  ;;  %5138 = vmatmul.bf16.gmra.mxu1 %v10606_v57  ;;  %v5990_v59 = vrot.slane %v5988_v35, 4 }
 0x2f5   : > { %v4652_v44 = vshrl.u32 %v4310_v0, 16  ;;  %v3849_v31 = vadd.f32 %v3808_v10, %v3195_v50  ;;  %v4655_v46 = vshll.u32 %v4310_v0, 16  ;;  %v5415_v50 = vrot.slane %v5414_v11, 4  ;;  %v10641_v11 = vld [vmem:[#allocation2 + $0x60] sm:$0xff] }
 0x2f6   : > { %v3159_v27 = vpop.f32.mrf.mxu2 }
 0x2f7   : > { %v4654_v51 = vrot.slane %v4652_v44, 7  ;;  %v4247_v32 = vadd.f32 %v12952_v61, %v3849_v31  ;;  %v13025_v52 = vpop.f32.mrf.mxu0  ;;  %v13027_v61 = vld [vmem:[#allocation2 + $0x64] sm:$0xf]  ;;  %v5420_v40 = vsel %vm10960_vm4, %v5415_v50, %v12995_v58  ;;  %v5655_v44 = vunpack.c.l.b16 %v5430_v23 }
 0x2f8   : > { %v5441_v0 = vshll.u32 %v13027_v61, 16  ;;  %v5445_v57 = vshrl.u32 %v13027_v61, 16  ;;  %v5434_v31 = vrot.slane %v5432_v6, 4 }
 0x2f9   : > { %v4657_v34 = vor.u32 %v4655_v46, %v4654_v51  ;;  %v4659_v9 = vrot.slane %v4654_v51, 4  ;;  %v4279_v39 = vmax.f32 %v4247_v32, 0.0  ;;  %v13029_v38 = vpop.f32.mrf.mxu1  ;;  %v5880_v46 = vld [vmem:[#allocation2 + $0x54] sm:$0xe]  ;;  %v4376_v32 = vsel %vm12190_vm10, 0, %v4375_v48 }
 0x2fa   : > { %4377 = vst [vmem:[#allocation2 + $0xc0] sm:$0x1] %v4376_v32  ;;  %v13050_v16 = vrot.slane %v5441_v0, 5  ;;  %v5447_v58 = vrot.slane %v5445_v57, 4  ;;  %v10038_v55 = vrot.slane %v5880_v46, 9 }
 0x2fb   : > { %v4658_v5 = vsel %vm12342_vm0, %v4650_v43, %v4657_v34  ;;  %v4851_v25 = vsel %vm12190_vm10, %v4659_v9, %v4850_v63  ;;  %v4311_v28 = vpack.c.bf16 %v4279_v39, %v4279_v39  ;;  %v5654_v63 = vunpack.c.l.b16 %v5420_v40  ;;  %v14563_v9 = vld [vmem:[#allocation17_spill] sm:$0xff]  ;;  %v4857_v46 = vld [vmem:[#allocation2 + $0xb0] sm:$0x1] }
 0x2fc   : > { %4849 = vst [vmem:[#allocation2 + $0xa0] sm:$0xf] %v4658_v5  ;;  %v3810_v19 = vpop.f32.mrf.mxu3  ;;  %v5991_v43 = vrot.slane %v13005_v22, 5  ;;  %v3197_v39 = vadd.f32 %v3159_v27, %v14563_v9  ;;  %v10658_v22 = vld [vmem:[%s14507_s3 + $0x100] sm:$0xff]  ;;  %v5451_v40 = vshll.u32 %v5217_v37, 16 }
 0x2fd   : > { %4852 = vst [vmem:[#allocation2 + $0xa4] sm:$0x1] %v4851_v25  ;;  %v4661_v3 = vshrl.u32 %v4311_v28, 16  ;;  %v3850_v10 = vadd.f32 %v3810_v19, %v3196_v13  ;;  %v4664_v60 = vshll.u32 %v4311_v28, 16  ;;  %v5679_v6 = vpack.c.b16 %v5655_v44, %v5654_v63  ;;  %v4431_v19 = vld [vmem:[#allocation2 + $0xc8] sm:$0x1]  ;;  %7181 = vmatpush.bf16.msrb.mxu1 %v10658_v22 }
 0x2fe   : > { %v13048_v36 = vpop.f32.mrf.mxu2  ;;  %v5989_v25 = vsel %vm11195_vm7, %v10038_v55, %v5988_v35  ;;  %v5438_v13 = vor.u32 %v5437_v7, %v5434_v31  ;;  %v5448_v28 = vor.u32 %v5447_v58, %v13050_v16  ;;  %v5992_v0 = vsel %vm11195_vm7, %v5990_v59, %v5991_v43 }
 0x2ff   : > { %v13043_v2 = vrot.slane %v4661_v3, 7  ;;  %v4248_v51 = vadd.f32 %v12979_v41, %v3850_v10  ;;  %v13053_v14 = vpop.f32.mrf.mxu0  ;;  %v4432_v57 = vsel %vm12225_vm12, 0, %v4431_v19  ;;  %v5881_v3 = vld [vmem:[#allocation2 + $0x60] sm:$0xe]  ;;  %v14564_v10 = vld [vmem:[#allocation18_spill] sm:$0xff]  ;;  %v5995_v44 = vrot.slane %v13027_v61, 5 }
 0x300   : > { %4433 = vst [vmem:[#allocation2 + $0xc8] sm:$0x1] %v4432_v57  ;;  %v5439_v58 = vrot.slane %v5438_v13, 4  ;;  %v13080_v61 = vld [vmem:[#allocation2 + $0x70] sm:$0xf] }
 0x301   : > { %v4666_v49 = vor.u32 %v4664_v60, %v13043_v2  ;;  %v4280_v26 = vmax.f32 %v4248_v51, 0.0  ;;  %6216 = vmatmul.bf16.gmra.mxu3 %v6104_v21  ;;  %v13055_v41 = vpop.f32.mrf.mxu1  ;;  %v14565_v21 = vld [vmem:[#allocation5_spill] sm:$0xff]  ;;  %v6080_v60 = vunpack.c.l.b16 %v5989_v25  ;;  %v4667_v63 = vrot.slane %v13043_v2, 4 }
 0x302   : > { %6535 = vmatmul.bf16.gmra.mxu0 %v10641_v11  ;;  %v2911_v35 = vadd.f32 %v14565_v21, %v14564_v10  ;;  %v5218_v51 = vld [vmem:[#allocation2 + $0x6c] sm:$0xf]  ;;  %v5997_v9 = vrot.slane %v5995_v44, 4  ;;  %v5465_v22 = vshll.u32 %v13080_v61, 16  ;;  %v5469_v19 = vshrl.u32 %v13080_v61, 16  ;;  %v10673_v21 = vld [vmem:[%s14507_s3 + $0x178] sm:$0xff] }
 0x303   : > { %v4854_v34 = vsel %vm12311_vm14, %v4666_v49, %v4853_v42  ;;  %v4312_v62 = vpack.c.bf16 %v4280_v26, %v4280_v26  ;;  %v10607_v23 = vld [vmem:[#allocation2 + $0x9c] sm:$0xff]  ;;  %5795 = vmatmul.bf16.gmra.mxu2 %v5679_v6  ;;  %v6081_v42 = vunpack.c.l.b16 %v5992_v0  ;;  %v5449_v49 = vrot.slane %v5448_v28, 4 }
 0x304   : > { %4855 = vst [vmem:[#allocation2 + $0xa8] sm:$0xf] %v4854_v34  ;;  %v3813_v5 = vpop.f32.mrf.mxu3  ;;  %5143 = vmatmul.bf16.gmra.mxu1 %v10607_v23  ;;  %v10039_v26 = vrot.slane %v5881_v3, 9  ;;  %v3198_v2 = vadd.f32 %v13048_v36, %v2911_v35  ;;  %v5998_v28 = vrot.slane %v5217_v37, 5  ;;  %v5444_v57 = vsel %vm10960_vm4, %v5439_v58, %v13050_v16  ;;  %v10697_v35 = vld [vmem:[%s14507_s3 + $0x1b8] sm:$0xff]  ;;  %7600 = vmatpush.bf16.msra.mxu2 %v10673_v21 }
 0x305   : > { %v4669_v50 = vshrl.u32 %v4312_v62, 16  ;;  %v3851_v27 = vadd.f32 %v3813_v5, %v3197_v39  ;;  %v4672_v31 = vshll.u32 %v4312_v62, 16  ;;  %v5456_v39 = vshrl.u32 %v5218_v51, 16  ;;  %7915 = vmatpush.bf16.msra.mxu3 %v10697_v35 }
 0x306   : > { %v13075_v32 = vpop.f32.mrf.mxu2  ;;  %v5459_v62 = vshll.u32 %v5218_v51, 16  ;;  %v6105_v0 = vpack.c.b16 %v6081_v42, %v6080_v60  ;;  %v5996_v36 = vsel %vm11195_vm7, %v10039_v26, %v5995_v44  ;;  %v5999_v3 = vsel %vm11195_vm7, %v5997_v9, %v5998_v28  ;;  %v13109_v44 = vld [vmem:[#allocation2 + $0x74] sm:$0x1]  ;;  %v13116_v60 = vld [vmem:[%s14508_s4] ss:$0 sm:$0xff] }
 0x307   : > { %v4671_v48 = vrot.slane %v4669_v50, 7  ;;  %v4249_v7 = vadd.f32 %v13003_v54, %v3851_v27  ;;  %v13078_v43 = vpop.f32.mrf.mxu0  ;;  %v5453_v54 = vrot.slane %v5451_v40, 5  ;;  %v5458_v10 = vrot.slane %v5456_v39, 4  ;;  %v4860_v51 = vld [vmem:[#allocation2 + $0xb4] sm:$0xf] }
 0x308   : > { %v5461_v37 = vrot.slane %v5459_v62, 5  ;;  %v13120_v42 = vrot.slane %v5465_v22, 5  ;;  %v5471_v58 = vrot.slane %v5469_v19, 4  ;;  %v5475_v39 = vshll.u32 %v13109_v44, 16  ;;  %v13128_v62 = vld [vmem:[#allocation2 + $0x6c] sm:$0xe] }
 0x309   : > { %v4674_v59 = vor.u32 %v4672_v31, %v4671_v48  ;;  %v4676_v11 = vrot.slane %v4671_v48, 4  ;;  %v4281_v55 = vmax.f32 %v4249_v7, 0.0  ;;  %v13082_v34 = vpop.f32.mrf.mxu1  ;;  %v5454_v13 = vsel %vm10960_vm4, %v5449_v49, %v5453_v54  ;;  %v13111_v7 = vld [vmem:[#allocation2 + $0xc] sm:$0xf]  ;;  %v14567_v22 = vld [vmem:[#allocation20_spill] sm:$0xff] }
 0x30a   : > { %v5657_v31 = vunpack.c.l.b16 %v5454_v13  ;;  %v6082_v54 = vunpack.c.l.b16 %v5996_v36  ;;  %v5462_v9 = vor.u32 %v5461_v37, %v5458_v10  ;;  %v2913_v19 = vadd.f32 %v12780_v47, %v14567_v22  ;;  %v10705_v47 = vld [vmem:[%s14507_s3 + $0x1f8] sm:$0xff] }
 0x30b   : > { %v4675_v23 = vsel %vm12342_vm0, %v4667_v63, %v4674_v59  ;;  %v4858_v6 = vsel %vm12190_vm10, %v4676_v11, %v4857_v46  ;;  %v4313_v5 = vpack.c.bf16 %v4281_v55, %v4281_v55  ;;  %v5656_v63 = vunpack.c.l.b16 %v5444_v57  ;;  %v10642_v55 = vld [vmem:[#allocation2 + $0x6c] sm:$0xff]  ;;  %v10713_v37 = vld [vmem:[%s14507_s3 + $0x238] sm:$0xff]  ;;  %8597 = vmatpush.bf16.msra.mxu0 %v10705_v47 }
 0x30c   : > { %4856 = vst [vmem:[#allocation2 + $0xac] sm:$0xf] %v4675_v23  ;;  %v3815_v25 = vpop.f32.mrf.mxu3  ;;  %v6083_v59 = vunpack.c.l.b16 %v5999_v3  ;;  %v6662_v23 = vshrl.u32 %v13111_v7, 16  ;;  %v13140_v57 = vld [vmem:[#allocation2 + $0x10] sm:$0xf]  ;;  %v10040_v10 = vrot.slane %v13128_v62, 9  ;;  %9023 = vmatpush.bf16.msra.mxu1 %v10713_v37  ;;  %v5160_v4 = vadd.f32 %v13116_v60, %v12831_v29 }
 0x30d   : > { %4859 = vst [vmem:[#allocation2 + $0xb0] sm:$0x1] %v4858_v6  ;;  %v4678_v50 = vshrl.u32 %v4313_v5, 16  ;;  %v3852_v27 = vadd.f32 %v3815_v25, %v3198_v2  ;;  %v4681_v48 = vshll.u32 %v4313_v5, 16  ;;  %v14566_v2 = vld [vmem:[#allocation6_spill] sm:$0xff]  ;;  %v5680_v28 = vpack.c.b16 %v5657_v31, %v5656_v63 }
 0x30e   : > { %v13118_v46 = vpop.f32.mrf.mxu2  ;;  %v3199_v5 = vadd.f32 %v13075_v32, %v14566_v2  ;;  %v13142_v32 = vpack.c.b16 %v6083_v59, %v6082_v54  ;;  %v5463_v21 = vrot.slane %v5462_v9, 4  ;;  %v5477_v35 = vrot.slane %v5475_v39, 5  ;;  %v4864_v63 = vld [vmem:[#allocation2 + $0xbc] sm:$0x1] }
 0x30f   : > { %v13106_v40 = vrot.slane %v4678_v50, 7  ;;  %v4250_v16 = vadd.f32 %v13025_v52, %v3852_v27  ;;  %v13123_v26 = vpop.f32.mrf.mxu0  ;;  %v5159_v50 = vadd.f32 %v13116_v60, %v12804_v15  ;;  %v13148_v15 = vld [vmem:[#allocation2 + $0x7c] sm:$0xf]  ;;  %v6671_v9 = vshll.u32 %v13140_v57, 16 }
 0x310   : > { %v5489_v54 = vshll.u32 %v13148_v15, 16 }
 0x311   : > { %v4683_v52 = vor.u32 %v4681_v48, %v13106_v40  ;;  %v4282_v49 = vmax.f32 %v4250_v16, 0.0  ;;  %6221 = vmatmul.bf16.gmra.mxu3 %v6105_v0  ;;  %v13125_v11 = vpop.f32.mrf.mxu1  ;;  %v5472_v0 = vor.u32 %v5471_v58, %v13120_v42  ;;  %v6002_v48 = vrot.slane %v13080_v61, 5 }
 0x312   : > { %6540 = vmatmul.bf16.gmra.mxu0 %v10642_v55  ;;  %v13154_v16 = vrot.slane %v6662_v23, 4 }
 0x313   : > { %v4861_v6 = vsel %vm12311_vm14, %v4683_v52, %v4860_v51  ;;  %v4314_v25 = vpack.c.bf16 %v4282_v49, %v4282_v49  ;;  %v10608_v13 = vld [vmem:[#allocation2 + $0xa8] sm:$0xff]  ;;  %5800 = vmatmul.bf16.gmra.mxu2 %v5680_v28  ;;  %v6665_v52 = vshll.u32 %v13111_v7, 16  ;;  %v4684_v49 = vrot.slane %v13106_v40, 4 }
 0x314   : > { %4862 = vst [vmem:[#allocation2 + $0xb4] sm:$0xf] %v4861_v6  ;;  %v3818_v27 = vpop.f32.mrf.mxu3  ;;  %5148 = vmatmul.bf16.gmra.mxu1 %v10608_v13  ;;  %v5473_v55 = vrot.slane %v5472_v0, 4  ;;  %v5468_v40 = vsel %vm10960_vm4, %v5463_v21, %v13120_v42  ;;  %v5493_v7 = vshrl.u32 %v13148_v15, 16  ;;  %v6675_v13 = vshrl.u32 %v13140_v57, 16 }
 0x315   : > { %v4686_v36 = vshrl.u32 %v4314_v25, 16  ;;  %v3853_v3 = vadd.f32 %v3818_v27, %v3199_v5  ;;  %v4689_v51 = vshll.u32 %v4314_v25, 16  ;;  %v7361_v28 = vrot.slane %v13140_v57, 5 }
 0x316   : > { %v5761_v59 = vpop.f32.mrf.mxu2  ;;  %v3200_v27 = vadd.f32 %v13118_v46, %v2913_v19  ;;  %v5478_v42 = vsel %vm10960_vm4, %v5473_v55, %v5477_v35  ;;  %v6667_v21 = vrot.slane %v6665_v52, 5  ;;  %v6677_v46 = vrot.slane %v6675_v13, 4 }
 0x317   : > { %v4688_v31 = vrot.slane %v4686_v36, 7  ;;  %v4251_v58 = vadd.f32 %v13053_v14, %v3853_v3  ;;  %v13161_v2 = vadd.f32 %v5761_v59, %v5159_v50  ;;  %v13163_v5 = vpop.f32.mrf.mxu0  ;;  %v5221_v14 = vld [vmem:[#allocation2 + $0x78] sm:$0xf]  ;;  %v13178_v36 = vld [vmem:[#allocation2 + $0x14] sm:$0x1]  ;;  %v7363_v19 = vrot.slane %v7361_v28, 4 }
 0x318   : > { %v5480_v47 = vshrl.u32 %v5221_v14, 16  ;;  %v5483_v37 = vshll.u32 %v5221_v14, 16  ;;  %v7364_v59 = vrot.slane %v13178_v36, 5  ;;  %v5659_v52 = vunpack.c.l.b16 %v5478_v42 }
 0x319   : > { %v4691_v39 = vor.u32 %v4689_v51, %v4688_v31  ;;  %v4693_v23 = vrot.slane %v4688_v31, 4  ;;  %v4283_v6 = vmax.f32 %v4251_v58, 0.0  ;;  %v13165_v25 = vpop.f32.mrf.mxu1  ;;  %v13182_v58 = vrot.slane %v5489_v54, 5 }
 0x31a   : > { %v6004_v54 = vrot.slane %v6002_v48, 4  ;;  %v5485_v14 = vrot.slane %v5483_v37, 5  ;;  %v6003_v42 = vsel %vm11195_vm7, %v10040_v10, %v6002_v48  ;;  %v6681_v48 = vshll.u32 %v13178_v36, 16 }
 0x31b   : > { %v4692_v22 = vsel %vm12342_vm0, %v4684_v49, %v4691_v39  ;;  %v4865_v50 = vsel %vm12190_vm10, %v4693_v23, %v4864_v63  ;;  %v4315_v0 = vpack.c.bf16 %v4283_v6, %v4283_v6  ;;  %v13184_v49 = vrot.slane %v6671_v9, 5  ;;  %v4867_v23 = vld [vmem:[#allocation2 + $0xc0] sm:$0xf] }
 0x31c   : > { %4863 = vst [vmem:[#allocation2 + $0xb8] sm:$0xf] %v4692_v22  ;;  %v3820_v3 = vpop.f32.mrf.mxu3  ;;  %v5495_v63 = vrot.slane %v5493_v7, 4  ;;  %v5482_v9 = vrot.slane %v5480_v47, 4  ;;  %v13198_v7 = vsel %vm11195_vm7, %v7363_v19, %v7364_v59  ;;  %v6005_v47 = vrot.slane %v13109_v44, 5 }
 0x31d   : > { %4866 = vst [vmem:[#allocation2 + $0xbc] sm:$0x1] %v4865_v50  ;;  %v4695_v31 = vshrl.u32 %v4315_v0, 16  ;;  %v3854_v51 = vadd.f32 %v3820_v3, %v3200_v27  ;;  %v4698_v35 = vshll.u32 %v4315_v0, 16  ;;  %v13204_v27 = vld [vmem:[#allocation2 + $0x80] sm:$0x1]  ;;  %v6668_v59 = vor.u32 %v6667_v21, %v13154_v16 }
 0x31e   : > { %v13192_v6 = vpop.f32.mrf.mxu2  ;;  %v10643_v3 = vld [vmem:[#allocation2 + $0x78] sm:$0xff]  ;;  %v5496_v37 = vor.u32 %v5495_v63, %v13182_v58  ;;  %v6006_v62 = vsel %vm11195_vm7, %v6004_v54, %v6005_v47  ;;  %v5486_v10 = vor.u32 %v5485_v14, %v5482_v9  ;;  %v5499_v44 = vshll.u32 %v13204_v27, 16  ;;  %v7295_v21 = vld [vmem:[#allocation2 + $0xc] sm:$0xe] }
 0x31f   : > { %v13189_v39 = vrot.slane %v4695_v31, 7  ;;  %v4252_v55 = vadd.f32 %v13078_v43, %v3854_v51  ;;  %v13202_v50 = vpop.f32.mrf.mxu0  ;;  %v5658_v43 = vunpack.c.l.b16 %v5468_v40  ;;  %v5161_v63 = vadd.f32 %v13116_v60, %v12857_v53  ;;  %v13233_v14 = vld [vmem:[#allocation2 + $0x1c] sm:$0xf]  ;;  %v4871_v53 = vld [vmem:[#allocation2 + $0xc8] sm:$0x1] }
 0x320   : > { %v6085_v9 = vunpack.c.l.b16 %v6006_v62  ;;  %v6669_v29 = vrot.slane %v6668_v59, 4 }
 0x321   : > { %v4700_v13 = vor.u32 %v4698_v35, %v13189_v39  ;;  %v4284_v22 = vmax.f32 %v4252_v55, 0.0  ;;  %6226 = vmatmul.bf16.gmra.mxu3 %v13142_v32  ;;  %v13206_v0 = vpop.f32.mrf.mxu1  ;;  %v6678_v32 = vor.u32 %v6677_v46, %v13184_v49  ;;  %v5681_v19 = vpack.c.b16 %v5659_v52, %v5658_v43 }
 0x322   : > { %6545 = vmatmul.bf16.gmra.mxu0 %v10643_v3  ;;  %v5162_v35 = vadd.f32 %v13116_v60, %v12882_v12  ;;  %v6084_v55 = vunpack.c.l.b16 %v6003_v42  ;;  %v5497_v52 = vrot.slane %v5496_v37, 4  ;;  %v6683_v43 = vrot.slane %v6681_v48, 5  ;;  %v13238_v37 = vld [vmem:[#allocation2 + $0x88] sm:$0xf]  ;;  %v6616_v48 = vld [vmem:[#allocation2 + $0x18] sm:$0xf] }
 0x323   : > { %v4868_v40 = vsel %vm12311_vm14, %v4700_v13, %v4867_v23  ;;  %v4316_v31 = vpack.c.bf16 %v4284_v22, %v4284_v22  ;;  %v10609_v51 = vld [vmem:[#allocation2 + $0xb4] sm:$0xff]  ;;  %5805 = vmatmul.bf16.gmra.mxu2 %v5681_v19  ;;  %v6679_v23 = vrot.slane %v6678_v32, 4  ;;  %v5487_v22 = vrot.slane %v5486_v10, 4 }
 0x324   : > { %4869 = vst [vmem:[#allocation2 + $0xc0] sm:$0xf] %v4868_v40  ;;  %v6187_v61 = vpop.f32.mrf.mxu3  ;;  %5153 = vmatmul.bf16.gmra.mxu1 %v10609_v51  ;;  %v10255_v3 = vrot.slane %v7295_v21, 9  ;;  %v4701_v47 = vrot.slane %v13189_v39, 4  ;;  %v10672_v32 = vld [vmem:[%s14507_s3 + $0x170] sm:$0xff]  ;;  %v6695_v39 = vshll.u32 %v13233_v14, 16  ;;  %v6107_v21 = vpack.c.b16 %v6085_v9, %v6084_v55 }
 0x325   : > { %v4703_v46 = vshrl.u32 %v4316_v31, 16  ;;  %v13229_v16 = vadd.f32 %v6187_v61, %v13161_v2  ;;  %v4706_v54 = vshll.u32 %v4316_v31, 16  ;;  %v5501_v2 = vrot.slane %v5499_v44, 5  ;;  %7601 = vmatpush.bf16.msra.mxu2 %v10672_v32  ;;  %v10696_v55 = vld [vmem:[%s14507_s3 + $0x1b0] sm:$0xff] }
 0x326   : > { %v5766_v13 = vpop.f32.mrf.mxu2  ;;  %v6684_v59 = vsel %vm10960_vm4, %v6679_v23, %v6683_v43  ;;  %v7362_v61 = vsel %vm11195_vm7, %v10255_v3, %v7361_v28  ;;  %v5842_v44 = vadd.f32 %v13192_v6, %v5160_v4  ;;  %v6674_v57 = vsel %vm10960_vm4, %v6669_v29, %v13184_v49  ;;  %v5224_v4 = vld [vmem:[#allocation2 + $0x84] sm:$0xf]  ;;  %7916 = vmatpush.bf16.msra.mxu3 %v10696_v55  ;;  %v10704_v55 = vld [vmem:[%s14507_s3 + $0x1f0] sm:$0xff] }
 0x327   : > { %v4705_v36 = vrot.slane %v4703_v46, 7  ;;  %v5843_v12 = vadd.f32 %v5766_v13, %v5161_v63  ;;  %v13236_v42 = vpop.f32.mrf.mxu0  ;;  %v5502_v19 = vsel %vm10960_vm4, %v5497_v52, %v5501_v2  ;;  %v6699_v63 = vshrl.u32 %v13233_v14, 16  ;;  %8598 = vmatpush.bf16.msra.mxu0 %v10704_v55 }
 0x328   : > { %14568 = vst [vmem:[#allocation7_spill] sm:$0xff] %v13236_v42  ;;  %v5513_v28 = vshll.u32 %v13238_v37, 16  ;;  %v5517_v1 = vshrl.u32 %v13238_v37, 16  ;;  %v5492_v6 = vsel %vm10960_vm4, %v5487_v22, %v13182_v58  ;;  %v7488_v23 = vunpack.c.l.b16 %v7362_v61 }
 0x329   : > { %v4708_v40 = vor.u32 %v4706_v54, %v4705_v36  ;;  %v4710_v51 = vrot.slane %v4705_v36, 4  ;;  %v13243_v31 = vpop.f32.mrf.mxu1  ;;  %v7489_v36 = vunpack.c.l.b16 %v13198_v7  ;;  %v5661_v49 = vunpack.c.l.b16 %v5502_v19 }
 0x32a   : > { %v7063_v54 = vunpack.c.l.b16 %v6684_v59  ;;  %v6686_v9 = vshrl.u32 %v6616_v48, 16  ;;  %v6689_v29 = vshll.u32 %v6616_v48, 16  ;;  %v13275_v13 = vrot.slane %v6695_v39, 5  ;;  %v13285_v39 = vld [vmem:[#allocation2 + $0x20] sm:$0x1] }
 0x32b   : > { %v4709_v62 = vsel %vm12342_vm0, %v4701_v47, %v4708_v40  ;;  %v4872_v10 = vsel %vm12190_vm10, %v4710_v51, %v4871_v53  ;;  %v6009_v53 = vrot.slane %v13148_v15, 5  ;;  %v6701_v2 = vrot.slane %v6699_v63, 4  ;;  %v10644_v15 = vld [vmem:[#allocation2 + $0x84] sm:$0xff] }
 0x32c   : > { %4870 = vst [vmem:[#allocation2 + $0xc4] sm:$0xf] %v4709_v62  ;;  %v6189_v46 = vpop.f32.mrf.mxu3  ;;  %v13277_v43 = vpack.c.b16 %v7489_v36, %v7488_v23  ;;  %v5504_v22 = vshrl.u32 %v5224_v4, 16  ;;  %v5507_v3 = vshll.u32 %v5224_v4, 16  ;;  %v13279_v47 = vrot.slane %v5513_v28, 5 }
 0x32d   : > { %4873 = vst [vmem:[#allocation2 + $0xc8] sm:$0x1] %v4872_v10  ;;  %v13265_v52 = vadd.f32 %v6189_v46, %v5842_v44  ;;  %v5519_v40 = vrot.slane %v5517_v1, 4  ;;  %v5660_v32 = vunpack.c.l.b16 %v5492_v6  ;;  %v7062_v19 = vunpack.c.l.b16 %v6674_v57  ;;  %v13287_v44 = vld [vmem:[#allocation2 + $0x8c] sm:$0x1] }
 0x32e   : > { %v5768_v58 = vpop.f32.mrf.mxu2  ;;  %v6688_v61 = vrot.slane %v6686_v9, 4  ;;  %v6691_v48 = vrot.slane %v6689_v29, 5  ;;  %v6702_v63 = vor.u32 %v6701_v2, %v13275_v13  ;;  %v5509_v28 = vrot.slane %v5507_v3, 5  ;;  %v5883_v6 = vld [vmem:[#allocation2 + $0x78] sm:$0xe]  ;;  %v10712_v29 = vld [vmem:[%s14507_s3 + $0x230] sm:$0xff] }
 0x32f   : > { %v5844_v51 = vadd.f32 %v5768_v58, %v5162_v35  ;;  %v13281_v7 = vpop.f32.mrf.mxu0  ;;  %v5682_v62 = vpack.c.b16 %v5661_v49, %v5660_v32  ;;  %v7094_v10 = vpack.c.b16 %v7063_v54, %v7062_v19  ;;  %v6011_v35 = vrot.slane %v6009_v53, 4  ;;  %v13310_v19 = vld [vmem:[#allocation2 + $0x94] sm:$0xf]  ;;  %9024 = vmatpush.bf16.msra.mxu1 %v10712_v29 }
 0x330   : > { %14569 = vst [vmem:[#allocation9_spill] sm:$0xff] %v13281_v7  ;;  %v5520_v57 = vor.u32 %v5519_v40, %v13279_v47  ;;  %v6705_v4 = vshll.u32 %v13285_v39, 16  ;;  %v6012_v23 = vrot.slane %v13204_v27, 5  ;;  %v5523_v36 = vshll.u32 %v13287_v44, 16 }
 0x331   : > { %6231 = vmatmul.bf16.gmra.mxu3 %v6107_v21  ;;  %v13283_v59 = vpop.f32.mrf.mxu1  ;;  %v5506_v21 = vrot.slane %v5504_v22, 4  ;;  %v5163_v49 = vadd.f32 %v13116_v60, %v12908_v45  ;;  %v6692_v54 = vor.u32 %v6691_v48, %v6688_v61  ;;  %v6703_v9 = vrot.slane %v6702_v63, 4  ;;  %v6619_v48 = vld [vmem:[#allocation2 + $0x24] sm:$0xf] }
 0x332   : > { %6550 = vmatmul.bf16.gmra.mxu0 %v10644_v15  ;;  %v10041_v58 = vrot.slane %v5883_v6, 9  ;;  %v6013_v22 = vsel %vm11195_vm7, %v6011_v35, %v6012_v23  ;;  %v5521_v3 = vrot.slane %v5520_v57, 4  ;;  %v6707_v45 = vrot.slane %v6705_v4, 5 }
 0x333   : > { %5810 = vmatmul.bf16.gmra.mxu2 %v5682_v62  ;;  %v5510_v27 = vor.u32 %v5509_v28, %v5506_v21  ;;  %v5164_v15 = vadd.f32 %v13116_v60, %v12930_v30  ;;  %v6693_v35 = vrot.slane %v6692_v54, 4  ;;  %v5537_v4 = vshll.u32 %v13310_v19, 16 }
 0x334   : > { %v6192_v46 = vpop.f32.mrf.mxu3  ;;  %7182 = vmatmul.bf16.vlgmr.msrb.gmra.mxu1 %v7094_v10  ;;  %v6010_v62 = vsel %vm11195_vm7, %v10041_v58, %v6009_v53  ;;  %v5525_v10 = vrot.slane %v5523_v36, 5  ;;  %v6708_v21 = vsel %vm10960_vm4, %v6703_v9, %v6707_v45  ;;  %v5541_v53 = vshrl.u32 %v13310_v19, 16  ;;  %v5227_v36 = vld [vmem:[#allocation2 + $0x90] sm:$0xf] }
 0x335   : > { %v13291_v1 = vadd.f32 %v6192_v46, %v5843_v12  ;;  %v13301_v12 = vld [vmem:[#allocation2 + $0x28] sm:$0xf]  ;;  %v6087_v46 = vunpack.c.l.b16 %v6013_v22  ;;  %v5511_v6 = vrot.slane %v5510_v27, 4  ;;  %v6086_v23 = vunpack.c.l.b16 %v6010_v62 }
 0x336   : > { %v5771_v2 = vpop.f32.mrf.mxu2  ;;  %v6719_v63 = vshll.u32 %v13301_v12, 16  ;;  %v6723_v28 = vshrl.u32 %v13301_v12, 16  ;;  %v5526_v30 = vsel %vm10960_vm4, %v5521_v3, %v5525_v10  ;;  %v6713_v54 = vshll.u32 %v6619_v48, 16 }
 0x337   : > { %v5845_v40 = vadd.f32 %v5771_v2, %v5163_v49  ;;  %v13308_v32 = vpop.f32.mrf.mxu0  ;;  %v6710_v49 = vshrl.u32 %v6619_v48, 16  ;;  %v5516_v9 = vsel %vm10960_vm4, %v5511_v6, %v13279_v47  ;;  %v6698_v29 = vsel %vm10960_vm4, %v6693_v35, %v13275_v13 }
 0x338   : > { %14570 = vst [vmem:[#allocation8_spill] sm:$0xff] %v13308_v32  ;;  %v7065_v2 = vunpack.c.l.b16 %v6708_v21  ;;  %v13334_v58 = vrot.slane %v6719_v63, 5  ;;  %v6108_v22 = vpack.c.b16 %v6087_v46, %v6086_v23  ;;  %v5663_v27 = vunpack.c.l.b16 %v5526_v30  ;;  %v10645_v63 = vld [vmem:[#allocation2 + $0x90] sm:$0xff]  ;;  %v13343_v46 = vld [vmem:[#allocation2 + $0x2c] sm:$0x1] }
 0x339   : > { %v13314_v61 = vpop.f32.mrf.mxu1  ;;  %v6725_v3 = vrot.slane %v6723_v28, 4  ;;  %v5528_v62 = vshrl.u32 %v5227_v36, 16  ;;  %v5531_v10 = vshll.u32 %v5227_v36, 16  ;;  %v13337_v48 = vrot.slane %v5537_v4, 5  ;;  %v13345_v30 = vld [vmem:[#allocation2 + $0x98] sm:$0x1] }
 0x33a   : > { %v5662_v6 = vunpack.c.l.b16 %v5516_v9  ;;  %v7064_v13 = vunpack.c.l.b16 %v6698_v29  ;;  %v6712_v21 = vrot.slane %v6710_v49, 4  ;;  %v6715_v23 = vrot.slane %v6713_v54, 5 }
 0x33b   : > { %v6726_v4 = vor.u32 %v6725_v3, %v13334_v58  ;;  %v5530_v36 = vrot.slane %v5528_v62, 4  ;;  %v6729_v49 = vshll.u32 %v13343_v46, 16  ;;  %v5547_v54 = vshll.u32 %v13345_v30, 16  ;;  %v13356_v62 = vld [vmem:[#allocation2 + $0x34] sm:$0xf] }
 0x33c   : > { %v6194_v57 = vpop.f32.mrf.mxu3  ;;  %v7095_v28 = vpack.c.b16 %v7065_v2, %v7064_v13  ;;  %v6019_v2 = vrot.slane %v13287_v44, 5  ;;  %v6716_v3 = vor.u32 %v6715_v23, %v6712_v21 }
 0x33d   : > { %v13326_v55 = vadd.f32 %v6194_v57, %v5844_v51  ;;  %v6016_v51 = vrot.slane %v13238_v37, 5  ;;  %v5543_v57 = vrot.slane %v5541_v53, 4  ;;  %v5683_v37 = vpack.c.b16 %v5663_v27, %v5662_v6 }
 0x33e   : > { %v5773_v45 = vpop.f32.mrf.mxu2  ;;  %v5165_v27 = vadd.f32 %v13116_v60, %v12956_v24  ;;  %v6727_v6 = vrot.slane %v6726_v4, 4  ;;  %v6731_v44 = vrot.slane %v6729_v49, 5  ;;  %v10671_v24 = vld [vmem:[%s14507_s3 + $0x168] sm:$0xff]  ;;  %v5549_v4 = vrot.slane %v5547_v54, 5 }
 0x33f   : > { %14571 = vst [vmem:[#allocation11_spill] sm:$0xff] %v13326_v55  ;;  %v5846_v18 = vadd.f32 %v5773_v45, %v5164_v15  ;;  %v13339_v47 = vpop.f32.mrf.mxu0  ;;  %v6018_v15 = vrot.slane %v6016_v51, 4  ;;  %v5544_v9 = vor.u32 %v5543_v57, %v13337_v48  ;;  %v5884_v45 = vld [vmem:[#allocation2 + $0x84] sm:$0xe]  ;;  %v6717_v49 = vrot.slane %v6716_v3, 4  ;;  %7602 = vmatpush.bf16.msra.mxu2 %v10671_v24  ;;  %v10695_v3 = vld [vmem:[%s14507_s3 + $0x1a8] sm:$0xff] }
 0x340   : > { %14572 = vst [vmem:[#allocation10_spill] sm:$0xff] %v13339_v47  ;;  %v10042_v57 = vrot.slane %v5884_v45, 9  ;;  %v6622_v45 = vld [vmem:[#allocation2 + $0x30] sm:$0xf]  ;;  %v5230_v47 = vld [vmem:[#allocation2 + $0x9c] sm:$0xf]  ;;  %7917 = vmatpush.bf16.msra.mxu3 %v10695_v3 }
 0x341   : > { %6236 = vmatmul.bf16.gmra.mxu3 %v6108_v22  ;;  %v13341_v35 = vpop.f32.mrf.mxu1  ;;  %v5533_v22 = vrot.slane %v5531_v10, 5  ;;  %v5555_v32 = vshll.u32 %v5230_v47, 16 }
 0x342   : > { %6555 = vmatmul.bf16.gmra.mxu0 %v10645_v63  ;;  %v5545_v63 = vrot.slane %v5544_v9, 4  ;;  %v6017_v23 = vsel %vm11195_vm7, %v10042_v57, %v6016_v51 }
 0x343   : > { %5815 = vmatmul.bf16.gmra.mxu2 %v5683_v37  ;;  %v5534_v13 = vor.u32 %v5533_v22, %v5530_v36  ;;  %v6747_v36 = vshrl.u32 %v13356_v62, 16  ;;  %v5166_v22 = vadd.f32 %v13116_v60, %v12981_v20  ;;  %v6734_v20 = vshrl.u32 %v6622_v45, 16 }
 0x344   : > { %v6197_v53 = vpop.f32.mrf.mxu3  ;;  %7187 = vmatmul.bf16.gmra.mxu1 %v7095_v28  ;;  %v5550_v51 = vsel %vm10960_vm4, %v5545_v63, %v5549_v4  ;;  %v6023_v4 = vrot.slane %v13310_v19, 5  ;;  %v5557_v3 = vrot.slane %v5555_v32, 5  ;;  %v5167_v32 = vadd.f32 %v13116_v60, %v13007_v56 }
 0x345   : > { %v13349_v29 = vadd.f32 %v6197_v53, %v5845_v40  ;;  %v6020_v40 = vsel %vm11195_vm7, %v6018_v15, %v6019_v2  ;;  %v13362_v53 = vld [vmem:[#allocation2 + $0xa0] sm:$0xf]  ;;  %v6743_v15 = vshll.u32 %v13356_v62, 16  ;;  %v6732_v2 = vsel %vm10960_vm4, %v6727_v6, %v6731_v44 }
 0x346   : > { %v5776_v10 = vpop.f32.mrf.mxu2  ;;  %v6089_v9 = vunpack.c.l.b16 %v6020_v40  ;;  %v5561_v54 = vshll.u32 %v13362_v53, 16  ;;  %v5565_v57 = vshrl.u32 %v13362_v53, 16  ;;  %v6737_v40 = vshll.u32 %v6622_v45, 16 }
 0x347   : > { %14573 = vst [vmem:[#allocation12_spill] sm:$0xff] %v13349_v29  ;;  %v5847_v37 = vadd.f32 %v5776_v10, %v5165_v27  ;;  %v13360_v28 = vpop.f32.mrf.mxu0  ;;  %v5535_v10 = vrot.slane %v5534_v13, 4  ;;  %v6722_v13 = vsel %vm10960_vm4, %v6717_v49, %v13334_v58  ;;  %v13392_v63 = vrot.slane %v6743_v15, 5 }
 0x348   : > { %14574 = vst [vmem:[#allocation14_spill] sm:$0xff] %v13360_v28  ;;  %v6088_v28 = vunpack.c.l.b16 %v6017_v23  ;;  %v5665_v24 = vunpack.c.l.b16 %v5550_v51  ;;  %v7067_v23 = vunpack.c.l.b16 %v6732_v2  ;;  %v5567_v7 = vrot.slane %v5565_v57, 4  ;;  %v13403_v2 = vld [vmem:[#allocation2 + $0xa4] sm:$0x1] }
 0x349   : > { %v13367_v21 = vpop.f32.mrf.mxu1  ;;  %v5540_v6 = vsel %vm10960_vm4, %v5535_v10, %v13337_v48  ;;  %v7066_v29 = vunpack.c.l.b16 %v6722_v13  ;;  %v5168_v56 = vadd.f32 %v13116_v60, %v13029_v38 }
 0x34a   : > { %v6109_v44 = vpack.c.b16 %v6089_v9, %v6088_v28  ;;  %v5664_v10 = vunpack.c.l.b16 %v5540_v6  ;;  %v10646_v28 = vld [vmem:[#allocation2 + $0x9c] sm:$0xff]  ;;  %v6736_v9 = vrot.slane %v6734_v20, 4 }
 0x34b   : > { %v7096_v49 = vpack.c.b16 %v7067_v23, %v7066_v29  ;;  %v10703_v29 = vld [vmem:[%s14507_s3 + $0x1e8] sm:$0xff] }
 0x34c   : > { %v6199_v27 = vpop.f32.mrf.mxu3  ;;  %v5684_v19 = vpack.c.b16 %v5665_v24, %v5664_v10  ;;  %8599 = vmatpush.bf16.msra.mxu0 %v10703_v29  ;;  %v10711_v23 = vld [vmem:[%s14507_s3 + $0x228] sm:$0xff] }
 0x34d   : > { %v13381_v8 = vadd.f32 %v6199_v27, %v5846_v18  ;;  %v6749_v18 = vrot.slane %v6747_v36, 4  ;;  %v5552_v27 = vshrl.u32 %v5230_v47, 16  ;;  %v13401_v36 = vld [vmem:[#allocation2 + $0x38] sm:$0x1]  ;;  %v6739_v47 = vrot.slane %v6737_v40, 5  ;;  %9025 = vmatpush.bf16.msra.mxu1 %v10711_v23 }
 0x34e   : > { %v5778_v45 = vpop.f32.mrf.mxu2  ;;  %v6753_v20 = vshll.u32 %v13401_v36, 16  ;;  %v6026_v40 = vrot.slane %v13345_v30, 5 }
 0x34f   : > { %14575 = vst [vmem:[#allocation13_spill] sm:$0xff] %v13381_v8  ;;  %v13395_v8 = vrot.slane %v5561_v54, 5  ;;  %v5848_v48 = vadd.f32 %v5778_v45, %v5166_v22  ;;  %v13399_v15 = vpop.f32.mrf.mxu0  ;;  %v6750_v51 = vor.u32 %v6749_v18, %v13392_v63  ;;  %v6025_v22 = vrot.slane %v6023_v4, 4 }
 0x350   : > { %14576 = vst [vmem:[#allocation15_spill] sm:$0xff] %v13399_v15  ;;  %v5554_v57 = vrot.slane %v5552_v27, 4  ;;  %v5571_v18 = vshll.u32 %v13403_v2, 16  ;;  %v6740_v24 = vor.u32 %v6739_v47, %v6736_v9 }
 0x351   : > { %6241 = vmatmul.bf16.gmra.mxu3 %v6109_v44  ;;  %v13397_v58 = vpop.f32.mrf.mxu1  ;;  %v5568_v6 = vor.u32 %v5567_v7, %v13395_v8  ;;  %v5885_v44 = vld [vmem:[#allocation2 + $0x90] sm:$0xe]  ;;  %v6751_v7 = vrot.slane %v6750_v51, 4  ;;  %v6027_v10 = vsel %vm11195_vm7, %v6025_v22, %v6026_v40 }
 0x352   : > { %6560 = vmatmul.bf16.gmra.mxu0 %v10646_v28  ;;  %v10043_v27 = vrot.slane %v5885_v44, 9  ;;  %v5558_v28 = vor.u32 %v5557_v3, %v5554_v57  ;;  %v5573_v51 = vrot.slane %v5571_v18, 5  ;;  %v6625_v44 = vld [vmem:[#allocation2 + $0x3c] sm:$0xf]  ;;  %v6091_v15 = vunpack.c.l.b16 %v6027_v10 }
 0x353   : > { %5820 = vmatmul.bf16.gmra.mxu2 %v5684_v19  ;;  %v5569_v30 = vrot.slane %v5568_v6, 4  ;;  %v6741_v22 = vrot.slane %v6740_v24, 4  ;;  %v6761_v10 = vshll.u32 %v6625_v44, 16 }
 0x354   : > { %v6202_v54 = vpop.f32.mrf.mxu3  ;;  %7192 = vmatmul.bf16.gmra.mxu1 %v7096_v49  ;;  %v6755_v49 = vrot.slane %v6753_v20, 5  ;;  %v6024_v47 = vsel %vm11195_vm7, %v10043_v27, %v6023_v4  ;;  %v5559_v40 = vrot.slane %v5558_v28, 4 }
 0x355   : > { %v13407_v13 = vadd.f32 %v6202_v54, %v5847_v37  ;;  %v6626_v37 = vld [vmem:[#allocation2 + $0x40] sm:$0xf]  ;;  %v13422_v54 = vld [vmem:[#allocation2 + $0xac] sm:$0xf]  ;;  %v5574_v38 = vsel %vm10960_vm4, %v5569_v30, %v5573_v51  ;;  %v6090_v23 = vunpack.c.l.b16 %v6024_v47  ;;  %v6746_v24 = vsel %vm10960_vm4, %v6741_v22, %v13392_v63 }
 0x356   : > { %v5781_v45 = vpop.f32.mrf.mxu2  ;;  %v6767_v29 = vshll.u32 %v6626_v37, 16  ;;  %v6756_v57 = vsel %vm10960_vm4, %v6751_v7, %v6755_v49  ;;  %v6771_v3 = vshrl.u32 %v6626_v37, 16  ;;  %v5589_v4 = vshrl.u32 %v13422_v54, 16  ;;  %v5233_v7 = vld [vmem:[#allocation2 + $0xa8] sm:$0xf] }
 0x357   : > { %14577 = vst [vmem:[#allocation16_spill] sm:$0xff] %v13407_v13  ;;  %v5849_v19 = vadd.f32 %v5781_v45, %v5167_v32  ;;  %v13432_v6 = vpop.f32.mrf.mxu0  ;;  %v5585_v32 = vshll.u32 %v13422_v54, 16  ;;  %v6758_v37 = vshrl.u32 %v6625_v44, 16  ;;  %v5564_v45 = vsel %vm10960_vm4, %v5559_v40, %v13395_v8  ;;  %v10647_v44 = vld [vmem:[#allocation2 + $0xa8] sm:$0xff] }
 0x358   : > { %14578 = vst [vmem:[#allocation3_spill] sm:$0xff] %v13432_v6  ;;  %v7069_v27 = vunpack.c.l.b16 %v6756_v57  ;;  %v13446_v28 = vrot.slane %v6767_v29, 5  ;;  %v6110_v30 = vpack.c.b16 %v6091_v15, %v6090_v23  ;;  %v5667_v49 = vunpack.c.l.b16 %v5574_v38  ;;  %v6627_v29 = vld [vmem:[#allocation2 + $0x44] sm:$0x1]  ;;  %v6628_v40 = vld [vmem:[#allocation2 + $0x48] sm:$0xf] }
 0x359   : > { %v13426_v9 = vpop.f32.mrf.mxu1  ;;  %v6773_v51 = vrot.slane %v6771_v3, 4  ;;  %v5579_v6 = vshll.u32 %v5233_v7, 16  ;;  %v5591_v63 = vrot.slane %v5589_v4, 4  ;;  %v5666_v13 = vunpack.c.l.b16 %v5564_v45  ;;  %v13455_v3 = vld [vmem:[#allocation2 + $0xb0] sm:$0x1]  ;;  %v10702_v4 = vld [vmem:[%s14507_s3 + $0x1e0] sm:$0xff] }
 0x35a   : > { %v7068_v8 = vunpack.c.l.b16 %v6746_v24  ;;  %v6760_v15 = vrot.slane %v6758_v37, 4  ;;  %v6763_v23 = vrot.slane %v6761_v10, 5  ;;  %v5886_v10 = vld [vmem:[#allocation2 + $0x9c] sm:$0xe]  ;;  %8600 = vmatpush.bf16.msra.mxu0 %v10702_v4 }
 0x35b   : > { %v5685_v38 = vpack.c.b16 %v5667_v49, %v5666_v13  ;;  %v5581_v45 = vrot.slane %v5579_v6, 5  ;;  %v6782_v49 = vshrl.u32 %v6628_v40, 16  ;;  %v10669_v6 = vld [vmem:[%s14507_s3 + $0x158] sm:$0xff] }
 0x35c   : > { %v6204_v20 = vpop.f32.mrf.mxu3 }
 0x35d   : > { %v13438_v18 = vadd.f32 %v6204_v20, %v5848_v48  ;;  %v6030_v48 = vrot.slane %v13362_v53, 5  ;;  %v5576_v20 = vshrl.u32 %v5233_v7, 16  ;;  %v7097_v53 = vpack.c.b16 %v7069_v27, %v7068_v8 }
 0x35e   : > { %v5783_v47 = vpop.f32.mrf.mxu2  ;;  %v5595_v8 = vshll.u32 %v13455_v3, 16  ;;  %v6784_v42 = vrot.slane %v6782_v49, 4 }
 0x35f   : > { %14579 = vst [vmem:[#allocation17_spill] sm:$0xff] %v13438_v18  ;;  %v13449_v18 = vrot.slane %v5585_v32, 5  ;;  %v13451_v22 = vadd.f32 %v5783_v47, %v5168_v56  ;;  %v6774_v32 = vor.u32 %v6773_v51, %v13446_v28  ;;  %v10670_v56 = vld [vmem:[%s14507_s3 + $0x160] sm:$0xff]  ;;  %v6032_v7 = vrot.slane %v6030_v48, 4  ;;  %v13467_v51 = vpop.f32.mrf.mxu0 }
 0x360   : > { %v5578_v37 = vrot.slane %v5576_v20, 4  ;;  %14582 = vst [vmem:[#allocation6_spill] sm:$0xff] %v13467_v51  ;;  %v6033_v47 = vrot.slane %v13403_v2, 5  ;;  %7603 = vmatpush.bf16.msra.mxu2 %v10670_v56  ;;  %v5169_v20 = vadd.f32 %v13116_v60, %v13055_v41 }
 0x361   : > { %6246 = vmatmul.bf16.gmra.mxu3 %v6110_v30  ;;  %v13453_v57 = vpop.f32.mrf.mxu1  ;;  %v5592_v13 = vor.u32 %v5591_v63, %v13449_v18  ;;  %v6777_v30 = vshll.u32 %v6627_v29, 16  ;;  %v6764_v63 = vor.u32 %v6763_v23, %v6760_v15  ;;  %v6775_v29 = vrot.slane %v6774_v32, 4 }
 0x362   : > { %14580 = vst [vmem:[#allocation18_spill] sm:$0xff] %v13453_v57  ;;  %6565 = vmatmul.bf16.gmra.mxu0 %v10647_v44  ;;  %v6785_v44 = vshll.u32 %v6628_v40, 16  ;;  %v6034_v56 = vsel %vm11195_vm7, %v6032_v7, %v6033_v47  ;;  %v5582_v40 = vor.u32 %v5581_v45, %v5578_v37  ;;  %v5597_v15 = vrot.slane %v5595_v8, 5 }
 0x363   : > { %5825 = vmatmul.bf16.gmra.mxu2 %v5685_v38  ;;  %v6629_v38 = vld [vmem:[#allocation2 + $0x4c] sm:$0xf]  ;;  %v5593_v4 = vrot.slane %v5592_v13, 4  ;;  %v6779_v51 = vrot.slane %v6777_v30, 5  ;;  %v6765_v7 = vrot.slane %v6764_v63, 4  ;;  %v10668_v13 = vld [vmem:[%s14507_s3 + $0x150] sm:$0xff] }
 0x364   : > { %v6207_v24 = vpop.f32.mrf.mxu3  ;;  %7197 = vmatmul.bf16.gmra.mxu1 %v7097_v53  ;;  %v10044_v53 = vrot.slane %v5886_v10, 9  ;;  %v6787_v23 = vrot.slane %v6785_v44, 5  ;;  %v6791_v32 = vshll.u32 %v6629_v38, 16  ;;  %7604 = vmatpush.bf16.msra.mxu2 %v10669_v6  ;;  %v6093_v10 = vunpack.c.l.b16 %v6034_v56  ;;  %v10700_v30 = vld [vmem:[%s14507_s3 + $0x1d0] sm:$0xff] }
 0x365   : > { %v13465_v27 = vadd.f32 %v6207_v24, %v5849_v19  ;;  %v10701_v19 = vld [vmem:[%s14507_s3 + $0x1d8] sm:$0xff]  ;;  %v6780_v37 = vsel %vm10960_vm4, %v6775_v29, %v6779_v51  ;;  %v6795_v45 = vshrl.u32 %v6629_v38, 16  ;;  %v5583_v49 = vrot.slane %v5582_v40, 4  ;;  %v5236_v63 = vld [vmem:[#allocation2 + $0xb4] sm:$0xf]  ;;  %v10694_v29 = vld [vmem:[%s14507_s3 + $0x1a0] sm:$0xff] }
 0x366   : > { %v5786_v2 = vpop.f32.mrf.mxu2  ;;  %v6031_v41 = vsel %vm11195_vm7, %v10044_v53, %v6030_v48  ;;  %8601 = vmatpush.bf16.msra.mxu0 %v10701_v19  ;;  %v5598_v47 = vsel %vm10960_vm4, %v5593_v4, %v5597_v15  ;;  %v5170_v51 = vadd.f32 %v13116_v60, %v13082_v34  ;;  %v6788_v53 = vor.u32 %v6787_v23, %v6784_v42  ;;  %v10667_v60 = vld [vmem:[%s14507_s3 + $0x148] sm:$0xff] }
 0x367   : > { %14581 = vst [vmem:[#allocation5_spill] sm:$0xff] %v13465_v27  ;;  %v13481_v24 = vadd.f32 %v5786_v2, %v5169_v20  ;;  %v13483_v27 = vld [vmem:[#allocation2 + $0xb8] sm:$0xf]  ;;  %v6092_v19 = vunpack.c.l.b16 %v6031_v41  ;;  %v6770_v20 = vsel %vm10960_vm4, %v6765_v7, %v13446_v28  ;;  %v5588_v38 = vsel %vm10960_vm4, %v5583_v49, %v13449_v18  ;;  %v10699_v28 = vld [vmem:[%s14507_s3 + $0x1c8] sm:$0xff]  ;;  %7918 = vmatpush.bf16.msra.mxu3 %v10694_v29  ;;  %v13526_v42 = vpop.f32.mrf.mxu0  ;;  %v10666_v29 = vld [vmem:[%s14507_s3 + $0x140] sm:$0xff] }
 0x368   : > { %v5609_v8 = vshll.u32 %v13483_v27, 16  ;;  %v5613_v44 = vshrl.u32 %v13483_v27, 16  ;;  %v7071_v2 = vunpack.c.l.b16 %v6780_v37  ;;  %v13515_v34 = vrot.slane %v6791_v32, 5  ;;  %7605 = vmatpush.bf16.msra.mxu2 %v10668_v13  ;;  %14585 = vst [vmem:[#allocation22_spill] sm:$0xff] %v13526_v42  ;;  %v10648_v49 = vld [vmem:[#allocation2 + $0xb4] sm:$0xff] }
 0x369   : > { %v13485_v55 = vpop.f32.mrf.mxu1  ;;  %v6111_v56 = vpack.c.b16 %v6093_v10, %v6092_v19  ;;  %v5669_v40 = vunpack.c.l.b16 %v5598_v47  ;;  %v14512_v18 = vrot.slane %v13422_v54, 5  ;;  %v6797_v4 = vrot.slane %v6795_v45, 4  ;;  %v10693_v10 = vld [vmem:[%s14507_s3 + $0x198] sm:$0xff]  ;;  %v6630_v47 = vld [vmem:[#allocation2 + $0x50] sm:$0x1] }
 0x36a   : > { %14583 = vst [vmem:[#allocation20_spill] sm:$0xff] %v13485_v55  ;;  %8602 = vmatpush.bf16.msra.mxu0 %v10700_v30  ;;  %v5600_v15 = vshrl.u32 %v5236_v63, 16  ;;  %v5603_v23 = vshll.u32 %v5236_v63, 16  ;;  %v13528_v32 = vrot.slane %v5609_v8, 5  ;;  %v5615_v7 = vrot.slane %v5613_v44, 4 }
 0x36b   : > { %v5668_v13 = vunpack.c.l.b16 %v5588_v38  ;;  %v7070_v30 = vunpack.c.l.b16 %v6770_v20  ;;  %v6631_v8 = vld [vmem:[#allocation2 + $0x54] sm:$0xf]  ;;  %v13540_v63 = vrot.slane %v6788_v53, 4  ;;  %v6798_v20 = vor.u32 %v6797_v4, %v13515_v34  ;;  %7919 = vmatpush.bf16.msra.mxu3 %v10693_v10  ;;  %v10698_v38 = vld [vmem:[%s14507_s3 + $0x1c0] sm:$0xff] }
 0x36c   : > { %v6209_v48 = vpop.f32.mrf.mxu3  ;;  %7606 = vmatpush.bf16.msra.mxu2 %v10667_v60  ;;  %v5616_v53 = vor.u32 %v5615_v7, %v13528_v32  ;;  %v13555_v4 = vld [vmem:[%s14508_s4] ss:$0 sm:$0xff]  ;;  %v6801_v10 = vshll.u32 %v6630_v47, 16 }
 0x36d   : > { %v13504_v6 = vadd.f32 %v6209_v48, %v13451_v22  ;;  %v13523_v22 = vld [vmem:[#allocation2 + $0x18] sm:$0xf]  ;;  %v5686_v19 = vpack.c.b16 %v5669_v40, %v5668_v13  ;;  %v7098_v44 = vpack.c.b16 %v7071_v2, %v7070_v30  ;;  %v6039_v2 = vrot.slane %v14512_v18, 4  ;;  %v5887_v30 = vld [vmem:[#allocation2 + $0xa8] sm:$0xe]  ;;  %v10710_v7 = vld [vmem:[%s14507_s3 + $0x220] sm:$0xff] }
 0x36e   : > { %v5788_v41 = vpop.f32.mrf.mxu2  ;;  %v8085_v45 = vshrl.u32 %v13523_v22, 16  ;;  %8603 = vmatpush.bf16.msra.mxu0 %v10699_v28  ;;  %v5602_v28 = vrot.slane %v5600_v15, 4  ;;  %v6632_v40 = vld [vmem:[#allocation2 + $0x58] sm:$0xf]  ;;  %v10692_v15 = vld [vmem:[%s14507_s3 + $0x190] sm:$0xff]  ;;  %v6799_v47 = vrot.slane %v6798_v20, 4  ;;  %9026 = vmatpush.bf16.msra.mxu1 %v10710_v7 }
 0x36f   : > { %14584 = vst [vmem:[#allocation21_spill] sm:$0xff] %v13504_v6  ;;  %v13530_v37 = vadd.f32 %v5788_v41, %v5170_v51  ;;  %v13538_v51 = vld [vmem:[#allocation2 + $0xbc] sm:$0x1]  ;;  %v5171_v41 = vadd.f32 %v13555_v4, %v13125_v11  ;;  %v6819_v18 = vshrl.u32 %v6632_v40, 16  ;;  %7920 = vmatpush.bf16.msra.mxu3 %v10692_v15  ;;  %v13578_v20 = vpop.f32.mrf.mxu0 }
 0x370   : > { %v5619_v11 = vshll.u32 %v13538_v51, 16  ;;  %7607 = vmatpush.bf16.msra.mxu2 %v10666_v29  ;;  %v6803_v29 = vrot.slane %v6801_v10, 5 }
 0x371   : > { %6251 = vmatmul.bf16.gmra.mxu3 %v6111_v56  ;;  %v13536_v48 = vpop.f32.mrf.mxu1  ;;  %v5605_v56 = vrot.slane %v5603_v23, 5  ;;  %v13565_v23 = vrot.slane %v8085_v45, 4  ;;  %v8088_v45 = vshll.u32 %v13523_v22, 16  ;;  %v14588_v22 = vrot.slane %v13422_v54, 5 }
 0x372   : > { %14586 = vst [vmem:[#allocation23_spill] sm:$0xff] %v13536_v48  ;;  %6570 = vmatmul.bf16.gmra.mxu0 %v10648_v49  ;;  %v6040_v49 = vrot.slane %v13455_v3, 5  ;;  %v5617_v48 = vrot.slane %v5616_v53, 4  ;;  %v6794_v53 = vsel %vm10960_vm4, %v13540_v63, %v13515_v34  ;;  %v6821_v10 = vrot.slane %v6819_v18, 4  ;;  %v10690_v18 = vld [vmem:[%s14507_s3 + $0x180] sm:$0xff] }
 0x373   : > { %5830 = vmatmul.bf16.gmra.mxu2 %v5686_v19  ;;  %8604 = vmatpush.bf16.msra.mxu0 %v10698_v38  ;;  %v6809_v19 = vshll.u32 %v6631_v8, 16  ;;  %v5606_v3 = vor.u32 %v5605_v56, %v5602_v28  ;;  %v5172_v63 = vadd.f32 %v13555_v4, %v13165_v25 }
 0x374   : > { %v6212_v60 = vpop.f32.mrf.mxu3  ;;  %7202 = vmatmul.bf16.gmra.mxu1 %v7098_v44  ;;  %v8037_v44 = vld [vmem:[#allocation2 + $0x1c] sm:$0xf]  ;;  %v6041_v6 = vsel %vm11195_vm7, %v6039_v2, %v6040_v49  ;;  %v5621_v2 = vrot.slane %v5619_v11, 5  ;;  %v8090_v49 = vrot.slane %v8088_v45, 5 }
 0x375   : > { %v13560_v13 = vadd.f32 %v6212_v60, %v13481_v24  ;;  %v6806_v24 = vshrl.u32 %v6631_v8, 16  ;;  %v6815_v60 = vshll.u32 %v6632_v40, 16  ;;  %v8094_v38 = vshll.u32 %v8037_v44, 16  ;;  %v10691_v8 = vld [vmem:[%s14507_s3 + $0x188] sm:$0xff] }
 0x376   : > { %v5791_v42 = vpop.f32.mrf.mxu2  ;;  %v8098_v57 = vshrl.u32 %v8037_v44, 16  ;;  %v6811_v56 = vrot.slane %v6809_v19, 5  ;;  %7921 = vmatpush.bf16.msra.mxu3 %v10691_v8  ;;  %v5607_v7 = vrot.slane %v5606_v3, 4  ;;  %v5622_v54 = vsel %vm10960_vm4, %v5617_v48, %v5621_v2  ;;  %v8038_v8 = vld [vmem:[#allocation2 + $0x20] sm:$0x1] }
 0x377   : > { %14587 = vst [vmem:[#allocation24_spill] sm:$0xff] %v13560_v13  ;;  %v10045_v13 = vrot.slane %v5887_v30, 9  ;;  %v5853_v55 = vadd.f32 %v5791_v42, %v5171_v41  ;;  %v6808_v28 = vrot.slane %v6806_v24, 4  ;;  %v6095_v42 = vunpack.c.l.b16 %v6041_v6  ;;  %v6633_v24 = vld [vmem:[#allocation2 + $0x5c] sm:$0x1] }
 0x378   : > { %v6817_v41 = vrot.slane %v6815_v60, 5  ;;  %v13597_v19 = vrot.slane %v8094_v38, 5  ;;  %v8100_v34 = vrot.slane %v8098_v57, 4  ;;  %v5612_v48 = vsel %vm10960_vm4, %v5607_v7, %v13528_v32 }
 0x379   : > { %v13580_v40 = vpop.f32.mrf.mxu1  ;;  %v6038_v30 = vsel %vm11195_vm7, %v10045_v13, %v14588_v22  ;;  %v6804_v13 = vsel %vm10960_vm4, %v6799_v47, %v6803_v29  ;;  %v6812_v44 = vor.u32 %v6811_v56, %v6808_v28  ;;  %v7072_v29 = vunpack.c.l.b16 %v6794_v53  ;;  %v10649_v28 = vld [vmem:[#allocation2 + $0xc0] sm:$0xff]  ;;  %v13612_v53 = vpop.f32.mrf.mxu0 }
 0x37a   : > { %v6094_v6 = vunpack.c.l.b16 %v6038_v30  ;;  %v7073_v60 = vunpack.c.l.b16 %v6804_v13  ;;  %v6822_v45 = vor.u32 %v6821_v10, %v6817_v41  ;;  %7922 = vmatpush.bf16.msra.mxu3 %v10690_v18  ;;  %v6044_v57 = vrot.slane %v13483_v27, 5  ;;  %14589 = vst [vmem:[#allocation25_spill] sm:$0xff] %v13612_v53 }
 0x37b   : > { %v6825_v38 = vshll.u32 %v6633_v24, 16  ;;  %v5670_v30 = vunpack.c.l.b16 %v5612_v48  ;;  %v8091_v25 = vor.u32 %v8090_v49, %v13565_v23  ;;  %v8101_v2 = vor.u32 %v8100_v34, %v13597_v19  ;;  %v5888_v49 = vld [vmem:[#allocation2 + $0xb4] sm:$0xe] }
 0x37c   : > { %v6214_v15 = vpop.f32.mrf.mxu3  ;;  %v6112_v47 = vpack.c.b16 %v6095_v42, %v6094_v6  ;;  %v6813_v56 = vrot.slane %v6812_v44, 4  ;;  %v7099_v10 = vpack.c.b16 %v7073_v60, %v7072_v29  ;;  %v8104_v7 = vshll.u32 %v8038_v8, 16  ;;  %v8039_v6 = vld [vmem:[#allocation2 + $0x24] sm:$0xf] }
 0x37d   : > { %v13595_v11 = vadd.f32 %v6214_v15, %v13530_v37  ;;  %v5671_v37 = vunpack.c.l.b16 %v5622_v54  ;;  %v6823_v15 = vrot.slane %v6822_v45, 4  ;;  %v6046_v54 = vrot.slane %v6044_v57, 4  ;;  %v7296_v45 = vld [vmem:[#allocation2 + $0x18] sm:$0xe] }
 0x37e   : > { %v5793_v3 = vpop.f32.mrf.mxu2  ;;  %v6818_v13 = vsel %vm10960_vm4, %v6813_v56, %v6817_v41  ;;  %v6827_v24 = vrot.slane %v6825_v38, 5  ;;  %v8092_v34 = vrot.slane %v8091_v25, 4  ;;  %v8102_v18 = vrot.slane %v8101_v2, 4 }
 0x37f   : > { %v5854_v22 = vadd.f32 %v5793_v3, %v5172_v63  ;;  %v5687_v42 = vpack.c.b16 %v5671_v37, %v5670_v30  ;;  %v5173_v63 = vadd.f32 %v13555_v4, %v13206_v0  ;;  %v5174_v48 = vadd.f32 %v13555_v4, %v13243_v31  ;;  %v6635_v31 = vld [vmem:[#allocation2 + $0x64] sm:$0xf] }
 0x380   : > { %v6047_v44 = vrot.slane %v13538_v51, 5  ;;  %v6828_v41 = vsel %vm10960_vm4, %v6823_v15, %v6827_v24  ;;  %v8097_v37 = vsel %vm10960_vm4, %v8092_v34, %v13597_v19  ;;  %v8106_v60 = vrot.slane %v8104_v7, 5 }
 0x381   : > { %6256 = vmatmul.bf16.gmra.mxu3 %v6112_v47  ;;  %v13610_v32 = vpop.f32.mrf.mxu1  ;;  %v8040_v47 = vld [vmem:[#allocation2 + $0x28] sm:$0xf]  ;;  %v10046_v29 = vrot.slane %v5888_v49, 9  ;;  %v7368_v51 = vrot.slane %v13233_v14, 5  ;;  %v8109_v38 = vshrl.u32 %v8039_v6, 16  ;;  %v8112_v25 = vshll.u32 %v8039_v6, 16 }
 0x382   : > { %6575 = vmatmul.bf16.gmra.mxu0 %v10649_v28  ;;  %v6048_v0 = vsel %vm11195_vm7, %v6046_v54, %v6047_v44  ;;  %v8107_v30 = vsel %vm10960_vm4, %v8102_v18, %v8106_v60  ;;  %v8118_v2 = vshll.u32 %v8040_v47, 16  ;;  %v7075_v56 = vunpack.c.l.b16 %v6828_v41  ;;  %v7302_v18 = vld [vmem:[#allocation2 + $0x60] sm:$0xe]  ;;  %v6636_v60 = vld [vmem:[#allocation2 + $0x68] sm:$0x1] }
 0x383   : > { %5835 = vmatmul.bf16.gmra.mxu2 %v5687_v42  ;;  %v6045_v19 = vsel %vm11195_vm7, %v10046_v29, %v6044_v57  ;;  %v10256_v42 = vrot.slane %v7296_v45, 9  ;;  %v6097_v15 = vunpack.c.l.b16 %v6048_v0  ;;  %v8485_v7 = vunpack.c.l.b16 %v8097_v37 }
 0x384   : > { %v6217_v27 = vpop.f32.mrf.mxu3  ;;  %7207 = vmatmul.bf16.gmra.mxu1 %v7099_v10  ;;  %v8122_v10 = vshrl.u32 %v8040_v47, 16  ;;  %v6839_v54 = vshll.u32 %v6635_v31, 16  ;;  %v6843_v14 = vshrl.u32 %v6635_v31, 16  ;;  %v8486_v49 = vunpack.c.l.b16 %v8107_v30  ;;  %v13644_v47 = vpop.f32.mrf.mxu0 }
 0x385   : > { %v13616_v23 = vadd.f32 %v6217_v27, %v5853_v55  ;;  %v13625_v55 = vunpack.c.l.b16 %v6818_v13  ;;  %v6634_v27 = vld [vmem:[#allocation2 + $0x60] sm:$0xf]  ;;  %v7370_v24 = vrot.slane %v7368_v51, 4  ;;  %v7371_v34 = vrot.slane %v13285_v39, 5  ;;  %14590 = vst [vmem:[#allocation26_spill] sm:$0xff] %v13644_v47 }
 0x386   : > { %v5796_v3 = vpop.f32.mrf.mxu2  ;;  %v8111_v6 = vrot.slane %v8109_v38, 4  ;;  %v6096_v44 = vunpack.c.l.b16 %v6045_v19  ;;  %v8114_v57 = vrot.slane %v8112_v25, 5  ;;  %v13642_v41 = vrot.slane %v8118_v2, 5 }
 0x387   : > { %v5855_v8 = vadd.f32 %v5796_v3, %v5173_v63  ;;  %v6830_v37 = vshrl.u32 %v6634_v27, 16  ;;  %v6833_v45 = vshll.u32 %v6634_v27, 16  ;;  %v8124_v3 = vrot.slane %v8122_v10, 4  ;;  %v8041_v10 = vld [vmem:[#allocation2 + $0x2c] sm:$0x1] }
 0x388   : > { %v7410_v29 = vrot.slane %v6635_v31, 5  ;;  %v6113_v0 = vpack.c.b16 %v6097_v15, %v6096_v44  ;;  %v13646_v30 = vrot.slane %v6839_v54, 5  ;;  %v6845_v53 = vrot.slane %v6843_v14, 4 }
 0x389   : > { %v13635_v28 = vpop.f32.mrf.mxu1  ;;  %v10262_v39 = vrot.slane %v7302_v18, 9  ;;  %v7372_v19 = vsel %vm11195_vm7, %v7370_v24, %v7371_v34  ;;  %v7413_v2 = vrot.slane %v6636_v60, 5  ;;  %v8517_v47 = vpack.c.b16 %v8486_v49, %v8485_v7 }
 0x38a   : > { %v7412_v25 = vrot.slane %v7410_v29, 4  ;;  %v7369_v31 = vsel %vm11195_vm7, %v10256_v42, %v7368_v51  ;;  %v6832_v54 = vrot.slane %v6830_v37, 4  ;;  %v7491_v24 = vunpack.c.l.b16 %v7372_v19  ;;  %v6638_v19 = vld [vmem:[#allocation2 + $0x70] sm:$0xf] }
 0x38b   : > { %v7411_v15 = vsel %vm11195_vm7, %v10262_v39, %v7410_v29  ;;  %v8115_v7 = vor.u32 %v8114_v57, %v8111_v6  ;;  %v8128_v51 = vshll.u32 %v8041_v10, 16  ;;  %v7375_v42 = vrot.slane %v13301_v12, 5  ;;  %v8043_v29 = vld [vmem:[#allocation2 + $0x34] sm:$0xf] }
 0x38c   : > { %v6219_v13 = vpop.f32.mrf.mxu3  ;;  %v7414_v14 = vsel %vm11195_vm7, %v7412_v25, %v7413_v2  ;;  %v7502_v18 = vunpack.c.l.b16 %v7411_v15  ;;  %v6849_v37 = vshll.u32 %v6636_v60, 16  ;;  %v5175_v6 = vadd.f32 %v13555_v4, %v13283_v59  ;;  %v13678_v39 = vpop.f32.mrf.mxu0  ;;  %v8042_v15 = vld [vmem:[#allocation2 + $0x30] sm:$0xf] }
 0x38d   : > { %v13640_v63 = vadd.f32 %v6219_v13, %v5854_v22  ;;  %v7100_v22 = vpack.c.b16 %v7075_v56, %v13625_v55  ;;  %v6835_v55 = vrot.slane %v6833_v45, 5  ;;  %v8125_v56 = vor.u32 %v8124_v3, %v13642_v41  ;;  %v7297_v3 = vld [vmem:[#allocation2 + $0x24] sm:$0xe]  ;;  %14591 = vst [vmem:[#allocation27_spill] sm:$0xff] %v13678_v39 }
 0x38e   : > { %v5798_v38 = vpop.f32.mrf.mxu2  ;;  %v7503_v49 = vunpack.c.l.b16 %v7414_v14  ;;  %v7490_v45 = vunpack.c.l.b16 %v7369_v31  ;;  %v8116_v60 = vrot.slane %v8115_v7, 4  ;;  %v10257_v25 = vrot.slane %v7297_v3, 9  ;;  %v6637_v7 = vld [vmem:[#allocation2 + $0x6c] sm:$0xf] }
 0x38f   : > { %v13651_v13 = vadd.f32 %v5798_v38, %v5174_v48  ;;  %v6846_v48 = vor.u32 %v6845_v53, %v13646_v30  ;;  %v10709_v53 = vld [vmem:[%s14507_s3 + $0x218] sm:$0xff]  ;;  %v6836_v57 = vor.u32 %v6835_v55, %v6832_v54  ;;  %v7377_v59 = vrot.slane %v7375_v42, 4 }
 0x390   : > { %v13672_v12 = vpack.c.b16 %v7503_v49, %v7502_v18  ;;  %9027 = vmatpush.bf16.msra.mxu1 %v10709_v53  ;;  %v7378_v2 = vrot.slane %v13343_v46, 5  ;;  %v6851_v10 = vrot.slane %v6849_v37, 5  ;;  %v8142_v54 = vshll.u32 %v8043_v29, 16  ;;  %v7303_v53 = vld [vmem:[#allocation2 + $0x6c] sm:$0xe] }
 0x391   : > { %6261 = vmatmul.bf16.gmra.mxu3 %v6113_v0  ;;  %v13657_v27 = vpop.f32.mrf.mxu1  ;;  %v6847_v0 = vrot.slane %v6846_v48, 4  ;;  %v7376_v48 = vsel %vm11195_vm7, %v10257_v25, %v7375_v42  ;;  %v6863_v49 = vshll.u32 %v6638_v19, 16  ;;  %v8136_v3 = vshll.u32 %v8042_v15, 16 }
 0x392   : > { %8605 = vmatmul.bf16.vlgmr.msra.gmra.mxu0 %v8517_v47  ;;  %v8126_v47 = vrot.slane %v8125_v56, 4  ;;  %v6837_v56 = vrot.slane %v6836_v57, 4  ;;  %v7379_v37 = vsel %vm11195_vm7, %v7377_v59, %v7378_v2  ;;  %v10263_v2 = vrot.slane %v7303_v53, 9 }
 0x393   : > { %7608 = vmatmul.bf16.vlgmr.msra.gmra.mxu2 %v13277_v43  ;;  %v13676_v43 = vpack.c.b16 %v7491_v24, %v7490_v45  ;;  %v8146_v24 = vshrl.u32 %v8043_v29, 16  ;;  %v6852_v46 = vsel %vm10960_vm4, %v6847_v0, %v6851_v10  ;;  %v8133_v45 = vshrl.u32 %v8042_v15, 16 }
 0x394   : > { %v6222_v34 = vpop.f32.mrf.mxu3  ;;  %7212 = vmatmul.bf16.gmra.mxu1 %v7100_v22  ;;  %v8130_v22 = vrot.slane %v8128_v51, 5  ;;  %v7417_v51 = vrot.slane %v6638_v19, 5  ;;  %v6842_v42 = vsel %vm10960_vm4, %v6837_v56, %v13646_v30  ;;  %v13704_v29 = vrot.slane %v8142_v54, 5 }
 0x395   : > { %v13664_v44 = vadd.f32 %v6222_v34, %v5855_v8  ;;  %v5176_v8 = vadd.f32 %v13555_v4, %v13314_v61  ;;  %v8121_v61 = vsel %vm10960_vm4, %v8116_v60, %v13642_v41  ;;  %v6867_v34 = vshrl.u32 %v6638_v19, 16  ;;  %v10674_v19 = vld [vmem:[#allocation2 + $0x18] sm:$0xff] }
 0x396   : > { %v5801_v38 = vpop.f32.mrf.mxu2  ;;  %v8131_v14 = vsel %vm10960_vm4, %v8126_v47, %v8130_v22  ;;  %v8487_v18 = vunpack.c.l.b16 %v8121_v61  ;;  %v13702_v47 = vld [vmem:[#allocation2 + $0x74] sm:$0x1]  ;;  %v7077_v0 = vunpack.c.l.b16 %v6852_v46  ;;  %v6854_v60 = vshrl.u32 %v6637_v7, 16  ;;  %v8044_v46 = vld [vmem:[#allocation2 + $0x38] sm:$0x1] }
 0x397   : > { %v13681_v31 = vadd.f32 %v5801_v38, %v5175_v6  ;;  %v8488_v57 = vunpack.c.l.b16 %v8131_v14  ;;  %v6857_v38 = vshll.u32 %v6637_v7, 16  ;;  %v8148_v22 = vrot.slane %v8146_v24, 4  ;;  %v13713_v7 = vpop.f32.mrf.mxu0 }
 0x398   : > { %v13706_v25 = vrot.slane %v6863_v49, 5  ;;  %v6869_v59 = vrot.slane %v6867_v34, 4  ;;  %v7076_v61 = vunpack.c.l.b16 %v6842_v42  ;;  %v8135_v15 = vrot.slane %v8133_v45, 4  ;;  %14593 = vst [vmem:[#allocation29_spill] sm:$0xff] %v13713_v7 }
 0x399   : > { %v13686_v55 = vpop.f32.mrf.mxu1  ;;  %v7420_v30 = vrot.slane %v13702_v47, 5  ;;  %v7492_v54 = vunpack.c.l.b16 %v7376_v48  ;;  %v7493_v14 = vunpack.c.l.b16 %v7379_v37  ;;  %v7418_v24 = vsel %vm11195_vm7, %v10263_v2, %v7417_v51  ;;  %v8045_v37 = vld [vmem:[#allocation2 + $0x3c] sm:$0xf] }
 0x39a   : > { %v7101_v34 = vpack.c.b16 %v7077_v0, %v7076_v61  ;;  %v8518_v53 = vpack.c.b16 %v8488_v57, %v8487_v18  ;;  %v8149_v45 = vor.u32 %v8148_v22, %v13704_v29  ;;  %v6859_v42 = vrot.slane %v6857_v38, 5  ;;  %v13723_v0 = vld [vmem:[#allocation2 + $0x30] sm:$0xe] }
 0x39b   : > { %v6870_v48 = vor.u32 %v6869_v59, %v13706_v25  ;;  %v8152_v7 = vshll.u32 %v8044_v46, 16  ;;  %v7504_v18 = vunpack.c.l.b16 %v7418_v24  ;;  %v5178_v57 = vadd.f32 %v13555_v4, %v13367_v21 }
 0x39c   : > { %v6224_v41 = vpop.f32.mrf.mxu3  ;;  %v6873_v38 = vshll.u32 %v13702_v47, 16  ;;  %v13732_v22 = vpack.c.b16 %v7493_v14, %v7492_v54  ;;  %v8157_v61 = vshrl.u32 %v8045_v37, 16  ;;  %v8150_v46 = vrot.slane %v8149_v45, 4  ;;  %v7304_v54 = vld [vmem:[#allocation2 + $0x78] sm:$0xe] }
 0x39d   : > { %v13697_v6 = vadd.f32 %v6224_v41, %v13651_v13  ;;  %v7419_v13 = vrot.slane %v7417_v51, 4  ;;  %v8138_v41 = vrot.slane %v8136_v3, 5  ;;  %v5177_v51 = vadd.f32 %v13555_v4, %v13341_v35  ;;  %v6641_v35 = vld [vmem:[#allocation2 + $0x7c] sm:$0xf]  ;;  %v6640_v47 = vld [vmem:[#allocation2 + $0x78] sm:$0xf] }
 0x39e   : > { %v5803_v10 = vpop.f32.mrf.mxu2  ;;  %v6871_v21 = vrot.slane %v6870_v48, 4  ;;  %v7424_v14 = vrot.slane %v6641_v35, 5  ;;  %v6881_v39 = vshll.u32 %v6640_v47, 16 }
 0x39f   : > { %14592 = vst [vmem:[#allocation28_spill] sm:$0xff] %v13697_v6  ;;  %v13709_v56 = vadd.f32 %v5803_v10, %v5176_v8  ;;  %v7421_v3 = vsel %vm11195_vm7, %v7419_v13, %v7420_v30  ;;  %v6856_v8 = vrot.slane %v6854_v60, 4  ;;  %v8139_v10 = vor.u32 %v8138_v41, %v8135_v15  ;;  %v8046_v13 = vld [vmem:[#allocation2 + $0x40] sm:$0xf] }
 0x3a0   : > { %v8160_v15 = vshll.u32 %v8045_v37, 16  ;;  %v8166_v59 = vshll.u32 %v8046_v13, 16  ;;  %v8170_v37 = vshrl.u32 %v8046_v13, 16  ;;  %v13752_v13 = vpop.f32.mrf.mxu0 }
 0x3a1   : > { %7923 = vmatmul.bf16.vlgmr.msra.gmra.mxu3 %v10674_v19  ;;  %v13715_v49 = vpop.f32.mrf.mxu1  ;;  %v7505_v19 = vunpack.c.l.b16 %v7421_v3  ;;  %v6860_v30 = vor.u32 %v6859_v42, %v6856_v8  ;;  %v6875_v3 = vrot.slane %v6873_v38, 5  ;;  %v14595_v8 = vrot.slane %v13356_v62, 5  ;;  %14596 = vst [vmem:[#allocation31_spill] sm:$0xff] %v13752_v13 }
 0x3a2   : > { %8610 = vmatmul.bf16.gmra.mxu0 %v8518_v53  ;;  %v8162_v48 = vrot.slane %v8160_v15, 5  ;;  %v10264_v38 = vrot.slane %v7304_v54, 9  ;;  %v8168_v15 = vrot.slane %v8166_v59, 5  ;;  %v6878_v13 = vshrl.u32 %v6640_v47, 16 }
 0x3a3   : > { %7613 = vmatmul.bf16.gmra.mxu2 %v13676_v43  ;;  %v13735_v41 = vpack.c.b16 %v7505_v19, %v7504_v18  ;;  %v8154_v43 = vrot.slane %v8152_v7, 5  ;;  %v7384_v42 = vrot.slane %v14595_v8, 4  ;;  %v8159_v7 = vrot.slane %v8157_v61, 4 }
 0x3a4   : > { %v6227_v2 = vpop.f32.mrf.mxu3  ;;  %7217 = vmatmul.bf16.gmra.mxu1 %v7101_v34  ;;  %v8140_v34 = vrot.slane %v8139_v10, 4  ;;  %v6861_v10 = vrot.slane %v6860_v30, 4  ;;  %v8172_v30 = vrot.slane %v8170_v37, 4 }
 0x3a5   : > { %v13728_v60 = vadd.f32 %v6227_v2, %v13681_v31  ;;  %v13739_v2 = vld [vmem:[#allocation2 + $0x80] sm:$0x1]  ;;  %v8155_v18 = vsel %vm10960_vm4, %v8150_v46, %v8154_v43  ;;  %v6887_v31 = vshll.u32 %v6641_v35, 16  ;;  %v8163_v54 = vor.u32 %v8162_v48, %v8159_v7 }
 0x3a6   : > { %v5806_v24 = vpop.f32.mrf.mxu2  ;;  %v8145_v45 = vsel %vm10960_vm4, %v8140_v34, %v13704_v29  ;;  %v7426_v29 = vrot.slane %v7424_v14, 4  ;;  %v7427_v34 = vrot.slane %v13739_v2, 5  ;;  %v6866_v46 = vsel %vm10960_vm4, %v6861_v10, %v13706_v25 }
 0x3a7   : > { %14594 = vst [vmem:[#allocation30_spill] sm:$0xff] %v13728_v60  ;;  %v5859_v53 = vadd.f32 %v5806_v24, %v5177_v51  ;;  %v6876_v51 = vsel %vm10960_vm4, %v6871_v21, %v6875_v3  ;;  %v6891_v60 = vshrl.u32 %v6641_v35, 16  ;;  %v7425_v21 = vsel %vm11195_vm7, %v10264_v38, %v7424_v14  ;;  %v10675_v3 = vld [vmem:[#allocation2 + $0x24] sm:$0xff] }
 0x3a8   : > { %v8490_v43 = vunpack.c.l.b16 %v8155_v18  ;;  %v7428_v35 = vsel %vm11195_vm7, %v7426_v29, %v7427_v34  ;;  %v7079_v8 = vunpack.c.l.b16 %v6876_v51  ;;  %v8489_v37 = vunpack.c.l.b16 %v8145_v45 }
 0x3a9   : > { %v13741_v19 = vpop.f32.mrf.mxu1  ;;  %v6893_v14 = vrot.slane %v6891_v60, 4  ;;  %v7506_v38 = vunpack.c.l.b16 %v7425_v21  ;;  %v6581_v25 = vadd.f32 %v13123_v26, %v13229_v16  ;;  %v7078_v7 = vunpack.c.l.b16 %v6866_v46 }
 0x3aa   : > { %v8173_v48 = vor.u32 %v8172_v30, %v8168_v15  ;;  %v8519_v18 = vpack.c.b16 %v8490_v43, %v8489_v37  ;;  %v8164_v51 = vrot.slane %v8163_v54, 4  ;;  %v14598_v21 = vrot.slane %v13356_v62, 5  ;;  %v6644_v30 = vld [vmem:[#allocation2 + $0x88] sm:$0xf]  ;;  %v10708_v43 = vld [vmem:[%s14507_s3 + $0x210] sm:$0xff]  ;;  %v13798_v54 = vpop.f32.mrf.mxu0 }
 0x3ab   : > { %v7102_v45 = vpack.c.b16 %v7079_v8, %v7078_v7  ;;  %v14599_v26 = vrot.slane %v13723_v0, 9  ;;  %9028 = vmatpush.bf16.msra.mxu1 %v10708_v43  ;;  %v13809_v7 = vld [vmem:[#allocation2 + $0x8c] sm:$0x1] }
 0x3ac   : > { %v6229_v24 = vpop.f32.mrf.mxu3  ;;  %v8169_v62 = vsel %vm10960_vm4, %v8164_v51, %v8168_v15  ;;  %v8174_v0 = vrot.slane %v8173_v48, 4  ;;  %v7431_v15 = vrot.slane %v6644_v30, 5 }
 0x3ad   : > { %v13756_v61 = vadd.f32 %v6229_v24, %v13709_v56  ;;  %v8047_v56 = vld [vmem:[#allocation2 + $0x44] sm:$0x1]  ;;  %v7507_v24 = vunpack.c.l.b16 %v7428_v35  ;;  %v6883_v35 = vrot.slane %v6881_v39, 5  ;;  %v13780_v16 = vsel %vm11195_vm7, %v14599_v26, %v14598_v21 }
 0x3ae   : > { %v5808_v59 = vpop.f32.mrf.mxu2  ;;  %v8176_v29 = vshll.u32 %v8047_v56, 16  ;;  %v14600_v39 = vrot.slane %v13401_v36, 5  ;;  %v8048_v36 = vld [vmem:[#allocation2 + $0x48] sm:$0xf]  ;;  %v8049_v56 = vld [vmem:[#allocation2 + $0x4c] sm:$0xf]  ;;  %v7494_v37 = vunpack.c.l.b16 %v13780_v16 }
 0x3af   : > { %14597 = vst [vmem:[#allocation32_spill] sm:$0xff] %v13756_v61  ;;  %v13765_v61 = vrot.slane %v6887_v31, 5  ;;  %v5860_v6 = vadd.f32 %v5808_v59, %v5178_v57  ;;  %v13769_v47 = vpack.c.b16 %v7507_v24, %v7506_v38  ;;  %v6880_v31 = vrot.slane %v6878_v13, 4  ;;  %v7305_v38 = vld [vmem:[#allocation2 + $0x84] sm:$0xe] }
 0x3b0   : > { %v13789_v13 = vsel %vm11195_vm7, %v7384_v42, %v14600_v39  ;;  %v5180_v42 = vadd.f32 %v13555_v4, %v13426_v9  ;;  %v8178_v8 = vrot.slane %v8176_v29, 5  ;;  %v8181_v48 = vshrl.u32 %v8048_v36, 16 }
 0x3b1   : > { %7928 = vmatmul.bf16.gmra.mxu3 %v10675_v3  ;;  %v7183_v10 = vpop.f32.mrf.mxu1  ;;  %v6894_v57 = vor.u32 %v6893_v14, %v13765_v61  ;;  %v6884_v3 = vor.u32 %v6883_v35, %v6880_v31  ;;  %v7495_v14 = vunpack.c.l.b16 %v13789_v13  ;;  %v8184_v51 = vshll.u32 %v8048_v36, 16 }
 0x3b2   : > { %v13771_v34 = vadd.f32 %v7183_v10, %v6581_v25  ;;  %8615 = vmatmul.bf16.gmra.mxu0 %v8519_v18  ;;  %v8179_v9 = vsel %vm10960_vm4, %v8174_v0, %v8178_v8  ;;  %v8190_v29 = vshll.u32 %v8049_v56, 16  ;;  %v6911_v26 = vshll.u32 %v6644_v30, 16 }
 0x3b3   : > { %7618 = vmatmul.bf16.gmra.mxu2 %v13732_v22  ;;  %v6897_v22 = vshll.u32 %v13739_v2, 16  ;;  %v6895_v59 = vrot.slane %v6894_v57, 4  ;;  %v6582_v2 = vadd.f32 %v13163_v5, %v13265_v52  ;;  %v6885_v35 = vrot.slane %v6884_v3, 4  ;;  %v6643_v52 = vld [vmem:[#allocation2 + $0x84] sm:$0xf] }
 0x3b4   : > { %v6232_v60 = vpop.f32.mrf.mxu3  ;;  %7222 = vmatmul.bf16.gmra.mxu1 %v7102_v45  ;;  %v8194_v45 = vshrl.u32 %v8049_v56, 16  ;;  %v7433_v57 = vrot.slane %v7431_v15, 4  ;;  %v6915_v16 = vshrl.u32 %v6644_v30, 16  ;;  %v7434_v39 = vrot.slane %v13809_v7, 5  ;;  %v10676_v30 = vld [vmem:[#allocation2 + $0x30] sm:$0xff] }
 0x3b5   : > { %v13782_v46 = vadd.f32 %v6232_v60, %v5859_v53  ;;  %v5179_v53 = vadd.f32 %v13555_v4, %v13397_v58  ;;  %v8491_v58 = vunpack.c.l.b16 %v8169_v62  ;;  %v6899_v18 = vrot.slane %v6897_v22, 5 }
 0x3b6   : > { %v5811_v24 = vpop.f32.mrf.mxu2  ;;  %v10265_v60 = vrot.slane %v7305_v38, 9  ;;  %v8492_v62 = vunpack.c.l.b16 %v8179_v9  ;;  %v8183_v0 = vrot.slane %v8181_v48, 4  ;;  %v13823_v22 = vrot.slane %v8190_v29, 5  ;;  %v8050_v48 = vld [vmem:[#allocation2 + $0x50] sm:$0x1] }
 0x3b7   : > { %v5861_v25 = vadd.f32 %v5811_v24, %v5179_v53  ;;  %v6900_v5 = vsel %vm10960_vm4, %v6895_v59, %v6899_v18  ;;  %v6890_v53 = vsel %vm10960_vm4, %v6885_v35, %v13765_v61  ;;  %v8196_v36 = vrot.slane %v8194_v45, 4  ;;  %v13827_v59 = vpop.f32.mrf.mxu0  ;;  %v10840_v45 = vld [vmem:[#allocation2 + $0x40] sm:$0xf] }
 0x3b8   : > { %v7432_v43 = vsel %vm11195_vm7, %v10265_v60, %v7431_v15  ;;  %v7435_v3 = vsel %vm11195_vm7, %v7433_v57, %v7434_v39  ;;  %v7081_v8 = vunpack.c.l.b16 %v6900_v5  ;;  %v6902_v56 = vshrl.u32 %v6643_v52, 16  ;;  %14602 = vst [vmem:[#allocation34_spill] sm:$0xff] %v13827_v59  ;;  %v13933_v59 = vld [vmem:[#allocation2 + $0xa4] sm:$0x1] }
 0x3b9   : > { %v7185_v10 = vpop.f32.mrf.mxu1  ;;  %v7509_v24 = vunpack.c.l.b16 %v7435_v3  ;;  %v13829_v15 = vrot.slane %v6911_v26, 5  ;;  %v6917_v9 = vrot.slane %v6915_v16, 4  ;;  %v7508_v61 = vunpack.c.l.b16 %v7432_v43 }
 0x3ba   : > { %v13811_v31 = vadd.f32 %v7185_v10, %v6582_v2  ;;  %v6905_v2 = vshll.u32 %v6643_v52, 16  ;;  %v6583_v18 = vadd.f32 %v13202_v50, %v13291_v1  ;;  %v7080_v29 = vunpack.c.l.b16 %v6890_v53 }
 0x3bb   : > { %v7389_v35 = vrot.slane %v10840_v45, 5  ;;  %v8197_v57 = vor.u32 %v8196_v36, %v13823_v22  ;;  %v7523_v26 = vpack.c.b16 %v7495_v14, %v7494_v37  ;;  %v8200_v16 = vshll.u32 %v8050_v48, 16  ;;  %v7299_v36 = vld [vmem:[#allocation2 + $0x3c] sm:$0xe]  ;;  %v10841_v14 = vld [vmem:[#allocation2 + $0x44] sm:$0x1] }
 0x3bc   : > { %v6234_v21 = vpop.f32.mrf.mxu3  ;;  %v7103_v52 = vpack.c.b16 %v7081_v8, %v7080_v29  ;;  %v6907_v43 = vrot.slane %v6905_v2, 5  ;;  %v6918_v50 = vor.u32 %v6917_v9, %v13829_v15  ;;  %v7392_v8 = vrot.slane %v10841_v14, 5  ;;  %v14605_v48 = vld [vmem:[#allocation11_spill] sm:$0xff]  ;;  %v13848_v45 = vld [vmem:[#allocation2 + $0x94] sm:$0xf] }
 0x3bd   : > { %v13816_v13 = vadd.f32 %v6234_v21, %v5860_v6  ;;  %v8186_v6 = vrot.slane %v8184_v51, 5  ;;  %v8520_v51 = vpack.c.b16 %v8492_v62, %v8491_v58  ;;  %v13834_v21 = vpack.c.b16 %v7509_v24, %v7508_v61  ;;  %v8051_v24 = vld [vmem:[#allocation2 + $0x54] sm:$0xf]  ;;  %v14606_v61 = vld [vmem:[#allocation7_spill] sm:$0xff] }
 0x3be   : > { %v5813_v38 = vpop.f32.mrf.mxu2  ;;  %v7391_v58 = vrot.slane %v7389_v35, 4  ;;  %v6921_v62 = vshll.u32 %v13809_v7, 16  ;;  %v8198_v3 = vrot.slane %v8197_v57, 4  ;;  %v6919_v2 = vrot.slane %v6918_v50, 4 }
 0x3bf   : > { %14601 = vst [vmem:[#allocation33_spill] sm:$0xff] %v13816_v13  ;;  %v5862_v10 = vadd.f32 %v5813_v38, %v5180_v42  ;;  %v6904_v42 = vrot.slane %v6902_v56, 4  ;;  %v8187_v1 = vor.u32 %v8186_v6, %v8183_v0  ;;  %v8202_v0 = vrot.slane %v8200_v16, 5 }
 0x3c0   : > { %v10259_v29 = vrot.slane %v7299_v36, 9  ;;  %v7393_v7 = vsel %vm11195_vm7, %v7391_v58, %v7392_v8  ;;  %v6923_v57 = vrot.slane %v6921_v62, 5  ;;  %v8205_v16 = vshrl.u32 %v8051_v24, 16 }
 0x3c1   : > { %7933 = vmatmul.bf16.gmra.mxu3 %v10676_v30  ;;  %v7188_v60 = vpop.f32.mrf.mxu1  ;;  %v14604_v30 = vld [vmem:[#allocation18_spill] sm:$0xff]  ;;  %v6908_v38 = vor.u32 %v6907_v43, %v6904_v42  ;;  %v8188_v9 = vrot.slane %v8187_v1, 4  ;;  %v8208_v42 = vshll.u32 %v8051_v24, 16  ;;  %v6935_v62 = vshll.u32 %v13848_v45, 16 }
 0x3c2   : > { %v13836_v5 = vadd.f32 %v7188_v60, %v6583_v18  ;;  %8620 = vmatmul.bf16.gmra.mxu0 %v8520_v51  ;;  %v5181_v37 = vadd.f32 %v13555_v4, %v14604_v30  ;;  %v6584_v18 = vadd.f32 %v14606_v61, %v14605_v48  ;;  %v13850_v60 = vpop.f32.mrf.mxu0  ;;  %v6924_v36 = vsel %vm10960_vm4, %v6919_v2, %v6923_v57  ;;  %v6646_v24 = vld [vmem:[#allocation2 + $0x90] sm:$0xf] }
 0x3c3   : > { %7623 = vmatmul.bf16.gmra.mxu2 %v7523_v26  ;;  %14607 = vst [vmem:[#allocation18_spill] sm:$0xff] %v13850_v60  ;;  %v8203_v26 = vsel %vm10960_vm4, %v8198_v3, %v8202_v0  ;;  %v6909_v58 = vrot.slane %v6908_v38, 4  ;;  %v6939_v30 = vshrl.u32 %v13848_v45, 16  ;;  %v7390_v3 = vsel %vm11195_vm7, %v10259_v29, %v7389_v35  ;;  %v10677_v0 = vld [vmem:[#allocation2 + $0x3c] sm:$0xff] }
 0x3c4   : > { %v6237_v39 = vpop.f32.mrf.mxu3  ;;  %7227 = vmatmul.bf16.gmra.mxu1 %v7103_v52  ;;  %v8193_v52 = vsel %vm10960_vm4, %v8188_v9, %v13823_v22  ;;  %v7497_v8 = vunpack.c.l.b16 %v7393_v7  ;;  %v8494_v2 = vunpack.c.l.b16 %v8203_v26  ;;  %v8207_v9 = vrot.slane %v8205_v16, 4  ;;  %v14610_v7 = vld [vmem:[#allocation12_spill] sm:$0xff] }
 0x3c5   : > { %v13839_v53 = vadd.f32 %v6237_v39, %v5861_v25  ;;  %v8052_v25 = vld [vmem:[#allocation2 + $0x58] sm:$0xf]  ;;  %v8493_v38 = vunpack.c.l.b16 %v8193_v52  ;;  %v8210_v48 = vrot.slane %v8208_v42, 5  ;;  %v6929_v57 = vshll.u32 %v6646_v24, 16 }
 0x3c6   : > { %v5816_v56 = vpop.f32.mrf.mxu2  ;;  %v8214_v43 = vshll.u32 %v8052_v25, 16  ;;  %v8218_v50 = vshrl.u32 %v8052_v25, 16  ;;  %v7083_v25 = vunpack.c.l.b16 %v6924_v36  ;;  %v6941_v35 = vrot.slane %v6939_v30, 4  ;;  %v10842_v36 = vld [vmem:[#allocation2 + $0x4c] sm:$0xf] }
 0x3c7   : > { %14603 = vst [vmem:[#allocation35_spill] sm:$0xff] %v13839_v53  ;;  %v5863_v6 = vadd.f32 %v5816_v56, %v5181_v37  ;;  %v14608_v37 = vld [vmem:[#allocation20_spill] sm:$0xff]  ;;  %v6914_v56 = vsel %vm10960_vm4, %v6909_v58, %v13829_v15  ;;  %v7496_v26 = vunpack.c.l.b16 %v7390_v3  ;;  %v8521_v58 = vpack.c.b16 %v8494_v2, %v8493_v38  ;;  %v7300_v38 = vld [vmem:[#allocation2 + $0x48] sm:$0xe] }
 0x3c8   : > { %v5182_v22 = vadd.f32 %v13555_v4, %v14608_v37  ;;  %v13872_v61 = vrot.slane %v8214_v43, 5  ;;  %v14611_v37 = vld [vmem:[#allocation9_spill] sm:$0xff]  ;;  %v7082_v52 = vunpack.c.l.b16 %v6914_v56  ;;  %v7396_v42 = vrot.slane %v10842_v36, 5  ;;  %v8053_v43 = vld [vmem:[#allocation2 + $0x5c] sm:$0x1] }
 0x3c9   : > { %v7190_v51 = vpop.f32.mrf.mxu1  ;;  %v6585_v15 = vadd.f32 %v14611_v37, %v14610_v7  ;;  %v7524_v60 = vpack.c.b16 %v7497_v8, %v7496_v26  ;;  %v6931_v56 = vrot.slane %v6929_v57, 5  ;;  %v8211_v2 = vor.u32 %v8210_v48, %v8207_v9  ;;  %v10707_v8 = vld [vmem:[%s14507_s3 + $0x208] sm:$0xff]  ;;  %v14614_v37 = vld [vmem:[#allocation23_spill] sm:$0xff]  ;;  %v8054_v9 = vld [vmem:[#allocation2 + $0x60] sm:$0xf] }
 0x3ca   : > { %v13857_v39 = vadd.f32 %v7190_v51, %v6584_v18  ;;  %v8220_v18 = vrot.slane %v8218_v50, 4  ;;  %v6926_v51 = vshrl.u32 %v6646_v24, 16  ;;  %v7104_v50 = vpack.c.b16 %v7083_v25, %v7082_v52  ;;  %v13880_v24 = vld [vmem:[#allocation2 + $0x98] sm:$0x1]  ;;  %v13883_v30 = vpop.f32.mrf.mxu0  ;;  %9029 = vmatpush.bf16.msra.mxu1 %v10707_v8 }
 0x3cb   : > { %14612 = vst [vmem:[#allocation7_spill] sm:$0xff] %v13883_v30  ;;  %v8224_v25 = vshll.u32 %v8053_v43, 16  ;;  %v7398_v7 = vrot.slane %v7396_v42, 4  ;;  %v10260_v57 = vrot.slane %v7300_v38, 9  ;;  %v14615_v43 = vld [vmem:[#allocation13_spill] sm:$0xff] }
 0x3cc   : > { %v6239_v1 = vpop.f32.mrf.mxu3 }
 0x3cd   : > { %v13865_v14 = vadd.f32 %v6239_v1, %v5862_v10  ;;  %v13874_v1 = vrot.slane %v6935_v62, 5  ;;  %v8221_v62 = vor.u32 %v8220_v18, %v13872_v61  ;;  %v6945_v18 = vshll.u32 %v13880_v24, 16 }
 0x3ce   : > { %v5818_v10 = vpop.f32.mrf.mxu2  ;;  %v7397_v38 = vsel %vm11195_vm7, %v10260_v57, %v7396_v42 }
 0x3cf   : > { %14609 = vst [vmem:[#allocation11_spill] sm:$0xff] %v13865_v14  ;;  %v5864_v29 = vadd.f32 %v5818_v10, %v5182_v22  ;;  %v6942_v3 = vor.u32 %v6941_v35, %v13874_v1  ;;  %v8222_v52 = vrot.slane %v8221_v62, 4  ;;  %v6947_v8 = vrot.slane %v6945_v18, 5 }
 0x3d1   : > { %7938 = vmatmul.bf16.gmra.mxu3 %v10677_v0  ;;  %v7193_v16 = vpop.f32.mrf.mxu1  ;;  %v6928_v0 = vrot.slane %v6926_v51, 4  ;;  %v5183_v51 = vadd.f32 %v13555_v4, %v14614_v37  ;;  %v6943_v26 = vrot.slane %v6942_v3, 4  ;;  %v8226_v37 = vrot.slane %v8224_v25, 5 }
 0x3d2   : > { %v13878_v14 = vadd.f32 %v7193_v16, %v6585_v15  ;;  %8625 = vmatmul.bf16.gmra.mxu0 %v8521_v58  ;;  %v10843_v15 = vld [vmem:[#allocation2 + $0x50] sm:$0x1]  ;;  %v8212_v16 = vrot.slane %v8211_v2, 4  ;;  %v8055_v58 = vld [vmem:[#allocation2 + $0x64] sm:$0xf] }
 0x3d3   : > { %7628 = vmatmul.bf16.gmra.mxu2 %v7524_v60  ;;  %v7399_v35 = vrot.slane %v10843_v15, 5  ;;  %v6932_v48 = vor.u32 %v6931_v56, %v6928_v0  ;;  %v13900_v15 = vld [vmem:[#allocation2 + $0xa0] sm:$0xf]  ;;  %v8229_v0 = vshrl.u32 %v8054_v9, 16  ;;  %v8227_v3 = vsel %vm10960_vm4, %v8222_v52, %v8226_v37  ;;  %v10678_v37 = vld [vmem:[#allocation2 + $0x48] sm:$0xff] }
 0x3d4   : > { %v6242_v22 = vpop.f32.mrf.mxu3  ;;  %7232 = vmatmul.bf16.gmra.mxu1 %v7104_v50  ;;  %v14616_v50 = vld [vmem:[#allocation8_spill] sm:$0xff]  ;;  %v8238_v2 = vshll.u32 %v8055_v58, 16  ;;  %v8242_v42 = vshrl.u32 %v8055_v58, 16  ;;  %v6948_v18 = vsel %vm10960_vm4, %v6943_v26, %v6947_v8  ;;  %v6959_v57 = vshll.u32 %v13900_v15, 16 }
 0x3d5   : > { %v13886_v10 = vadd.f32 %v6242_v22, %v5863_v6  ;;  %v5184_v6 = vadd.f32 %v13555_v4, %v13580_v40  ;;  %v6586_v22 = vadd.f32 %v14616_v50, %v14615_v43  ;;  %v7400_v4 = vsel %vm11195_vm7, %v7398_v7, %v7399_v35  ;;  %v13917_v50 = vpop.f32.mrf.mxu0 }
 0x3d6   : > { %v5821_v60 = vpop.f32.mrf.mxu2  ;;  %v8217_v40 = vsel %vm10960_vm4, %v8212_v16, %v13872_v61  ;;  %v6963_v7 = vshrl.u32 %v13900_v15, 16  ;;  %v7498_v61 = vunpack.c.l.b16 %v7397_v38  ;;  %v6649_v16 = vld [vmem:[#allocation2 + $0x9c] sm:$0xf]  ;;  %v8232_v43 = vshll.u32 %v8054_v9, 16  ;;  %14618 = vst [vmem:[#allocation9_spill] sm:$0xff] %v13917_v50 }
 0x3d7   : > { %14613 = vst [vmem:[#allocation20_spill] sm:$0xff] %v13886_v10  ;;  %v5865_v36 = vadd.f32 %v5821_v60, %v5183_v51  ;;  %v6933_v51 = vrot.slane %v6932_v48, 4  ;;  %v7499_v60 = vunpack.c.l.b16 %v7400_v4  ;;  %v8495_v48 = vunpack.c.l.b16 %v8217_v40  ;;  %v14620_v40 = vld [vmem:[#allocation10_spill] sm:$0xff] }
 0x3d8   : > { %v8496_v58 = vunpack.c.l.b16 %v8227_v3  ;;  %v13925_v8 = vrot.slane %v8238_v2, 5  ;;  %v8244_v38 = vrot.slane %v8242_v42, 4  ;;  %v6950_v9 = vshrl.u32 %v6649_v16, 16 }
 0x3d9   : > { %v7195_v62 = vpop.f32.mrf.mxu1  ;;  %v6938_v52 = vsel %vm10960_vm4, %v6933_v51, %v13874_v1  ;;  %v6965_v50 = vrot.slane %v6963_v7, 4  ;;  %v14619_v1 = vld [vmem:[#allocation16_spill] sm:$0xff]  ;;  %v8234_v30 = vrot.slane %v8232_v43, 5  ;;  %v7525_v42 = vpack.c.b16 %v7499_v60, %v7498_v61 }
 0x3da   : > { %v13907_v56 = vadd.f32 %v7195_v62, %v6586_v22  ;;  %v13922_v22 = vld [vmem:[#allocation2 + $0x58] sm:$0xf]  ;;  %v7085_v62 = vunpack.c.l.b16 %v6948_v18  ;;  %v6587_v3 = vadd.f32 %v14620_v40, %v14619_v1  ;;  %v7084_v51 = vunpack.c.l.b16 %v6938_v52  ;;  %v8056_v18 = vld [vmem:[#allocation2 + $0x68] sm:$0x1] }
 0x3db   : > { %v8522_v53 = vpack.c.b16 %v8496_v58, %v8495_v48  ;;  %v14622_v52 = vrot.slane %v13922_v22, 5  ;;  %v7301_v48 = vld [vmem:[#allocation2 + $0x54] sm:$0xe]  ;;  %v8248_v61 = vshll.u32 %v8056_v18, 16  ;;  %v6969_v60 = vshll.u32 %v13933_v59, 16  ;;  %v14625_v18 = vld [vmem:[#allocation17_spill] sm:$0xff] }
 0x3dc   : > { %v6244_v25 = vpop.f32.mrf.mxu3  ;;  %v7105_v2 = vpack.c.b16 %v7085_v62, %v7084_v51  ;;  %v10261_v40 = vrot.slane %v7301_v48, 9 }
 0x3dd   : > { %v13915_v35 = vadd.f32 %v6244_v25, %v5864_v29  ;;  %v8231_v29 = vrot.slane %v8229_v0, 4  ;;  %v6953_v25 = vshll.u32 %v6649_v16, 16  ;;  %v7405_v43 = vrot.slane %v14622_v52, 4 }
 0x3de   : > { %v5823_v4 = vpop.f32.mrf.mxu2  ;;  %v8250_v52 = vrot.slane %v8248_v61, 5 }
 0x3df   : > { %14617 = vst [vmem:[#allocation12_spill] sm:$0xff] %v13915_v35  ;;  %v13927_v35 = vrot.slane %v6959_v57, 5  ;;  %v5866_v10 = vadd.f32 %v5823_v4, %v5184_v6  ;;  %v8245_v57 = vor.u32 %v8244_v38, %v13925_v8  ;;  %v6952_v6 = vrot.slane %v6950_v9, 4  ;;  %v8058_v9 = vld [vmem:[#allocation2 + $0x70] sm:$0xf] }
 0x3e0   : > { %v6955_v7 = vrot.slane %v6953_v25, 5  ;;  %v8235_v58 = vor.u32 %v8234_v30, %v8231_v29  ;;  %v13949_v25 = vpop.f32.mrf.mxu0  ;;  %v8262_v13 = vshll.u32 %v8058_v9, 16 }
 0x3e1   : > { %7943 = vmatmul.bf16.gmra.mxu3 %v10678_v37  ;;  %v7198_v26 = vpop.f32.mrf.mxu1  ;;  %v6966_v37 = vor.u32 %v6965_v50, %v13927_v35  ;;  %v8246_v38 = vrot.slane %v8245_v57, 4  ;;  %14624 = vst [vmem:[#allocation8_spill] sm:$0xff] %v13949_v25  ;;  %v6971_v57 = vrot.slane %v6969_v60, 5  ;;  %v8266_v25 = vshrl.u32 %v8058_v9, 16  ;;  %v6652_v9 = vld [vmem:[#allocation2 + $0xa8] sm:$0xf] }
 0x3e2   : > { %v13931_v0 = vadd.f32 %v7198_v26, %v6587_v3  ;;  %8630 = vmatmul.bf16.gmra.mxu0 %v8522_v53  ;;  %v10845_v26 = vld [vmem:[#allocation2 + $0x5c] sm:$0x1]  ;;  %v13945_v53 = vld [vmem:[%s14508_s4] ss:$0 sm:$0xff]  ;;  %v6956_v30 = vor.u32 %v6955_v7, %v6952_v6 }
 0x3e3   : > { %7633 = vmatmul.bf16.gmra.mxu2 %v7525_v42  ;;  %v7406_v62 = vrot.slane %v10845_v26, 5  ;;  %v5185_v50 = vadd.f32 %v13945_v53, %v13610_v32  ;;  %v6967_v29 = vrot.slane %v6966_v37, 4  ;;  %v13955_v26 = vld [vmem:[#allocation2 + $0xac] sm:$0xf]  ;;  %v8251_v7 = vsel %vm10960_vm4, %v8246_v38, %v8250_v52 }
 0x3e4   : > { %14621 = vst [vmem:[#allocation23_spill] sm:$0xff] %v13931_v0  ;;  %v6247_v16 = vpop.f32.mrf.mxu3  ;;  %7237 = vmatmul.bf16.gmra.mxu1 %v7105_v2  ;;  %v14626_v2 = vld [vmem:[#allocation14_spill] sm:$0xff]  ;;  %v6957_v48 = vrot.slane %v6956_v30, 4  ;;  %v6983_v61 = vshll.u32 %v13955_v26, 16  ;;  %v6987_v60 = vshrl.u32 %v13955_v26, 16  ;;  %v8498_v30 = vunpack.c.l.b16 %v8251_v7 }
 0x3e5   : > { %v13939_v4 = vadd.f32 %v6247_v16, %v5865_v36  ;;  %v8057_v36 = vld [vmem:[#allocation2 + $0x6c] sm:$0xf]  ;;  %v7407_v3 = vsel %vm11195_vm7, %v7405_v43, %v7406_v62  ;;  %v6588_v42 = vadd.f32 %v14626_v2, %v14625_v18  ;;  %v8236_v16 = vrot.slane %v8235_v58, 4  ;;  %v10679_v2 = vld [vmem:[#allocation2 + $0x54] sm:$0xff] }
 0x3e6   : > { %v5826_v1 = vpop.f32.mrf.mxu2  ;;  %v8256_v37 = vshll.u32 %v8057_v36, 16  ;;  %v6972_v58 = vsel %vm10960_vm4, %v6967_v29, %v6971_v57  ;;  %v5186_v62 = vadd.f32 %v13945_v53, %v13635_v28  ;;  %v13979_v29 = vrot.slane %v8262_v13, 5 }
 0x3e7   : > { %14623 = vst [vmem:[#allocation13_spill] sm:$0xff] %v13939_v4  ;;  %v5867_v51 = vadd.f32 %v5826_v1, %v5185_v50  ;;  %v8253_v4 = vshrl.u32 %v8057_v36, 16  ;;  %v8241_v6 = vsel %vm10960_vm4, %v8236_v16, %v13925_v8  ;;  %v14628_v8 = vrot.slane %v13922_v22, 5 }
 0x3e8   : > { %v7501_v36 = vunpack.c.l.b16 %v7407_v3  ;;  %v6962_v1 = vsel %vm10960_vm4, %v6957_v48, %v13927_v35  ;;  %v8268_v18 = vrot.slane %v8266_v25, 4  ;;  %v8497_v28 = vunpack.c.l.b16 %v8241_v6  ;;  %v8059_v48 = vld [vmem:[#allocation2 + $0x74] sm:$0x1]  ;;  %v13985_v25 = vpop.f32.mrf.mxu0 }
 0x3e9   : > { %v7200_v32 = vpop.f32.mrf.mxu1  ;;  %v7404_v38 = vsel %vm11195_vm7, %v10261_v40, %v14628_v8  ;;  %v8258_v16 = vrot.slane %v8256_v37, 5  ;;  %v6974_v22 = vshrl.u32 %v6652_v9, 16  ;;  %v13981_v57 = vrot.slane %v6983_v61, 5  ;;  %v14630_v8 = vld [vmem:[#allocation15_spill] sm:$0xff] }
 0x3ea   : > { %v13957_v0 = vadd.f32 %v7200_v32, %v6588_v42  ;;  %v7087_v42 = vunpack.c.l.b16 %v6972_v58  ;;  %v6977_v32 = vshll.u32 %v6652_v9, 16  ;;  %v6989_v40 = vrot.slane %v6987_v60, 4 }
 0x3eb   : > { %v7086_v7 = vunpack.c.l.b16 %v6962_v1  ;;  %v7500_v13 = vunpack.c.l.b16 %v7404_v38  ;;  %v8523_v6 = vpack.c.b16 %v8498_v30, %v8497_v28  ;;  %v8272_v1 = vshll.u32 %v8059_v48, 16  ;;  %v10706_v30 = vld [vmem:[%s14507_s3 + $0x200] sm:$0xff]  ;;  %v8060_v28 = vld [vmem:[#allocation2 + $0x78] sm:$0xf] }
 0x3ec   : > { %v6249_v43 = vpop.f32.mrf.mxu3  ;;  %v6990_v38 = vor.u32 %v6989_v40, %v13981_v57  ;;  %9030 = vmatpush.bf16.msra.mxu1 %v10706_v30  ;;  %v8061_v40 = vld [vmem:[#allocation2 + $0x7c] sm:$0xf]  ;;  %v14003_v48 = vld [vmem:[#allocation2 + $0xb8] sm:$0xf] }
 0x3ed   : > { %v13970_v50 = vadd.f32 %v6249_v43, %v5866_v10  ;;  %v8255_v10 = vrot.slane %v8253_v4, 4  ;;  %v14629_v43 = vld [vmem:[#allocation5_spill] sm:$0xff]  ;;  %v8269_v4 = vor.u32 %v8268_v18, %v13979_v29  ;;  %v7106_v9 = vpack.c.b16 %v7087_v42, %v7086_v7  ;;  %v14633_v7 = vld [vmem:[#allocation3_spill] sm:$0xff] }
 0x3ee   : > { %v5828_v52 = vpop.f32.mrf.mxu2  ;;  %v6589_v35 = vadd.f32 %v14630_v8, %v14629_v43  ;;  %v7526_v61 = vpack.c.b16 %v7501_v36, %v7500_v13  ;;  %v5187_v42 = vadd.f32 %v13945_v53, %v13657_v27 }
 0x3ef   : > { %14627 = vst [vmem:[#allocation16_spill] sm:$0xff] %v13970_v50  ;;  %v5868_v3 = vadd.f32 %v5828_v52, %v5186_v62  ;;  %v13990_v50 = vld [vmem:[#allocation2 + $0xb0] sm:$0x1]  ;;  %v8259_v60 = vor.u32 %v8258_v16, %v8255_v10  ;;  %v6979_v52 = vrot.slane %v6977_v32, 5  ;;  %v8270_v18 = vrot.slane %v8269_v4, 4 }
 0x3f0   : > { %v6993_v36 = vshll.u32 %v13990_v50, 16 }
 0x3f1   : > { %7948 = vmatmul.bf16.gmra.mxu3 %v10679_v2  ;;  %v7203_v58 = vpop.f32.mrf.mxu1  ;;  %v6976_v2 = vrot.slane %v6974_v22, 4  ;;  %v6991_v22 = vrot.slane %v6990_v38, 4  ;;  %v8260_v32 = vrot.slane %v8259_v60, 4  ;;  %v8280_v60 = vshll.u32 %v8060_v28, 16 }
 0x3f2   : > { %v13988_v37 = vadd.f32 %v7203_v58, %v6589_v35  ;;  %8635 = vmatmul.bf16.gmra.mxu0 %v8523_v6  ;;  %v14632_v35 = vld [vmem:[#allocation21_spill] sm:$0xff]  ;;  %v6995_v6 = vrot.slane %v6993_v36, 5  ;;  %v7007_v36 = vshll.u32 %v14003_v48, 16 }
 0x3f3   : > { %7638 = vmatmul.bf16.gmra.mxu2 %v7526_v61  ;;  %v6980_v16 = vor.u32 %v6979_v52, %v6976_v2  ;;  %v6590_v13 = vadd.f32 %v14633_v7, %v14632_v35  ;;  %v8265_v27 = vsel %vm10960_vm4, %v8260_v32, %v13979_v29  ;;  %v8290_v2 = vshrl.u32 %v8061_v40, 16  ;;  %v14012_v52 = vpop.f32.mrf.mxu0 }
 0x3f4   : > { %14631 = vst [vmem:[#allocation10_spill] sm:$0xff] %v13988_v37  ;;  %v6252_v62 = vpop.f32.mrf.mxu3  ;;  %7242 = vmatmul.bf16.gmra.mxu1 %v7106_v9  ;;  %v8277_v9 = vshrl.u32 %v8060_v28, 16  ;;  %v6996_v30 = vsel %vm10960_vm4, %v6991_v22, %v6995_v6  ;;  %v7011_v29 = vshrl.u32 %v14003_v48, 16  ;;  %v8499_v32 = vunpack.c.l.b16 %v8265_v27  ;;  %v14636_v37 = vld [vmem:[#allocation24_spill] sm:$0xff] }
 0x3f5   : > { %v13993_v43 = vadd.f32 %v6252_v62, %v5867_v51  ;;  %v8274_v51 = vrot.slane %v8272_v1, 5  ;;  %v8286_v62 = vshll.u32 %v8061_v40, 16  ;;  %v6981_v1 = vrot.slane %v6980_v16, 4  ;;  %v10680_v40 = vld [vmem:[#allocation2 + $0x60] sm:$0xff] }
 0x3f6   : > { %v5831_v10 = vpop.f32.mrf.mxu2  ;;  %v8279_v16 = vrot.slane %v8277_v9, 4  ;;  %v7089_v35 = vunpack.c.l.b16 %v6996_v30  ;;  %v8282_v22 = vrot.slane %v8280_v60, 5 }
 0x3f7   : > { %v5869_v8 = vadd.f32 %v5831_v10, %v5187_v42  ;;  %v8275_v4 = vsel %vm10960_vm4, %v8270_v18, %v8274_v51  ;;  %v5188_v18 = vadd.f32 %v13945_v53, %v13686_v55  ;;  %v6655_v10 = vld [vmem:[#allocation2 + $0xb4] sm:$0xf]  ;;  %v6986_v28 = vsel %vm10960_vm4, %v6981_v1, %v13981_v57  ;;  %v8062_v1 = vld [vmem:[#allocation2 + $0x80] sm:$0x1] }
 0x3f8   : > { %v8500_v51 = vunpack.c.l.b16 %v8275_v4  ;;  %v14025_v7 = vrot.slane %v8286_v62, 5  ;;  %v6998_v6 = vshrl.u32 %v6655_v10, 16  ;;  %v14027_v55 = vrot.slane %v7007_v36, 5  ;;  %v14033_v62 = vld [vmem:[#allocation2 + $0xbc] sm:$0x1] }
 0x3f9   : > { %v7205_v58 = vpop.f32.mrf.mxu1  ;;  %v7088_v27 = vunpack.c.l.b16 %v6986_v28  ;;  %v7017_v28 = vshll.u32 %v14033_v62, 16 }
 0x3fa   : > { %v14010_v61 = vadd.f32 %v7205_v58, %v6590_v13  ;;  %v8292_v13 = vrot.slane %v8290_v2, 4  ;;  %v8524_v9 = vpack.c.b16 %v8500_v51, %v8499_v32  ;;  %v7000_v36 = vrot.slane %v6998_v6, 4 }
 0x3fb   : > { %v7107_v60 = vpack.c.b16 %v7089_v35, %v7088_v27  ;;  %v5189_v32 = vadd.f32 %v13945_v53, %v13715_v49 }
 0x3fc   : > { %14634 = vst [vmem:[#allocation17_spill] sm:$0xff] %v14010_v61  ;;  %v6254_v38 = vpop.f32.mrf.mxu3  ;;  %v7001_v61 = vshll.u32 %v6655_v10, 16  ;;  %v8293_v2 = vor.u32 %v8292_v13, %v14025_v7 }
 0x3fd   : > { %v14020_v42 = vadd.f32 %v6254_v38, %v5868_v3  ;;  %v7013_v3 = vrot.slane %v7011_v29, 4 }
 0x3fe   : > { %v5833_v58 = vpop.f32.mrf.mxu2  ;;  %v7003_v29 = vrot.slane %v7001_v61, 5  ;;  %v8294_v51 = vrot.slane %v8293_v2, 4 }
 0x3ff   : > { %14635 = vst [vmem:[#allocation14_spill] sm:$0xff] %v14020_v42  ;;  %v5870_v38 = vadd.f32 %v5833_v58, %v5188_v18  ;;  %v14637_v42 = vld [vmem:[#allocation6_spill] sm:$0xff]  ;;  %v7014_v18 = vor.u32 %v7013_v3, %v14027_v55  ;;  %v8064_v3 = vld [vmem:[#allocation2 + $0x88] sm:$0xf] }
 0x400   : > { %v6591_v57 = vadd.f32 %v14637_v42, %v14636_v37  ;;  %v8296_v37 = vshll.u32 %v8062_v1, 16  ;;  %v14040_v42 = vpop.f32.mrf.mxu0  ;;  %v7004_v13 = vor.u32 %v7003_v29, %v7000_v36  ;;  %v8310_v2 = vshll.u32 %v8064_v3, 16 }
 0x401   : > { %7953 = vmatmul.bf16.gmra.mxu3 %v10680_v40  ;;  %v7208_v4 = vpop.f32.mrf.mxu1  ;;  %v8283_v40 = vor.u32 %v8282_v22, %v8279_v16  ;;  %v7015_v61 = vrot.slane %v7014_v18, 4 }
 0x402   : > { %v14031_v30 = vadd.f32 %v7208_v4, %v6591_v57  ;;  %8640 = vmatmul.bf16.gmra.mxu0 %v8524_v9  ;;  %v8298_v57 = vrot.slane %v8296_v37, 5  ;;  %v7019_v4 = vrot.slane %v7017_v28, 5  ;;  %v7005_v29 = vrot.slane %v7004_v13, 4  ;;  %v6658_v28 = vld [vmem:[#allocation2 + $0xc0] sm:$0xf] }
 0x403   : > { %7643 = vmatmul.bf16.gmra.mxu2 %v13672_v12  ;;  %v8284_v6 = vrot.slane %v8283_v40, 4  ;;  %v14047_v12 = vld [vmem:[#allocation2 + $0xc4] sm:$0xf] }
 0x404   : > { %14638 = vst [vmem:[#allocation5_spill] sm:$0xff] %v14031_v30  ;;  %v6257_v10 = vpop.f32.mrf.mxu3  ;;  %7247 = vmatmul.bf16.gmra.mxu1 %v7107_v60  ;;  %v8299_v1 = vsel %vm10960_vm4, %v8294_v51, %v8298_v57  ;;  %v8063_v60 = vld [vmem:[#allocation2 + $0x84] sm:$0xf]  ;;  %v7031_v18 = vshll.u32 %v14047_v12, 16  ;;  %v7035_v40 = vshrl.u32 %v14047_v12, 16 }
 0x405   : > { %v14037_v58 = vadd.f32 %v6257_v10, %v5869_v8  ;;  %v14639_v8 = vld [vmem:[#allocation22_spill] sm:$0xff]  ;;  %v8289_v9 = vsel %vm10960_vm4, %v8284_v6, %v14025_v7  ;;  %v8314_v10 = vshrl.u32 %v8064_v3, 16  ;;  %v5190_v7 = vadd.f32 %v13945_v53, %v13741_v19  ;;  %v14077_v30 = vld [vmem:[#allocation2 + $0xc8] sm:$0x1] }
 0x406   : > { %v5836_v35 = vpop.f32.mrf.mxu2  ;;  %v6592_v22 = vadd.f32 %v14639_v8, %v13595_v11  ;;  %v7020_v11 = vsel %vm10960_vm4, %v7015_v61, %v7019_v4  ;;  %v8502_v51 = vunpack.c.l.b16 %v8299_v1  ;;  %v8304_v13 = vshll.u32 %v8063_v60, 16  ;;  %v10681_v6 = vld [vmem:[#allocation2 + $0x6c] sm:$0xff] }
 0x407   : > { %v5871_v16 = vadd.f32 %v5836_v35, %v5189_v32  ;;  %v7010_v32 = vsel %vm10960_vm4, %v7005_v29, %v14027_v55  ;;  %v8301_v35 = vshrl.u32 %v8063_v60, 16  ;;  %v7091_v3 = vunpack.c.l.b16 %v7020_v11  ;;  %v14073_v11 = vld [vmem:[#allocation2 + $0x8c] sm:$0x1] }
 0x408   : > { %v8501_v61 = vunpack.c.l.b16 %v8289_v9  ;;  %v14067_v8 = vrot.slane %v8310_v2, 5  ;;  %v14069_v57 = vpop.f32.mrf.mxu0  ;;  %v7022_v19 = vshrl.u32 %v6658_v28, 16  ;;  %v7025_v53 = vshll.u32 %v6658_v28, 16 }
 0x409   : > { %v7210_v27 = vpop.f32.mrf.mxu1  ;;  %v7037_v4 = vrot.slane %v7035_v40, 4  ;;  %v6593_v55 = vadd.f32 %v13578_v20, %v13616_v23  ;;  %v7090_v1 = vunpack.c.l.b16 %v7010_v32  ;;  %v8303_v9 = vrot.slane %v8301_v35, 4 }
 0x40a   : > { %v14052_v49 = vadd.f32 %v7210_v27, %v6592_v22  ;;  %v8316_v22 = vrot.slane %v8314_v10, 4  ;;  %v8525_v29 = vpack.c.b16 %v8502_v51, %v8501_v61  ;;  %v8306_v2 = vrot.slane %v8304_v13, 5 }
 0x40b   : > { %v7027_v28 = vrot.slane %v7025_v53, 5  ;;  %v8320_v23 = vshll.u32 %v14073_v11, 16  ;;  %v7041_v32 = vshll.u32 %v14077_v30, 16 }
 0x40c   : > { %14640 = vst [vmem:[#allocation15_spill] sm:$0xff] %v14052_v49  ;;  %v6259_v36 = vpop.f32.mrf.mxu3  ;;  %v7108_v49 = vpack.c.b16 %v7091_v3, %v7090_v1  ;;  %v8307_v51 = vor.u32 %v8306_v2, %v8303_v9 }
 0x40d   : > { %v14062_v37 = vadd.f32 %v6259_v36, %v5870_v38  ;;  %v7033_v38 = vrot.slane %v7031_v18, 5  ;;  %v8317_v18 = vor.u32 %v8316_v22, %v14067_v8  ;;  %v14085_v22 = vld [vmem:[#allocation2 + $0x94] sm:$0xf]  ;;  %v8322_v53 = vrot.slane %v8320_v23, 5 }
 0x40e   : > { %v5838_v27 = vpop.f32.mrf.mxu2  ;;  %v8334_v9 = vshll.u32 %v14085_v22, 16  ;;  %v8338_v2 = vshrl.u32 %v14085_v22, 16 }
 0x40f   : > { %v5872_v36 = vadd.f32 %v5838_v27, %v5190_v7  ;;  %v7024_v7 = vrot.slane %v7022_v19, 4  ;;  %v8318_v35 = vrot.slane %v8317_v18, 4  ;;  %v14642_v19 = vld [vmem:[#allocation25_spill] sm:$0xff] }
 0x411   : > { %7958 = vmatmul.bf16.gmra.mxu3 %v10681_v6  ;;  %v7213_v60 = vpop.f32.mrf.mxu1  ;;  %v7038_v6 = vor.u32 %v7037_v4, %v7033_v38  ;;  %v7028_v3 = vor.u32 %v7027_v28, %v7024_v7  ;;  %v7043_v4 = vrot.slane %v7041_v32, 5 }
 0x412   : > { %v14075_v10 = vadd.f32 %v7213_v60, %v6593_v55  ;;  %8645 = vmatmul.bf16.gmra.mxu0 %v8525_v29  ;;  %v8308_v55 = vrot.slane %v8307_v51, 4  ;;  %v8323_v60 = vsel %vm10960_vm4, %v8318_v35, %v8322_v53  ;;  %v8066_v29 = vld [vmem:[#allocation2 + $0x90] sm:$0xf]  ;;  %v10682_v51 = vld [vmem:[#allocation2 + $0x78] sm:$0xff] }
 0x413   : > { %7648 = vmatmul.bf16.gmra.mxu2 %v13735_v41  ;;  %v7039_v61 = vrot.slane %v7038_v6, 4  ;;  %v7029_v18 = vrot.slane %v7028_v3, 4  ;;  %v8504_v6 = vunpack.c.l.b16 %v8323_v60  ;;  %v8325_v23 = vshrl.u32 %v8066_v29, 16 }
 0x414   : > { %14641 = vst [vmem:[#allocation21_spill] sm:$0xff] %v14075_v10  ;;  %v6262_v40 = vpop.f32.mrf.mxu3  ;;  %7252 = vmatmul.bf16.gmra.mxu1 %v7108_v49  ;;  %v14090_v49 = vpop.f32.mrf.mxu0  ;;  %v8313_v7 = vsel %vm10960_vm4, %v8308_v55, %v14067_v8  ;;  %v8328_v32 = vshll.u32 %v8066_v29, 16  ;;  %v14110_v55 = vld [vmem:[#allocation2 + $0x98] sm:$0x1] }
 0x415   : > { %v14080_v20 = vadd.f32 %v6262_v40, %v5871_v16  ;;  %v6594_v16 = vadd.f32 %v14642_v19, %v13640_v63  ;;  %v7044_v63 = vsel %vm10960_vm4, %v7039_v61, %v7043_v4  ;;  %v7034_v28 = vsel %vm10960_vm4, %v7029_v18, %v7033_v38  ;;  %14645 = vst [vmem:[#allocation24_spill] sm:$0xff] %v14110_v55 }
 0x416   : > { %v7609_v13 = vpop.f32.mrf.mxu2  ;;  %v7093_v35 = vunpack.c.l.b16 %v7044_v63  ;;  %v8340_v19 = vrot.slane %v8338_v2, 4  ;;  %v8327_v38 = vrot.slane %v8325_v23, 4  ;;  %v8330_v60 = vrot.slane %v8328_v32, 5 }
 0x417   : > { %v7689_v27 = vadd.f32 %v7609_v13, %v13771_v34  ;;  %v8336_v13 = vrot.slane %v8334_v9, 5 }
 0x419   : > { %v7215_v41 = vpop.f32.mrf.mxu1  ;;  %v8341_v9 = vor.u32 %v8340_v19, %v8336_v13  ;;  %v14647_v19 = vld [vmem:[#allocation28_spill] sm:$0xff] }
 0x41a   : > { %v14092_v1 = vadd.f32 %v7215_v41, %v6594_v16  ;;  %v8503_v16 = vunpack.c.l.b16 %v8313_v7  ;;  %v7092_v41 = vunpack.c.l.b16 %v7034_v28  ;;  %v8331_v28 = vor.u32 %v8330_v60, %v8327_v38  ;;  %v8069_v60 = vld [vmem:[#allocation2 + $0x9c] sm:$0xf] }
 0x41c   : > { %14643 = vst [vmem:[#allocation3_spill] sm:$0xff] %v14092_v1  ;;  %v6264_v34 = vpop.f32.mrf.mxu3  ;;  %v8526_v4 = vpack.c.b16 %v8504_v6, %v8503_v16  ;;  %v14114_v2 = vpop.f32.mrf.mxu0  ;;  %v8342_v6 = vrot.slane %v8341_v9, 4 }
 0x41d   : > { %v14100_v40 = vadd.f32 %v6264_v34, %v5872_v36  ;;  %v14644_v36 = vld [vmem:[#allocation26_spill] sm:$0xff]  ;;  %v7109_v34 = vpack.c.b16 %v7093_v35, %v7092_v41  ;;  %v8332_v41 = vrot.slane %v8331_v28, 4 }
 0x41e   : > { %v7611_v3 = vpop.f32.mrf.mxu2  ;;  %v6595_v53 = vadd.f32 %v14644_v36, %v13664_v44  ;;  %v8344_v44 = vshll.u32 %v14110_v55, 16 }
 0x41f   : > { %v7690_v61 = vadd.f32 %v7611_v3, %v13811_v31  ;;  %v10847_v31 = vld [vmem:[#allocation2 + $0x1c] sm:$0xf]  ;;  %v8337_v28 = vsel %vm10960_vm4, %v8332_v41, %v8336_v13  ;;  %v14651_v13 = vld [vmem:[#allocation29_spill] sm:$0xff] }
 0x420   : > { %v8784_v63 = vrot.slane %v10847_v31, 5  ;;  %v14648_v3 = vld [vmem:[#allocation27_spill] sm:$0xff]  ;;  %v8346_v36 = vrot.slane %v8344_v44, 5 }
 0x421   : > { %7963 = vmatmul.bf16.gmra.mxu3 %v10682_v51  ;;  %v7218_v8 = vpop.f32.mrf.mxu1  ;;  %v14120_v51 = vld [vmem:[#allocation2 + $0xa0] sm:$0xf]  ;;  %v6596_v16 = vadd.f32 %v14648_v3, %v14647_v19  ;;  %v8349_v3 = vshrl.u32 %v8069_v60, 16 }
 0x422   : > { %v14112_v29 = vadd.f32 %v7218_v8, %v6595_v53  ;;  %8650 = vmatmul.bf16.gmra.mxu0 %v8526_v4  ;;  %v8786_v32 = vrot.slane %v8784_v63, 4  ;;  %v8718_v53 = vld [vmem:[#allocation2 + $0x18] sm:$0xe]  ;;  %v10848_v8 = vld [vmem:[#allocation2 + $0x20] sm:$0x1]  ;;  %v8347_v38 = vsel %vm10960_vm4, %v8342_v6, %v8346_v36  ;;  %v8362_v9 = vshrl.u32 %v14120_v51, 16 }
 0x423   : > { %7653 = vmatmul.bf16.gmra.mxu2 %v13769_v47  ;;  %v8787_v4 = vrot.slane %v10848_v8, 5  ;;  %v8506_v19 = vunpack.c.l.b16 %v8347_v38  ;;  %v10683_v36 = vld [vmem:[#allocation2 + $0x84] sm:$0xff] }
 0x424   : > { %14646 = vst [vmem:[#allocation6_spill] sm:$0xff] %v14112_v29  ;;  %v7924_v18 = vpop.f32.mrf.mxu3  ;;  %7257 = vmatmul.bf16.gmra.mxu1 %v7109_v34  ;;  %v8358_v34 = vshll.u32 %v14120_v51, 16  ;;  %v10849_v38 = vld [vmem:[#allocation2 + $0x28] sm:$0xf] }
 0x425   : > { %v14116_v7 = vadd.f32 %v7924_v18, %v7689_v27  ;;  %v10479_v18 = vrot.slane %v8718_v53, 9  ;;  %v8788_v31 = vsel %vm11195_vm7, %v8786_v32, %v8787_v4  ;;  %v8364_v53 = vrot.slane %v8362_v9, 4  ;;  %v14650_v4 = vld [vmem:[#allocation30_spill] sm:$0xff] }
 0x426   : > { %v7614_v23 = vpop.f32.mrf.mxu2  ;;  %v14141_v8 = vrot.slane %v8358_v34, 5  ;;  %v8505_v32 = vunpack.c.l.b16 %v8337_v28  ;;  %v6597_v41 = vadd.f32 %v14651_v13, %v14650_v4  ;;  %v8791_v29 = vrot.slane %v10849_v38, 5  ;;  %v10850_v13 = vld [vmem:[#allocation2 + $0x2c] sm:$0x1]  ;;  %v14654_v38 = vld [vmem:[#allocation31_spill] sm:$0xff] }
 0x427   : > { %v7691_v35 = vadd.f32 %v7614_v23, %v13836_v5  ;;  %v14137_v23 = vpop.f32.mrf.mxu0  ;;  %v8785_v6 = vsel %vm11195_vm7, %v10479_v18, %v8784_v63  ;;  %v14147_v18 = vld [vmem:[#allocation2 + $0xa4] sm:$0x1]  ;;  %v8351_v34 = vrot.slane %v8349_v3, 4  ;;  %v7306_v3 = vld [vmem:[#allocation2 + $0x90] sm:$0xe] }
 0x428   : > { %v8527_v63 = vpack.c.b16 %v8506_v19, %v8505_v32  ;;  %v8368_v19 = vshll.u32 %v14147_v18, 16  ;;  %v8719_v32 = vld [vmem:[#allocation2 + $0x24] sm:$0xe]  ;;  %v8793_v4 = vrot.slane %v8791_v29, 4 }
 0x429   : > { %v7220_v27 = vpop.f32.mrf.mxu1 }
 0x42a   : > { %v14125_v47 = vadd.f32 %v7220_v27, %v6596_v16  ;;  %v8352_v16 = vshll.u32 %v8069_v60, 16  ;;  %v8912_v27 = vunpack.c.l.b16 %v8788_v31  ;;  %v7438_v60 = vrot.slane %v13848_v45, 5 }
 0x42c   : > { %14649 = vst [vmem:[#allocation22_spill] sm:$0xff] %v14125_v47  ;;  %v7926_v5 = vpop.f32.mrf.mxu3  ;;  %v8354_v31 = vrot.slane %v8352_v16, 5 }
 0x42d   : > { %v14133_v44 = vadd.f32 %v7926_v5, %v7690_v61  ;;  %v8911_v5 = vunpack.c.l.b16 %v8785_v6  ;;  %v7440_v6 = vrot.slane %v7438_v60, 4 }
 0x42e   : > { %v7616_v47 = vpop.f32.mrf.mxu2  ;;  %v8355_v45 = vor.u32 %v8354_v31, %v8351_v34  ;;  %v10480_v34 = vrot.slane %v8719_v32, 9  ;;  %v8072_v32 = vld [vmem:[#allocation2 + $0xa8] sm:$0xf] }
 0x42f   : > { %v7692_v61 = vadd.f32 %v7616_v47, %v13857_v39  ;;  %v8943_v28 = vpack.c.b16 %v8912_v27, %v8911_v5  ;;  %v8365_v39 = vor.u32 %v8364_v53, %v14141_v8  ;;  %v7441_v53 = vrot.slane %v13880_v24, 5  ;;  %v14653_v5 = vld [vmem:[#allocation32_spill] sm:$0xff] }
 0x431   : > { %7968 = vmatmul.bf16.gmra.mxu3 %v10683_v36  ;;  %v7223_v1 = vpop.f32.mrf.mxu1  ;;  %v8366_v16 = vrot.slane %v8365_v39, 4  ;;  %v7442_v39 = vsel %vm11195_vm7, %v7440_v6, %v7441_v53 }
 0x432   : > { %v14149_v9 = vadd.f32 %v7223_v1, %v6597_v41  ;;  %8655 = vmatmul.bf16.gmra.mxu0 %v8527_v63  ;;  %v14156_v1 = vpop.f32.mrf.mxu0  ;;  %v8794_v41 = vrot.slane %v10850_v13, 5  ;;  %v6598_v63 = vadd.f32 %v14654_v38, %v14653_v5  ;;  %v8373_v38 = vshrl.u32 %v8072_v32, 16 }
 0x433   : > { %7658 = vmatmul.bf16.gmra.mxu2 %v13834_v21 }
 0x434   : > { %14652 = vst [vmem:[#allocation25_spill] sm:$0xff] %v14149_v9  ;;  %v7929_v47 = vpop.f32.mrf.mxu3  ;;  %9031 = vmatmul.bf16.vlgmr.msra.gmra.mxu1 %v8943_v28  ;;  %v8370_v28 = vrot.slane %v8368_v19, 5  ;;  %v8356_v9 = vrot.slane %v8355_v45, 4  ;;  %v8795_v24 = vsel %vm11195_vm7, %v8793_v4, %v8794_v41  ;;  %v8792_v4 = vsel %vm11195_vm7, %v10480_v34, %v8791_v29  ;;  %v10684_v41 = vld [vmem:[#allocation2 + $0x90] sm:$0xff] }
 0x435   : > { %v14152_v36 = vadd.f32 %v7929_v47, %v7691_v35  ;;  %v14159_v35 = vld [vmem:[#allocation2 + $0xac] sm:$0xf]  ;;  %v10266_v47 = vrot.slane %v7306_v3, 9  ;;  %v7511_v3 = vunpack.c.l.b16 %v7442_v39  ;;  %v8914_v53 = vunpack.c.l.b16 %v8795_v24 }
 0x436   : > { %v7619_v27 = vpop.f32.mrf.mxu2  ;;  %v8371_v13 = vsel %vm10960_vm4, %v8366_v16, %v8370_v28  ;;  %v8361_v45 = vsel %vm10960_vm4, %v8356_v9, %v14141_v8  ;;  %v6599_v29 = vadd.f32 %v13798_v54, %v13782_v46  ;;  %v7445_v9 = vrot.slane %v13900_v15, 5 }
 0x437   : > { %v7693_v21 = vadd.f32 %v7619_v27, %v13878_v14  ;;  %v8382_v14 = vshll.u32 %v14159_v35, 16  ;;  %v8386_v27 = vshrl.u32 %v14159_v35, 16  ;;  %v7439_v6 = vsel %vm11195_vm7, %v10266_v47, %v7438_v60  ;;  %v10851_v47 = vld [vmem:[#allocation2 + $0x34] sm:$0xf] }
 0x438   : > { %v8508_v16 = vunpack.c.l.b16 %v8371_v13  ;;  %v8913_v60 = vunpack.c.l.b16 %v8792_v4  ;;  %v8798_v55 = vrot.slane %v10851_v47, 5  ;;  %v8720_v4 = vld [vmem:[#allocation2 + $0x30] sm:$0xe]  ;;  %v7447_v15 = vrot.slane %v7445_v9, 4 }
 0x439   : > { %v7225_v31 = vpop.f32.mrf.mxu1  ;;  %v14183_v28 = vrot.slane %v8382_v14, 5 }
 0x43a   : > { %v14168_v10 = vadd.f32 %v7225_v31, %v6598_v63  ;;  %v8376_v63 = vshll.u32 %v8072_v32, 16  ;;  %v14189_v34 = vpop.f32.mrf.mxu0  ;;  %v8944_v14 = vpack.c.b16 %v8914_v53, %v8913_v60  ;;  %v8800_v46 = vrot.slane %v8798_v55, 4 }
 0x43c   : > { %14655 = vst [vmem:[#allocation26_spill] sm:$0xff] %v14168_v10  ;;  %v7931_v19 = vpop.f32.mrf.mxu3  ;;  %v8507_v10 = vunpack.c.l.b16 %v8361_v45  ;;  %v8378_v45 = vrot.slane %v8376_v63, 5 }
 0x43d   : > { %v14174_v5 = vadd.f32 %v7931_v19, %v7692_v61  ;;  %v8388_v61 = vrot.slane %v8386_v27, 4  ;;  %v7510_v19 = vunpack.c.l.b16 %v7439_v6  ;;  %v14191_v27 = vld [vmem:[#allocation2 + $0xb0] sm:$0x1]  ;;  %v8375_v6 = vrot.slane %v8373_v38, 4 }
 0x43e   : > { %v7621_v31 = vpop.f32.mrf.mxu2  ;;  %v8528_v13 = vpack.c.b16 %v8508_v16, %v8507_v10  ;;  %v8392_v10 = vshll.u32 %v14191_v27, 16  ;;  %v10852_v16 = vld [vmem:[#allocation2 + $0x38] sm:$0x1]  ;;  %v7448_v38 = vrot.slane %v13933_v59, 5 }
 0x43f   : > { %v7694_v8 = vadd.f32 %v7621_v31, %v13907_v56  ;;  %v7531_v24 = vpack.c.b16 %v7511_v3, %v7510_v19  ;;  %v8389_v56 = vor.u32 %v8388_v61, %v14183_v28  ;;  %v10481_v3 = vrot.slane %v8720_v4, 9  ;;  %v7307_v31 = vld [vmem:[#allocation2 + $0x9c] sm:$0xe]  ;;  %v14200_v61 = vld [vmem:[#allocation2 + $0xb8] sm:$0xf] }
 0x440   : > { %v8801_v53 = vrot.slane %v10852_v16, 5  ;;  %v8379_v63 = vor.u32 %v8378_v45, %v8375_v6  ;;  %v7449_v4 = vsel %vm11195_vm7, %v7447_v15, %v7448_v38  ;;  %v8394_v59 = vrot.slane %v8392_v10, 5 }
 0x441   : > { %7973 = vmatmul.bf16.gmra.mxu3 %v10684_v41  ;;  %v7228_v39 = vpop.f32.mrf.mxu1  ;;  %v8390_v19 = vrot.slane %v8389_v56, 4  ;;  %v10267_v45 = vrot.slane %v7307_v31, 9  ;;  %v8406_v56 = vshll.u32 %v14200_v61, 16  ;;  %v7513_v10 = vunpack.c.l.b16 %v7449_v4 }
 0x442   : > { %v14193_v32 = vadd.f32 %v7228_v39, %v6599_v29  ;;  %8660 = vmatmul.bf16.gmra.mxu0 %v8528_v13  ;;  %v8802_v47 = vsel %vm11195_vm7, %v8800_v46, %v8801_v53  ;;  %v14658_v29 = vld [vmem:[#allocation23_spill] sm:$0xff]  ;;  %v14660_v13 = vld [vmem:[#allocation34_spill] sm:$0xff]  ;;  %v8410_v53 = vshrl.u32 %v14200_v61, 16 }
 0x443   : > { %7663 = vmatmul.bf16.gmra.mxu2 %v7531_v24  ;;  %v14659_v24 = vld [vmem:[#allocation33_spill] sm:$0xff]  ;;  %v8395_v46 = vsel %vm10960_vm4, %v8390_v19, %v8394_v59  ;;  %v7446_v15 = vsel %vm11195_vm7, %v10267_v45, %v7445_v9  ;;  %v8916_v38 = vunpack.c.l.b16 %v8802_v47  ;;  %v8861_v19 = vrot.slane %v14120_v51, 5 }
 0x444   : > { %14656 = vst [vmem:[#allocation28_spill] sm:$0xff] %v14193_v32  ;;  %v7934_v41 = vpop.f32.mrf.mxu3  ;;  %9036 = vmatmul.bf16.gmra.mxu1 %v8944_v14  ;;  %v6600_v14 = vadd.f32 %v14660_v13, %v14659_v24  ;;  %v10685_v32 = vld [vmem:[#allocation2 + $0x9c] sm:$0xff]  ;;  %v7512_v4 = vunpack.c.l.b16 %v7446_v15 }
 0x445   : > { %v14196_v54 = vadd.f32 %v7934_v41, %v7693_v21  ;;  %v8799_v21 = vsel %vm11195_vm7, %v10481_v3, %v8798_v55  ;;  %v8729_v41 = vld [vmem:[#allocation2 + $0x9c] sm:$0xe]  ;;  %v8380_v55 = vrot.slane %v8379_v63, 4  ;;  %v8075_v3 = vld [vmem:[#allocation2 + $0xb4] sm:$0xf] }
 0x446   : > { %v7624_v60 = vpop.f32.mrf.mxu2  ;;  %v8915_v31 = vunpack.c.l.b16 %v8799_v21  ;;  %v10490_v13 = vrot.slane %v8729_v41, 9  ;;  %v8397_v59 = vshrl.u32 %v8075_v3, 16  ;;  %v8863_v21 = vrot.slane %v8861_v19, 4  ;;  %v10853_v41 = vld [vmem:[#allocation2 + $0x40] sm:$0xf] }
 0x447   : > { %14657 = vst [vmem:[#allocation27_spill] sm:$0xff] %v14196_v54  ;;  %v7695_v39 = vadd.f32 %v7624_v60, %v14658_v29  ;;  %v14217_v60 = vpop.f32.mrf.mxu0  ;;  %v8385_v63 = vsel %vm10960_vm4, %v8380_v55, %v14183_v28  ;;  %v8412_v54 = vrot.slane %v8410_v53, 4  ;;  %v8805_v55 = vrot.slane %v10853_v41, 5 }
 0x448   : > { %v8862_v9 = vsel %vm11195_vm7, %v10490_v13, %v8861_v19  ;;  %v8509_v45 = vunpack.c.l.b16 %v8385_v63  ;;  %v8945_v28 = vpack.c.b16 %v8916_v38, %v8915_v31  ;;  %v7452_v53 = vrot.slane %v13955_v26, 5 }
 0x449   : > { %v7230_v6 = vpop.f32.mrf.mxu1  ;;  %v7532_v19 = vpack.c.b16 %v7513_v10, %v7512_v4  ;;  %v8933_v15 = vunpack.c.l.b16 %v8862_v9  ;;  %v8399_v63 = vrot.slane %v8397_v59, 4  ;;  %v8807_v9 = vrot.slane %v8805_v55, 4  ;;  %v10854_v59 = vld [vmem:[#allocation2 + $0x44] sm:$0x1]  ;;  %v7308_v4 = vld [vmem:[#allocation2 + $0xa8] sm:$0xe] }
 0x44a   : > { %v14212_v16 = vadd.f32 %v7230_v6, %v6600_v14  ;;  %v8510_v14 = vunpack.c.l.b16 %v8395_v46  ;;  %v8400_v6 = vshll.u32 %v8075_v3, 16  ;;  %v14663_v46 = vld [vmem:[#allocation35_spill] sm:$0xff]  ;;  %v7454_v10 = vrot.slane %v7452_v53, 4 }
 0x44c   : > { %14661 = vst [vmem:[#allocation30_spill] sm:$0xff] %v14212_v16  ;;  %v7936_v29 = vpop.f32.mrf.mxu3  ;;  %v14227_v16 = vrot.slane %v8406_v56, 5  ;;  %v14664_v56 = vld [vmem:[#allocation18_spill] sm:$0xff] }
 0x44d   : > { %v14221_v24 = vadd.f32 %v7936_v29, %v7694_v8  ;;  %v8864_v8 = vrot.slane %v14147_v18, 5  ;;  %v6601_v3 = vadd.f32 %v14664_v56, %v14663_v46  ;;  %v8529_v18 = vpack.c.b16 %v8510_v14, %v8509_v45 }
 0x44e   : > { %v7626_v47 = vpop.f32.mrf.mxu2 }
 0x44f   : > { %14662 = vst [vmem:[#allocation29_spill] sm:$0xff] %v14221_v24  ;;  %v7696_v51 = vadd.f32 %v7626_v47, %v13957_v0  ;;  %v8865_v29 = vsel %vm11195_vm7, %v8863_v21, %v8864_v8  ;;  %v14238_v24 = vld [vmem:[#allocation2 + $0xbc] sm:$0x1]  ;;  %v8402_v0 = vrot.slane %v8400_v6, 5  ;;  %v8721_v47 = vld [vmem:[#allocation2 + $0x3c] sm:$0xe]  ;;  %v14248_v21 = vpop.f32.mrf.mxu0 }
 0x450   : > { %v8934_v31 = vunpack.c.l.b16 %v8865_v29  ;;  %v8416_v14 = vshll.u32 %v14238_v24, 16  ;;  %v10482_v8 = vrot.slane %v8721_v47, 9  ;;  %v8808_v6 = vrot.slane %v10854_v59, 5  ;;  %v14667_v29 = vld [vmem:[#allocation7_spill] sm:$0xff] }
 0x451   : > { %7978 = vmatmul.bf16.gmra.mxu3 %v10685_v32  ;;  %v7233_v13 = vpop.f32.mrf.mxu1  ;;  %v8413_v32 = vor.u32 %v8412_v54, %v14227_v16  ;;  %v7455_v54 = vrot.slane %v13990_v50, 5  ;;  %v8403_v45 = vor.u32 %v8402_v0, %v8399_v63  ;;  %v10268_v47 = vrot.slane %v7308_v4, 9  ;;  %v8730_v63 = vld [vmem:[#allocation2 + $0xa8] sm:$0xe] }
 0x452   : > { %v14240_v38 = vadd.f32 %v7233_v13, %v6601_v3  ;;  %8665 = vmatmul.bf16.gmra.mxu0 %v8529_v18  ;;  %v14243_v26 = vpack.c.b16 %v8934_v31, %v8933_v15  ;;  %v14251_v3 = vld [vmem:[#allocation2 + $0xc4] sm:$0xf]  ;;  %v8418_v18 = vrot.slane %v8416_v14, 5  ;;  %v8809_v15 = vsel %vm11195_vm7, %v8807_v9, %v8808_v6 }
 0x453   : > { %7668 = vmatmul.bf16.gmra.mxu2 %v7532_v19  ;;  %v8414_v56 = vrot.slane %v8413_v32, 4  ;;  %v7456_v19 = vsel %vm11195_vm7, %v7454_v10, %v7455_v54  ;;  %v8430_v50 = vshll.u32 %v14251_v3, 16  ;;  %v8404_v32 = vrot.slane %v8403_v45, 4 }
 0x454   : > { %14665 = vst [vmem:[#allocation32_spill] sm:$0xff] %v14240_v38  ;;  %v7939_v41 = vpop.f32.mrf.mxu3  ;;  %9041 = vmatmul.bf16.gmra.mxu1 %v8945_v28  ;;  %v14666_v28 = vld [vmem:[#allocation11_spill] sm:$0xff]  ;;  %v7453_v10 = vsel %vm11195_vm7, %v10268_v47, %v7452_v53  ;;  %v7515_v14 = vunpack.c.l.b16 %v7456_v19  ;;  %v8918_v6 = vunpack.c.l.b16 %v8809_v15  ;;  %v10491_v45 = vrot.slane %v8730_v63, 9  ;;  %v14670_v47 = vld [vmem:[#allocation20_spill] sm:$0xff] }
 0x455   : > { %v14245_v46 = vadd.f32 %v7939_v41, %v7695_v39  ;;  %v8806_v39 = vsel %vm11195_vm7, %v10482_v8, %v8805_v55  ;;  %v6602_v13 = vadd.f32 %v14667_v29, %v14666_v28  ;;  %v8419_v55 = vsel %vm10960_vm4, %v8414_v56, %v8418_v18  ;;  %v8078_v41 = vld [vmem:[#allocation2 + $0xc0] sm:$0xf] }
 0x456   : > { %v8434_v8 = vshrl.u32 %v14251_v3, 16  ;;  %v8917_v9 = vunpack.c.l.b16 %v8806_v39  ;;  %v8409_v54 = vsel %vm10960_vm4, %v8404_v32, %v14227_v16  ;;  %v8868_v28 = vrot.slane %v14159_v35, 5  ;;  %v14671_v35 = vld [vmem:[#allocation9_spill] sm:$0xff] }
 0x457   : > { %v8512_v56 = vunpack.c.l.b16 %v8419_v55  ;;  %v8421_v29 = vshrl.u32 %v8078_v41, 16  ;;  %v14275_v18 = vrot.slane %v8430_v50, 5  ;;  %v14280_v19 = vpop.f32.mrf.mxu0  ;;  %v7514_v15 = vunpack.c.l.b16 %v7453_v10  ;;  %v10855_v55 = vld [vmem:[#allocation2 + $0x4c] sm:$0xf] }
 0x458   : > { %v8869_v53 = vsel %vm11195_vm7, %v10491_v45, %v8868_v28  ;;  %v8870_v39 = vrot.slane %v8868_v28, 4  ;;  %v8511_v16 = vunpack.c.l.b16 %v8409_v54  ;;  %v6603_v63 = vadd.f32 %v14671_v35, %v14670_v47  ;;  %v14286_v28 = vld [vmem:[#allocation2 + $0xc8] sm:$0x1]  ;;  %v14673_v47 = vld [vmem:[#allocation8_spill] sm:$0xff] }
 0x459   : > { %v7235_v31 = vpop.f32.mrf.mxu1  ;;  %v8946_v32 = vpack.c.b16 %v8918_v6, %v8917_v9  ;;  %v8812_v50 = vrot.slane %v10855_v55, 5  ;;  %v8423_v10 = vrot.slane %v8421_v29, 4  ;;  %v7459_v9 = vrot.slane %v14003_v48, 5 }
 0x45a   : > { %v14262_v0 = vadd.f32 %v7235_v31, %v6602_v13  ;;  %v8424_v13 = vshll.u32 %v8078_v41, 16  ;;  %v10686_v31 = vld [vmem:[#allocation2 + $0xa8] sm:$0xff]  ;;  %v8530_v45 = vpack.c.b16 %v8512_v56, %v8511_v16  ;;  %v14672_v16 = vld [vmem:[#allocation12_spill] sm:$0xff] }
 0x45b   : > { %v6604_v29 = vadd.f32 %v14673_v47, %v14672_v16 }
 0x45c   : > { %14668 = vst [vmem:[#allocation31_spill] sm:$0xff] %v14262_v0  ;;  %v7941_v59 = vpop.f32.mrf.mxu3  ;;  %v8436_v0 = vrot.slane %v8434_v8, 4  ;;  %v8426_v54 = vrot.slane %v8424_v13, 5  ;;  %v7309_v13 = vld [vmem:[#allocation2 + $0xb4] sm:$0xe] }
 0x45d   : > { %v14269_v4 = vadd.f32 %v7941_v59, %v7696_v51  ;;  %v8871_v51 = vrot.slane %v14191_v27, 5  ;;  %v7533_v59 = vpack.c.b16 %v7515_v14, %v7514_v15  ;;  %v8935_v27 = vunpack.c.l.b16 %v8869_v53 }
 0x45e   : > { %v8440_v14 = vshll.u32 %v14286_v28, 16  ;;  %v8427_v56 = vor.u32 %v8426_v54, %v8423_v10  ;;  %v8814_v53 = vrot.slane %v8812_v50, 4  ;;  %v7461_v15 = vrot.slane %v7459_v9, 4 }
 0x45f   : > { %14669 = vst [vmem:[#allocation23_spill] sm:$0xff] %v14269_v4  ;;  %v8872_v41 = vsel %vm11195_vm7, %v8870_v39, %v8871_v51  ;;  %v8722_v51 = vld [vmem:[#allocation2 + $0x48] sm:$0xe]  ;;  %v14297_v55 = vpop.f32.mrf.mxu0  ;;  %v10269_v10 = vrot.slane %v7309_v13, 9  ;;  %v8878_v13 = vrot.slane %v14238_v24, 5 }
 0x460   : > { %v8936_v38 = vunpack.c.l.b16 %v8872_v41  ;;  %v8442_v35 = vrot.slane %v8440_v14, 5  ;;  %v8731_v41 = vld [vmem:[#allocation2 + $0xb4] sm:$0xe] }
 0x461   : > { %7983 = vmatmul.bf16.gmra.mxu3 %v10686_v31  ;;  %v7238_v8 = vpop.f32.mrf.mxu1  ;;  %v8437_v31 = vor.u32 %v8436_v0, %v14275_v18  ;;  %v10856_v0 = vld [vmem:[#allocation2 + $0x50] sm:$0x1]  ;;  %v10492_v14 = vrot.slane %v8731_v41, 9 }
 0x462   : > { %v14288_v4 = vadd.f32 %v7238_v8, %v6603_v63  ;;  %8670 = vmatmul.bf16.gmra.mxu0 %v8530_v45  ;;  %v14292_v6 = vpack.c.b16 %v8936_v38, %v8935_v27  ;;  %v8815_v63 = vrot.slane %v10856_v0, 5  ;;  %v7462_v38 = vrot.slane %v14033_v62, 5 }
 0x463   : > { %7673 = vmatmul.bf16.gmra.mxu2 %v7533_v59  ;;  %v8438_v39 = vrot.slane %v8437_v31, 4  ;;  %v8428_v59 = vrot.slane %v8427_v56, 4  ;;  %v8875_v56 = vrot.slane %v14200_v61, 5 }
 0x464   : > { %9046 = vmatmul.bf16.gmra.mxu1 %v8946_v32  ;;  %v10483_v32 = vrot.slane %v8722_v51, 9  ;;  %v8816_v27 = vsel %vm11195_vm7, %v8814_v53, %v8815_v63  ;;  %v7463_v54 = vsel %vm11195_vm7, %v7461_v15, %v7462_v38  ;;  %v10687_v53 = vld [vmem:[#allocation2 + $0xb4] sm:$0xff] }
 0x465   : > { %v8443_v45 = vsel %vm10960_vm4, %v8438_v39, %v8442_v35  ;;  %v8433_v31 = vsel %vm10960_vm4, %v8428_v59, %v14275_v18  ;;  %v7460_v39 = vsel %vm11195_vm7, %v10269_v10, %v7459_v9  ;;  %v8920_v16 = vunpack.c.l.b16 %v8816_v27  ;;  %v10857_v63 = vld [vmem:[#allocation2 + $0x58] sm:$0xf]  ;;  %v4378_v9 = vld [vmem:[#allocation2 + $0xcc] sm:$0x1] }
 0x466   : > { %v8813_v62 = vsel %vm11195_vm7, %v10483_v32, %v8812_v50  ;;  %v8514_v51 = vunpack.c.l.b16 %v8443_v45  ;;  %v7517_v47 = vunpack.c.l.b16 %v7463_v54  ;;  %v8876_v15 = vsel %vm11195_vm7, %v10492_v14, %v8875_v56  ;;  %v14674_v50 = vld [vmem:[#allocation13_spill] sm:$0xff] }
 0x467   : > { %v8513_v18 = vunpack.c.l.b16 %v8433_v31  ;;  %v8919_v35 = vunpack.c.l.b16 %v8813_v62  ;;  %v6605_v0 = vadd.f32 %v13985_v25, %v14674_v50  ;;  %v7516_v61 = vunpack.c.l.b16 %v7460_v39  ;;  %v14328_v62 = vpop.f32.mrf.mxu0  ;;  %v14337_v50 = vld [vmem:[#allocation2 + $0xd0] sm:$0xf] }
 0x468   : > { %v4379_v45 = vsel %vm12190_vm10, 0, %v4378_v9  ;;  %v8937_v27 = vunpack.c.l.b16 %v8876_v15  ;;  %v7466_v25 = vrot.slane %v14047_v12, 5  ;;  %v10858_v15 = vld [vmem:[#allocation2 + $0x5c] sm:$0x1] }
 0x469   : > { %v7240_v48 = vpop.f32.mrf.mxu1  ;;  %v8531_v41 = vpack.c.b16 %v8514_v51, %v8513_v18  ;;  %v7534_v54 = vpack.c.b16 %v7517_v47, %v7516_v61  ;;  %v8947_v31 = vpack.c.b16 %v8920_v16, %v8919_v35  ;;  %4380 = vst [vmem:[#allocation2 + $0xcc] sm:$0x1] %v4379_v45  ;;  %v7310_v51 = vld [vmem:[#allocation2 + $0xc0] sm:$0xe]  ;;  %v4434_v35 = vld [vmem:[#allocation2 + $0xd4] sm:$0x1] }
 0x46a   : > { %v14300_v8 = vadd.f32 %v7240_v48, %v6604_v29  ;;  %v8877_v29 = vrot.slane %v8875_v56, 4  ;;  %v8819_v48 = vrot.slane %v10857_v63, 5  ;;  %v8723_v56 = vld [vmem:[#allocation2 + $0x54] sm:$0xe]  ;;  %v14676_v16 = vld [vmem:[#allocation16_spill] sm:$0xff]  ;;  %v10270_v63 = vrot.slane %v7310_v51, 9 }
 0x46b   : > { %v10484_v47 = vrot.slane %v8723_v56, 9  ;;  %v6606_v12 = vadd.f32 %v14012_v52, %v14676_v16 }
 0x46c   : > { %v8879_v38 = vsel %vm11195_vm7, %v8877_v29, %v8878_v13  ;;  %v8821_v39 = vrot.slane %v8819_v48, 4  ;;  %v8822_v29 = vrot.slane %v10858_v15, 5  ;;  %v7469_v13 = vrot.slane %v14077_v30, 5 }
 0x46d   : > { %v8938_v24 = vunpack.c.l.b16 %v8879_v38  ;;  %v4435_v38 = vsel %vm12225_vm12, 0, %v4434_v35  ;;  %v8458_v30 = vshrl.u32 %v14337_v50, 16 }
 0x46e   : > { %v8823_v18 = vsel %vm11195_vm7, %v8821_v39, %v8822_v29  ;;  %4436 = vst [vmem:[#allocation2 + $0xd4] sm:$0x1] %v4435_v38  ;;  %v8882_v29 = vrot.slane %v14251_v3, 5 }
 0x46f   : > { %v14330_v14 = vpack.c.b16 %v8938_v24, %v8937_v27  ;;  %v7467_v24 = vsel %vm11195_vm7, %v10270_v63, %v7466_v25  ;;  %v8460_v56 = vrot.slane %v8458_v30, 4 }
 0x470   : > { %v8884_v9 = vrot.slane %v8882_v29, 4  ;;  %v7518_v63 = vunpack.c.l.b16 %v7467_v24  ;;  %v10689_v33 = vld [vmem:[#allocation2 + $0xcc] sm:$0xff] }
 0x471   : > { %7988 = vmatmul.bf16.gmra.mxu3 %v10687_v53  ;;  %v7243_v32 = vpop.f32.mrf.mxu1  ;;  %v7468_v53 = vrot.slane %v7466_v25, 4  ;;  %v8885_v25 = vrot.slane %v14286_v28, 5 }
 0x472   : > { %v14325_v10 = vadd.f32 %v7243_v32, %v6605_v0  ;;  %8675 = vmatmul.bf16.gmra.mxu0 %v8531_v41  ;;  %v8732_v0 = vld [vmem:[#allocation2 + $0xc0] sm:$0xe]  ;;  %v8081_v32 = vld [vmem:[#allocation2 + $0xcc] sm:$0xf]  ;;  %v8454_v41 = vshll.u32 %v14337_v50, 16 }
 0x473   : > { %7678 = vmatmul.bf16.gmra.mxu2 %v7534_v54  ;;  %v7470_v52 = vsel %vm11195_vm7, %v7468_v53, %v7469_v13  ;;  %v8445_v45 = vshrl.u32 %v8081_v32, 16  ;;  %v8448_v27 = vshll.u32 %v8081_v32, 16  ;;  %v8820_v54 = vsel %vm11195_vm7, %v10484_v47, %v8819_v48  ;;  %v10688_v53 = vld [vmem:[#allocation2 + $0xc0] sm:$0xff] }
 0x474   : > { %9051 = vmatmul.bf16.gmra.mxu1 %v8947_v31  ;;  %v8456_v31 = vrot.slane %v8454_v41, 5  ;;  %v10493_v15 = vrot.slane %v8732_v0, 9  ;;  %v7519_v16 = vunpack.c.l.b16 %v7470_v52  ;;  %v8921_v48 = vunpack.c.l.b16 %v8820_v54 }
 0x475   : > { %v8447_v39 = vrot.slane %v8445_v45, 4  ;;  %v8450_v51 = vrot.slane %v8448_v27, 5  ;;  %v6607_v47 = vadd.f32 %v14040_v42, %v13993_v43  ;;  %v8886_v3 = vsel %vm11195_vm7, %v8884_v9, %v8885_v25  ;;  %v14361_v30 = vld [vmem:[#allocation2 + $0xd4] sm:$0x1]  ;;  %v10859_v42 = vld [vmem:[#allocation2 + $0x64] sm:$0xf] }
 0x476   : > { %v8461_v35 = vor.u32 %v8460_v56, %v8456_v31  ;;  %v7535_v32 = vpack.c.b16 %v7519_v16, %v7518_v63  ;;  %v8940_v45 = vunpack.c.l.b16 %v8886_v3  ;;  %v8464_v43 = vshll.u32 %v14361_v30, 16 }
 0x477   : > { %v8451_v13 = vor.u32 %v8450_v51, %v8447_v39  ;;  %v8826_v54 = vrot.slane %v10859_v42, 5  ;;  %v8725_v42 = vld [vmem:[#allocation2 + $0x6c] sm:$0xe] }
 0x478   : > { %v8462_v24 = vrot.slane %v8461_v35, 4  ;;  %v8466_v39 = vrot.slane %v8464_v43, 5  ;;  %v6610_v43 = vadd.f32 %v14114_v2, %v14062_v37 }
 0x479   : > { %v7245_v61 = vpop.f32.mrf.mxu1  ;;  %v8452_v0 = vrot.slane %v8451_v13, 4  ;;  %v10860_v13 = vld [vmem:[#allocation2 + $0x68] sm:$0x1] }
 0x47a   : > { %v14343_v59 = vadd.f32 %v7245_v61, %v6606_v12  ;;  %v8922_v12 = vunpack.c.l.b16 %v8823_v18  ;;  %v8883_v61 = vsel %vm11195_vm7, %v10493_v15, %v8882_v29  ;;  %v14359_v18 = vpop.f32.mrf.mxu0  ;;  %v8467_v15 = vsel %vm10960_vm4, %v8462_v24, %v8466_v39 }
 0x47b   : > { %v8939_v52 = vunpack.c.l.b16 %v8883_v61  ;;  %v8457_v27 = vsel %vm10960_vm4, %v8452_v0, %v8456_v31  ;;  %v8828_v29 = vrot.slane %v8826_v54, 4  ;;  %v8516_v16 = vunpack.c.l.b16 %v8467_v15  ;;  %v8724_v31 = vld [vmem:[#allocation2 + $0x60] sm:$0xe] }
 0x47c   : > { %v8948_v41 = vpack.c.b16 %v8922_v12, %v8921_v48  ;;  %v8515_v51 = vunpack.c.l.b16 %v8457_v27  ;;  %v14678_v12 = vld [vmem:[#allocation14_spill] sm:$0xff]  ;;  %v8829_v61 = vrot.slane %v10860_v13, 5  ;;  %v10485_v48 = vrot.slane %v8724_v31, 9 }
 0x47d   : > { %v14368_v56 = vpack.c.b16 %v8940_v45, %v8939_v52  ;;  %v10861_v45 = vld [vmem:[#allocation2 + $0x70] sm:$0xf] }
 0x47e   : > { %v8532_v9 = vpack.c.b16 %v8516_v16, %v8515_v51  ;;  %v8827_v0 = vsel %vm11195_vm7, %v10485_v48, %v8826_v54  ;;  %v8833_v27 = vrot.slane %v10861_v45, 5  ;;  %v10862_v54 = vld [vmem:[#allocation2 + $0x74] sm:$0x1]  ;;  %v8726_v48 = vld [vmem:[#allocation2 + $0x78] sm:$0xe] }
 0x47f   : > { %v8836_v51 = vrot.slane %v10862_v54, 5  ;;  %v14410_v54 = vpop.f32.mrf.mxu2 }
 0x480   : > { %v8835_v24 = vrot.slane %v8833_v27, 4 }
 0x481   : > { %7993 = vmatmul.bf16.gmra.mxu3 %v10688_v53  ;;  %v7248_v38 = vpop.f32.mrf.mxu1  ;;  %v6608_v53 = vadd.f32 %v14069_v57, %v14678_v12  ;;  %v6609_v57 = vadd.f32 %v14090_v49, %v14037_v58  ;;  %v6611_v12 = vadd.f32 %v14137_v23, %v14080_v20 }
 0x482   : > { %v14363_v28 = vadd.f32 %v7248_v38, %v6607_v47  ;;  %v14376_v63 = vpop.f32.mrf.mxu0  ;;  %v8830_v47 = vsel %vm11195_vm7, %v8828_v29, %v8829_v61  ;;  %8680 = vmatmul.bf16.gmra.mxu0 %v8532_v9  ;;  %v8923_v38 = vunpack.c.l.b16 %v8827_v0  ;;  %v10486_v29 = vrot.slane %v8725_v42, 9 }
 0x483   : > { %7683 = vmatmul.bf16.gmra.mxu2 %v7535_v32  ;;  %v8924_v3 = vunpack.c.l.b16 %v8830_v47  ;;  %v8837_v58 = vsel %vm11195_vm7, %v8835_v24, %v8836_v51  ;;  %v6612_v9 = vadd.f32 %v14156_v1, %v14100_v40  ;;  %v8686_v1 = vadd.f32 %v14189_v34, %v14116_v7 }
 0x484   : > { %9056 = vmatmul.bf16.gmra.mxu1 %v8948_v41  ;;  %v8834_v49 = vsel %vm11195_vm7, %v10486_v29, %v8833_v27  ;;  %v8926_v16 = vunpack.c.l.b16 %v8837_v58  ;;  %v10865_v27 = vld [vmem:[#allocation2 + $0x88] sm:$0xf]  ;;  %v8687_v42 = vadd.f32 %v14217_v60, %v14133_v44  ;;  %v8850_v29 = vrot.slane %v14073_v11, 5 }
 0x485   : > { %v8949_v52 = vpack.c.b16 %v8924_v3, %v8923_v38  ;;  %v8847_v40 = vrot.slane %v10865_v27, 5 }
 0x487   : > { %v8849_v24 = vrot.slane %v8847_v40, 4 }
 0x489   : > { %v7250_v35 = vpop.f32.mrf.mxu1 }
 0x48a   : > { %v14374_v25 = vadd.f32 %v7250_v35, %v6608_v53  ;;  %v8925_v53 = vunpack.c.l.b16 %v8834_v49  ;;  %v10863_v35 = vld [vmem:[#allocation2 + $0x7c] sm:$0xf]  ;;  %v14414_v49 = vpop.f32.mrf.mxu3 }
 0x48b   : > { %v8840_v13 = vrot.slane %v10863_v35, 5 }
 0x48c   : > { %v8950_v2 = vpack.c.b16 %v8926_v16, %v8925_v53 }
 0x48d   : > { %v8842_v61 = vrot.slane %v8840_v13, 4 }
 0x491   : > { %7998 = vmatmul.bf16.gmra.mxu3 %v10689_v33  ;;  %v7253_v32 = vpop.f32.mrf.mxu1  ;;  %v10864_v33 = vld [vmem:[#allocation2 + $0x80] sm:$0x1] }
 0x492   : > { %v14384_v41 = vadd.f32 %v7253_v32, %v6609_v57  ;;  %v8843_v0 = vrot.slane %v10864_v33, 5  ;;  %v10487_v57 = vrot.slane %v8726_v48, 9  ;;  %v8688_v48 = vadd.f32 %v14248_v21, %v14152_v36 }
 0x494   : > { %9061 = vmatmul.bf16.gmra.mxu1 %v8949_v52  ;;  %v8844_v20 = vsel %vm11195_vm7, %v8842_v61, %v8843_v0  ;;  %v8841_v23 = vsel %vm11195_vm7, %v10487_v57, %v8840_v13  ;;  %v7631_v13 = vpop.f32.mrf.mxu2  ;;  %v8854_v61 = vrot.slane %v14085_v22, 5  ;;  %v8689_v0 = vadd.f32 %v14280_v19, %v14174_v5  ;;  %v8728_v57 = vld [vmem:[#allocation2 + $0x90] sm:$0xe] }
 0x495   : > { %v8928_v38 = vunpack.c.l.b16 %v8844_v20  ;;  %v8927_v32 = vunpack.c.l.b16 %v8841_v23  ;;  %v14679_v23 = vld [vmem:[#allocation24_spill] sm:$0xff] }
 0x497   : > { %v8951_v45 = vpack.c.b16 %v8928_v38, %v8927_v32  ;;  %v8857_v38 = vrot.slane %v14679_v23, 5 }
 0x499   : > { %v7255_v39 = vpop.f32.mrf.mxu1 }
 0x49a   : > { %v14388_v15 = vadd.f32 %v7255_v39, %v6610_v43  ;;  %v8727_v39 = vld [vmem:[#allocation2 + $0x84] sm:$0xe] }
 0x49b   : > { %v10488_v16 = vrot.slane %v8727_v39, 9 }
 0x49d   : > { %v8848_v44 = vsel %vm11195_vm7, %v10488_v16, %v8847_v40 }
 0x49e   : > { %v8929_v53 = vunpack.c.l.b16 %v8848_v44 }
 0x4a1   : > { %v7258_v31 = vpop.f32.mrf.mxu1 }
 0x4a2   : > { %v14396_v37 = vadd.f32 %v7258_v31, %v6611_v12  ;;  %v8851_v12 = vsel %vm11195_vm7, %v8849_v24, %v8850_v29  ;;  %v14426_v31 = vpop.f32.mrf.mxu0 }
 0x4a3   : > { %v8930_v60 = vunpack.c.l.b16 %v8851_v12  ;;  %v14681_v12 = vld [vmem:[#allocation29_spill] sm:$0xff] }
 0x4a4   : > { %9066 = vmatmul.bf16.gmra.mxu1 %v8950_v2 }
 0x4a5   : > { %v8952_v35 = vpack.c.b16 %v8930_v60, %v8929_v53 }
 0x4a9   : > { %v7260_v47 = vpop.f32.mrf.mxu1 }
 0x4aa   : > { %v14400_v3 = vadd.f32 %v7260_v47, %v6612_v9  ;;  %v7946_v9 = vpop.f32.mrf.mxu3  ;;  %v8856_v47 = vrot.slane %v8854_v61, 4 }
 0x4ac   : > { %v8858_v22 = vsel %vm11195_vm7, %v8856_v47, %v8857_v38 }
 0x4ad   : > { %v8932_v24 = vunpack.c.l.b16 %v8858_v22 }
 0x4b1   : > { %v9032_v52 = vpop.f32.mrf.mxu1 }
 0x4b2   : > { %v9112_v43 = vadd.f32 %v9032_v52, %v8686_v1  ;;  %v8628_v52 = vpop.f32.mrf.mxu0  ;;  %v7634_v1 = vpop.f32.mrf.mxu2 }
 0x4b4   : > { %9071 = vmatmul.bf16.gmra.mxu1 %v8951_v45  ;;  %v9144_v7 = vmax.f32 %v9112_v43, 0.0  ;;  %v10489_v45 = vrot.slane %v8728_v57, 9  ;;  %v7949_v43 = vpop.f32.mrf.mxu3 }
 0x4b6   : > { %v8855_v36 = vsel %vm11195_vm7, %v10489_v45, %v8854_v61 }
 0x4b7   : > { %v8931_v5 = vunpack.c.l.b16 %v8855_v36 }
 0x4b9   : > { %v9034_v51 = vpop.f32.mrf.mxu1 }
 0x4ba   : > { %v9113_v58 = vadd.f32 %v9034_v51, %v8687_v42  ;;  %v8953_v42 = vpack.c.b16 %v8932_v24, %v8931_v5  ;;  %v8631_v39 = vpop.f32.mrf.mxu0  ;;  %v14680_v51 = vld [vmem:[#allocation27_spill] sm:$0xff] }
 0x4bb   : > { %v8690_v29 = vadd.f32 %v14297_v55, %v14680_v51  ;;  %v8692_v55 = vadd.f32 %v14359_v18, %v14245_v46 }
 0x4bc   : > { %v9145_v34 = vmax.f32 %v9113_v58, 0.0  ;;  %v7636_v58 = vpop.f32.mrf.mxu2 }
 0x4be   : > { %v10717_v11 = vpack.c.bf16 %v9145_v34, %v9144_v7  ;;  %v8691_v7 = vadd.f32 %v14328_v62, %v14681_v12  ;;  %v7951_v34 = vpop.f32.mrf.mxu3 }
 0x4c0   : > { %10718 = vst [vmem:[%s14421_s14] sm:$0xff] %v10717_v11  }
 0x4c1   : > { %v9037_v2 = vpop.f32.mrf.mxu1 }
 0x4c2   : > { %v9114_v33 = vadd.f32 %v9037_v2, %v8688_v48 }
 0x4c4   : > { %9076 = vmatmul.bf16.gmra.mxu1 %v8952_v35  ;;  %v9146_v27 = vmax.f32 %v9114_v33, 0.0  ;;  %v8633_v35 = vpop.f32.mrf.mxu0  ;;  %v7639_v61 = vpop.f32.mrf.mxu2 }
 0x4c6   : > { %v7954_v47 = vpop.f32.mrf.mxu3 }
 0x4c9   : > { %v9039_v20 = vpop.f32.mrf.mxu1 }
 0x4ca   : > { %v9115_v32 = vadd.f32 %v9039_v20, %v8689_v0  ;;  %v14682_v0 = vld [vmem:[#allocation23_spill] sm:$0xff] }
 0x4cb   : > { %v8693_v62 = vadd.f32 %v14376_v63, %v14682_v0 }
 0x4cc   : > { %v9147_v40 = vmax.f32 %v9115_v32, 0.0  ;;  %v8636_v57 = vpop.f32.mrf.mxu0  ;;  %v7641_v38 = vpop.f32.mrf.mxu2 }
 0x4ce   : > { %v10722_v21 = vpack.c.bf16 %v9147_v40, %v9146_v27  ;;  %v7956_v22 = vpop.f32.mrf.mxu3  ;;  %v14683_v40 = vld [vmem:[#allocation10_spill] sm:$0xff] }
 0x4cf   : > { %v7697_v36 = vadd.f32 %v14410_v54, %v14683_v40  ;;  %v14687_v40 = vld [vmem:[#allocation21_spill] sm:$0xff] }
 0x4d0   : > { %10794 = vst [vmem:[%s14421_s14 + $0x8] sm:$0xff] %v10722_v21   ;;  %v14684_v21 = vld [vmem:[#allocation17_spill] sm:$0xff] }
 0x4d1   : > { %v9042_v19 = vpop.f32.mrf.mxu1  ;;  %v7698_v24 = vadd.f32 %v7631_v13, %v14684_v21  ;;  %v8012_v46 = vadd.f32 %v14414_v49, %v7697_v36  ;;  %v14685_v49 = vld [vmem:[#allocation5_spill] sm:$0xff]  ;;  %v7701_v36 = vadd.f32 %v7639_v61, %v14687_v40 }
 0x4d2   : > { %v9116_v16 = vadd.f32 %v9042_v19, %v8690_v29  ;;  %v8733_v21 = vld [vmem:[#allocation2 + $0xcc] sm:$0xe] }
 0x4d3   : > { %v8013_v63 = vadd.f32 %v7946_v9, %v7698_v24  ;;  %v8694_v19 = vadd.f32 %v14426_v31, %v8012_v46 }
 0x4d4   : > { %9081 = vmatmul.bf16.gmra.mxu1 %v8953_v42  ;;  %v9148_v60 = vmax.f32 %v9116_v16, 0.0  ;;  %v8638_v18 = vpop.f32.mrf.mxu0  ;;  %v7644_v5 = vpop.f32.mrf.mxu2 }
 0x4d5   : > { %v8695_v29 = vadd.f32 %v8628_v52, %v8013_v63  ;;  %v10494_v63 = vrot.slane %v8733_v21, 9 }
 0x4d6   : > { %v14456_v42 = vpop.f32.mrf.mxu3 }
 0x4d9   : > { %v9044_v44 = vpop.f32.mrf.mxu1 }
 0x4da   : > { %v9117_v11 = vadd.f32 %v9044_v44, %v8691_v7 }
 0x4dc   : > { %v9149_v53 = vmax.f32 %v9117_v11, 0.0  ;;  %v8641_v44 = vpop.f32.mrf.mxu0  ;;  %v7646_v11 = vpop.f32.mrf.mxu2 }
 0x4de   : > { %v10727_v2 = vpack.c.bf16 %v9149_v53, %v9148_v60  ;;  %v7699_v60 = vadd.f32 %v7634_v1, %v14685_v49  ;;  %v7961_v9 = vpop.f32.mrf.mxu3 }
 0x4e0   : > { %10795 = vst [vmem:[%s14421_s14 + $0x10] sm:$0xff] %v10727_v2   ;;  %v8014_v31 = vadd.f32 %v7949_v43, %v7699_v60  ;;  %v8889_v43 = vrot.slane %v14337_v50, 5 }
 0x4e1   : > { %v9047_v48 = vpop.f32.mrf.mxu1 }
 0x4e2   : > { %v9118_v33 = vadd.f32 %v9047_v48, %v8692_v55  ;;  %v8696_v52 = vadd.f32 %v8631_v39, %v8014_v31  ;;  %v8016_v39 = vadd.f32 %v7954_v47, %v7701_v36  ;;  %v8890_v50 = vsel %vm11195_vm7, %v10494_v63, %v8889_v43 }
 0x4e4   : > { %9086 = vmatmul.bf16.gmra.mxu1 %v14243_v26  ;;  %v9150_v32 = vmax.f32 %v9118_v33, 0.0  ;;  %v8643_v55 = vpop.f32.mrf.mxu0 }
 0x4e9   : > { %v9049_v20 = vpop.f32.mrf.mxu1 }
 0x4ea   : > { %v9119_v23 = vadd.f32 %v9049_v20, %v8693_v62  ;;  %v7649_v62 = vpop.f32.mrf.mxu2 }
 0x4ec   : > { %v9151_v45 = vmax.f32 %v9119_v23, 0.0 }
 0x4ee   : > { %v10732_v27 = vpack.c.bf16 %v9151_v45, %v9150_v32  ;;  %v7964_v32 = vpop.f32.mrf.mxu3 }
 0x4f0   : > { %10796 = vst [vmem:[%s14421_s14 + $0x18] sm:$0xff] %v10732_v27  }
 0x4f1   : > { %v9052_v26 = vpop.f32.mrf.mxu1 }
 0x4f2   : > { %v9120_v51 = vadd.f32 %v9052_v26, %v8694_v19  ;;  %v7651_v24 = vpop.f32.mrf.mxu2  ;;  %v8891_v19 = vrot.slane %v8889_v43, 4  ;;  %v14691_v43 = vld [vmem:[#allocation25_spill] sm:$0xff] }
 0x4f4   : > { %9091 = vmatmul.bf16.gmra.mxu1 %v14292_v6  ;;  %v9152_v12 = vmax.f32 %v9120_v51, 0.0  ;;  %v14686_v6 = vld [vmem:[#allocation15_spill] sm:$0xff]  ;;  %v8892_v51 = vrot.slane %v14361_v30, 5 }
 0x4f5   : > { %v7700_v2 = vadd.f32 %v7636_v58, %v14686_v6  ;;  %v8646_v58 = vpop.f32.mrf.mxu0 }
 0x4f6   : > { %v7966_v46 = vpop.f32.mrf.mxu3  ;;  %v8893_v47 = vsel %vm11195_vm7, %v8891_v19, %v8892_v51 }
 0x4f7   : > { %v8015_v48 = vadd.f32 %v7951_v34, %v7700_v2  ;;  %v14688_v34 = vld [vmem:[#allocation3_spill] sm:$0xff]  ;;  %v14690_v2 = vld [vmem:[#allocation22_spill] sm:$0xff] }
 0x4f8   : > { %v7704_v31 = vadd.f32 %v7646_v11, %v14690_v2 }
 0x4f9   : > { %v9054_v16 = vpop.f32.mrf.mxu1  ;;  %v8697_v0 = vadd.f32 %v8633_v35, %v8015_v48 }
 0x4fa   : > { %v9121_v54 = vadd.f32 %v9054_v16, %v8695_v29  ;;  %v8698_v29 = vadd.f32 %v8636_v57, %v8016_v39  ;;  %v7654_v49 = vpop.f32.mrf.mxu2  ;;  %v14689_v57 = vld [vmem:[#allocation6_spill] sm:$0xff]  ;;  %v8019_v17 = vadd.f32 %v7961_v9, %v7704_v31 }
 0x4fc   : > { %v9153_v7 = vmax.f32 %v9121_v54, 0.0 }
 0x4fe   : > { %v10737_v13 = vpack.c.bf16 %v9153_v7, %v9152_v12  ;;  %v8941_v7 = vunpack.c.l.b16 %v8890_v50  ;;  %v7969_v30 = vpop.f32.mrf.mxu3 }
 0x500   : > { %10797 = vst [vmem:[%s14421_s14 + $0x20] sm:$0xff] %v10737_v13   ;;  %v8942_v13 = vunpack.c.l.b16 %v8893_v47  ;;  %v14693_v47 = vld [vmem:[#allocation28_spill] sm:$0xff] }
 0x501   : > { %v9057_v53 = vpop.f32.mrf.mxu1 }
 0x502   : > { %v9122_v33 = vadd.f32 %v9057_v53, %v8696_v52  ;;  %v7703_v53 = vadd.f32 %v7644_v5, %v14689_v57 }
 0x504   : > { %9096 = vmatmul.bf16.gmra.mxu1 %v14330_v14  ;;  %v9154_v45 = vmax.f32 %v9122_v33, 0.0  ;;  %v7702_v14 = vadd.f32 %v7641_v38, %v14688_v34  ;;  %v8018_v48 = vadd.f32 %v14456_v42, %v7703_v53  ;;  %v7705_v34 = vadd.f32 %v7649_v62, %v14691_v43 }
 0x506   : > { %v8017_v35 = vadd.f32 %v7956_v22, %v7702_v14  ;;  %v8648_v22 = vpop.f32.mrf.mxu0  ;;  %v8700_v33 = vadd.f32 %v8641_v44, %v8018_v48  ;;  %v14692_v14 = vld [vmem:[#allocation26_spill] sm:$0xff]  ;;  %v8020_v39 = vadd.f32 %v7964_v32, %v7705_v34 }
 0x507   : > { %v7706_v9 = vadd.f32 %v7651_v24, %v14692_v14  ;;  %v14694_v24 = vld [vmem:[#allocation30_spill] sm:$0xff] }
 0x508   : > { %v8699_v16 = vadd.f32 %v8638_v18, %v8017_v35  ;;  %v8958_v18 = vpack.c.b16 %v8942_v13, %v8941_v7  ;;  %v8702_v35 = vadd.f32 %v8646_v58, %v8020_v39 }
 0x509   : > { %v9059_v20 = vpop.f32.mrf.mxu1  ;;  %v8021_v21 = vadd.f32 %v7966_v46, %v7706_v9 }
 0x50a   : > { %v9123_v23 = vadd.f32 %v9059_v20, %v8697_v0  ;;  %v7656_v0 = vpop.f32.mrf.mxu2 }
 0x50b   : > { %v8703_v63 = vadd.f32 %v8648_v22, %v8021_v21 }
 0x50c   : > { %v9155_v1 = vmax.f32 %v9123_v23, 0.0  ;;  %v8701_v23 = vadd.f32 %v8643_v55, %v8019_v17  ;;  %v14695_v17 = vld [vmem:[#allocation32_spill] sm:$0xff] }
 0x50e   : > { %v10742_v27 = vpack.c.bf16 %v9155_v1, %v9154_v45  ;;  %v8651_v52 = vpop.f32.mrf.mxu0  ;;  %v7971_v45 = vpop.f32.mrf.mxu3 }
 0x510   : > { %10798 = vst [vmem:[%s14421_s14 + $0x28] sm:$0xff] %v10742_v27  }
 0x511   : > { %v9062_v26 = vpop.f32.mrf.mxu1 }
 0x512   : > { %v9124_v61 = vadd.f32 %v9062_v26, %v8698_v29  ;;  %v7659_v11 = vpop.f32.mrf.mxu2 }
 0x514   : > { %9101 = vmatmul.bf16.gmra.mxu1 %v14368_v56  ;;  %v9156_v12 = vmax.f32 %v9124_v61, 0.0 }
 0x516   : > { %v8653_v26 = vpop.f32.mrf.mxu0  ;;  %v7974_v44 = vpop.f32.mrf.mxu3 }
 0x519   : > { %v9064_v54 = vpop.f32.mrf.mxu1 }
 0x51a   : > { %v9125_v38 = vadd.f32 %v9064_v54, %v8699_v16  ;;  %v7661_v61 = vpop.f32.mrf.mxu2 }
 0x51c   : > { %v9157_v56 = vmax.f32 %v9125_v38, 0.0  ;;  %v7707_v38 = vadd.f32 %v7654_v49, %v14693_v47 }
 0x51e   : > { %v10747_v60 = vpack.c.bf16 %v9157_v56, %v9156_v12  ;;  %v8656_v19 = vpop.f32.mrf.mxu0  ;;  %v7976_v50 = vpop.f32.mrf.mxu3  ;;  %v7708_v56 = vadd.f32 %v7656_v0, %v14694_v24  ;;  %v8022_v32 = vadd.f32 %v7969_v30, %v7707_v38 }
 0x520   : > { %10799 = vst [vmem:[%s14421_s14 + $0x30] sm:$0xff] %v10747_v60   ;;  %v8023_v58 = vadd.f32 %v7971_v45, %v7708_v56  ;;  %v8704_v22 = vadd.f32 %v8651_v52, %v8022_v32 }
 0x521   : > { %v9067_v6 = vpop.f32.mrf.mxu1 }
 0x522   : > { %v9126_v20 = vadd.f32 %v9067_v6, %v8700_v33  ;;  %v7664_v7 = vpop.f32.mrf.mxu2  ;;  %v8705_v57 = vadd.f32 %v8653_v26, %v8023_v58  ;;  %v7709_v33 = vadd.f32 %v7659_v11, %v14695_v17 }
 0x523   : > { %v7711_v11 = vadd.f32 %v7664_v7, %v14288_v4 }
 0x524   : > { %9106 = vmatmul.bf16.gmra.mxu1 %v8958_v18  ;;  %v9158_v40 = vmax.f32 %v9126_v20, 0.0  ;;  %v14696_v20 = vld [vmem:[#allocation31_spill] sm:$0xff]  ;;  %v8024_v45 = vadd.f32 %v7974_v44, %v7709_v33 }
 0x526   : > { %v8658_v46 = vpop.f32.mrf.mxu0  ;;  %v7979_v13 = vpop.f32.mrf.mxu3 }
 0x527   : > { %v8026_v44 = vadd.f32 %v7979_v13, %v7711_v11 }
 0x529   : > { %v9069_v1 = vpop.f32.mrf.mxu1 }
 0x52a   : > { %v9127_v27 = vadd.f32 %v9069_v1, %v8701_v23  ;;  %v7666_v49 = vpop.f32.mrf.mxu2  ;;  %v7710_v23 = vadd.f32 %v7661_v61, %v14696_v20  ;;  %v8706_v1 = vadd.f32 %v8656_v19, %v8024_v45 }
 0x52c   : > { %v9159_v5 = vmax.f32 %v9127_v27, 0.0  ;;  %v8025_v52 = vadd.f32 %v7976_v50, %v7710_v23 }
 0x52e   : > { %v10752_v36 = vpack.c.bf16 %v9159_v5, %v9158_v40  ;;  %v8661_v31 = vpop.f32.mrf.mxu0  ;;  %v7981_v0 = vpop.f32.mrf.mxu3  ;;  %v8707_v5 = vadd.f32 %v8658_v46, %v8025_v52 }
 0x530   : > { %10800 = vst [vmem:[%s14421_s14 + $0x38] sm:$0xff] %v10752_v36  }
 0x531   : > { %v9072_v42 = vpop.f32.mrf.mxu1 }
 0x532   : > { %v9128_v55 = vadd.f32 %v9072_v42, %v8702_v35  ;;  %v7669_v36 = vpop.f32.mrf.mxu2  ;;  %v7712_v35 = vadd.f32 %v7666_v49, %v14300_v8 }
 0x533   : > { %v7713_v24 = vadd.f32 %v7669_v36, %v14325_v10 }
 0x534   : > { %v9160_v16 = vmax.f32 %v9128_v55, 0.0 }
 0x536   : > { %v8663_v27 = vpop.f32.mrf.mxu0  ;;  %v7984_v34 = vpop.f32.mrf.mxu3 }
 0x537   : > { %v8028_v32 = vadd.f32 %v7984_v34, %v7713_v24 }
 0x539   : > { %v9074_v51 = vpop.f32.mrf.mxu1 }
 0x53a   : > { %v9129_v29 = vadd.f32 %v9074_v51, %v8703_v63  ;;  %v7671_v55 = vpop.f32.mrf.mxu2  ;;  %v8027_v63 = vadd.f32 %v7981_v0, %v7712_v35  ;;  %v8708_v51 = vadd.f32 %v8661_v31, %v8026_v44 }
 0x53b   : > { %v7714_v56 = vadd.f32 %v7671_v55, %v14343_v59 }
 0x53c   : > { %v9161_v54 = vmax.f32 %v9129_v29, 0.0  ;;  %v8709_v61 = vadd.f32 %v8663_v27, %v8027_v63 }
 0x53e   : > { %v10757_v62 = vpack.c.bf16 %v9161_v54, %v9160_v16  ;;  %v8666_v39 = vpop.f32.mrf.mxu0  ;;  %v7986_v19 = vpop.f32.mrf.mxu3 }
 0x53f   : > { %v8029_v46 = vadd.f32 %v7986_v19, %v7714_v56  ;;  %v8710_v7 = vadd.f32 %v8666_v39, %v8028_v32 }
 0x540   : > { %10801 = vst [vmem:[%s14421_s14 + $0x40] sm:$0xff] %v10757_v62  }
 0x541   : > { %v9077_v12 = vpop.f32.mrf.mxu1 }
 0x542   : > { %v9130_v60 = vadd.f32 %v9077_v12, %v8704_v22  ;;  %v7674_v38 = vpop.f32.mrf.mxu2 }
 0x543   : > { %v7715_v10 = vadd.f32 %v7674_v38, %v14363_v28 }
 0x544   : > { %v9162_v6 = vmax.f32 %v9130_v60, 0.0 }
 0x546   : > { %v8668_v50 = vpop.f32.mrf.mxu0  ;;  %v7989_v12 = vpop.f32.mrf.mxu3 }
 0x547   : > { %v8711_v60 = vadd.f32 %v8668_v50, %v8029_v46  ;;  %v8030_v33 = vadd.f32 %v7989_v12, %v7715_v10 }
 0x549   : > { %v9079_v53 = vpop.f32.mrf.mxu1 }
 0x54a   : > { %v9131_v18 = vadd.f32 %v9079_v53, %v8705_v57  ;;  %v7676_v22 = vpop.f32.mrf.mxu2 }
 0x54b   : > { %v7716_v17 = vadd.f32 %v7676_v22, %v14374_v25 }
 0x54c   : > { %v9163_v2 = vmax.f32 %v9131_v18, 0.0 }
 0x54e   : > { %v10762_v48 = vpack.c.bf16 %v9163_v2, %v9162_v6  ;;  %v8671_v58 = vpop.f32.mrf.mxu0  ;;  %v7991_v57 = vpop.f32.mrf.mxu3 }
 0x54f   : > { %v8712_v20 = vadd.f32 %v8671_v58, %v8030_v33 }
 0x550   : > { %10802 = vst [vmem:[%s14421_s14 + $0x48] sm:$0xff] %v10762_v48  }
 0x551   : > { %v9082_v30 = vpop.f32.mrf.mxu1 }
 0x552   : > { %v9132_v40 = vadd.f32 %v9082_v30, %v8706_v1  ;;  %v7679_v49 = vpop.f32.mrf.mxu2  ;;  %v8031_v30 = vadd.f32 %v7991_v57, %v7716_v17 }
 0x554   : > { %v9164_v42 = vmax.f32 %v9132_v40, 0.0 }
 0x556   : > { %v8673_v48 = vpop.f32.mrf.mxu0  ;;  %v7994_v0 = vpop.f32.mrf.mxu3 }
 0x557   : > { %v8713_v45 = vadd.f32 %v8673_v48, %v8031_v30 }
 0x559   : > { %v9084_v26 = vpop.f32.mrf.mxu1 }
 0x55a   : > { %v9133_v43 = vadd.f32 %v9084_v26, %v8707_v5  ;;  %v7681_v40 = vpop.f32.mrf.mxu2 }
 0x55b   : > { %v7718_v25 = vadd.f32 %v7681_v40, %v14388_v15 }
 0x55c   : > { %v9165_v14 = vmax.f32 %v9133_v43, 0.0  ;;  %v7717_v43 = vadd.f32 %v7679_v49, %v14384_v41 }
 0x55e   : > { %v10767_v9 = vpack.c.bf16 %v9165_v14, %v9164_v42  ;;  %v8676_v52 = vpop.f32.mrf.mxu0  ;;  %v7996_v26 = vpop.f32.mrf.mxu3  ;;  %v8032_v42 = vadd.f32 %v7994_v0, %v7717_v43 }
 0x560   : > { %10803 = vst [vmem:[%s14421_s14 + $0x50] sm:$0xff] %v10767_v9   ;;  %v8033_v9 = vadd.f32 %v7996_v26, %v7718_v25  ;;  %v8714_v39 = vadd.f32 %v8676_v52, %v8032_v42 }
 0x561   : > { %v9087_v21 = vpop.f32.mrf.mxu1 }
 0x562   : > { %v9134_v29 = vadd.f32 %v9087_v21, %v8708_v51  ;;  %v7684_v11 = vpop.f32.mrf.mxu2 }
 0x564   : > { %v9166_v62 = vmax.f32 %v9134_v29, 0.0 }
 0x566   : > { %v8678_v14 = vpop.f32.mrf.mxu0  ;;  %v7999_v21 = vpop.f32.mrf.mxu3 }
 0x567   : > { %v8715_v44 = vadd.f32 %v8678_v14, %v8033_v9 }
 0x569   : > { %v9089_v16 = vpop.f32.mrf.mxu1 }
 0x56a   : > { %v9135_v54 = vadd.f32 %v9089_v16, %v8709_v61  ;;  %v7686_v41 = vpop.f32.mrf.mxu2  ;;  %v7719_v16 = vadd.f32 %v7684_v11, %v14396_v37 }
 0x56b   : > { %v7720_v50 = vadd.f32 %v7686_v41, %v14400_v3 }
 0x56c   : > { %v9167_v47 = vmax.f32 %v9135_v54, 0.0 }
 0x56e   : > { %v10772_v4 = vpack.c.bf16 %v9167_v47, %v9166_v62  ;;  %v8681_v19 = vpop.f32.mrf.mxu0  ;;  %v8001_v15 = vpop.f32.mrf.mxu3  ;;  %v8034_v62 = vadd.f32 %v7999_v21, %v7719_v16 }
 0x56f   : > { %v8035_v47 = vadd.f32 %v8001_v15, %v7720_v50 }
 0x570   : > { %10804 = vst [vmem:[%s14421_s14 + $0x58] sm:$0xff] %v10772_v4   ;;  %v8716_v4 = vadd.f32 %v8681_v19, %v8034_v62 }
 0x571   : > { %v9092_v8 = vpop.f32.mrf.mxu1 }
 0x572   : > { %v9136_v13 = vadd.f32 %v9092_v8, %v8710_v7 }
 0x574   : > { %v9168_v6 = vmax.f32 %v9136_v13, 0.0 }
 0x576   : > { %v8683_v38 = vpop.f32.mrf.mxu0 }
 0x577   : > { %v8717_v12 = vadd.f32 %v8683_v38, %v8035_v47 }
 0x579   : > { %v9094_v53 = vpop.f32.mrf.mxu1 }
 0x57a   : > { %v9137_v18 = vadd.f32 %v9094_v53, %v8711_v60 }
 0x57c   : > { %v9169_v2 = vmax.f32 %v9137_v18, 0.0 }
 0x57e   : > { %v10777_v31 = vpack.c.bf16 %v9169_v2, %v9168_v6 }
 0x580   : > { %10805 = vst [vmem:[%s14421_s14 + $0x60] sm:$0xff] %v10777_v31  }
 0x581   : > { %v9097_v59 = vpop.f32.mrf.mxu1 }
 0x582   : > { %v9138_v23 = vadd.f32 %v9097_v59, %v8712_v20 }
 0x584   : > { %v9170_v5 = vmax.f32 %v9138_v23, 0.0 }
 0x589   : > { %v9099_v1 = vpop.f32.mrf.mxu1 }
 0x58a   : > { %v9139_v27 = vadd.f32 %v9099_v1, %v8713_v45 }
 0x58c   : > { %v9171_v36 = vmax.f32 %v9139_v27, 0.0 }
 0x58e   : > { %v10782_v28 = vpack.c.bf16 %v9171_v36, %v9170_v5 }
 0x590   : > { %10806 = vst [vmem:[%s14421_s14 + $0x68] sm:$0xff] %v10782_v28  }
 0x591   : > { %v9102_v34 = vpop.f32.mrf.mxu1 }
 0x592   : > { %v9140_v35 = vadd.f32 %v9102_v34, %v8714_v39 }
 0x594   : > { %v9172_v51 = vmax.f32 %v9140_v35, 0.0 }
 0x599   : > { %v9104_v55 = vpop.f32.mrf.mxu1 }
 0x59a   : > { %v9141_v63 = vadd.f32 %v9104_v55, %v8715_v44 }
 0x59c   : > { %v9173_v29 = vmax.f32 %v9141_v63, 0.0 }
 0x59e   : > { %v10787_v61 = vpack.c.bf16 %v9173_v29, %v9172_v51 }
 0x5a0   : > { %10807 = vst [vmem:[%s14421_s14 + $0x70] sm:$0xff] %v10787_v61  }
 0x5a1   : > { %v9107_v54 = vpop.f32.mrf.mxu1 }
 0x5a2   : > { %v9142_v24 = vadd.f32 %v9107_v54, %v8716_v4 }
 0x5a4   : > { %v9174_v32 = vmax.f32 %v9142_v24, 0.0 }
 0x5a9   : > { %v9109_v8 = vpop.f32.mrf.mxu1 }
 0x5aa   : > { %v9143_v56 = vadd.f32 %v9109_v8, %v8717_v12 }
 0x5ac   : > { %v9175_v46 = vmax.f32 %v9143_v56, 0.0 }
 0x5ae   : > { %v10792_v58 = vpack.c.bf16 %v9175_v46, %v9174_v32 }
 0x5b0   : > { %10808 = vst [vmem:[%s14421_s14 + $0x78] sm:$0xff] %v10792_v58  }
 0x5b1 PF: > { %s15_s18 = sadd.s32 1, %s10872_s18  }
 0x5b2   : > { %p12_p4 = scmp.ge.s32.totalorder %s15_s18, 4  }
 0x5b4   :  { %14 = sbr.rel (!%p12_p4) target bundleno = 1 (0x1), region = 91 }

</bundles_post_ra>
